<compile_context>
chip_gen: v7x
topology: tpu7x:2x2x1
jax: 0.10.0
libtpu: 0.0.40
codegen_flags: <defaults>
</compile_context>

<pallas_src>
import functools
import math

import jax
import jax.numpy as jnp
from jax.experimental import pallas as pl
from jax.experimental.pallas import tpu as pltpu


# SMEM parameter-vector layout (all pre-folded host-side):
#  0: 1 - dt/tau_w          1: a*dt/tau_w          2: -(a*dt/tau_w)*u_rest
#  3: b*dt                  4: 1 - dt/tau          5: (dt/tau)*u_rest
#  6: r*dt/tau              7: delta_T*dt/tau      8: 1/delta_T
#  9: -theta_rh/delta_T    10: u_rest             11: threshold
# 12: theta_reset          13: trace_scale
# 14: trace_decay at global step 0 (carried-in buffer value)
# 15: trace_decay at steps > 0 (= exp(-dt/tau_s), what compute_decay() sets)
_N_PARAMS = 16


def _aelif_chunk_kernel(params_ref,                                  # SMEM (16,) f32
                        inc_ref,                                     # VMEM (T_CHUNK, tile_r, L) f32
                        u_in, w_in, s_in, spiked_in, trace_in,       # VMEM (tile_r, L)  initial state
                        u_out, w_out, s_out, spiked_out, trace_out,  # VMEM (tile_r, L)  resident over chunks
                        spikes_out,                                  # VMEM (T_CHUNK, tile_r, L) int8
                        *, t_chunk: int, use_exp: bool):
    c = pl.program_id(1)                # time-chunk index (inner, sequential grid axis)

    # First chunk of this spatial tile: seed the chunk-resident output blocks from the
    # carried-in state.  State out_specs map to the same block for every chunk, so these
    # buffers stay in VMEM across the whole time loop and hit HBM once per spatial tile.
    @pl.when(c == 0)
    def _seed():
        u_out[...] = u_in[...]
        w_out[...] = w_in[...]
        s_out[...] = s_in[...]
        spiked_out[...] = spiked_in[...]
        trace_out[...] = trace_in[...]

    # Hoisted scalar parameters (read once per chunk, not per step).
    c_w1 = params_ref[0]          # 1 - dt/tau_w
    a_dtw = params_ref[1]         # a*dt/tau_w
    c_w0 = params_ref[2]          # -(a*dt/tau_w)*u_rest
    b_dt = params_ref[3]          # b*dt
    c_u1 = params_ref[4]          # 1 - dt/tau
    c_u0 = params_ref[5]          # (dt/tau)*u_rest
    r_dtt = params_ref[6]         # r*dt/tau
    dT_dtt = params_ref[7]        # delta_T*dt/tau
    inv_dT = params_ref[8]        # 1/delta_T
    c_e = params_ref[9]           # -theta_rh/delta_T
    u_rest = params_ref[10]
    threshold = params_ref[11]
    theta_reset = params_ref[12]
    trace_scale = params_ref[13]
    td_init = params_ref[14]      # carried-in trace_decay (used only on global step 0)
    td_rest = params_ref[15]      # exp(-dt/tau_s)         (what compute_decay() sets)

    # Chunk-entry loads: register-carried state for the whole chunk.
    u = u_out[...]
    w = w_out[...]
    trace = trace_out[...]
    s_f = s_out[...].astype(jnp.float32)        # previous-step spike as 0/1 float
    spiked_b = spiked_out[...] != 0             # 'spiked' latch as bool

    # Fully-unrolled inner time loop (t_chunk is a small static constant, 4..16): all
    # spikes_out indices are static, state flows through registers.
    for t_local in range(t_chunk):
        i_in = inc_ref[t_local]                 # the only per-step tile load

        # compute_adaptation(): w += dt/tau_w * (a*(u - u_rest) - w + b*tau_w*int(s_prev))
        w = c_w1 * w + a_dtw * u + c_w0 + b_dt * s_f

        # compute_potential(): leaky + exponential integration (uses updated w)
        u_new = c_u1 * u + c_u0 + r_dtt * (i_in - w)
        if use_exp:   # delta_T != 0 resolved at trace time
            e_arg = jnp.minimum(u * inv_dT + c_e, 80.0)     # clamp: same reset outcome, no inf
            u_new = u_new + dT_dtt * jnp.exp(e_arg)

        # compute_spike() + refractory_and_reset() with the 'spiked' latch
        s_new = jnp.logical_and(u_new >= threshold, jnp.logical_not(spiked_b))
        spiked_tmp = jnp.logical_or(spiked_b, s_new)
        do_reset = jnp.logical_and(u_new >= theta_reset, spiked_tmp)
        u = jnp.where(do_reset, u_rest, u_new)
        spiked_b = jnp.logical_and(spiked_tmp, jnp.logical_not(do_reset))
        s_f = s_new.astype(jnp.float32)

        # NeuralPopulation.forward(): additive spike trace with the *old* trace_decay.
        # Global step 0 uses the carried-in trace_decay buffer; later steps use the value
        # compute_decay() set after step 1.
        td = jnp.where(c == 0, td_init, td_rest) if t_local == 0 else td_rest
        trace = trace * td + trace_scale * s_f

        # Per-step spike stream (int8 cast only at the store).
        spikes_out[t_local] = s_new.astype(jnp.int8)

    # Chunk-exit stores.
    u_out[...] = u
    w_out[...] = w
    trace_out[...] = trace
    s_out[...] = s_f.astype(jnp.int8)
    spiked_out[...] = spiked_b.astype(jnp.int8)


def _lane_dense_shape(n_elems: int, max_lanes: int = 1024):
    """Pick (rows, lanes) with lanes a large multiple of 128 (lane-dense layout)."""
    if n_elems % 128 != 0:
        return None
    lanes = 128
    while (n_elems % (2 * lanes) == 0) and (2 * lanes <= max_lanes) and (n_elems // (2 * lanes) >= 8):
        lanes *= 2
    return n_elems // lanes, lanes


def aelif_simulate(in_current, u, w, s, spiked, trace, trace_decay, params, *,
                   t_chunk=8, tile_r=None):
    """Run T fused AELIFPopulation.forward() steps in a single pallas_call.

    in_current : f32 [T, H, W]   per-step injected current ("traces" arg of forward()).
    u, w, trace: f32 [H, W];   s, spiked: int8 (0/1) [H, W].
    trace_decay: scalar (current value of the trace_decay buffer; 1.0 after reset).
    params     : dict of python-float hyper-parameters (incl. tau_s).

    Returns (u, w, s, spiked, trace, spikes[T,H,W] int8, trace_decay_new).
    """
    T, H, W = in_current.shape
    n = H * W

    # ---- lane-dense layout: flatten the population plane to (R, L), L a multiple of 128 ----
    rl = _lane_dense_shape(n)
    R, L = (H, W) if rl is None else rl
    cur = in_current.reshape(T, R, L)
    u2, w2, tr2 = (x.reshape(R, L) for x in (u, w, trace))
    s2, sp2 = (x.reshape(R, L) for x in (s, spiked))

    # ---- spatial tiling ----
    if tile_r is None:
        tile_r = R        # single tile: best on single-TC v5e/v6e
        # TODO(synk): on v7x pick tile_r = R // 2 (nr even) so both TensorCores get work.
    assert R % tile_r == 0
    if tile_r != R:
        # int8 state / spike blocks need a sublane multiple of 32 unless they span full R
        assert tile_r % 32 == 0 and L % 128 == 0
    nr = R // tile_r

    # ---- time chunking ----
    t_chunk = max(1, min(int(t_chunk), T))
    while T % t_chunk != 0:
        t_chunk -= 1
    n_chunks = T // t_chunk

    # ---- host-folded hyper-parameters ----
    a, b = float(params["a"]), float(params["b"])
    tau_w, tau = float(params["tau_w"]), float(params["tau"])
    dt, r = float(params["dt"]), float(params["r"])
    delta_T = float(params["delta_T"])
    u_rest = float(params["u_rest"])
    use_exp = delta_T != 0.0
    inv_dT = (1.0 / delta_T) if use_exp else 0.0
    a_dtw = a * dt / tau_w
    dtt = dt / tau
    td_rest = math.exp(-dt / float(params["tau_s"]))   # compute_decay(): exp(-dt/tau_s)

    pvec = jnp.stack([
        jnp.float32(1.0 - dt / tau_w), jnp.float32(a_dtw), jnp.float32(-a_dtw * u_rest),
        jnp.float32(b * dt), jnp.float32(1.0 - dtt), jnp.float32(dtt * u_rest),
        jnp.float32(r * dtt), jnp.float32(delta_T * dtt), jnp.float32(inv_dT),
        jnp.float32(-float(params["theta_rh"]) * inv_dT), jnp.float32(u_rest),
        jnp.float32(params["threshold"]), jnp.float32(params["theta_reset"]),
        jnp.float32(params["trace_scale"]),
        jnp.asarray(trace_decay, jnp.float32), jnp.float32(td_rest),
    ])

    # state blocks: same block index for every chunk -> VMEM-resident across the time loop
    state_spec = pl.BlockSpec((tile_r, L), lambda rb, cb: (rb, 0))
    # streamed blocks: a fresh (t_chunk, tile_r, L) slab per grid step
    stream_spec = pl.BlockSpec((t_chunk, tile_r, L), lambda rb, cb: (cb, rb, 0))

    out_shapes = (
        jax.ShapeDtypeStruct((R, L), jnp.float32),   # u
        jax.ShapeDtypeStruct((R, L), jnp.float32),   # w
        jax.ShapeDtypeStruct((R, L), jnp.int8),      # s
        jax.ShapeDtypeStruct((R, L), jnp.int8),      # spiked
        jax.ShapeDtypeStruct((R, L), jnp.float32),   # trace
        jax.ShapeDtypeStruct((T, R, L), jnp.int8),   # per-step spikes
    )

    # VMEM budget (bytes): double-buffered streams + state in/out (default double buffers);
    # explicit limit so the config also ports to v7x's 64 MiB physical VMEM.
    stream_tile = t_chunk * tile_r * L * (4 + 1)          # f32 current + int8 spikes
    state_tile = tile_r * L * (3 * 4 + 2 * 1)             # u,w,trace f32 + s,spiked int8
    vmem_needed = 2 * stream_tile + 4 * state_tile
    vmem_limit = int(min(64 * 1024 * 1024, max(32 * 1024 * 1024, 2 * vmem_needed)))

    u_n, w_n, s_n, spiked_n, trace_n, spikes = pl.pallas_call(
        functools.partial(_aelif_chunk_kernel, t_chunk=t_chunk, use_exp=use_exp),
        grid=(nr, n_chunks),
        in_specs=[pl.BlockSpec(memory_space=pltpu.MemorySpace.SMEM),   # hyper-parameter vector
                  stream_spec,                                         # in_current chunk
                  state_spec, state_spec, state_spec, state_spec, state_spec],
        out_specs=(state_spec, state_spec, state_spec, state_spec, state_spec, stream_spec),
        out_shape=out_shapes,
        # u, w, s, spiked, trace update in place (inputs 2..6 -> outputs 0..4)
        input_output_aliases={2: 0, 3: 1, 4: 2, 5: 3, 6: 4},
        compiler_params=pltpu.CompilerParams(
            dimension_semantics=("parallel", "arbitrary"),   # spatial tiles parallel, time sequential
            vmem_limit_bytes=vmem_limit),
    )(pvec, cur, u2, w2, s2, sp2, tr2)

    return (u_n.reshape(H, W), w_n.reshape(H, W), s_n.reshape(H, W),
            spiked_n.reshape(H, W), trace_n.reshape(H, W),
            spikes.reshape(T, H, W), jnp.float32(td_rest))


if __name__ == "__main__":
    # Population topology (1, H, W) -> [H, W] plane; T simulation steps fused in-kernel.
    T, H, W = 16, 64, 128
    T_CHUNK = 8    # 2 time chunks -> exercises the chunked inner grid axis

    # AELIFPopulation default hyper-parameters (from __init__/_init_kwargs)
    params = dict(a=0.1, b=0.1, tau_w=1.0, threshold=-50.0, u_rest=-65.0, dt=1.0,
                  r=1.0, tau=50.0, theta_rh=-55.0, theta_reset=-20.0, delta_T=1.0,
                  tau_s=10.0, trace_scale=1.0)
    assert params["u_rest"] < params["theta_rh"] < params["threshold"] < params["theta_reset"]

    key = jax.random.PRNGKey(0)
    in_current = 20.0 * jax.random.uniform(key, (T, H, W), dtype=jnp.float32)

    # Initial state, exactly as in reset_state_variables / __init__
    u0 = jnp.full((H, W), params["u_rest"], dtype=jnp.float32)   # potential = u_rest
    w0 = jnp.zeros((H, W), dtype=jnp.float32)                    # w = 0
    s0 = jnp.zeros((H, W), dtype=jnp.int8)                       # s = False
    spiked0 = jnp.zeros((H, W), dtype=jnp.int8)                  # spiked = False
    trace0 = jnp.zeros((H, W), dtype=jnp.float32)                # traces = 0
    trace_decay0 = jnp.float32(1.0)                              # ones_like(tau_s)

    u, w, s, spiked, trace, spikes, trace_decay = aelif_simulate(
        in_current, u0, w0, s0, spiked0, trace0, trace_decay0, params, t_chunk=T_CHUNK)

    jax.block_until_ready((u, w, s, spiked, trace, spikes, trace_decay))
    print("KERNEL_OK")
</pallas_src>

<mosaic_0001>
module attributes {stable_mosaic.version = 11 : i64} {
  func.func @_aelif_chunk_kernel(%arg0: i32, %arg1: i32, %arg2: memref<16xf32, #tpu.memory_space<smem>>, %arg3: memref<8x8x1024xf32, #tpu.memory_space<vmem>>, %arg4: memref<8x1024xf32, #tpu.memory_space<vmem>>, %arg5: memref<8x1024xf32, #tpu.memory_space<vmem>>, %arg6: memref<8x1024xi8, #tpu.memory_space<vmem>>, %arg7: memref<8x1024xi8, #tpu.memory_space<vmem>>, %arg8: memref<8x1024xf32, #tpu.memory_space<vmem>>, %arg9: memref<8x1024xf32, #tpu.memory_space<vmem>>, %arg10: memref<8x1024xf32, #tpu.memory_space<vmem>>, %arg11: memref<8x1024xi8, #tpu.memory_space<vmem>>, %arg12: memref<8x1024xi8, #tpu.memory_space<vmem>>, %arg13: memref<8x1024xf32, #tpu.memory_space<vmem>>, %arg14: memref<8x8x1024xi8, #tpu.memory_space<vmem>>) attributes {dimension_semantics = [#tpu.dimension_semantics<parallel>, #tpu.dimension_semantics<arbitrary>], iteration_bounds = array<i64: 1, 2>, scalar_prefetch = 0 : i64, scratch_operands = 0 : i64, tpu.core_type = #tpu.core_type<tc>, window_params = [{transform_indices = @transform_0, window_bounds = array<i64: 16>}, {transform_indices = @transform_1, window_bounds = array<i64: 8, 8, 1024>}, {transform_indices = @transform_2, window_bounds = array<i64: 8, 1024>}, {transform_indices = @transform_3, window_bounds = array<i64: 8, 1024>}, {transform_indices = @transform_4, window_bounds = array<i64: 8, 1024>}, {transform_indices = @transform_5, window_bounds = array<i64: 8, 1024>}, {transform_indices = @transform_6, window_bounds = array<i64: 8, 1024>}, {transform_indices = @transform_7, window_bounds = array<i64: 8, 1024>}, {transform_indices = @transform_8, window_bounds = array<i64: 8, 1024>}, {transform_indices = @transform_9, window_bounds = array<i64: 8, 1024>}, {transform_indices = @transform_10, window_bounds = array<i64: 8, 1024>}, {transform_indices = @transform_11, window_bounds = array<i64: 8, 1024>}, {transform_indices = @transform_12, window_bounds = array<i64: 8, 8, 1024>}]} {
    %c0_i32 = arith.constant 0 : i32
    %0 = arith.cmpi eq, %arg1, %c0_i32 : i32
    %1 = arith.extui %0 : i1 to i32
    %c0_i32_0 = arith.constant 0 : i32
    %2 = arith.cmpi ne, %1, %c0_i32_0 : i32
    scf.if %2 {
      %c0_93 = arith.constant 0 : index
      %c0_94 = arith.constant 0 : index
      %460 = vector.load %arg4[%c0_93, %c0_94] : memref<8x1024xf32, #tpu.memory_space<vmem>>, vector<8x1024xf32>
      %c0_95 = arith.constant 0 : index
      %c0_96 = arith.constant 0 : index
      %461 = vector.load %arg9[%c0_95, %c0_96] : memref<8x1024xf32, #tpu.memory_space<vmem>>, vector<8x1024xf32>
      tpu.vector_store %arg9[%c0_95, %c0_96], %460 {strides = array<i32>} : memref<8x1024xf32, #tpu.memory_space<vmem>>, vector<8x1024xf32>,
      %c0_97 = arith.constant 0 : index
      %c0_98 = arith.constant 0 : index
      %462 = vector.load %arg5[%c0_97, %c0_98] : memref<8x1024xf32, #tpu.memory_space<vmem>>, vector<8x1024xf32>
      %c0_99 = arith.constant 0 : index
      %c0_100 = arith.constant 0 : index
      %463 = vector.load %arg10[%c0_99, %c0_100] : memref<8x1024xf32, #tpu.memory_space<vmem>>, vector<8x1024xf32>
      tpu.vector_store %arg10[%c0_99, %c0_100], %462 {strides = array<i32>} : memref<8x1024xf32, #tpu.memory_space<vmem>>, vector<8x1024xf32>,
      %c0_101 = arith.constant 0 : index
      %c0_102 = arith.constant 0 : index
      %464 = vector.load %arg6[%c0_101, %c0_102] : memref<8x1024xi8, #tpu.memory_space<vmem>>, vector<8x1024xi8>
      %c0_103 = arith.constant 0 : index
      %c0_104 = arith.constant 0 : index
      %465 = vector.load %arg11[%c0_103, %c0_104] : memref<8x1024xi8, #tpu.memory_space<vmem>>, vector<8x1024xi8>
      tpu.vector_store %arg11[%c0_103, %c0_104], %464 {strides = array<i32>} : memref<8x1024xi8, #tpu.memory_space<vmem>>, vector<8x1024xi8>,
      %c0_105 = arith.constant 0 : index
      %c0_106 = arith.constant 0 : index
      %466 = vector.load %arg7[%c0_105, %c0_106] : memref<8x1024xi8, #tpu.memory_space<vmem>>, vector<8x1024xi8>
      %c0_107 = arith.constant 0 : index
      %c0_108 = arith.constant 0 : index
      %467 = vector.load %arg12[%c0_107, %c0_108] : memref<8x1024xi8, #tpu.memory_space<vmem>>, vector<8x1024xi8>
      tpu.vector_store %arg12[%c0_107, %c0_108], %466 {strides = array<i32>} : memref<8x1024xi8, #tpu.memory_space<vmem>>, vector<8x1024xi8>,
      %c0_109 = arith.constant 0 : index
      %c0_110 = arith.constant 0 : index
      %468 = vector.load %arg8[%c0_109, %c0_110] : memref<8x1024xf32, #tpu.memory_space<vmem>>, vector<8x1024xf32>
      %c0_111 = arith.constant 0 : index
      %c0_112 = arith.constant 0 : index
      %469 = vector.load %arg13[%c0_111, %c0_112] : memref<8x1024xf32, #tpu.memory_space<vmem>>, vector<8x1024xf32>
      tpu.vector_store %arg13[%c0_111, %c0_112], %468 {strides = array<i32>} : memref<8x1024xf32, #tpu.memory_space<vmem>>, vector<8x1024xf32>,
    } else {
    }
    %c0 = arith.constant 0 : index
    %3 = memref.load %arg2[%c0] : memref<16xf32, #tpu.memory_space<smem>>
    %c1 = arith.constant 1 : index
    %4 = memref.load %arg2[%c1] : memref<16xf32, #tpu.memory_space<smem>>
    %c2 = arith.constant 2 : index
    %5 = memref.load %arg2[%c2] : memref<16xf32, #tpu.memory_space<smem>>
    %c3 = arith.constant 3 : index
    %6 = memref.load %arg2[%c3] : memref<16xf32, #tpu.memory_space<smem>>
    %c4 = arith.constant 4 : index
    %7 = memref.load %arg2[%c4] : memref<16xf32, #tpu.memory_space<smem>>
    %c5 = arith.constant 5 : index
    %8 = memref.load %arg2[%c5] : memref<16xf32, #tpu.memory_space<smem>>
    %c6 = arith.constant 6 : index
    %9 = memref.load %arg2[%c6] : memref<16xf32, #tpu.memory_space<smem>>
    %c7 = arith.constant 7 : index
    %10 = memref.load %arg2[%c7] : memref<16xf32, #tpu.memory_space<smem>>
    %c8 = arith.constant 8 : index
    %11 = memref.load %arg2[%c8] : memref<16xf32, #tpu.memory_space<smem>>
    %c9 = arith.constant 9 : index
    %12 = memref.load %arg2[%c9] : memref<16xf32, #tpu.memory_space<smem>>
    %c10 = arith.constant 10 : index
    %13 = memref.load %arg2[%c10] : memref<16xf32, #tpu.memory_space<smem>>
    %c11 = arith.constant 11 : index
    %14 = memref.load %arg2[%c11] : memref<16xf32, #tpu.memory_space<smem>>
    %c12 = arith.constant 12 : index
    %15 = memref.load %arg2[%c12] : memref<16xf32, #tpu.memory_space<smem>>
    %c13 = arith.constant 13 : index
    %16 = memref.load %arg2[%c13] : memref<16xf32, #tpu.memory_space<smem>>
    %c14 = arith.constant 14 : index
    %17 = memref.load %arg2[%c14] : memref<16xf32, #tpu.memory_space<smem>>
    %c15 = arith.constant 15 : index
    %18 = memref.load %arg2[%c15] : memref<16xf32, #tpu.memory_space<smem>>
    %c0_1 = arith.constant 0 : index
    %c0_2 = arith.constant 0 : index
    %19 = vector.load %arg9[%c0_1, %c0_2] : memref<8x1024xf32, #tpu.memory_space<vmem>>, vector<8x1024xf32>
    %c0_3 = arith.constant 0 : index
    %c0_4 = arith.constant 0 : index
    %20 = vector.load %arg10[%c0_3, %c0_4] : memref<8x1024xf32, #tpu.memory_space<vmem>>, vector<8x1024xf32>
    %c0_5 = arith.constant 0 : index
    %c0_6 = arith.constant 0 : index
    %21 = vector.load %arg13[%c0_5, %c0_6] : memref<8x1024xf32, #tpu.memory_space<vmem>>, vector<8x1024xf32>
    %c0_7 = arith.constant 0 : index
    %c0_8 = arith.constant 0 : index
    %22 = vector.load %arg11[%c0_7, %c0_8] : memref<8x1024xi8, #tpu.memory_space<vmem>>, vector<8x1024xi8>
    %23 = arith.sitofp %22 : vector<8x1024xi8> to vector<8x1024xf32>
    %c0_9 = arith.constant 0 : index
    %c0_10 = arith.constant 0 : index
    %24 = vector.load %arg12[%c0_9, %c0_10] : memref<8x1024xi8, #tpu.memory_space<vmem>>, vector<8x1024xi8>
    %c0_i8 = arith.constant 0 : i8
    %25 = vector.broadcast %c0_i8 : i8 to vector<8x1024xi8>
    %26 = arith.cmpi ne, %24, %25 : vector<8x1024xi8>
    %c0_11 = arith.constant 0 : index
    %c0_12 = arith.constant 0 : index
    %c0_13 = arith.constant 0 : index
    %27 = vector.load %arg3[%c0_11, %c0_12, %c0_13] : memref<8x8x1024xf32, #tpu.memory_space<vmem>>, vector<1x8x1024xf32>
    %28 = vector.shape_cast %27 : vector<1x8x1024xf32> to vector<8x1024xf32>
    %29 = vector.broadcast %3 : f32 to vector<8x1024xf32>
    %30 = arith.mulf %29, %20 : vector<8x1024xf32>
    %31 = vector.broadcast %4 : f32 to vector<8x1024xf32>
    %32 = arith.mulf %31, %19 : vector<8x1024xf32>
    %33 = arith.addf %30, %32 : vector<8x1024xf32>
    %34 = vector.broadcast %5 : f32 to vector<8x1024xf32>
    %35 = arith.addf %33, %34 : vector<8x1024xf32>
    %36 = vector.broadcast %6 : f32 to vector<8x1024xf32>
    %37 = arith.mulf %36, %23 : vector<8x1024xf32>
    %38 = arith.addf %35, %37 : vector<8x1024xf32>
    %39 = vector.broadcast %7 : f32 to vector<8x1024xf32>
    %40 = arith.mulf %39, %19 : vector<8x1024xf32>
    %41 = vector.broadcast %8 : f32 to vector<8x1024xf32>
    %42 = arith.addf %40, %41 : vector<8x1024xf32>
    %43 = arith.subf %28, %38 : vector<8x1024xf32>
    %44 = vector.broadcast %9 : f32 to vector<8x1024xf32>
    %45 = arith.mulf %44, %43 : vector<8x1024xf32>
    %46 = arith.addf %42, %45 : vector<8x1024xf32>
    %47 = vector.broadcast %11 : f32 to vector<8x1024xf32>
    %48 = arith.mulf %19, %47 : vector<8x1024xf32>
    %49 = vector.broadcast %12 : f32 to vector<8x1024xf32>
    %50 = arith.addf %48, %49 : vector<8x1024xf32>
    %cst = arith.constant 8.000000e+01 : f32
    %51 = vector.broadcast %cst : f32 to vector<8x1024xf32>
    %52 = arith.minimumf %50, %51 : vector<8x1024xf32>
    %53 = math.exp %52 : vector<8x1024xf32>
    %54 = vector.broadcast %10 : f32 to vector<8x1024xf32>
    %55 = arith.mulf %54, %53 : vector<8x1024xf32>
    %56 = arith.addf %46, %55 : vector<8x1024xf32>
    %57 = vector.broadcast %14 : f32 to vector<8x1024xf32>
    %58 = arith.cmpf oge, %56, %57 : vector<8x1024xf32>
    %cst_14 = arith.constant dense<true> : vector<8x1024xi1>
    %59 = arith.xori %26, %cst_14 : vector<8x1024xi1>
    %60 = arith.andi %58, %59 : vector<8x1024xi1>
    %61 = arith.ori %26, %60 : vector<8x1024xi1>
    %62 = vector.broadcast %15 : f32 to vector<8x1024xf32>
    %63 = arith.cmpf oge, %56, %62 : vector<8x1024xf32>
    %64 = arith.andi %63, %61 : vector<8x1024xi1>
    %65 = vector.broadcast %13 : f32 to vector<8x1024xf32>
    %66 = arith.select %64, %65, %56 : vector<8x1024xi1>, vector<8x1024xf32>
    %cst_15 = arith.constant dense<true> : vector<8x1024xi1>
    %67 = arith.xori %64, %cst_15 : vector<8x1024xi1>
    %68 = arith.andi %61, %67 : vector<8x1024xi1>
    %69 = arith.extui %60 : vector<8x1024xi1> to vector<8x1024xi32>
    %70 = arith.sitofp %69 : vector<8x1024xi32> to vector<8x1024xf32>
    %c0_i32_16 = arith.constant 0 : i32
    %71 = arith.cmpi eq, %arg1, %c0_i32_16 : i32
    %72 = arith.select %71, %17, %18 : f32
    %73 = vector.broadcast %72 : f32 to vector<8x1024xf32>
    %74 = arith.mulf %21, %73 : vector<8x1024xf32>
    %75 = vector.broadcast %16 : f32 to vector<8x1024xf32>
    %76 = arith.mulf %75, %70 : vector<8x1024xf32>
    %77 = arith.addf %74, %76 : vector<8x1024xf32>
    %78 = arith.extui %60 : vector<8x1024xi1> to vector<8x1024xi8>
    %c0_17 = arith.constant 0 : index
    %c0_18 = arith.constant 0 : index
    %c0_19 = arith.constant 0 : index
    %79 = vector.load %arg14[%c0_17, %c0_18, %c0_19] : memref<8x8x1024xi8, #tpu.memory_space<vmem>>, vector<1x8x1024xi8>
    %80 = vector.shape_cast %79 : vector<1x8x1024xi8> to vector<8x1024xi8>
    %81 = vector.shape_cast %78 : vector<8x1024xi8> to vector<1x8x1024xi8>
    tpu.vector_store %arg14[%c0_17, %c0_18, %c0_19], %81 {strides = array<i32>} : memref<8x8x1024xi8, #tpu.memory_space<vmem>>, vector<1x8x1024xi8>,
    %c1_20 = arith.constant 1 : index
    %c0_21 = arith.constant 0 : index
    %c0_22 = arith.constant 0 : index
    %82 = vector.load %arg3[%c1_20, %c0_21, %c0_22] : memref<8x8x1024xf32, #tpu.memory_space<vmem>>, vector<1x8x1024xf32>
    %83 = vector.shape_cast %82 : vector<1x8x1024xf32> to vector<8x1024xf32>
    %84 = vector.broadcast %3 : f32 to vector<8x1024xf32>
    %85 = arith.mulf %84, %38 : vector<8x1024xf32>
    %86 = vector.broadcast %4 : f32 to vector<8x1024xf32>
    %87 = arith.mulf %86, %66 : vector<8x1024xf32>
    %88 = arith.addf %85, %87 : vector<8x1024xf32>
    %89 = vector.broadcast %5 : f32 to vector<8x1024xf32>
    %90 = arith.addf %88, %89 : vector<8x1024xf32>
    %91 = vector.broadcast %6 : f32 to vector<8x1024xf32>
    %92 = arith.mulf %91, %70 : vector<8x1024xf32>
    %93 = arith.addf %90, %92 : vector<8x1024xf32>
    %94 = vector.broadcast %7 : f32 to vector<8x1024xf32>
    %95 = arith.mulf %94, %66 : vector<8x1024xf32>
    %96 = vector.broadcast %8 : f32 to vector<8x1024xf32>
    %97 = arith.addf %95, %96 : vector<8x1024xf32>
    %98 = arith.subf %83, %93 : vector<8x1024xf32>
    %99 = vector.broadcast %9 : f32 to vector<8x1024xf32>
    %100 = arith.mulf %99, %98 : vector<8x1024xf32>
    %101 = arith.addf %97, %100 : vector<8x1024xf32>
    %102 = vector.broadcast %11 : f32 to vector<8x1024xf32>
    %103 = arith.mulf %66, %102 : vector<8x1024xf32>
    %104 = vector.broadcast %12 : f32 to vector<8x1024xf32>
    %105 = arith.addf %103, %104 : vector<8x1024xf32>
    %cst_23 = arith.constant 8.000000e+01 : f32
    %106 = vector.broadcast %cst_23 : f32 to vector<8x1024xf32>
    %107 = arith.minimumf %105, %106 : vector<8x1024xf32>
    %108 = math.exp %107 : vector<8x1024xf32>
    %109 = vector.broadcast %10 : f32 to vector<8x1024xf32>
    %110 = arith.mulf %109, %108 : vector<8x1024xf32>
    %111 = arith.addf %101, %110 : vector<8x1024xf32>
    %112 = vector.broadcast %14 : f32 to vector<8x1024xf32>
    %113 = arith.cmpf oge, %111, %112 : vector<8x1024xf32>
    %cst_24 = arith.constant dense<true> : vector<8x1024xi1>
    %114 = arith.xori %68, %cst_24 : vector<8x1024xi1>
    %115 = arith.andi %113, %114 : vector<8x1024xi1>
    %116 = arith.ori %68, %115 : vector<8x1024xi1>
    %117 = vector.broadcast %15 : f32 to vector<8x1024xf32>
    %118 = arith.cmpf oge, %111, %117 : vector<8x1024xf32>
    %119 = arith.andi %118, %116 : vector<8x1024xi1>
    %120 = vector.broadcast %13 : f32 to vector<8x1024xf32>
    %121 = arith.select %119, %120, %111 : vector<8x1024xi1>, vector<8x1024xf32>
    %cst_25 = arith.constant dense<true> : vector<8x1024xi1>
    %122 = arith.xori %119, %cst_25 : vector<8x1024xi1>
    %123 = arith.andi %116, %122 : vector<8x1024xi1>
    %124 = arith.extui %115 : vector<8x1024xi1> to vector<8x1024xi32>
    %125 = arith.sitofp %124 : vector<8x1024xi32> to vector<8x1024xf32>
    %126 = vector.broadcast %18 : f32 to vector<8x1024xf32>
    %127 = arith.mulf %77, %126 : vector<8x1024xf32>
    %128 = vector.broadcast %16 : f32 to vector<8x1024xf32>
    %129 = arith.mulf %128, %125 : vector<8x1024xf32>
    %130 = arith.addf %127, %129 : vector<8x1024xf32>
    %131 = arith.extui %115 : vector<8x1024xi1> to vector<8x1024xi8>
    %c1_26 = arith.constant 1 : index
    %c0_27 = arith.constant 0 : index
    %c0_28 = arith.constant 0 : index
    %132 = vector.load %arg14[%c1_26, %c0_27, %c0_28] : memref<8x8x1024xi8, #tpu.memory_space<vmem>>, vector<1x8x1024xi8>
    %133 = vector.shape_cast %132 : vector<1x8x1024xi8> to vector<8x1024xi8>
    %134 = vector.shape_cast %131 : vector<8x1024xi8> to vector<1x8x1024xi8>
    tpu.vector_store %arg14[%c1_26, %c0_27, %c0_28], %134 {strides = array<i32>} : memref<8x8x1024xi8, #tpu.memory_space<vmem>>, vector<1x8x1024xi8>,
    %c2_29 = arith.constant 2 : index
    %c0_30 = arith.constant 0 : index
    %c0_31 = arith.constant 0 : index
    %135 = vector.load %arg3[%c2_29, %c0_30, %c0_31] : memref<8x8x1024xf32, #tpu.memory_space<vmem>>, vector<1x8x1024xf32>
    %136 = vector.shape_cast %135 : vector<1x8x1024xf32> to vector<8x1024xf32>
    %137 = vector.broadcast %3 : f32 to vector<8x1024xf32>
    %138 = arith.mulf %137, %93 : vector<8x1024xf32>
    %139 = vector.broadcast %4 : f32 to vector<8x1024xf32>
    %140 = arith.mulf %139, %121 : vector<8x1024xf32>
    %141 = arith.addf %138, %140 : vector<8x1024xf32>
    %142 = vector.broadcast %5 : f32 to vector<8x1024xf32>
    %143 = arith.addf %141, %142 : vector<8x1024xf32>
    %144 = vector.broadcast %6 : f32 to vector<8x1024xf32>
    %145 = arith.mulf %144, %125 : vector<8x1024xf32>
    %146 = arith.addf %143, %145 : vector<8x1024xf32>
    %147 = vector.broadcast %7 : f32 to vector<8x1024xf32>
    %148 = arith.mulf %147, %121 : vector<8x1024xf32>
    %149 = vector.broadcast %8 : f32 to vector<8x1024xf32>
    %150 = arith.addf %148, %149 : vector<8x1024xf32>
    %151 = arith.subf %136, %146 : vector<8x1024xf32>
    %152 = vector.broadcast %9 : f32 to vector<8x1024xf32>
    %153 = arith.mulf %152, %151 : vector<8x1024xf32>
    %154 = arith.addf %150, %153 : vector<8x1024xf32>
    %155 = vector.broadcast %11 : f32 to vector<8x1024xf32>
    %156 = arith.mulf %121, %155 : vector<8x1024xf32>
    %157 = vector.broadcast %12 : f32 to vector<8x1024xf32>
    %158 = arith.addf %156, %157 : vector<8x1024xf32>
    %cst_32 = arith.constant 8.000000e+01 : f32
    %159 = vector.broadcast %cst_32 : f32 to vector<8x1024xf32>
    %160 = arith.minimumf %158, %159 : vector<8x1024xf32>
    %161 = math.exp %160 : vector<8x1024xf32>
    %162 = vector.broadcast %10 : f32 to vector<8x1024xf32>
    %163 = arith.mulf %162, %161 : vector<8x1024xf32>
    %164 = arith.addf %154, %163 : vector<8x1024xf32>
    %165 = vector.broadcast %14 : f32 to vector<8x1024xf32>
    %166 = arith.cmpf oge, %164, %165 : vector<8x1024xf32>
    %cst_33 = arith.constant dense<true> : vector<8x1024xi1>
    %167 = arith.xori %123, %cst_33 : vector<8x1024xi1>
    %168 = arith.andi %166, %167 : vector<8x1024xi1>
    %169 = arith.ori %123, %168 : vector<8x1024xi1>
    %170 = vector.broadcast %15 : f32 to vector<8x1024xf32>
    %171 = arith.cmpf oge, %164, %170 : vector<8x1024xf32>
    %172 = arith.andi %171, %169 : vector<8x1024xi1>
    %173 = vector.broadcast %13 : f32 to vector<8x1024xf32>
    %174 = arith.select %172, %173, %164 : vector<8x1024xi1>, vector<8x1024xf32>
    %cst_34 = arith.constant dense<true> : vector<8x1024xi1>
    %175 = arith.xori %172, %cst_34 : vector<8x1024xi1>
    %176 = arith.andi %169, %175 : vector<8x1024xi1>
    %177 = arith.extui %168 : vector<8x1024xi1> to vector<8x1024xi32>
    %178 = arith.sitofp %177 : vector<8x1024xi32> to vector<8x1024xf32>
    %179 = vector.broadcast %18 : f32 to vector<8x1024xf32>
    %180 = arith.mulf %130, %179 : vector<8x1024xf32>
    %181 = vector.broadcast %16 : f32 to vector<8x1024xf32>
    %182 = arith.mulf %181, %178 : vector<8x1024xf32>
    %183 = arith.addf %180, %182 : vector<8x1024xf32>
    %184 = arith.extui %168 : vector<8x1024xi1> to vector<8x1024xi8>
    %c2_35 = arith.constant 2 : index
    %c0_36 = arith.constant 0 : index
    %c0_37 = arith.constant 0 : index
    %185 = vector.load %arg14[%c2_35, %c0_36, %c0_37] : memref<8x8x1024xi8, #tpu.memory_space<vmem>>, vector<1x8x1024xi8>
    %186 = vector.shape_cast %185 : vector<1x8x1024xi8> to vector<8x1024xi8>
    %187 = vector.shape_cast %184 : vector<8x1024xi8> to vector<1x8x1024xi8>
    tpu.vector_store %arg14[%c2_35, %c0_36, %c0_37], %187 {strides = array<i32>} : memref<8x8x1024xi8, #tpu.memory_space<vmem>>, vector<1x8x1024xi8>,
    %c3_38 = arith.constant 3 : index
    %c0_39 = arith.constant 0 : index
    %c0_40 = arith.constant 0 : index
    %188 = vector.load %arg3[%c3_38, %c0_39, %c0_40] : memref<8x8x1024xf32, #tpu.memory_space<vmem>>, vector<1x8x1024xf32>
    %189 = vector.shape_cast %188 : vector<1x8x1024xf32> to vector<8x1024xf32>
    %190 = vector.broadcast %3 : f32 to vector<8x1024xf32>
    %191 = arith.mulf %190, %146 : vector<8x1024xf32>
    %192 = vector.broadcast %4 : f32 to vector<8x1024xf32>
    %193 = arith.mulf %192, %174 : vector<8x1024xf32>
    %194 = arith.addf %191, %193 : vector<8x1024xf32>
    %195 = vector.broadcast %5 : f32 to vector<8x1024xf32>
    %196 = arith.addf %194, %195 : vector<8x1024xf32>
    %197 = vector.broadcast %6 : f32 to vector<8x1024xf32>
    %198 = arith.mulf %197, %178 : vector<8x1024xf32>
    %199 = arith.addf %196, %198 : vector<8x1024xf32>
    %200 = vector.broadcast %7 : f32 to vector<8x1024xf32>
    %201 = arith.mulf %200, %174 : vector<8x1024xf32>
    %202 = vector.broadcast %8 : f32 to vector<8x1024xf32>
    %203 = arith.addf %201, %202 : vector<8x1024xf32>
    %204 = arith.subf %189, %199 : vector<8x1024xf32>
    %205 = vector.broadcast %9 : f32 to vector<8x1024xf32>
    %206 = arith.mulf %205, %204 : vector<8x1024xf32>
    %207 = arith.addf %203, %206 : vector<8x1024xf32>
    %208 = vector.broadcast %11 : f32 to vector<8x1024xf32>
    %209 = arith.mulf %174, %208 : vector<8x1024xf32>
    %210 = vector.broadcast %12 : f32 to vector<8x1024xf32>
    %211 = arith.addf %209, %210 : vector<8x1024xf32>
    %cst_41 = arith.constant 8.000000e+01 : f32
    %212 = vector.broadcast %cst_41 : f32 to vector<8x1024xf32>
    %213 = arith.minimumf %211, %212 : vector<8x1024xf32>
    %214 = math.exp %213 : vector<8x1024xf32>
    %215 = vector.broadcast %10 : f32 to vector<8x1024xf32>
    %216 = arith.mulf %215, %214 : vector<8x1024xf32>
    %217 = arith.addf %207, %216 : vector<8x1024xf32>
    %218 = vector.broadcast %14 : f32 to vector<8x1024xf32>
    %219 = arith.cmpf oge, %217, %218 : vector<8x1024xf32>
    %cst_42 = arith.constant dense<true> : vector<8x1024xi1>
    %220 = arith.xori %176, %cst_42 : vector<8x1024xi1>
    %221 = arith.andi %219, %220 : vector<8x1024xi1>
    %222 = arith.ori %176, %221 : vector<8x1024xi1>
    %223 = vector.broadcast %15 : f32 to vector<8x1024xf32>
    %224 = arith.cmpf oge, %217, %223 : vector<8x1024xf32>
    %225 = arith.andi %224, %222 : vector<8x1024xi1>
    %226 = vector.broadcast %13 : f32 to vector<8x1024xf32>
    %227 = arith.select %225, %226, %217 : vector<8x1024xi1>, vector<8x1024xf32>
    %cst_43 = arith.constant dense<true> : vector<8x1024xi1>
    %228 = arith.xori %225, %cst_43 : vector<8x1024xi1>
    %229 = arith.andi %222, %228 : vector<8x1024xi1>
    %230 = arith.extui %221 : vector<8x1024xi1> to vector<8x1024xi32>
    %231 = arith.sitofp %230 : vector<8x1024xi32> to vector<8x1024xf32>
    %232 = vector.broadcast %18 : f32 to vector<8x1024xf32>
    %233 = arith.mulf %183, %232 : vector<8x1024xf32>
    %234 = vector.broadcast %16 : f32 to vector<8x1024xf32>
    %235 = arith.mulf %234, %231 : vector<8x1024xf32>
    %236 = arith.addf %233, %235 : vector<8x1024xf32>
    %237 = arith.extui %221 : vector<8x1024xi1> to vector<8x1024xi8>
    %c3_44 = arith.constant 3 : index
    %c0_45 = arith.constant 0 : index
    %c0_46 = arith.constant 0 : index
    %238 = vector.load %arg14[%c3_44, %c0_45, %c0_46] : memref<8x8x1024xi8, #tpu.memory_space<vmem>>, vector<1x8x1024xi8>
    %239 = vector.shape_cast %238 : vector<1x8x1024xi8> to vector<8x1024xi8>
    %240 = vector.shape_cast %237 : vector<8x1024xi8> to vector<1x8x1024xi8>
    tpu.vector_store %arg14[%c3_44, %c0_45, %c0_46], %240 {strides = array<i32>} : memref<8x8x1024xi8, #tpu.memory_space<vmem>>, vector<1x8x1024xi8>,
    %c4_47 = arith.constant 4 : index
    %c0_48 = arith.constant 0 : index
    %c0_49 = arith.constant 0 : index
    %241 = vector.load %arg3[%c4_47, %c0_48, %c0_49] : memref<8x8x1024xf32, #tpu.memory_space<vmem>>, vector<1x8x1024xf32>
    %242 = vector.shape_cast %241 : vector<1x8x1024xf32> to vector<8x1024xf32>
    %243 = vector.broadcast %3 : f32 to vector<8x1024xf32>
    %244 = arith.mulf %243, %199 : vector<8x1024xf32>
    %245 = vector.broadcast %4 : f32 to vector<8x1024xf32>
    %246 = arith.mulf %245, %227 : vector<8x1024xf32>
    %247 = arith.addf %244, %246 : vector<8x1024xf32>
    %248 = vector.broadcast %5 : f32 to vector<8x1024xf32>
    %249 = arith.addf %247, %248 : vector<8x1024xf32>
    %250 = vector.broadcast %6 : f32 to vector<8x1024xf32>
    %251 = arith.mulf %250, %231 : vector<8x1024xf32>
    %252 = arith.addf %249, %251 : vector<8x1024xf32>
    %253 = vector.broadcast %7 : f32 to vector<8x1024xf32>
    %254 = arith.mulf %253, %227 : vector<8x1024xf32>
    %255 = vector.broadcast %8 : f32 to vector<8x1024xf32>
    %256 = arith.addf %254, %255 : vector<8x1024xf32>
    %257 = arith.subf %242, %252 : vector<8x1024xf32>
    %258 = vector.broadcast %9 : f32 to vector<8x1024xf32>
    %259 = arith.mulf %258, %257 : vector<8x1024xf32>
    %260 = arith.addf %256, %259 : vector<8x1024xf32>
    %261 = vector.broadcast %11 : f32 to vector<8x1024xf32>
    %262 = arith.mulf %227, %261 : vector<8x1024xf32>
    %263 = vector.broadcast %12 : f32 to vector<8x1024xf32>
    %264 = arith.addf %262, %263 : vector<8x1024xf32>
    %cst_50 = arith.constant 8.000000e+01 : f32
    %265 = vector.broadcast %cst_50 : f32 to vector<8x1024xf32>
    %266 = arith.minimumf %264, %265 : vector<8x1024xf32>
    %267 = math.exp %266 : vector<8x1024xf32>
    %268 = vector.broadcast %10 : f32 to vector<8x1024xf32>
    %269 = arith.mulf %268, %267 : vector<8x1024xf32>
    %270 = arith.addf %260, %269 : vector<8x1024xf32>
    %271 = vector.broadcast %14 : f32 to vector<8x1024xf32>
    %272 = arith.cmpf oge, %270, %271 : vector<8x1024xf32>
    %cst_51 = arith.constant dense<true> : vector<8x1024xi1>
    %273 = arith.xori %229, %cst_51 : vector<8x1024xi1>
    %274 = arith.andi %272, %273 : vector<8x1024xi1>
    %275 = arith.ori %229, %274 : vector<8x1024xi1>
    %276 = vector.broadcast %15 : f32 to vector<8x1024xf32>
    %277 = arith.cmpf oge, %270, %276 : vector<8x1024xf32>
    %278 = arith.andi %277, %275 : vector<8x1024xi1>
    %279 = vector.broadcast %13 : f32 to vector<8x1024xf32>
    %280 = arith.select %278, %279, %270 : vector<8x1024xi1>, vector<8x1024xf32>
    %cst_52 = arith.constant dense<true> : vector<8x1024xi1>
    %281 = arith.xori %278, %cst_52 : vector<8x1024xi1>
    %282 = arith.andi %275, %281 : vector<8x1024xi1>
    %283 = arith.extui %274 : vector<8x1024xi1> to vector<8x1024xi32>
    %284 = arith.sitofp %283 : vector<8x1024xi32> to vector<8x1024xf32>
    %285 = vector.broadcast %18 : f32 to vector<8x1024xf32>
    %286 = arith.mulf %236, %285 : vector<8x1024xf32>
    %287 = vector.broadcast %16 : f32 to vector<8x1024xf32>
    %288 = arith.mulf %287, %284 : vector<8x1024xf32>
    %289 = arith.addf %286, %288 : vector<8x1024xf32>
    %290 = arith.extui %274 : vector<8x1024xi1> to vector<8x1024xi8>
    %c4_53 = arith.constant 4 : index
    %c0_54 = arith.constant 0 : index
    %c0_55 = arith.constant 0 : index
    %291 = vector.load %arg14[%c4_53, %c0_54, %c0_55] : memref<8x8x1024xi8, #tpu.memory_space<vmem>>, vector<1x8x1024xi8>
    %292 = vector.shape_cast %291 : vector<1x8x1024xi8> to vector<8x1024xi8>
    %293 = vector.shape_cast %290 : vector<8x1024xi8> to vector<1x8x1024xi8>
    tpu.vector_store %arg14[%c4_53, %c0_54, %c0_55], %293 {strides = array<i32>} : memref<8x8x1024xi8, #tpu.memory_space<vmem>>, vector<1x8x1024xi8>,
    %c5_56 = arith.constant 5 : index
    %c0_57 = arith.constant 0 : index
    %c0_58 = arith.constant 0 : index
    %294 = vector.load %arg3[%c5_56, %c0_57, %c0_58] : memref<8x8x1024xf32, #tpu.memory_space<vmem>>, vector<1x8x1024xf32>
    %295 = vector.shape_cast %294 : vector<1x8x1024xf32> to vector<8x1024xf32>
    %296 = vector.broadcast %3 : f32 to vector<8x1024xf32>
    %297 = arith.mulf %296, %252 : vector<8x1024xf32>
    %298 = vector.broadcast %4 : f32 to vector<8x1024xf32>
    %299 = arith.mulf %298, %280 : vector<8x1024xf32>
    %300 = arith.addf %297, %299 : vector<8x1024xf32>
    %301 = vector.broadcast %5 : f32 to vector<8x1024xf32>
    %302 = arith.addf %300, %301 : vector<8x1024xf32>
    %303 = vector.broadcast %6 : f32 to vector<8x1024xf32>
    %304 = arith.mulf %303, %284 : vector<8x1024xf32>
    %305 = arith.addf %302, %304 : vector<8x1024xf32>
    %306 = vector.broadcast %7 : f32 to vector<8x1024xf32>
    %307 = arith.mulf %306, %280 : vector<8x1024xf32>
    %308 = vector.broadcast %8 : f32 to vector<8x1024xf32>
    %309 = arith.addf %307, %308 : vector<8x1024xf32>
    %310 = arith.subf %295, %305 : vector<8x1024xf32>
    %311 = vector.broadcast %9 : f32 to vector<8x1024xf32>
    %312 = arith.mulf %311, %310 : vector<8x1024xf32>
    %313 = arith.addf %309, %312 : vector<8x1024xf32>
    %314 = vector.broadcast %11 : f32 to vector<8x1024xf32>
    %315 = arith.mulf %280, %314 : vector<8x1024xf32>
    %316 = vector.broadcast %12 : f32 to vector<8x1024xf32>
    %317 = arith.addf %315, %316 : vector<8x1024xf32>
    %cst_59 = arith.constant 8.000000e+01 : f32
    %318 = vector.broadcast %cst_59 : f32 to vector<8x1024xf32>
    %319 = arith.minimumf %317, %318 : vector<8x1024xf32>
    %320 = math.exp %319 : vector<8x1024xf32>
    %321 = vector.broadcast %10 : f32 to vector<8x1024xf32>
    %322 = arith.mulf %321, %320 : vector<8x1024xf32>
    %323 = arith.addf %313, %322 : vector<8x1024xf32>
    %324 = vector.broadcast %14 : f32 to vector<8x1024xf32>
    %325 = arith.cmpf oge, %323, %324 : vector<8x1024xf32>
    %cst_60 = arith.constant dense<true> : vector<8x1024xi1>
    %326 = arith.xori %282, %cst_60 : vector<8x1024xi1>
    %327 = arith.andi %325, %326 : vector<8x1024xi1>
    %328 = arith.ori %282, %327 : vector<8x1024xi1>
    %329 = vector.broadcast %15 : f32 to vector<8x1024xf32>
    %330 = arith.cmpf oge, %323, %329 : vector<8x1024xf32>
    %331 = arith.andi %330, %328 : vector<8x1024xi1>
    %332 = vector.broadcast %13 : f32 to vector<8x1024xf32>
    %333 = arith.select %331, %332, %323 : vector<8x1024xi1>, vector<8x1024xf32>
    %cst_61 = arith.constant dense<true> : vector<8x1024xi1>
    %334 = arith.xori %331, %cst_61 : vector<8x1024xi1>
    %335 = arith.andi %328, %334 : vector<8x1024xi1>
    %336 = arith.extui %327 : vector<8x1024xi1> to vector<8x1024xi32>
    %337 = arith.sitofp %336 : vector<8x1024xi32> to vector<8x1024xf32>
    %338 = vector.broadcast %18 : f32 to vector<8x1024xf32>
    %339 = arith.mulf %289, %338 : vector<8x1024xf32>
    %340 = vector.broadcast %16 : f32 to vector<8x1024xf32>
    %341 = arith.mulf %340, %337 : vector<8x1024xf32>
    %342 = arith.addf %339, %341 : vector<8x1024xf32>
    %343 = arith.extui %327 : vector<8x1024xi1> to vector<8x1024xi8>
    %c5_62 = arith.constant 5 : index
    %c0_63 = arith.constant 0 : index
    %c0_64 = arith.constant 0 : index
    %344 = vector.load %arg14[%c5_62, %c0_63, %c0_64] : memref<8x8x1024xi8, #tpu.memory_space<vmem>>, vector<1x8x1024xi8>
    %345 = vector.shape_cast %344 : vector<1x8x1024xi8> to vector<8x1024xi8>
    %346 = vector.shape_cast %343 : vector<8x1024xi8> to vector<1x8x1024xi8>
    tpu.vector_store %arg14[%c5_62, %c0_63, %c0_64], %346 {strides = array<i32>} : memref<8x8x1024xi8, #tpu.memory_space<vmem>>, vector<1x8x1024xi8>,
    %c6_65 = arith.constant 6 : index
    %c0_66 = arith.constant 0 : index
    %c0_67 = arith.constant 0 : index
    %347 = vector.load %arg3[%c6_65, %c0_66, %c0_67] : memref<8x8x1024xf32, #tpu.memory_space<vmem>>, vector<1x8x1024xf32>
    %348 = vector.shape_cast %347 : vector<1x8x1024xf32> to vector<8x1024xf32>
    %349 = vector.broadcast %3 : f32 to vector<8x1024xf32>
    %350 = arith.mulf %349, %305 : vector<8x1024xf32>
    %351 = vector.broadcast %4 : f32 to vector<8x1024xf32>
    %352 = arith.mulf %351, %333 : vector<8x1024xf32>
    %353 = arith.addf %350, %352 : vector<8x1024xf32>
    %354 = vector.broadcast %5 : f32 to vector<8x1024xf32>
    %355 = arith.addf %353, %354 : vector<8x1024xf32>
    %356 = vector.broadcast %6 : f32 to vector<8x1024xf32>
    %357 = arith.mulf %356, %337 : vector<8x1024xf32>
    %358 = arith.addf %355, %357 : vector<8x1024xf32>
    %359 = vector.broadcast %7 : f32 to vector<8x1024xf32>
    %360 = arith.mulf %359, %333 : vector<8x1024xf32>
    %361 = vector.broadcast %8 : f32 to vector<8x1024xf32>
    %362 = arith.addf %360, %361 : vector<8x1024xf32>
    %363 = arith.subf %348, %358 : vector<8x1024xf32>
    %364 = vector.broadcast %9 : f32 to vector<8x1024xf32>
    %365 = arith.mulf %364, %363 : vector<8x1024xf32>
    %366 = arith.addf %362, %365 : vector<8x1024xf32>
    %367 = vector.broadcast %11 : f32 to vector<8x1024xf32>
    %368 = arith.mulf %333, %367 : vector<8x1024xf32>
    %369 = vector.broadcast %12 : f32 to vector<8x1024xf32>
    %370 = arith.addf %368, %369 : vector<8x1024xf32>
    %cst_68 = arith.constant 8.000000e+01 : f32
    %371 = vector.broadcast %cst_68 : f32 to vector<8x1024xf32>
    %372 = arith.minimumf %370, %371 : vector<8x1024xf32>
    %373 = math.exp %372 : vector<8x1024xf32>
    %374 = vector.broadcast %10 : f32 to vector<8x1024xf32>
    %375 = arith.mulf %374, %373 : vector<8x1024xf32>
    %376 = arith.addf %366, %375 : vector<8x1024xf32>
    %377 = vector.broadcast %14 : f32 to vector<8x1024xf32>
    %378 = arith.cmpf oge, %376, %377 : vector<8x1024xf32>
    %cst_69 = arith.constant dense<true> : vector<8x1024xi1>
    %379 = arith.xori %335, %cst_69 : vector<8x1024xi1>
    %380 = arith.andi %378, %379 : vector<8x1024xi1>
    %381 = arith.ori %335, %380 : vector<8x1024xi1>
    %382 = vector.broadcast %15 : f32 to vector<8x1024xf32>
    %383 = arith.cmpf oge, %376, %382 : vector<8x1024xf32>
    %384 = arith.andi %383, %381 : vector<8x1024xi1>
    %385 = vector.broadcast %13 : f32 to vector<8x1024xf32>
    %386 = arith.select %384, %385, %376 : vector<8x1024xi1>, vector<8x1024xf32>
    %cst_70 = arith.constant dense<true> : vector<8x1024xi1>
    %387 = arith.xori %384, %cst_70 : vector<8x1024xi1>
    %388 = arith.andi %381, %387 : vector<8x1024xi1>
    %389 = arith.extui %380 : vector<8x1024xi1> to vector<8x1024xi32>
    %390 = arith.sitofp %389 : vector<8x1024xi32> to vector<8x1024xf32>
    %391 = vector.broadcast %18 : f32 to vector<8x1024xf32>
    %392 = arith.mulf %342, %391 : vector<8x1024xf32>
    %393 = vector.broadcast %16 : f32 to vector<8x1024xf32>
    %394 = arith.mulf %393, %390 : vector<8x1024xf32>
    %395 = arith.addf %392, %394 : vector<8x1024xf32>
    %396 = arith.extui %380 : vector<8x1024xi1> to vector<8x1024xi8>
    %c6_71 = arith.constant 6 : index
    %c0_72 = arith.constant 0 : index
    %c0_73 = arith.constant 0 : index
    %397 = vector.load %arg14[%c6_71, %c0_72, %c0_73] : memref<8x8x1024xi8, #tpu.memory_space<vmem>>, vector<1x8x1024xi8>
    %398 = vector.shape_cast %397 : vector<1x8x1024xi8> to vector<8x1024xi8>
    %399 = vector.shape_cast %396 : vector<8x1024xi8> to vector<1x8x1024xi8>
    tpu.vector_store %arg14[%c6_71, %c0_72, %c0_73], %399 {strides = array<i32>} : memref<8x8x1024xi8, #tpu.memory_space<vmem>>, vector<1x8x1024xi8>,
    %c7_74 = arith.constant 7 : index
    %c0_75 = arith.constant 0 : index
    %c0_76 = arith.constant 0 : index
    %400 = vector.load %arg3[%c7_74, %c0_75, %c0_76] : memref<8x8x1024xf32, #tpu.memory_space<vmem>>, vector<1x8x1024xf32>
    %401 = vector.shape_cast %400 : vector<1x8x1024xf32> to vector<8x1024xf32>
    %402 = vector.broadcast %3 : f32 to vector<8x1024xf32>
    %403 = arith.mulf %402, %358 : vector<8x1024xf32>
    %404 = vector.broadcast %4 : f32 to vector<8x1024xf32>
    %405 = arith.mulf %404, %386 : vector<8x1024xf32>
    %406 = arith.addf %403, %405 : vector<8x1024xf32>
    %407 = vector.broadcast %5 : f32 to vector<8x1024xf32>
    %408 = arith.addf %406, %407 : vector<8x1024xf32>
    %409 = vector.broadcast %6 : f32 to vector<8x1024xf32>
    %410 = arith.mulf %409, %390 : vector<8x1024xf32>
    %411 = arith.addf %408, %410 : vector<8x1024xf32>
    %412 = vector.broadcast %7 : f32 to vector<8x1024xf32>
    %413 = arith.mulf %412, %386 : vector<8x1024xf32>
    %414 = vector.broadcast %8 : f32 to vector<8x1024xf32>
    %415 = arith.addf %413, %414 : vector<8x1024xf32>
    %416 = arith.subf %401, %411 : vector<8x1024xf32>
    %417 = vector.broadcast %9 : f32 to vector<8x1024xf32>
    %418 = arith.mulf %417, %416 : vector<8x1024xf32>
    %419 = arith.addf %415, %418 : vector<8x1024xf32>
    %420 = vector.broadcast %11 : f32 to vector<8x1024xf32>
    %421 = arith.mulf %386, %420 : vector<8x1024xf32>
    %422 = vector.broadcast %12 : f32 to vector<8x1024xf32>
    %423 = arith.addf %421, %422 : vector<8x1024xf32>
    %cst_77 = arith.constant 8.000000e+01 : f32
    %424 = vector.broadcast %cst_77 : f32 to vector<8x1024xf32>
    %425 = arith.minimumf %423, %424 : vector<8x1024xf32>
    %426 = math.exp %425 : vector<8x1024xf32>
    %427 = vector.broadcast %10 : f32 to vector<8x1024xf32>
    %428 = arith.mulf %427, %426 : vector<8x1024xf32>
    %429 = arith.addf %419, %428 : vector<8x1024xf32>
    %430 = vector.broadcast %14 : f32 to vector<8x1024xf32>
    %431 = arith.cmpf oge, %429, %430 : vector<8x1024xf32>
    %cst_78 = arith.constant dense<true> : vector<8x1024xi1>
    %432 = arith.xori %388, %cst_78 : vector<8x1024xi1>
    %433 = arith.andi %431, %432 : vector<8x1024xi1>
    %434 = arith.ori %388, %433 : vector<8x1024xi1>
    %435 = vector.broadcast %15 : f32 to vector<8x1024xf32>
    %436 = arith.cmpf oge, %429, %435 : vector<8x1024xf32>
    %437 = arith.andi %436, %434 : vector<8x1024xi1>
    %438 = vector.broadcast %13 : f32 to vector<8x1024xf32>
    %439 = arith.select %437, %438, %429 : vector<8x1024xi1>, vector<8x1024xf32>
    %cst_79 = arith.constant dense<true> : vector<8x1024xi1>
    %440 = arith.xori %437, %cst_79 : vector<8x1024xi1>
    %441 = arith.andi %434, %440 : vector<8x1024xi1>
    %442 = arith.extui %433 : vector<8x1024xi1> to vector<8x1024xi32>
    %443 = arith.sitofp %442 : vector<8x1024xi32> to vector<8x1024xf32>
    %444 = vector.broadcast %18 : f32 to vector<8x1024xf32>
    %445 = arith.mulf %395, %444 : vector<8x1024xf32>
    %446 = vector.broadcast %16 : f32 to vector<8x1024xf32>
    %447 = arith.mulf %446, %443 : vector<8x1024xf32>
    %448 = arith.addf %445, %447 : vector<8x1024xf32>
    %449 = arith.extui %433 : vector<8x1024xi1> to vector<8x1024xi8>
    %c7_80 = arith.constant 7 : index
    %c0_81 = arith.constant 0 : index
    %c0_82 = arith.constant 0 : index
    %450 = vector.load %arg14[%c7_80, %c0_81, %c0_82] : memref<8x8x1024xi8, #tpu.memory_space<vmem>>, vector<1x8x1024xi8>
    %451 = vector.shape_cast %450 : vector<1x8x1024xi8> to vector<8x1024xi8>
    %452 = vector.shape_cast %449 : vector<8x1024xi8> to vector<1x8x1024xi8>
    tpu.vector_store %arg14[%c7_80, %c0_81, %c0_82], %452 {strides = array<i32>} : memref<8x8x1024xi8, #tpu.memory_space<vmem>>, vector<1x8x1024xi8>,
    %c0_83 = arith.constant 0 : index
    %c0_84 = arith.constant 0 : index
    %453 = vector.load %arg9[%c0_83, %c0_84] : memref<8x1024xf32, #tpu.memory_space<vmem>>, vector<8x1024xf32>
    tpu.vector_store %arg9[%c0_83, %c0_84], %439 {strides = array<i32>} : memref<8x1024xf32, #tpu.memory_space<vmem>>, vector<8x1024xf32>,
    %c0_85 = arith.constant 0 : index
    %c0_86 = arith.constant 0 : index
    %454 = vector.load %arg10[%c0_85, %c0_86] : memref<8x1024xf32, #tpu.memory_space<vmem>>, vector<8x1024xf32>
    tpu.vector_store %arg10[%c0_85, %c0_86], %411 {strides = array<i32>} : memref<8x1024xf32, #tpu.memory_space<vmem>>, vector<8x1024xf32>,
    %c0_87 = arith.constant 0 : index
    %c0_88 = arith.constant 0 : index
    %455 = vector.load %arg13[%c0_87, %c0_88] : memref<8x1024xf32, #tpu.memory_space<vmem>>, vector<8x1024xf32>
    tpu.vector_store %arg13[%c0_87, %c0_88], %448 {strides = array<i32>} : memref<8x1024xf32, #tpu.memory_space<vmem>>, vector<8x1024xf32>,
    %456 = arith.fptosi %443 : vector<8x1024xf32> to vector<8x1024xi8>
    %c0_89 = arith.constant 0 : index
    %c0_90 = arith.constant 0 : index
    %457 = vector.load %arg11[%c0_89, %c0_90] : memref<8x1024xi8, #tpu.memory_space<vmem>>, vector<8x1024xi8>
    tpu.vector_store %arg11[%c0_89, %c0_90], %456 {strides = array<i32>} : memref<8x1024xi8, #tpu.memory_space<vmem>>, vector<8x1024xi8>,
    %458 = arith.extui %441 : vector<8x1024xi1> to vector<8x1024xi8>
    %c0_91 = arith.constant 0 : index
    %c0_92 = arith.constant 0 : index
    %459 = vector.load %arg12[%c0_91, %c0_92] : memref<8x1024xi8, #tpu.memory_space<vmem>>, vector<8x1024xi8>
    tpu.vector_store %arg12[%c0_91, %c0_92], %458 {strides = array<i32>} : memref<8x1024xi8, #tpu.memory_space<vmem>>, vector<8x1024xi8>,
    return
  }
  func.func @transform_0(%arg0: i32, %arg1: i32) -> i32 {
    %c0_i32 = arith.constant 0 : i32
    %c0_i32_0 = arith.constant 0 : i32
    return %c0_i32 : i32
  }
  func.func @transform_1(%arg0: i32, %arg1: i32) -> (i32, i32, i32) {
    %c0_i32 = arith.constant 0 : i32
    %c0_i32_0 = arith.constant 0 : i32
    return %arg1, %arg0, %c0_i32 : i32, i32, i32
  }
  func.func @transform_2(%arg0: i32, %arg1: i32) -> (i32, i32) {
    %c0_i32 = arith.constant 0 : i32
    %c0_i32_0 = arith.constant 0 : i32
    return %arg0, %c0_i32 : i32, i32
  }
  func.func @transform_3(%arg0: i32, %arg1: i32) -> (i32, i32) {
    %c0_i32 = arith.constant 0 : i32
    %c0_i32_0 = arith.constant 0 : i32
    return %arg0, %c0_i32 : i32, i32
  }
  func.func @transform_4(%arg0: i32, %arg1: i32) -> (i32, i32) {
    %c0_i32 = arith.constant 0 : i32
    %c0_i32_0 = arith.constant 0 : i32
    return %arg0, %c0_i32 : i32, i32
  }
  func.func @transform_5(%arg0: i32, %arg1: i32) -> (i32, i32) {
    %c0_i32 = arith.constant 0 : i32
    %c0_i32_0 = arith.constant 0 : i32
    return %arg0, %c0_i32 : i32, i32
  }
  func.func @transform_6(%arg0: i32, %arg1: i32) -> (i32, i32) {
    %c0_i32 = arith.constant 0 : i32
    %c0_i32_0 = arith.constant 0 : i32
    return %arg0, %c0_i32 : i32, i32
  }
  func.func @transform_7(%arg0: i32, %arg1: i32) -> (i32, i32) {
    %c0_i32 = arith.constant 0 : i32
    %c0_i32_0 = arith.constant 0 : i32
    return %arg0, %c0_i32 : i32, i32
  }
  func.func @transform_8(%arg0: i32, %arg1: i32) -> (i32, i32) {
    %c0_i32 = arith.constant 0 : i32
    %c0_i32_0 = arith.constant 0 : i32
    return %arg0, %c0_i32 : i32, i32
  }
  func.func @transform_9(%arg0: i32, %arg1: i32) -> (i32, i32) {
    %c0_i32 = arith.constant 0 : i32
    %c0_i32_0 = arith.constant 0 : i32
    return %arg0, %c0_i32 : i32, i32
  }
  func.func @transform_10(%arg0: i32, %arg1: i32) -> (i32, i32) {
    %c0_i32 = arith.constant 0 : i32
    %c0_i32_0 = arith.constant 0 : i32
    return %arg0, %c0_i32 : i32, i32
  }
  func.func @transform_11(%arg0: i32, %arg1: i32) -> (i32, i32) {
    %c0_i32 = arith.constant 0 : i32
    %c0_i32_0 = arith.constant 0 : i32
    return %arg0, %c0_i32 : i32, i32
  }
  func.func @transform_12(%arg0: i32, %arg1: i32) -> (i32, i32, i32) {
    %c0_i32 = arith.constant 0 : i32
    %c0_i32_0 = arith.constant 0 : i32
    return %arg1, %arg0, %c0_i32 : i32, i32, i32
  }
}

</mosaic_0001>

<bundles_post_ra>
// kernel: tpu_custom_call.1
= control target key start
LH: loop header
LB: loop body
LE: loop exit
PB: predicated region body
PF: predicated region fallthrough
CT: control target
= control target key end

     0   :  { %s10510_s0 = inlined_call_operand.vmem [shape: f32[16], index: 0, kind: input, shape index: {}]   ;;  %s10511_s1 = inlined_call_operand.hbm [shape: f32[16,8,1024], index: 1, kind: input, shape index: {}]   ;;  %s10512_s2 = inlined_call_operand.hbm [shape: f32[8,1024], index: 2, kind: input, shape index: {}, may-alias: {2,7}]   ;;  %s10513_s3 = inlined_call_operand.hbm [shape: f32[8,1024], index: 3, kind: input, shape index: {}, may-alias: {3,8}]   ;;  %s10514_s4 = inlined_call_operand.hbm [shape: s8[8,1024], index: 4, kind: input, shape index: {}, may-alias: {4,9}]   ;;  %s10515_s5 = inlined_call_operand.hbm [shape: s8[8,1024], index: 5, kind: input, shape index: {}, may-alias: {5,10}]   ;;  %s10516_s6 = inlined_call_operand.hbm [shape: f32[8,1024], index: 6, kind: input, shape index: {}, may-alias: {6,11}]   ;;  %s10517_s7 = inlined_call_operand.hbm [shape: f32[8,1024], index: 7, kind: output, shape index: {0}, may-alias: {2,7}]   ;;  %s10518_s8 = inlined_call_operand.hbm [shape: f32[8,1024], index: 8, kind: output, shape index: {1}, may-alias: {3,8}]   ;;  %s10519_s9 = inlined_call_operand.hbm [shape: s8[8,1024], index: 9, kind: output, shape index: {2}, may-alias: {4,9}]   ;;  %s10520_s10 = inlined_call_operand.hbm [shape: s8[8,1024], index: 10, kind: output, shape index: {3}, may-alias: {5,10}]   ;;  %s10521_s11 = inlined_call_operand.hbm [shape: f32[8,1024], index: 11, kind: output, shape index: {4}, may-alias: {6,11}]   ;;  %s10522_s12 = inlined_call_operand.hbm [shape: s8[16,8,1024], index: 12, kind: output, shape index: {5}]  }
   0x1   :  { %10783 = sst [smem:[#allocation141_spill]] %s10510_s0 }
   0x2   :  { %10784 = sst [smem:[#allocation142_spill]] %s10512_s2 }
   0x3   :  { %10785 = sst [smem:[#allocation143_spill]] %s10513_s3 }
   0x4   :  { %10786 = sst [smem:[#allocation144_spill]] %s10514_s4 }
   0x5   :  { %10787 = sst [smem:[#allocation145_spill]] %s10519_s9 }
   0x6   :  { %10788 = sst [smem:[#allocation146_spill]] %s10521_s11 }
   0x7   :  { %10789 = sst [smem:[#allocation147_spill]] %s10522_s12 }
   0x8   :  { %18 = vsyncpa [#allocation5], 0 }
   0x9   :  { %19 = vsyncpa [#allocation3], 0 }
   0xa   :  { %21 = vsyncpa [#allocation3 + $0x1], 0 }
   0xb   :  { %22 = vsyncpa [#allocation8], 0 }
   0xc   :  { %23 = vsyncpa [#allocation11], 0 }
   0xd   :  { %24 = vsyncpa [#allocation14], 0 }
   0xe   :  { %25 = vsyncpa [#allocation4], 0 }
   0xf   :  { %26 = vsyncpa [#allocation17], 0 }
  0x10   :  { %27 = vsyncpa [#allocation20], 0 }
  0x11   :  { %28 = vsyncpa [#allocation23], 0 }
  0x12   :  { %30 = vsyncpa [#allocation23 + $0x1], 0  ;;  %s4818_s21 = smov 0   ;;  %s4820_s22 = smov 0  }
  0x13   :  { %s4822_s23 = smov 0   ;;  %s4824_s24 = smov 0  }
  0x14   :  { %s4826_s25 = smov 0   ;;  %s4828_s26 = smov 0  }
  0x15 LB: > { %s4733_s27 = smov [#allocation7]   ;;  %s10523_s29 = sadd.s32 4294967295, %s4731_s26   ;;  %s4731_s26 = sphi %s4828_s26, %s36_s26   ;;  %s4727_s25 = sphi %s4826_s25, %s11803_s25   ;;  %s4723_s24 = sphi %s4824_s24, %s11802_s24   ;;  %s4719_s23 = sphi %s4822_s23, %s11801_s23   ;;  %s4715_s22 = sphi %s4820_s22, %s11800_s22   ;;  %s4711_s21 = sphi %s4818_s21, %s11799_s21  }
  0x16   : > { %s417_s28 = sshll.u32 %s4733_s27, 4  ;;  %p3822_p0 = scmp.ge.s32.totalorder %s4731_s26, 1  ;;  %s418_s28 = int_to_ptr.vmem [resolvable:$true] %s417_s28 }
  0x17   : > { %p4852_p1 = scmp.eq.s32.totalorder %s10523_s29, 0  ;;  %p390_p2 = scmp.lt.s32.totalorder %s4731_s26, 3 }
  0x18   : > { %s4734_s14 = smov [#allocation10]   ;;  %s10793_s0 = sld [smem:[#allocation141_spill]] }
  0x19   : > { %s10790_s30 = scalar_select %p4852_p1, 1, 0 }
  0x1a   : > { %p4857_p3 = pnand %p3822_p0, %p390_p2  ;;  %s445_s15 = sshll.u32 %s4734_s14, 4  ;;  %s4864_s15 = int_to_ptr.vmem [resolvable:$true] %s445_s15 }
  0x1b   : > { %s10794_s2 = sld [smem:[#allocation142_spill]] }
  0x1c   : > { %s10791_s13 = scalar_select %p4857_p3, 1, 0 }
  0x1d   : > { %p4061_p5 = pneg %p4857_p3 }
  0x1e   : > { %s403_s19 = sshll.u32 %s10793_s0, 4  ;;  %s4875_s19 = int_to_ptr.vmem [resolvable:$true] %s403_s19 }
  0x1f   : > { %p4868_p6 = pnand %p4061_p5, %p4852_p1 }
  0x21   : > { %s4306_s29 = scalar_lea.hbm %s10794_s2, 1024  ;;  %p4885_p8 = pneg %p4868_p6 }
  0x22   : > { %p4307_p7 = scmp.ne.s32.totalorder %s10794_s2, %s4306_s29  ;;  %p4313_p11 = scmp.lt.u32.totalorder %s4306_s29, %s10794_s2 }
  0x24   : > { %p4309_p9 = pnand %p4885_p8, %p4307_p7 }
  0x26   : > { %p4310_p10 = pneg %p4309_p9 }
  0x28   : > { %p4315_p12 = pnand %p4313_p11, %p4310_p10 }
  0x2a   : > { %4318 = shalt.err (!%p4315_p12)
}
  0x2b   : > { %s4319_s20 = scalar_lea.vmem %s418_s28, 1024  ;;  %p4327_p5 = scmp.lt.s32.totalorder %s418_s28, %s418_s28 }
  0x2c   : > { %p4320_p13 = scmp.ne.s32.totalorder %s418_s28, %s4319_s20  ;;  %p4328_p4 = scmp.lt.s32.totalorder %s4319_s20, %s4319_s20 }
  0x2e   : > { %p4322_p0 = pnand %p4320_p13, %p4885_p8  ;;  %p4329_p3 = por %p4328_p4, %p4327_p5 }
  0x30   : > { %p4323_p2 = pneg %p4322_p0 }
  0x32   : > { %p4330_p1 = pnand %p4329_p3, %p4323_p2 }
  0x34   : > { %4333 = shalt.err (!%p4330_p1)
}
  0x35   : > { %4067 = dma.hbm_to_vmem [thread:$0]  (!%p4868_p6), %s10794_s2, 1024, %s418_s28, [#allocation8]  }
  0x36   : > { %s10796_s4 = sld [smem:[#allocation144_spill]] }
  0x3c   : > { %s4334_s17 = scalar_lea.hbm %s10796_s4, 256 }
  0x3d   : > { %p4335_p7 = scmp.ne.s32.totalorder %s10796_s4, %s4334_s17  ;;  %p4341_p1 = scmp.lt.u32.totalorder %s4334_s17, %s10796_s4 }
  0x3f   : > { %p4337_p9 = pnand %p4335_p7, %p4885_p8 }
  0x41   : > { %p4338_p4 = pneg %p4337_p9 }
  0x43   : > { %p4343_p3 = pnand %p4341_p1, %p4338_p4 }
  0x45   : > { %4346 = shalt.err (!%p4343_p3)
}
  0x46   : > { %s4347_s28 = scalar_lea.vmem %s4864_s15, 256  ;;  %p4355_p13 = scmp.lt.s32.totalorder %s4864_s15, %s4864_s15 }
  0x47   : > { %p4348_p10 = scmp.ne.s32.totalorder %s4864_s15, %s4347_s28  ;;  %p4356_p0 = scmp.lt.s32.totalorder %s4347_s28, %s4347_s28 }
  0x49   : > { %p4350_p11 = pnand %p4348_p10, %p4885_p8  ;;  %p4357_p2 = por %p4356_p0, %p4355_p13 }
  0x4b   : > { %p4351_p12 = pneg %p4350_p11 }
  0x4d   : > { %p4358_p5 = pnand %p4357_p2, %p4351_p12 }
  0x4f   : > { %4361 = shalt.err (!%p4358_p5)
}
  0x50   : > { %4073 = dma.hbm_to_vmem [thread:$0]  (!%p4868_p6), %s10796_s4, 256, %s4864_s15, [#allocation11]  }
  0x51   : > { %s4362_s12 = scalar_lea.vmem %s4875_s19, 16  ;;  %p4370_p1 = scmp.lt.s32.totalorder %s4875_s19, %s4875_s19 }
  0x52   : > { %p4363_p7 = scmp.ne.s32.totalorder %s4875_s19, %s4362_s12  ;;  %p4371_p3 = scmp.lt.s32.totalorder %s4362_s12, %s4362_s12 }
  0x54   : > { %p4365_p9 = pnand %p4363_p7, %p4885_p8  ;;  %p4372_p10 = por %p4371_p3, %p4370_p1 }
  0x56   : > { %p4366_p4 = pneg %p4365_p9 }
  0x58   : > { %p4373_p11 = pnand %p4372_p10, %p4366_p4 }
  0x5a   : > { %4376 = shalt.err (!%p4373_p11)
}
  0x5b   : > { %s4735_s27 = smov [#allocation2]   ;;  %s4736_s29 = smov [#allocation9]  }
  0x5c   : > { %4064 = dma.vmem_to_smem (!%p4868_p6), %s4875_s19, 16, %s4735_s27, [#allocation5]  }
  0x5d   : > { %s431_s14 = sshll.u32 %s4736_s29, 4  ;;  %s4737_s15 = smov [#allocation12]   ;;  %s432_s14 = int_to_ptr.vmem [resolvable:$true] %s431_s14 }
  0x5e   : > { %s459_s17 = sshll.u32 %s4737_s15, 4  ;;  %s10797_s3 = sld [smem:[#allocation143_spill]]  ;;  %s460_s17 = int_to_ptr.vmem [resolvable:$true] %s459_s17 }
  0x64   : > { %s4377_s28 = scalar_lea.hbm %s10797_s3, 1024 }
  0x65   : > { %p4378_p12 = scmp.ne.s32.totalorder %s10797_s3, %s4377_s28  ;;  %p4384_p2 = scmp.lt.u32.totalorder %s4377_s28, %s10797_s3 }
  0x67   : > { %p4380_p13 = pnand %p4378_p12, %p4885_p8 }
  0x69   : > { %p4381_p0 = pneg %p4380_p13 }
  0x6b   : > { %p4386_p5 = pnand %p4384_p2, %p4381_p0 }
  0x6d   : > { %4389 = shalt.err (!%p4386_p5)
}
  0x6e   : > { %s4390_s19 = scalar_lea.vmem %s432_s14, 1024  ;;  %p4398_p1 = scmp.lt.s32.totalorder %s432_s14, %s432_s14 }
  0x6f   : > { %p4391_p7 = scmp.ne.s32.totalorder %s432_s14, %s4390_s19  ;;  %p4399_p3 = scmp.lt.s32.totalorder %s4390_s19, %s4390_s19 }
  0x71   : > { %p4393_p9 = pnand %p4391_p7, %p4885_p8  ;;  %p4400_p10 = por %p4399_p3, %p4398_p1 }
  0x73   : > { %p4394_p4 = pneg %p4393_p9 }
  0x75   : > { %p4401_p11 = pnand %p4400_p10, %p4394_p4 }
  0x77   : > { %4404 = shalt.err (!%p4401_p11)
}
  0x78   : > { %4070 = dma.hbm_to_vmem [thread:$0]  (!%p4868_p6), %s10797_s3, 1024, %s432_s14, [#allocation8]  }
  0x79   : > { %s4405_s18 = scalar_lea.hbm %s10515_s5, 256 }
  0x7a   : > { %p4406_p12 = scmp.ne.s32.totalorder %s10515_s5, %s4405_s18  ;;  %p4412_p2 = scmp.lt.u32.totalorder %s4405_s18, %s10515_s5 }
  0x7c   : > { %p4408_p13 = pnand %p4406_p12, %p4885_p8 }
  0x7e   : > { %p4409_p0 = pneg %p4408_p13 }
  0x80   : > { %p4414_p5 = pnand %p4412_p2, %p4409_p0 }
  0x82   : > { %4417 = shalt.err (!%p4414_p5)
}
  0x83   : > { %s4418_s12 = scalar_lea.vmem %s460_s17, 256  ;;  %p4426_p1 = scmp.lt.s32.totalorder %s460_s17, %s460_s17 }
  0x84   : > { %p4419_p7 = scmp.ne.s32.totalorder %s460_s17, %s4418_s12  ;;  %p4427_p3 = scmp.lt.s32.totalorder %s4418_s12, %s4418_s12 }
  0x86   : > { %p4421_p9 = pnand %p4419_p7, %p4885_p8  ;;  %p4428_p10 = por %p4427_p3, %p4426_p1 }
  0x88   : > { %p4422_p4 = pneg %p4421_p9 }
  0x8a   : > { %p4429_p11 = pnand %p4428_p10, %p4422_p4 }
  0x8c   : > { %4432 = shalt.err (!%p4429_p11)
}
  0x8d   : > { %4076 = dma.hbm_to_vmem [thread:$0]  (!%p4868_p6), %s10515_s5, 256, %s460_s17, [#allocation11]  }
  0x8e   : > { %s4738_s27 = smov [#allocation13]   ;;  %s4433_s18 = scalar_lea.hbm %s10516_s6, 1024 }
  0x8f   : > { %s473_s29 = sshll.u32 %s4738_s27, 4  ;;  %p4434_p12 = scmp.ne.s32.totalorder %s10516_s6, %s4433_s18  ;;  %s474_s29 = int_to_ptr.vmem [resolvable:$true] %s473_s29 }
  0x90   : > { %p4440_p2 = scmp.lt.u32.totalorder %s4433_s18, %s10516_s6 }
  0x91   : > { %p4436_p13 = pnand %p4434_p12, %p4885_p8 }
  0x93   : > { %p4437_p0 = pneg %p4436_p13 }
  0x95   : > { %p4442_p5 = pnand %p4440_p2, %p4437_p0 }
  0x97   : > { %4445 = shalt.err (!%p4442_p5)
}
  0x98   : > { %s4446_s17 = scalar_lea.vmem %s474_s29, 1024  ;;  %p4454_p1 = scmp.lt.s32.totalorder %s474_s29, %s474_s29 }
  0x99   : > { %p4447_p7 = scmp.ne.s32.totalorder %s474_s29, %s4446_s17  ;;  %p4455_p3 = scmp.lt.s32.totalorder %s4446_s17, %s4446_s17 }
  0x9b   : > { %p4449_p9 = pnand %p4447_p7, %p4885_p8  ;;  %p4456_p10 = por %p4455_p3, %p4454_p1 }
  0x9d   : > { %p4450_p4 = pneg %p4449_p9 }
  0x9f   : > { %p4457_p11 = pnand %p4456_p10, %p4450_p4 }
  0xa1   : > { %4460 = shalt.err (!%p4457_p11)
}
  0xa2   : > { %4079 = dma.hbm_to_vmem [thread:$0]  (!%p4868_p6), %s10516_s6, 1024, %s474_s29, [#allocation14]  }
  0xa3   : > { %s3821_s11 = sadd.s32 4294967294, %s4731_s26   ;;  %s45_s19 = sadd.s32 1, %s4727_s25 }
  0xa4   : > { %p46_p8 = scmp.ge.s32.totalorder %s45_s19, 2  ;;  %s78_s16 = sadd.s32 1, %s4719_s23 }
  0xa5   : > { %p85_p12 = scmp.ne.s32.totalorder %s4719_s23, %s4715_s22  ;;  %p86_p13 = scmp.eq.s32.totalorder %s4731_s26, 0 }
  0xa6   : > { %s11805_s19 = smov (%p46_p8, %s45_s19), 0  ;;  %p91_p2 = scmp.ne.s32.totalorder %s4715_s22, %s4711_s21 }
  0xa7   : > { %p4995_p0 = por %p86_p13, %p85_p12  ;;  %s73_s29 = ssub.s32 %s4727_s25, %s11805_s19 }
  0xa8   : > { %s10799_s2 = sadd.s32 4294967295, %s4731_s26   ;;  %p76_p5 = scmp.eq.s32.totalorder %s73_s29, 0 }
  0xa9   : > { %p5005_p6 = scmp.eq.s32.totalorder %s10799_s2, 1  ;;  %p10801_p7 = scmp.ne.s32.totalorder %s10790_s30, 0 }
  0xaa   : > { %p383_p1 = scmp.eq.s32.totalorder %s3821_s11, 1  ;;  %p4094_p10 = scmp.lt.s32.totalorder %s4731_s26, 2 }
  0xab   : > { %s10800_s15 = scalar_select %p5005_p6, 1, 0 }
  0xac   : > { %p5011_p9 = por %p10801_p7, %p91_p2  ;;  %p5017_p4 = por %p5005_p6, %p85_p12 }
  0xad   : > { %s5022_s28 = scalar_select %p76_p5, %s4719_s23, %s78_s16  }
  0xae   : > { %s10803_s20 = scalar_select %p5017_p4, 1, 0 }
  0xaf   : > { %p5024_p3 = por %p383_p1, %p91_p2  ;;  %s484_s9 = sand.u32 1, %s4719_s23  }
  0xb0   : > { %s4010_s17 = sshll.u32 %s4727_s25, 13  ;;  %s3830_s12 = sshll.u32 %s484_s9, 9 }
  0xb1   : > { %s10804_s0 = scalar_select %p5024_p3, 1, 0 }
  0xb2   : > { %s5034_s2 = scalar_lea.hbm %s10511_s1, %s4010_s17  ;;  %s488_s11 = scalar_lea.vmem [#allocation6], %s3830_s12 }
  0xb3   : > { %s498_s16 = sshll.u32 %s488_s11, 4  ;;  %p5038_p11 = pnand %p4094_p10, %p4995_p0  ;;  %s5042_s16 = int_to_ptr.vmem [resolvable:$true] %s498_s16 }
  0xb4   : > { %s5044_s4 = scalar_lea.sflag [#allocation3], %s484_s9  ;;  %s4461_s14 = scalar_lea.hbm %s5034_s2, 8192 }
  0xb5   : > { %p4462_p8 = scmp.ne.s32.totalorder %s5034_s2, %s4461_s14  ;;  %p4463_p12 = pneg %p5038_p11 }
  0xb6   : > { %s4466_s12 = scalar_lea.hbm %s10511_s1, 16384  ;;  %p4467_p0 = scmp.lt.u32.totalorder %s5034_s2, %s10511_s1 }
  0xb7   : > { %p4464_p13 = pnand %p4463_p12, %p4462_p8  ;;  %p4468_p5 = scmp.lt.u32.totalorder %s4466_s12, %s4461_s14 }
  0xb8   : > { %p4470_p1 = scmp.lt.u32.totalorder %s4461_s14, %s5034_s2 }
  0xb9   : > { %p4465_p2 = pneg %p4464_p13  ;;  %p4469_p7 = por %p4468_p5, %p4467_p0 }
  0xbb   : > { %p4471_p10 = por %p4470_p1, %p4469_p7 }
  0xbd   : > { %p4472_p3 = pnand %p4471_p10, %p4465_p2 }
  0xbf   : > { %4475 = shalt.err (!%p4472_p3)
}
  0xc0   : > { %s4476_s9 = scalar_lea.vmem %s5042_s16, 8192  ;;  %s4739_s17 = smov [#allocation6]  }
  0xc1   : > { %p4477_p8 = scmp.ne.s32.totalorder %s5042_s16, %s4476_s9  ;;  %s4481_s27 = sshll.u32 %s4739_s17, 4  ;;  %s4482_s27 = int_to_ptr.vmem [resolvable:$false] %s4481_s27 }
  0xc2   : > { %s4483_s29 = scalar_lea.vmem %s4482_s27, 16384  ;;  %p4484_p6 = scmp.lt.s32.totalorder %s5042_s16, %s4482_s27 }
  0xc3   : > { %p4479_p13 = pnand %p4477_p8, %p4463_p12  ;;  %p4485_p0 = scmp.lt.s32.totalorder %s4483_s29, %s4476_s9 }
  0xc5   : > { %p4480_p4 = pneg %p4479_p13  ;;  %p4486_p5 = por %p4485_p0, %p4484_p6 }
  0xc7   : > { %p4487_p7 = pnand %p4486_p5, %p4480_p4 }
  0xc9   : > { %4490 = shalt.err (!%p4487_p7)
}
  0xca   : > { %s4740_s14 = smov 1024   ;;  %s4741_s12 = smov 64  }
  0xcb   : > { %4083 = dma.hbm_to_vmem [thread:$0]  (!%p5038_p11), %s5034_s2, 8192, %s5042_s16, %s5044_s4, %s4740_s14, %s4740_s14, %s4741_s12  }
  0xcc   : > { %p10806_p3 = scmp.ne.s32.totalorder %s10791_s13, 0 }
  0xce   : > { %510 = sbr.rel (%p10806_p3) target bundleno = 1020 (0x3fc), region = 48 }
  0xd5   : > { %p10807_p12 = scmp.ne.s32.totalorder %s10790_s30, 0 }
  0xd7   : > { %4674 = dma.done.wait (%p10807_p12), [#allocation5], 16  }
  0xd8   : > { %4676 = vsyncadd (%p10807_p12), [#allocation5], 4294967280  ;;  %s5079_s11 = sand.u32 1, %s4715_s22  }
  0xd9   : > { %s3836_s9 = sshll.u32 %s5079_s11, 9  ;;  %s517_s17 = scalar_lea.sflag [#allocation3], %s5079_s11 }
  0xda   : > { %s5083_s27 = scalar_lea.vmem [#allocation6], %s3836_s9 }
  0xdb   : > { %4678 = dma.done.wait (%p5011_p9), %s517_s17, 8192  }
  0xdc   : > { %4680 = vsyncadd (%p5011_p9), %s517_s17, 4294959104 }
  0xdd   : > { %4682 = dma.done.wait (%p10807_p12), [#allocation8], 2048  }
  0xde   : > { %4684 = vsyncadd (%p10807_p12), [#allocation8], 4294965248 }
  0xdf   : > { %4686 = dma.done.wait (%p10807_p12), [#allocation11], 512  }
  0xe0   : > { %4688 = vsyncadd (%p10807_p12), [#allocation11], 4294966784 }
  0xe1   : > { %4690 = dma.done.wait (%p10807_p12), [#allocation14], 1024  }
  0xe2   : > { %4692 = vsyncadd (%p10807_p12), [#allocation14], 4294966272 }
  0xe3   : > { %545 = sfence }
  0xe4   : > { %s3842_s3 = sshll.u32 %s5079_s11, 7  ;;  %p586_p6 = scmp.eq.s32.totalorder %s4723_s24, 0 }
  0xe5   : > { %s5103_s4 = scalar_lea.vmem [#allocation22], %s3842_s3  ;;  %p3843_p9 = scmp.ne.s32.totalorder %s4723_s24, 0 }
  0xe6   : > { %v590_v0 = vld [vmem:[#allocation7] sm:$0xff] (!%p3843_p9)  ;;  %v591_v1 = vld [vmem:[#allocation7 + $0x8] sm:$0xff] (!%p3843_p9)  ;;  %v592_v2 = vld [vmem:[#allocation7 + $0x10] sm:$0xff] (!%p3843_p9) }
  0xe7   : > { %589 = sbr.rel (%p3843_p9) target bundleno = 245 (0xf5), region = 80  ;;  %598 = vst [vmem:[#allocation15] sm:$0xff] (!%p3843_p9), %v590_v0  ;;  %599 = vst [vmem:[#allocation15 + $0x8] sm:$0xff] (!%p3843_p9), %v591_v1  ;;  %v593_v3 = vld [vmem:[#allocation7 + $0x18] sm:$0xff] (!%p3843_p9)  ;;  %v594_v4 = vld [vmem:[#allocation7 + $0x20] sm:$0xff] (!%p3843_p9) }
  0xe8   : > { %600 = vst [vmem:[#allocation15 + $0x10] sm:$0xff] (!%p3843_p9), %v592_v2  ;;  %v595_v5 = vld [vmem:[#allocation7 + $0x28] sm:$0xff] (!%p3843_p9)  ;;  %601 = vst [vmem:[#allocation15 + $0x18] sm:$0xff] (!%p3843_p9), %v593_v3  ;;  %v596_v6 = vld [vmem:[#allocation7 + $0x30] sm:$0xff] (!%p3843_p9) }
  0xe9   : > { %602 = vst [vmem:[#allocation15 + $0x20] sm:$0xff] (!%p3843_p9), %v594_v4  ;;  %603 = vst [vmem:[#allocation15 + $0x28] sm:$0xff] (!%p3843_p9), %v595_v5  ;;  %v597_v7 = vld [vmem:[#allocation7 + $0x38] sm:$0xff] (!%p3843_p9)  ;;  %v606_v8 = vld [vmem:[#allocation9] sm:$0xff] (!%p3843_p9) }
  0xea   : > { %604 = vst [vmem:[#allocation15 + $0x30] sm:$0xff] (!%p3843_p9), %v596_v6  ;;  %605 = vst [vmem:[#allocation15 + $0x38] sm:$0xff] (!%p3843_p9), %v597_v7  ;;  %v607_v9 = vld [vmem:[#allocation9 + $0x8] sm:$0xff] (!%p3843_p9)  ;;  %v608_v10 = vld [vmem:[#allocation9 + $0x10] sm:$0xff] (!%p3843_p9) }
  0xeb   : > { %614 = vst [vmem:[#allocation16] sm:$0xff] (!%p3843_p9), %v606_v8  ;;  %v609_v11 = vld [vmem:[#allocation9 + $0x18] sm:$0xff] (!%p3843_p9)  ;;  %615 = vst [vmem:[#allocation16 + $0x8] sm:$0xff] (!%p3843_p9), %v607_v9  ;;  %v610_v12 = vld [vmem:[#allocation9 + $0x20] sm:$0xff] (!%p3843_p9) }
  0xec   : > { %616 = vst [vmem:[#allocation16 + $0x10] sm:$0xff] (!%p3843_p9), %v608_v10  ;;  %617 = vst [vmem:[#allocation16 + $0x18] sm:$0xff] (!%p3843_p9), %v609_v11  ;;  %v611_v13 = vld [vmem:[#allocation9 + $0x28] sm:$0xff] (!%p3843_p9)  ;;  %v612_v14 = vld [vmem:[#allocation9 + $0x30] sm:$0xff] (!%p3843_p9) }
  0xed   : > { %618 = vst [vmem:[#allocation16 + $0x20] sm:$0xff] (!%p3843_p9), %v610_v12  ;;  %619 = vst [vmem:[#allocation16 + $0x28] sm:$0xff] (!%p3843_p9), %v611_v13  ;;  %v613_v15 = vld [vmem:[#allocation9 + $0x38] sm:$0xff] (!%p3843_p9)  ;;  %v622_v16 = vld [vmem:[#allocation10] sm:$0xff] (!%p3843_p9) }
  0xee   : > { %620 = vst [vmem:[#allocation16 + $0x30] sm:$0xff] %v612_v14  ;;  %v623_v17 = vld [vmem:[#allocation10 + $0x8] sm:$0xff]  ;;  %621 = vst [vmem:[#allocation16 + $0x38] sm:$0xff] %v613_v15  ;;  %v626_v18 = vld [vmem:[#allocation12] sm:$0xff] }
  0xef   : > { %624 = vst [vmem:[#allocation18] sm:$0xff] %v622_v16  ;;  %625 = vst [vmem:[#allocation18 + $0x8] sm:$0xff] %v623_v17  ;;  %v627_v19 = vld [vmem:[#allocation12 + $0x8] sm:$0xff]  ;;  %v630_v20 = vld [vmem:[#allocation13] sm:$0xff] }
  0xf0   : > { %628 = vst [vmem:[#allocation19] sm:$0xff] %v626_v18  ;;  %629 = vst [vmem:[#allocation19 + $0x8] sm:$0xff] %v627_v19  ;;  %v631_v21 = vld [vmem:[#allocation13 + $0x8] sm:$0xff]  ;;  %v632_v22 = vld [vmem:[#allocation13 + $0x10] sm:$0xff] }
  0xf1   : > { %638 = vst [vmem:[#allocation21] sm:$0xff] %v630_v20  ;;  %v633_v23 = vld [vmem:[#allocation13 + $0x18] sm:$0xff]  ;;  %639 = vst [vmem:[#allocation21 + $0x8] sm:$0xff] %v631_v21  ;;  %v634_v24 = vld [vmem:[#allocation13 + $0x20] sm:$0xff] }
  0xf2   : > { %640 = vst [vmem:[#allocation21 + $0x10] sm:$0xff] %v632_v22  ;;  %641 = vst [vmem:[#allocation21 + $0x18] sm:$0xff] %v633_v23  ;;  %v635_v25 = vld [vmem:[#allocation13 + $0x28] sm:$0xff]  ;;  %v636_v26 = vld [vmem:[#allocation13 + $0x30] sm:$0xff] }
  0xf3   : > { %642 = vst [vmem:[#allocation21 + $0x20] sm:$0xff] %v634_v24  ;;  %643 = vst [vmem:[#allocation21 + $0x28] sm:$0xff] %v635_v25  ;;  %v637_v27 = vld [vmem:[#allocation13 + $0x38] sm:$0xff] }
  0xf4   : > { %644 = vst [vmem:[#allocation21 + $0x30] sm:$0xff] %v636_v26  ;;  %645 = vst [vmem:[#allocation21 + $0x38] sm:$0xff] %v637_v27 }
  0xf5 PF: > { %s646_s30 = sld [smem:[#allocation2]]  ;;  %s3844_s13 = sld [smem:[#allocation2 + $0x1]]  ;;  %v5118_v33 = vld [vmem:[#allocation15] sm:$0xff]  ;;  %v5120_v34 = vld [vmem:[#allocation15 + $0x8] sm:$0xff]  ;;  %vm10548_vm1 = vmmov 1  }
  0xf6   : > { %s5106_s18 = sld [smem:[#allocation2 + $0x2]]  ;;  %v686_v28 = vld [vmem:[#allocation18] sm:$0xff]  ;;  %s5108_s2 = sld [smem:[#allocation2 + $0x3]]  ;;  %v5128_v43 = vld [vmem:[#allocation15 + $0x10] sm:$0xff]  ;;  %v5130_v44 = vld [vmem:[#allocation15 + $0x18] sm:$0xff] }
  0xf7   : > { %s5110_s16 = sld [smem:[#allocation2 + $0x8]]  ;;  %s5116_s29 = sld [smem:[#allocation2 + $0x9]]  ;;  %v688_v37 = vunpack.c.0.s8 %v686_v28  ;;  %v689_v38 = vunpack.c.1.s8 %v686_v28  ;;  %v690_v45 = vunpack.c.2.s8 %v686_v28  ;;  %v691_v46 = vunpack.c.3.s8 %v686_v28  ;;  %v5176_v19 = vld [vmem:[#allocation19] sm:$0xff]  ;;  %v708_v20 = vld [vmem:[%s5083_s27] sm:$0xff]  ;;  %v709_v27 = vld [vmem:[%s5083_s27 + $0x8] sm:$0xff] }
  0xf8   : > { %s5138_s14 = sld [smem:[#allocation2 + $0x4]]  ;;  %s5160_s12 = sld [smem:[#allocation2 + $0x5]]  ;;  %vm706_vm0 = vnez %v5176_v19 }
  0xf9   : > { %v670_v29 = vld [vmem:[#allocation16] sm:$0xff]  ;;  %v671_v30 = vld [vmem:[#allocation16 + $0x8] sm:$0xff]  ;;  %v696_v51 = vcvt.s32.f32 %v688_v37  ;;  %v697_v52 = vcvt.s32.f32 %v689_v38  ;;  %v698_v55 = vcvt.s32.f32 %v690_v45  ;;  %v699_v59 = vcvt.s32.f32 %v691_v46  ;;  %s5166_s9 = sld [smem:[#allocation2 + $0x6]]  ;;  %s5189_s17 = sld [smem:[#allocation2 + $0x7]]  ;;  %vm879_vm2 = vmxor %vm706_vm0, %vm10548_vm1 }
  0xfa   : > { %v672_v35 = vld [vmem:[#allocation16 + $0x10] sm:$0xff]  ;;  %v673_v36 = vld [vmem:[#allocation16 + $0x18] sm:$0xff]  ;;  %s3854_s3 = sld [smem:[#allocation2 + $0xb]]  ;;  %p11600_p11 = scmp.ne.s32.totalorder %s10800_s15, 0 }
  0xfb   : > { %v5112_v31 = vstv %s646_s30  ;;  %v5114_v32 = vstv %s3844_s13  ;;  %s5230_s30 = sld [smem:[#allocation2 + $0xc]]  ;;  %s5235_s13 = sld [smem:[#allocation2 + $0xa]] }
  0xfc   : > { %v717_v39 = vmul.f32 %v5112_v31, %v670_v29  ;;  %v718_v40 = vmul.f32 %v5112_v31, %v671_v30  ;;  %v726_v41 = vmul.f32 %v5114_v32, %v5118_v33  ;;  %v727_v42 = vmul.f32 %v5114_v32, %v5120_v34  ;;  %v710_v30 = vld [vmem:[%s5083_s27 + $0x10] sm:$0xff] }
  0xfd   : > { %v719_v47 = vmul.f32 %v5112_v31, %v672_v35  ;;  %v720_v48 = vmul.f32 %v5112_v31, %v673_v36  ;;  %v728_v49 = vmul.f32 %v5114_v32, %v5128_v43  ;;  %v729_v50 = vmul.f32 %v5114_v32, %v5130_v44  ;;  %v711_v36 = vld [vmem:[%s5083_s27 + $0x18] sm:$0xff] }
  0xfe   : > { %v734_v53 = vadd.f32 %v726_v41, %v717_v39  ;;  %v735_v54 = vadd.f32 %v727_v42, %v718_v40  ;;  %v5141_v56 = vstv %s5106_s18  ;;  %v5144_v57 = vstv %s5108_s2  ;;  %s9053_s18 = sld [smem:[#allocation2 + $0xd]]  ;;  %s9133_s2 = sld [smem:[#allocation2 + $0xe]] }
  0xff   : > { %v5147_v58 = vstv %s5110_s16  ;;  %v736_v60 = vadd.f32 %v728_v49, %v719_v47  ;;  %v737_v61 = vadd.f32 %v729_v50, %v720_v48  ;;  %v5150_v62 = vstv %s5116_s29  ;;  %s9135_s16 = sld [smem:[#allocation2 + $0xf]] }
 0x100   : > { %v812_v63 = vmul.f32 %v5147_v58, %v5118_v33  ;;  %v813_v0 = vmul.f32 %v5147_v58, %v5120_v34  ;;  %v814_v1 = vmul.f32 %v5147_v58, %v5128_v43  ;;  %v815_v2 = vmul.f32 %v5147_v58, %v5130_v44 }
 0x101   : > { %v743_v3 = vadd.f32 %v5141_v56, %v734_v53  ;;  %v744_v4 = vadd.f32 %v5141_v56, %v735_v54  ;;  %v752_v5 = vmul.f32 %v5144_v57, %v696_v51  ;;  %v753_v6 = vmul.f32 %v5144_v57, %v697_v52 }
 0x102   : > { %v821_v7 = vadd.f32 %v5150_v62, %v812_v63  ;;  %v822_v8 = vadd.f32 %v5150_v62, %v813_v0  ;;  %v823_v9 = vadd.f32 %v5150_v62, %v814_v1  ;;  %v824_v10 = vadd.f32 %v5150_v62, %v815_v2  ;;  %v687_v1 = vld [vmem:[#allocation18 + $0x8] sm:$0xff] }
 0x103   : > { %v745_v11 = vadd.f32 %v5141_v56, %v736_v60  ;;  %v746_v12 = vadd.f32 %v5141_v56, %v737_v61  ;;  %v754_v13 = vmul.f32 %v5144_v57, %v698_v55  ;;  %v755_v14 = vmul.f32 %v5144_v57, %v699_v59 }
 0x104   : > { %v829_v15 = vmin.f32 %v821_v7, 80.0  ;;  %v830_v16 = vmin.f32 %v822_v8, 80.0  ;;  %v831_v17 = vmin.f32 %v823_v9, 80.0  ;;  %v832_v18 = vmin.f32 %v824_v10, 80.0 }
 0x105   : > { %v5179_v21 = vadd.f32 %v752_v5, %v743_v3  ;;  %v5182_v22 = vstv %s5138_s14  ;;  %v5184_v23 = vadd.f32 %v753_v6, %v744_v4  ;;  %v5187_v28 = vadd.f32 %v754_v13, %v745_v11  ;;  %s11807_s2 = smov (!%p586_p6, %s9133_s2), %s9135_s16 }
 0x106   : > { %v837_v24 = vmul.f32 1.442695, %v829_v15  ;;  %v839_v25 = vmul.f32 1.442695, %v830_v16  ;;  %v841_v26 = vmul.f32 1.442695, %v831_v17  ;;  %v5193_v35 = vadd.f32 %v755_v14, %v746_v12 }
 0x107   : > { %v843_v29 = vmul.f32 1.442695, %v832_v18  ;;  %v769_v37 = vmul.f32 %v5182_v22, %v5118_v33  ;;  %v5199_v38 = vstv %s5160_s12  ;;  %v786_v39 = vsub.f32 %v708_v20, %v5179_v21  ;;  %v674_v20 = vld [vmem:[#allocation16 + $0x20] sm:$0xff] }
 0x108   : > { %4178 = vpow2.f32 %v837_v24  ;;  %v770_v40 = vmul.f32 %v5182_v22, %v5120_v34  ;;  %v787_v41 = vsub.f32 %v709_v27, %v5184_v23  ;;  %v5206_v42 = vstv %s5166_s9  ;;  %v675_v27 = vld [vmem:[#allocation16 + $0x28] sm:$0xff] }
 0x109   : > { %4180 = vpow2.f32 %v839_v25  ;;  %v771_v45 = vmul.f32 %v5182_v22, %v5128_v43  ;;  %v788_v46 = vsub.f32 %v710_v30, %v5187_v28  ;;  %v772_v33 = vmul.f32 %v5182_v22, %v5130_v44 }
 0x10a   : > { %4182 = vpow2.f32 %v841_v26  ;;  %v789_v34 = vsub.f32 %v711_v36, %v5193_v35  ;;  %v778_v47 = vadd.f32 %v5199_v38, %v769_v37  ;;  %v795_v48 = vmul.f32 %v5206_v42, %v786_v39  ;;  %v676_v39 = vld [vmem:[#allocation16 + $0x30] sm:$0xff] }
 0x10b   : > { %4184 = vpow2.f32 %v843_v29  ;;  %v779_v43 = vadd.f32 %v5199_v38, %v770_v40  ;;  %v796_v49 = vmul.f32 %v5206_v42, %v787_v41  ;;  %v10535_v50 = vmov 0  }
 0x10c   : > { %v881_v51 = vsel %vm879_vm2, 16843009, %v10535_v50  ;;  %v780_v52 = vadd.f32 %v5199_v38, %v771_v45  ;;  %v797_v53 = vmul.f32 %v5206_v42, %v788_v46  ;;  %v781_v54 = vadd.f32 %v5199_v38, %v772_v33  ;;  %v5281_v45 = vld [vmem:[#allocation15 + $0x20] sm:$0xff]  ;;  %v677_v46 = vld [vmem:[#allocation16 + $0x38] sm:$0xff] }
 0x10d   : > { %v798_v44 = vmul.f32 %v5206_v42, %v789_v34  ;;  %v5227_v55 = vstv %s5189_s17  ;;  %v803_v59 = vadd.f32 %v795_v48, %v778_v47  ;;  %v883_v60 = vunpack.c.0.s8 %v881_v51  ;;  %v5292_v48 = vld [vmem:[#allocation15 + $0x28] sm:$0xff] }
 0x10e   : > { %v804_v63 = vadd.f32 %v796_v49, %v779_v43  ;;  %v884_v0 = vunpack.c.1.s8 %v881_v51  ;;  %v805_v3 = vadd.f32 %v797_v53, %v780_v52  ;;  %v885_v5 = vunpack.c.2.s8 %v881_v51  ;;  %v5294_v43 = vld [vmem:[#allocation15 + $0x30] sm:$0xff] }
 0x10f   : > { %v806_v7 = vadd.f32 %v798_v44, %v781_v54  ;;  %v5233_v9 = vstv %s3854_s3  ;;  %v886_v10 = vunpack.c.3.s8 %v881_v51  ;;  %vm5240_vm3 = vcmp.ne.s32.totalorder %v883_v60, 0  ;;  %v5305_v54 = vld [vmem:[#allocation15 + $0x38] sm:$0xff] }
 0x110   : > { %v692_v15 = vunpack.c.0.s8 %v687_v1  ;;  %vm5247_vm4 = vcmp.ne.s32.totalorder %v884_v0, 0  ;;  %v693_v24 = vunpack.c.1.s8 %v687_v1  ;;  %vm5255_vm6 = vcmp.ne.s32.totalorder %v885_v5, 0 }
 0x111   : > { %v694_v29 = vunpack.c.2.s8 %v687_v1  ;;  %vm5263_vm8 = vcmp.ne.s32.totalorder %v886_v10, 0  ;;  %v10816_v37 = vmov 0  ;;  %v695_v40 = vunpack.c.3.s8 %v687_v1 }
 0x112   : > { %v4179_v61 = vpop.eup %4178  ;;  %v10819_v41 = vmov 0  ;;  %v700_v33 = vcvt.s32.f32 %v692_v15  ;;  %v721_v34 = vmul.f32 %v5112_v31, %v674_v20  ;;  %v10822_v47 = vmov 0 }
 0x113   : > { %v4181_v2 = vpop.eup %4180  ;;  %v854_v4 = vmul.f32 %v4179_v61, %v5227_v55  ;;  %v701_v49 = vcvt.s32.f32 %v693_v24  ;;  %v722_v51 = vmul.f32 %v5112_v31, %v675_v27  ;;  %v730_v52 = vmul.f32 %v5114_v32, %v5281_v45 }
 0x114   : > { %v4183_v6 = vpop.eup %4182  ;;  %v855_v8 = vmul.f32 %v4181_v2, %v5227_v55  ;;  %v10825_v53 = vmov 0  ;;  %v702_v44 = vcvt.s32.f32 %v694_v29  ;;  %v731_v60 = vmul.f32 %v5114_v32, %v5292_v48 }
 0x115   : > { %v4185_v11 = vpop.eup %4184  ;;  %v856_v12 = vmul.f32 %v4183_v6, %v5227_v55  ;;  %v5238_v13 = vadd.f32 %v854_v4, %v803_v59  ;;  %v723_v59 = vmul.f32 %v5112_v31, %v676_v39  ;;  %v732_v61 = vmul.f32 %v5114_v32, %v5294_v43 }
 0x116   : > { %v857_v16 = vmul.f32 %v4185_v11, %v5227_v55  ;;  %v5245_v17 = vadd.f32 %v855_v8, %v804_v63  ;;  %v5317_v63 = vstv %s5230_s30  ;;  %v703_v0 = vcvt.s32.f32 %v695_v40 }
 0x117   : > { %v5251_v25 = vadd.f32 %v856_v12, %v805_v3  ;;  %vm871_vm5 = vcmp.ge.f32.partialorder %v5238_v13, %v5233_v9  ;;  %10828 = vst [vmem:[#allocation37_spill] sm:$0xff] %v5317_v63  ;;  %v724_v1 = vmul.f32 %v5112_v31, %v677_v46  ;;  %v733_v2 = vmul.f32 %v5114_v32, %v5305_v54 }
 0x118   : > { %v5259_v30 = vadd.f32 %v857_v16, %v806_v7  ;;  %vm872_vm7 = vcmp.ge.f32.partialorder %v5245_v17, %v5233_v9  ;;  %vm5269_vm9 = vmand %vm871_vm5, %vm5240_vm3  ;;  %v5327_v3 = vstv %s5235_s13  ;;  %v1067_v4 = vmul.f32 %v5179_v21, %v5112_v31 }
 0x119   : > { %v10817_v37 = vsel %vm5269_vm9, 4294967295, %v10816_v37  ;;  %vm873_vm10 = vcmp.ge.f32.partialorder %v5251_v25, %v5233_v9  ;;  %vm5277_vm11 = vmand %vm872_vm7, %vm5247_vm4  ;;  %v1068_v5 = vmul.f32 %v5184_v23, %v5112_v31  ;;  %v1069_v6 = vmul.f32 %v5187_v28, %v5112_v31 }
 0x11a   : > { %10818 = vst [vmem:[#allocation33_spill] sm:$0xff] %v10817_v37  ;;  %v10820_v41 = vsel %vm5277_vm11, 4294967295, %v10819_v41  ;;  %vm874_vm12 = vcmp.ge.f32.partialorder %v5259_v30, %v5233_v9  ;;  %vm5288_vm13 = vmand %vm873_vm10, %vm5255_vm6  ;;  %v1070_v7 = vmul.f32 %v5193_v35, %v5112_v31  ;;  %v738_v8 = vadd.f32 %v730_v52, %v721_v34 }
 0x11b   : > { %10821 = vst [vmem:[#allocation34_spill] sm:$0xff] %v10820_v41  ;;  %v10823_v47 = vsel %vm5288_vm13, 4294967295, %v10822_v47  ;;  %vm5301_vm14 = vmand %vm874_vm12, %vm5263_vm8  ;;  %v756_v10 = vmul.f32 %v5144_v57, %v700_v33  ;;  %v739_v21 = vadd.f32 %v731_v60, %v722_v51  ;;  %v740_v12 = vadd.f32 %v732_v61, %v723_v59 }
 0x11c   : > { %10824 = vst [vmem:[#allocation35_spill] sm:$0xff] %v10823_v47  ;;  %v10826_v53 = vsel %vm5301_vm14, 4294967295, %v10825_v53  ;;  %vm907_vm15 = vmpackc.low %vm5277_vm11, %vm5269_vm9  ;;  %v757_v23 = vmul.f32 %v5144_v57, %v701_v49  ;;  %v5346_v14 = vmul.f32 %v5144_v57, %v702_v44  ;;  %vm916_vm5 = vcmp.ge.f32.partialorder %v5238_v13, %v5317_v63 }
 0x11d   : > { %10827 = vst [vmem:[#allocation36_spill] sm:$0xff] %v10826_v53  ;;  %vm908_vm2 = vmpackc.low %vm5301_vm14, %vm5288_vm13  ;;  %v741_v35 = vadd.f32 %v733_v2, %v724_v1  ;;  %v5354_v19 = vmul.f32 %v5144_v57, %v703_v0  ;;  %v747_v24 = vadd.f32 %v5141_v56, %v738_v8  ;;  %v773_v26 = vmul.f32 %v5182_v22, %v5281_v45 }
 0x11e   : > { %vm909_vm3 = vmpackc.even %vm908_vm2, %vm907_vm15  ;;  %v774_v27 = vmul.f32 %v5182_v22, %v5292_v48  ;;  %vm918_vm6 = vcmp.ge.f32.partialorder %v5251_v25, %v5317_v63  ;;  %vm919_vm12 = vcmp.ge.f32.partialorder %v5259_v30, %v5317_v63  ;;  %v748_v36 = vadd.f32 %v5141_v56, %v739_v21 }
 0x11f   : > { %vm5340_vm4 = vmor %vm706_vm0, %vm909_vm3  ;;  %vm917_vm0 = vcmp.ge.f32.partialorder %v5245_v17, %v5317_v63  ;;  %v5377_v39 = vmul.f32 %v5182_v22, %v5294_v43  ;;  %v749_v33 = vadd.f32 %v5141_v56, %v740_v12  ;;  %v750_v34 = vadd.f32 %v5141_v56, %v741_v35 }
 0x120   : > { %v924_v28 = vsel %vm5340_vm4, 16843009, %v10535_v50  ;;  %v5393_v49 = vmul.f32 %v5182_v22, %v5305_v54  ;;  %v5408_v44 = vadd.f32 %v5199_v38, %v773_v26  ;;  %v5411_v59 = vadd.f32 %v5199_v38, %v774_v27  ;;  %v3867_v26 = vld [vmem:[%s5083_s27 + $0x40] sm:$0xff] }
 0x121   : > { %v926_v15 = vunpack.c.0.s8 %v924_v28  ;;  %v927_v16 = vunpack.c.1.s8 %v924_v28  ;;  %v928_v18 = vunpack.c.2.s8 %v924_v28  ;;  %v929_v20 = vunpack.c.3.s8 %v924_v28 }
 0x122   : > { %v10533_v61 = vmov 0.0   ;;  %v5433_v2 = vadd.f32 %v756_v10, %v747_v24 }
 0x123   : > { %vm934_vm7 = vcmp.ne.s32.totalorder %v926_v15, 0  ;;  %vm935_vm8 = vcmp.ne.s32.totalorder %v927_v16, 0  ;;  %vm936_vm10 = vcmp.ne.s32.totalorder %v928_v18, 0  ;;  %vm937_vm15 = vcmp.ne.s32.totalorder %v929_v20, 0 }
 0x124   : > { %vm5370_vm2 = vmand %vm916_vm5, %vm934_vm7  ;;  %v5429_v0 = vsel %vm5269_vm9, 1.0, %v10533_v61  ;;  %v5462_v28 = vsel %vm5277_vm11, 1.0, %v10533_v61  ;;  %v5478_v18 = vsel %vm5288_vm13, 1.0, %v10533_v61  ;;  %v5494_v27 = vsel %vm5301_vm14, 1.0, %v10533_v61 }
 0x125   : > { %vm5379_vm3 = vmand %vm917_vm0, %vm935_vm8  ;;  %v5387_v46 = vsel %vm5370_vm2, %v5327_v3, %v5238_v13  ;;  %10839 = vst [vmem:[#allocation38_spill] sm:$0xff] %v5429_v0  ;;  %v1099_v24 = vmul.f32 %v5429_v0, %v5144_v57  ;;  %v1101_v60 = vmul.f32 %v5478_v18, %v5144_v57 }
 0x126   : > { %vm5395_vm5 = vmand %vm918_vm6, %vm936_vm10  ;;  %v5403_v52 = vsel %vm5379_vm3, %v5327_v3, %v5245_v17  ;;  %v1075_v13 = vmul.f32 %v5387_v46, %v5114_v32  ;;  %v1155_v10 = vmul.f32 %v5387_v46, %v5147_v58  ;;  %10844 = vst [vmem:[#allocation39_spill] sm:$0xff] %v5462_v28 }
 0x127   : > { %vm5416_vm0 = vmand %vm919_vm12, %vm937_vm15  ;;  %v5424_v17 = vsel %vm5395_vm5, %v5327_v3, %v5251_v25  ;;  %v1076_v1 = vmul.f32 %v5403_v52, %v5114_v32  ;;  %10847 = vst [vmem:[#allocation40_spill] sm:$0xff] %v5478_v18 }
 0x128   : > { %v5439_v8 = vsel %vm5416_vm0, %v5327_v3, %v5259_v30  ;;  %vm5444_vm6 = vmxor %vm5370_vm2, %vm10548_vm1  ;;  %v1077_v21 = vmul.f32 %v5424_v17, %v5114_v32  ;;  %v1083_v12 = vadd.f32 %v1075_v13, %v1067_v4  ;;  %v1156_v4 = vmul.f32 %v5403_v52, %v5147_v58  ;;  %10850 = vst [vmem:[#allocation41_spill] sm:$0xff] %v5494_v27 }
 0x129   : > { %vm5455_vm7 = vmxor %vm5379_vm3, %vm10548_vm1  ;;  %v1078_v35 = vmul.f32 %v5439_v8, %v5114_v32  ;;  %v1084_v15 = vadd.f32 %v1076_v1, %v1068_v5  ;;  %v5482_v5 = vadd.f32 %v757_v23, %v748_v36  ;;  %v1157_v40 = vmul.f32 %v5424_v17, %v5147_v58 }
 0x12a   : > { %vm5471_vm8 = vmxor %vm5395_vm5, %vm10548_vm1  ;;  %v1085_v20 = vadd.f32 %v1077_v21, %v1069_v6  ;;  %v1091_v6 = vadd.f32 %v1083_v12, %v5141_v56  ;;  %v1100_v36 = vmul.f32 %v5462_v28, %v5144_v57  ;;  %v1158_v51 = vmul.f32 %v5439_v8, %v5147_v58 }
 0x12b   : > { %vm5487_vm10 = vmxor %vm5416_vm0, %vm10548_vm1  ;;  %v1086_v29 = vadd.f32 %v1078_v35, %v1070_v7  ;;  %v1092_v23 = vadd.f32 %v1084_v15, %v5141_v56  ;;  %v1163_v7 = vadd.f32 %v1155_v10, %v5150_v62  ;;  %v1164_v1 = vadd.f32 %v1156_v4, %v5150_v62 }
 0x12c   : > { %vm967_vm12 = vmpackc.low %vm5455_vm7, %vm5444_vm6  ;;  %v1093_v13 = vadd.f32 %v1085_v20, %v5141_v56  ;;  %v1165_v25 = vadd.f32 %v1157_v40, %v5150_v62  ;;  %v1102_v12 = vmul.f32 %v5494_v27, %v5144_v57  ;;  %v1166_v10 = vadd.f32 %v1158_v51, %v5150_v62 }
 0x12d   : > { %vm968_vm15 = vmpackc.low %vm5487_vm10, %vm5471_vm8  ;;  %v1094_v21 = vadd.f32 %v1086_v29, %v5141_v56  ;;  %v1171_v30 = vmin.f32 %v1163_v7, 80.0  ;;  %v5526_v15 = vadd.f32 %v1099_v24, %v1091_v6  ;;  %v1172_v16 = vmin.f32 %v1164_v1, 80.0  ;;  %v3868_v7 = vld [vmem:[%s5083_s27 + $0x48] sm:$0xff] }
 0x12e   : > { %vm5522_vm2 = vmpackc.even %vm968_vm15, %vm967_vm12  ;;  %v1173_v4 = vmin.f32 %v1165_v25, 80.0  ;;  %v5529_v20 = vadd.f32 %v5346_v14, %v749_v33  ;;  %v5532_v29 = vadd.f32 %v1100_v36, %v1092_v23  ;;  %v1174_v40 = vmin.f32 %v1166_v10, 80.0  ;;  %v3869_v14 = vld [vmem:[%s5083_s27 + $0x50] sm:$0xff] }
 0x12f   : > { %v1179_v61 = vmul.f32 1.442695, %v1171_v30  ;;  %v5535_v51 = vadd.f32 %v5354_v19, %v750_v34  ;;  %v5538_v50 = vadd.f32 %v1101_v60, %v1093_v13  ;;  %v1181_v27 = vmul.f32 1.442695, %v1172_v16  ;;  %vm10544_vm3 = vmand %vm5340_vm4, %vm5522_vm2  ;;  %v3870_v34 = vld [vmem:[%s5083_s27 + $0x58] sm:$0xff]  ;;  %v713_v30 = vld [vmem:[%s5083_s27 + $0x28] sm:$0xff] }
 0x130   : > { %v1183_v24 = vmul.f32 1.442695, %v1173_v4  ;;  %v816_v6 = vmul.f32 %v5147_v58, %v5281_v45  ;;  %v5547_v33 = vadd.f32 %v1102_v12, %v1094_v21  ;;  %v1185_v23 = vmul.f32 1.442695, %v1174_v40  ;;  %v5555_v45 = vld [vmem:[#allocation19 + $0x8] sm:$0xff]  ;;  %vm1219_vm5 = vmxor %vm10544_vm3, %vm10548_vm1 }
 0x131   : > { %4186 = vpow2.f32 %v1179_v61  ;;  %v817_v19 = vmul.f32 %v5147_v58, %v5292_v48  ;;  %v1115_v36 = vmul.f32 %v5387_v46, %v5182_v22  ;;  %v1131_v13 = vsub.f32 %v3867_v26, %v5526_v15 }
 0x132   : > { %4188 = vpow2.f32 %v1181_v27  ;;  %v818_v60 = vmul.f32 %v5147_v58, %v5294_v43  ;;  %v1116_v61 = vmul.f32 %v5403_v52, %v5182_v22  ;;  %v1132_v1 = vsub.f32 %v3868_v7, %v5532_v29  ;;  %v714_v7 = vld [vmem:[%s5083_s27 + $0x30] sm:$0xff] }
 0x133   : > { %4190 = vpow2.f32 %v1183_v24  ;;  %v819_v48 = vmul.f32 %v5147_v58, %v5305_v54  ;;  %v1117_v46 = vmul.f32 %v5424_v17, %v5182_v22  ;;  %v1133_v27 = vsub.f32 %v3869_v14, %v5538_v50  ;;  %v5579_v17 = vld [vmem:[%s5083_s27 + $0x20] sm:$0xff] }
 0x134   : > { %4192 = vpow2.f32 %v1185_v23  ;;  %v825_v43 = vadd.f32 %v5150_v62, %v816_v6  ;;  %v1118_v52 = vmul.f32 %v5439_v8, %v5182_v22  ;;  %v1134_v54 = vsub.f32 %v3870_v34, %v5547_v33  ;;  %v715_v23 = vld [vmem:[%s5083_s27 + $0x38] sm:$0xff] }
 0x135   : > { %vm10547_vm0 = vnez %v5555_v45  ;;  %v5583_v25 = vadd.f32 %v5199_v38, %v5377_v39  ;;  %v826_v21 = vadd.f32 %v5150_v62, %v817_v19  ;;  %v1123_v12 = vadd.f32 %v1115_v36, %v5199_v38 }
 0x136   : > { %v1139_v10 = vmul.f32 %v1131_v13, %v5206_v42  ;;  %v5591_v8 = vadd.f32 %v5199_v38, %v5393_v49  ;;  %v827_v16 = vadd.f32 %v5150_v62, %v818_v60  ;;  %v1124_v4 = vadd.f32 %v1116_v61, %v5199_v38  ;;  %vm5624_vm12 = vmxor %vm10547_vm0, %vm10548_vm1 }
 0x137   : > { %v1140_v26 = vmul.f32 %v1132_v1, %v5206_v42  ;;  %v10853_v40 = vmov 0   ;;  %v828_v24 = vadd.f32 %v5150_v62, %v819_v48  ;;  %v1125_v6 = vadd.f32 %v1117_v46, %v5199_v38 }
 0x138   : > { %v1221_v39 = vsel %vm1219_vm5, 16843009, %v10853_v40  ;;  %v1141_v14 = vmul.f32 %v1133_v27, %v5206_v42  ;;  %v790_v49 = vsub.f32 %v5579_v17, %v5433_v2  ;;  %v833_v19 = vmin.f32 %v825_v43, 80.0 }
 0x139   : > { %v1126_v34 = vadd.f32 %v1118_v52, %v5199_v38  ;;  %v1142_v36 = vmul.f32 %v1134_v54, %v5206_v42  ;;  %v791_v13 = vsub.f32 %v713_v30, %v5482_v5  ;;  %v834_v60 = vmin.f32 %v826_v21, 80.0 }
 0x13a   : > { %v1147_v61 = vadd.f32 %v1139_v10, %v1123_v12  ;;  %v1223_v1 = vunpack.c.0.s8 %v1221_v39  ;;  %v792_v48 = vsub.f32 %v714_v7, %v5529_v20  ;;  %v835_v18 = vmin.f32 %v827_v16, 80.0 }
 0x13b   : > { %v4187_v46 = vpop.eup %4186  ;;  %v1148_v28 = vadd.f32 %v1140_v26, %v1124_v4  ;;  %v1224_v27 = vunpack.c.1.s8 %v1221_v39  ;;  %v793_v0 = vsub.f32 %v715_v23, %v5535_v51  ;;  %v836_v53 = vmin.f32 %v828_v24, 80.0 }
 0x13c   : > { %v4189_v17 = vpop.eup %4188  ;;  %v1149_v43 = vadd.f32 %v1141_v14, %v1125_v6  ;;  %v1195_v52 = vmul.f32 %v4187_v46, %v5227_v55  ;;  %v1225_v47 = vunpack.c.2.s8 %v1221_v39  ;;  %v845_v54 = vmul.f32 1.442695, %v833_v19 }
 0x13d   : > { %v4191_v41 = vpop.eup %4190  ;;  %v1150_v30 = vadd.f32 %v1142_v36, %v1126_v34  ;;  %v1196_v21 = vmul.f32 %v4189_v17, %v5227_v55  ;;  %v1226_v12 = vunpack.c.3.s8 %v1221_v39  ;;  %v847_v10 = vmul.f32 1.442695, %v834_v60 }
 0x13e   : > { %v4193_v7 = vpop.eup %4192  ;;  %v1197_v16 = vmul.f32 %v4191_v41, %v5227_v55  ;;  %v5612_v4 = vadd.f32 %v1195_v52, %v1147_v61  ;;  %vm1231_vm6 = vcmp.ne.s32.totalorder %v1223_v1, 0  ;;  %v849_v26 = vmul.f32 1.442695, %v835_v18 }
 0x13f   : > { %v1198_v24 = vmul.f32 %v4193_v7, %v5227_v55  ;;  %v5615_v6 = vadd.f32 %v1196_v21, %v1148_v28  ;;  %vm1232_vm7 = vcmp.ne.s32.totalorder %v1224_v27, 0  ;;  %v851_v14 = vmul.f32 1.442695, %v836_v53 }
 0x140   : > { %v5617_v23 = vadd.f32 %v1197_v16, %v1149_v43  ;;  %vm1211_vm8 = vcmp.ge.f32.partialorder %v5612_v4, %v5233_v9  ;;  %vm1233_vm10 = vcmp.ne.s32.totalorder %v1225_v47, 0  ;;  %4194 = vpow2.f32 %v845_v54 }
 0x141   : > { %v5628_v18 = vadd.f32 %v1198_v24, %v1150_v30  ;;  %vm1212_vm15 = vcmp.ge.f32.partialorder %v5615_v6, %v5233_v9  ;;  %vm1234_vm5 = vcmp.ne.s32.totalorder %v1226_v12, 0  ;;  %vm5632_vm3 = vmand %vm1211_vm8, %vm1231_vm6  ;;  %v10856_v53 = vmov 0 }
 0x142   : > { %v10857_v53 = vsel %vm5632_vm3, 4294967295, %v10856_v53  ;;  %4196 = vpow2.f32 %v847_v10  ;;  %vm1213_vm14 = vcmp.ge.f32.partialorder %v5617_v23, %v5233_v9  ;;  %vm5638_vm13 = vmand %vm1212_vm15, %vm1232_vm7  ;;  %v10859_v47 = vmov 0 }
 0x143   : > { %10858 = vst [vmem:[#allocation42_spill] sm:$0xff] %v10857_v53  ;;  %v10860_v47 = vsel %vm5638_vm13, 4294967295, %v10859_v47  ;;  %v799_v28 = vmul.f32 %v5206_v42, %v790_v49  ;;  %v800_v39 = vmul.f32 %v5206_v42, %v791_v13  ;;  %4198 = vpow2.f32 %v849_v26  ;;  %vm5646_vm6 = vmand %vm1213_vm14, %vm1233_vm10 }
 0x144   : > { %10861 = vst [vmem:[#allocation43_spill] sm:$0xff] %v10860_v47  ;;  %vm1214_vm0 = vcmp.ge.f32.partialorder %v5628_v18, %v5233_v9  ;;  %v10862_v19 = vmov 0  ;;  %v801_v34 = vmul.f32 %v5206_v42, %v792_v48  ;;  %v802_v36 = vmul.f32 %v5206_v42, %v793_v0  ;;  %vm1247_vm8 = vmpackc.low %vm5638_vm13, %vm5632_vm3 }
 0x145   : > { %v10863_v19 = vsel %vm5646_vm6, 4294967295, %v10862_v19  ;;  %4200 = vpow2.f32 %v851_v14  ;;  %vm5652_vm7 = vmand %vm1214_vm0, %vm1234_vm5  ;;  %v10865_v60 = vmov 0  ;;  %v5663_v49 = vsel %vm5624_vm12, 16843009, %v10853_v40 }
 0x146   : > { %10864 = vst [vmem:[#allocation44_spill] sm:$0xff] %v10863_v19  ;;  %v10866_v60 = vsel %vm5652_vm7, 4294967295, %v10865_v60  ;;  %vm1248_vm14 = vmpackc.low %vm5652_vm7, %vm5646_vm6  ;;  %v807_v0 = vadd.f32 %v799_v28, %v5408_v44  ;;  %v5671_v13 = vadd.f32 %v800_v39, %v5411_v59  ;;  %v5674_v61 = vadd.f32 %v801_v34, %v5583_v25 }
 0x147   : > { %10867 = vst [vmem:[#allocation45_spill] sm:$0xff] %v10866_v60  ;;  %vm1249_vm10 = vmpackc.even %vm1248_vm14, %vm1247_vm8  ;;  %v5677_v1 = vadd.f32 %v802_v36, %v5591_v8  ;;  %v887_v44 = vunpack.c.0.s8 %v5663_v49  ;;  %v888_v59 = vunpack.c.1.s8 %v5663_v49  ;;  %v889_v46 = vunpack.c.2.s8 %v5663_v49 }
 0x148   : > { %vm10868_vm0 = vmand %vm5340_vm4, %vm5522_vm2  ;;  %vm1255_vm15 = vcmp.ge.f32.partialorder %v5612_v4, %v5317_v63  ;;  %v1404_v35 = vmul.f32 %v5526_v15, %v5112_v31  ;;  %v1405_v8 = vmul.f32 %v5532_v29, %v5112_v31  ;;  %vm1256_vm4 = vcmp.ge.f32.partialorder %v5615_v6, %v5317_v63 }
 0x149   : > { %vm5684_vm12 = vmor %vm10868_vm0, %vm1249_vm10  ;;  %v10871_v21 = vmov 0.0   ;;  %v1406_v29 = vmul.f32 %v5538_v50, %v5112_v31  ;;  %vm1257_vm2 = vcmp.ge.f32.partialorder %v5617_v23, %v5317_v63  ;;  %v1407_v26 = vmul.f32 %v5547_v33, %v5112_v31 }
 0x14a   : > { %v1263_v11 = vsel %vm5684_vm12, 16843009, %v10853_v40  ;;  %v4195_v27 = vpop.eup %4194  ;;  %v5706_v12 = vsel %vm5632_vm3, 1.0, %v10871_v21  ;;  %v5711_v15 = vsel %vm5638_vm13, 1.0, %v10871_v21  ;;  %v5749_v28 = vsel %vm5646_vm6, 1.0, %v10871_v21 }
 0x14b   : > { %v1265_v17 = vunpack.c.0.s8 %v1263_v11  ;;  %v1266_v43 = vunpack.c.1.s8 %v1263_v11  ;;  %v1267_v52 = vunpack.c.2.s8 %v1263_v11  ;;  %v1268_v54 = vunpack.c.3.s8 %v1263_v11  ;;  %10872 = vst [vmem:[#allocation46_spill] sm:$0xff] %v5706_v12  ;;  %10873 = vst [vmem:[#allocation47_spill] sm:$0xff] %v5711_v15 }
 0x14c   : > { %v4197_v30 = vpop.eup %4196  ;;  %v858_v24 = vmul.f32 %v4195_v27, %v5227_v55  ;;  %10880 = vst [vmem:[#allocation48_spill] sm:$0xff] %v5749_v28  ;;  %v1436_v33 = vmul.f32 %v5706_v12, %v5144_v57  ;;  %v1437_v39 = vmul.f32 %v5711_v15, %v5144_v57  ;;  %v1438_v15 = vmul.f32 %v5749_v28, %v5144_v57 }
 0x14d   : > { %v4199_v10 = vpop.eup %4198  ;;  %vm1273_vm5 = vcmp.ne.s32.totalorder %v1265_v17, 0  ;;  %vm1274_vm8 = vcmp.ne.s32.totalorder %v1266_v43, 0  ;;  %vm1275_vm14 = vcmp.ne.s32.totalorder %v1267_v52, 0  ;;  %vm5719_vm0 = vcmp.ne.s32.totalorder %v1268_v54, 0 }
 0x14e   : > { %vm5726_vm1 = vmand %vm1255_vm15, %vm1273_vm5  ;;  %vm5755_vm15 = vcmp.ne.s32.totalorder %v887_v44, 0  ;;  %v859_v44 = vmul.f32 %v4197_v30, %v5227_v55  ;;  %v860_v27 = vmul.f32 %v4199_v10, %v5227_v55  ;;  %vm5776_vm5 = vcmp.ne.s32.totalorder %v888_v59, 0 }
 0x14f   : > { %v4201_v7 = vpop.eup %4200  ;;  %vm5736_vm10 = vmand %vm1256_vm4, %vm1274_vm8  ;;  %v5744_v41 = vsel %vm5726_vm1, %v5327_v3, %v5612_v4  ;;  %v5798_v59 = vsel %vm5652_vm7, 1.0, %v10871_v21  ;;  %v10910_v34 = vmov 0  ;;  %v10917_v25 = vmov 0 }
 0x150   : > { %vm5762_vm4 = vmand %vm1257_vm2, %vm1275_vm14  ;;  %v5770_v36 = vsel %vm5736_vm10, %v5327_v3, %v5615_v6  ;;  %v1412_v11 = vmul.f32 %v5744_v41, %v5114_v32  ;;  %vm10887_vm2 = vcmp.ge.f32.partialorder %v5628_v18, %v5317_v63  ;;  %10890 = vst [vmem:[#allocation49_spill] sm:$0xff] %v5798_v59  ;;  %v861_v54 = vmul.f32 %v4201_v7, %v5227_v55 }
 0x151   : > { %vm5785_vm8 = vmand %vm10887_vm2, %vm5719_vm0  ;;  %v5793_v6 = vsel %vm5762_vm4, %v5327_v3, %v5617_v23  ;;  %v1413_v52 = vmul.f32 %v5770_v36, %v5114_v32  ;;  %vm10891_vm14 = vmmov 1   ;;  %v1492_v7 = vmul.f32 %v5744_v41, %v5147_v58 }
 0x152   : > { %v5807_v30 = vsel %vm5785_vm8, %v5327_v3, %v5628_v18  ;;  %vm5812_vm0 = vmxor %vm5726_vm1, %vm10891_vm14  ;;  %v1414_v10 = vmul.f32 %v5793_v6, %v5114_v32  ;;  %v1420_v16 = vadd.f32 %v1412_v11, %v1404_v35  ;;  %vm5820_vm2 = vcmp.ne.s32.totalorder %v889_v46, 0  ;;  %v3885_v46 = vld [vmem:[%s5083_s27 + $0x80] sm:$0xff] }
 0x153   : > { %vm5827_vm7 = vmxor %vm5736_vm10, %vm10891_vm14  ;;  %v1415_v50 = vmul.f32 %v5807_v30, %v5114_v32  ;;  %v1421_v60 = vadd.f32 %v1413_v52, %v1405_v8  ;;  %v1493_v35 = vmul.f32 %v5770_v36, %v5147_v58  ;;  %v5835_v11 = vadd.f32 %v858_v24, %v807_v0 }
 0x154   : > { %vm5840_vm1 = vmxor %vm5762_vm4, %vm10891_vm14  ;;  %v1422_v14 = vadd.f32 %v1414_v10, %v1406_v29  ;;  %v1439_v19 = vmul.f32 %v5798_v59, %v5144_v57  ;;  %v5849_v8 = vadd.f32 %v859_v44, %v5671_v13  ;;  %v1428_v4 = vadd.f32 %v1420_v16, %v5141_v56 }
 0x155   : > { %vm5854_vm10 = vmxor %vm5785_vm8, %vm10891_vm14  ;;  %v1423_v24 = vadd.f32 %v1415_v50, %v1407_v26  ;;  %v1494_v29 = vmul.f32 %v5793_v6, %v5147_v58  ;;  %v5862_v52 = vadd.f32 %v860_v27, %v5674_v61  ;;  %v1429_v13 = vadd.f32 %v1421_v60, %v5141_v56 }
 0x156   : > { %vm1305_vm4 = vmpackc.low %vm5827_vm7, %vm5812_vm0  ;;  %v1495_v44 = vmul.f32 %v5807_v30, %v5147_v58  ;;  %v1500_v26 = vadd.f32 %v1492_v7, %v5150_v62  ;;  %v5873_v43 = vadd.f32 %v861_v54, %v5677_v1  ;;  %v1430_v61 = vadd.f32 %v1422_v14, %v5141_v56 }
 0x157   : > { %vm1306_vm8 = vmpackc.low %vm5854_vm10, %vm5840_vm1  ;;  %v1501_v27 = vadd.f32 %v1493_v35, %v5150_v62  ;;  %v1502_v60 = vadd.f32 %v1494_v29, %v5150_v62  ;;  %vm875_vm7 = vcmp.ge.f32.partialorder %v5835_v11, %v5233_v9  ;;  %v1431_v23 = vadd.f32 %v1423_v24, %v5141_v56 }
 0x158   : > { %v1503_v1 = vadd.f32 %v1495_v44, %v5150_v62  ;;  %v1508_v54 = vmin.f32 %v1500_v26, 80.0  ;;  %vm876_vm0 = vcmp.ge.f32.partialorder %v5849_v8, %v5233_v9  ;;  %vm5888_vm6 = vmpackc.even %vm1306_vm8, %vm1305_vm4  ;;  %v10902_v10 = vmov 0  ;;  %v3888_v26 = vld [vmem:[%s5083_s27 + $0x98] sm:$0xff] }
 0x159   : > { %v10903_v10 = vsel %vm5888_vm6, 4294967295, %v10902_v10  ;;  %v5892_v16 = vadd.f32 %v1436_v33, %v1428_v4  ;;  %v1509_v7 = vmin.f32 %v1501_v27, 80.0  ;;  %v1510_v18 = vmin.f32 %v1502_v60, 80.0  ;;  %vm5910_vm4 = vmand %vm875_vm7, %vm5755_vm15  ;;  %v3886_v33 = vld [vmem:[%s5083_s27 + $0x88] sm:$0xff] }
 0x15a   : > { %v10904_v50 = vunpack.c.3.s8 %v5663_v49  ;;  %v5901_v14 = vadd.f32 %v1437_v39, %v1429_v13  ;;  %v1511_v0 = vmin.f32 %v1503_v1, 80.0  ;;  %v1516_v24 = vmul.f32 1.442695, %v1508_v54  ;;  %vm5924_vm10 = vmand %vm876_vm0, %vm5776_vm5 }
 0x15b   : > { %v10907_v49 = vmov 0  ;;  %v5915_v4 = vadd.f32 %v1438_v15, %v1430_v61  ;;  %v1518_v39 = vmul.f32 1.442695, %v1509_v7  ;;  %v1520_v29 = vmul.f32 1.442695, %v1510_v18  ;;  %vm10555_vm15 = vmand %vm5684_vm12, %vm5888_vm6  ;;  %v3887_v15 = vld [vmem:[%s5083_s27 + $0x90] sm:$0xff] }
 0x15c   : > { %vm5896_vm1 = vcmp.ne.s32.totalorder %v10904_v50, 0  ;;  %v10908_v49 = vsel %vm5910_vm4, 4294967295, %v10907_v49  ;;  %vm878_vm8 = vcmp.ge.f32.partialorder %v5873_v43, %v5233_v9  ;;  %v10911_v34 = vsel %vm5924_vm10, 4294967295, %v10910_v34 }
 0x15d   : > { %10909 = vst [vmem:[#allocation50_spill] sm:$0xff] %v10908_v49  ;;  %10912 = vst [vmem:[#allocation51_spill] sm:$0xff] %v10911_v34  ;;  %v5933_v13 = vadd.f32 %v1439_v19, %v1431_v23  ;;  %4202 = vpow2.f32 %v1516_v24  ;;  %v1522_v44 = vmul.f32 1.442695, %v1511_v0  ;;  %v1452_v17 = vmul.f32 %v5744_v41, %v5182_v22 }
 0x15e   : > { %v1468_v61 = vsub.f32 %v3885_v46, %v5892_v16  ;;  %4204 = vpow2.f32 %v1518_v39  ;;  %vm10913_vm5 = vcmp.ge.f32.partialorder %v5862_v52, %v5233_v9  ;;  %v10914_v27 = vmov 0  ;;  %vm5956_vm0 = vmand %vm878_vm8, %vm5896_vm1 }
 0x15f   : > { %vm5944_vm7 = vmand %vm10913_vm5, %vm5820_vm2  ;;  %v1453_v19 = vmul.f32 %v5770_v36, %v5182_v22  ;;  %v1469_v60 = vsub.f32 %v3886_v33, %v5901_v14  ;;  %4206 = vpow2.f32 %v1520_v29  ;;  %v10918_v25 = vsel %vm5956_vm0, 4294967295, %v10917_v25 }
 0x160   : > { %v10915_v27 = vsel %vm5944_vm7, 4294967295, %v10914_v27  ;;  %10919 = vst [vmem:[#allocation53_spill] sm:$0xff] %v10918_v25  ;;  %v1454_v41 = vmul.f32 %v5793_v6, %v5182_v22  ;;  %v1470_v23 = vsub.f32 %v3887_v15, %v5915_v4  ;;  %4208 = vpow2.f32 %v1522_v44  ;;  %vm1556_vm2 = vmxor %vm10555_vm15, %vm10891_vm14 }
 0x161   : > { %10916 = vst [vmem:[#allocation52_spill] sm:$0xff] %v10915_v27  ;;  %v1455_v36 = vmul.f32 %v5807_v30, %v5182_v22  ;;  %v1471_v1 = vsub.f32 %v3888_v26, %v5933_v13  ;;  %vm910_vm1 = vmpackc.low %vm5924_vm10, %vm5910_vm4  ;;  %v1460_v6 = vadd.f32 %v1452_v17, %v5199_v38  ;;  %v1476_v54 = vmul.f32 %v1468_v61, %v5206_v42 }
 0x162   : > { %vm911_vm8 = vmpackc.low %vm5956_vm0, %vm5944_vm7  ;;  %v1461_v7 = vadd.f32 %v1453_v19, %v5199_v38  ;;  %v1477_v30 = vmul.f32 %v1469_v60, %v5206_v42  ;;  %v1558_v18 = vsel %vm1556_vm2, 16843009, %v10853_v40  ;;  %v1462_v50 = vadd.f32 %v1454_v41, %v5199_v38 }
 0x163   : > { %v1478_v35 = vmul.f32 %v1470_v23, %v5206_v42  ;;  %v1463_v46 = vadd.f32 %v1455_v36, %v5199_v38  ;;  %v1479_v0 = vmul.f32 %v1471_v1, %v5206_v42  ;;  %vm912_vm5 = vmpackc.even %vm911_vm8, %vm910_vm1  ;;  %v1484_v24 = vadd.f32 %v1476_v54, %v1460_v6 }
 0x164   : > { %v1560_v33 = vunpack.c.0.s8 %v1558_v18  ;;  %v1485_v29 = vadd.f32 %v1477_v30, %v1461_v7  ;;  %v1561_v15 = vunpack.c.1.s8 %v1558_v18  ;;  %v1562_v61 = vunpack.c.2.s8 %v1558_v18 }
 0x165   : > { %v1486_v26 = vadd.f32 %v1478_v35, %v1462_v50  ;;  %vm10920_vm2 = vnez %v5555_v45  ;;  %v10921_v19 = vmov 0  ;;  %v1487_v41 = vadd.f32 %v1479_v0, %v1463_v46 }
 0x166   : > { %vm5992_vm15 = vmor %vm10920_vm2, %vm912_vm5  ;;  %v1563_v36 = vunpack.c.3.s8 %v1558_v18  ;;  %vm1568_vm1 = vcmp.ne.s32.totalorder %v1560_v33, 0  ;;  %vm1569_vm8 = vcmp.ne.s32.totalorder %v1561_v15, 0  ;;  %vm1570_vm2 = vcmp.ne.s32.totalorder %v1562_v61, 0 }
 0x167   : > { %v4203_v39 = vpop.eup %4202  ;;  %v10922_v19 = vsel %vm5992_vm15, 4294967295, %v10921_v19  ;;  %v925_v45 = vsel %vm5992_vm15, 16843009, %v10853_v40  ;;  %v10923_v35 = vmov 0  ;;  %v10926_v46 = vmov 0 }
 0x168   : > { %v4205_v44 = vpop.eup %4204  ;;  %v1532_v17 = vmul.f32 %v4203_v39, %v5227_v55  ;;  %vm1571_vm3 = vcmp.ne.s32.totalorder %v1563_v36, 0  ;;  %v930_v0 = vunpack.c.0.s8 %v925_v45  ;;  %v931_v33 = vunpack.c.1.s8 %v925_v45 }
 0x169   : > { %v4207_v60 = vpop.eup %4206  ;;  %v1533_v23 = vmul.f32 %v4205_v44, %v5227_v55  ;;  %v6032_v39 = vmul.f32 %v5433_v2, %v5112_v31  ;;  %v932_v15 = vunpack.c.2.s8 %v925_v45  ;;  %v6041_v44 = vsel %vm5910_vm4, 1.0, %v10871_v21 }
 0x16a   : > { %v4209_v1 = vpop.eup %4208  ;;  %v1534_v6 = vmul.f32 %v4207_v60, %v5227_v55  ;;  %v5998_v54 = vadd.f32 %v1532_v17, %v1484_v24  ;;  %v10929_v24 = vmov 0  ;;  %10935 = vst [vmem:[#allocation58_spill] sm:$0xff] %v6041_v44  ;;  %v6049_v17 = vmul.f32 %v5529_v20, %v5112_v31 }
 0x16b   : > { %v1535_v7 = vmul.f32 %v4209_v1, %v5227_v55  ;;  %v6001_v30 = vadd.f32 %v1533_v23, %v1485_v29  ;;  %v10932_v29 = vmov 0  ;;  %v933_v2 = vunpack.c.3.s8 %v925_v45 }
 0x16c   : > { %v6006_v50 = vadd.f32 %v1534_v6, %v1486_v26  ;;  %vm1548_vm5 = vcmp.ge.f32.partialorder %v5998_v54, %v5233_v9  ;;  %v6045_v26 = vmul.f32 %v5482_v5, %v5112_v31  ;;  %v6058_v61 = vsel %vm5924_vm10, 1.0, %v10871_v21 }
 0x16d   : > { %v6010_v18 = vadd.f32 %v1535_v7, %v1487_v41  ;;  %vm1549_vm13 = vcmp.ge.f32.partialorder %v6001_v30, %v5233_v9  ;;  %vm6014_vm11 = vmand %vm1548_vm5, %vm1568_vm1  ;;  %10936 = vst [vmem:[#allocation59_spill] sm:$0xff] %v6058_v61  ;;  %v6063_v5 = vsel %vm5944_vm7, 1.0, %v10871_v21  ;;  %v6068_v20 = vsel %vm5956_vm0, 1.0, %v10871_v21 }
 0x16e   : > { %v10924_v35 = vsel %vm6014_vm11, 4294967295, %v10923_v35  ;;  %vm1550_vm9 = vcmp.ge.f32.partialorder %v6006_v50, %v5233_v9  ;;  %vm6020_vm15 = vmand %vm1549_vm13, %vm1569_vm8  ;;  %10937 = vst [vmem:[#allocation60_spill] sm:$0xff] %v6063_v5  ;;  %vm6078_vm8 = vcmp.ne.s32.totalorder %v930_v0, 0  ;;  %v6084_v41 = vmul.f32 %v5535_v51, %v5112_v31 }
 0x16f   : > { %10925 = vst [vmem:[#allocation54_spill] sm:$0xff] %v10924_v35  ;;  %v10927_v46 = vsel %vm6020_vm15, 4294967295, %v10926_v46  ;;  %vm1551_vm14 = vcmp.ge.f32.partialorder %v6010_v18, %v5233_v9  ;;  %vm6026_vm6 = vmand %vm1550_vm9, %vm1570_vm2  ;;  %vm6090_vm7 = vcmp.ne.s32.totalorder %v931_v33, 0  ;;  %v6096_v36 = vmul.f32 %v6041_v44, %v5144_v57 }
 0x170   : > { %10928 = vst [vmem:[#allocation55_spill] sm:$0xff] %v10927_v46  ;;  %v10930_v24 = vsel %vm6026_vm6, 4294967295, %v10929_v24  ;;  %vm6034_vm1 = vmand %vm1551_vm14, %vm1571_vm3  ;;  %vm10943_vm14 = vnez %v10903_v10  ;;  %v10945_v51 = vmov 0  ;;  %v6113_v6 = vmul.f32 %v6058_v61, %v5144_v57 }
 0x171   : > { %10931 = vst [vmem:[#allocation56_spill] sm:$0xff] %v10930_v24  ;;  %v10933_v29 = vsel %vm6034_vm1, 4294967295, %v10932_v29  ;;  %vm1584_vm9 = vmpackc.low %vm6020_vm15, %vm6014_vm11  ;;  %v6117_v7 = vmul.f32 %v6063_v5, %v5144_v57  ;;  %v6121_v48 = vmul.f32 %v6068_v20, %v5144_v57  ;;  %v1740_v45 = vmul.f32 %v5892_v16, %v5112_v31 }
 0x172   : > { %10934 = vst [vmem:[#allocation57_spill] sm:$0xff] %v10933_v29  ;;  %10938 = vst [vmem:[#allocation61_spill] sm:$0xff] %v6068_v20  ;;  %v1742_v60 = vmul.f32 %v5915_v4, %v5112_v31  ;;  %vm10960_vm4 = vcmp.ge.f32.partialorder %v5873_v43, %v5317_v63  ;;  %v6296_v4 = vsel %vm6020_vm15, 1.0, %v10871_v21 }
 0x173   : > { %vm1585_vm13 = vmpackc.low %vm6034_vm1, %vm6026_vm6  ;;  %vm10963_vm1 = vcmp.ge.f32.partialorder %v5998_v54, %v5317_v63  ;;  %10980 = vst [vmem:[#allocation63_spill] sm:$0xff] %v6296_v4 }
 0x174   : > { %vm1586_vm5 = vmpackc.even %vm1585_vm13, %vm1584_vm9  ;;  %vm6107_vm13 = vcmp.ne.s32.totalorder %v932_v15, 0 }
 0x175   : > { %vm10944_vm3 = vmand %vm5684_vm12, %vm10943_vm14  ;;  %vm10951_vm14 = vcmp.ge.f32.partialorder %v5835_v11, %v5317_v63  ;;  %vm10954_vm12 = vcmp.ge.f32.partialorder %v5849_v8, %v5317_v63 }
 0x176   : > { %vm6103_vm9 = vmor %vm10944_vm3, %vm1586_vm5  ;;  %vm6130_vm3 = vcmp.ne.s32.totalorder %v933_v2, 0  ;;  %v1741_v2 = vmul.f32 %v5901_v14, %v5112_v31 }
 0x177   : > { %v10946_v51 = vsel %vm6103_vm9, 4294967295, %v10945_v51  ;;  %v1600_v10 = vsel %vm6103_vm9, 16843009, %v10853_v40  ;;  %vm6139_vm5 = vmand %vm10951_vm14, %vm6078_vm8 }
 0x178   : > { %v1602_v15 = vunpack.c.0.s8 %v1600_v10  ;;  %v1603_v20 = vunpack.c.1.s8 %v1600_v10  ;;  %v1604_v5 = vunpack.c.2.s8 %v1600_v10  ;;  %v1605_v61 = vunpack.c.3.s8 %v1600_v10  ;;  %vm6148_vm0 = vmand %vm10954_vm12, %vm6090_vm7 }
 0x179   : > { %v1743_v10 = vmul.f32 %v5933_v13, %v5112_v31  ;;  %vm10957_vm7 = vcmp.ge.f32.partialorder %v5862_v52, %v5317_v63  ;;  %vm6176_vm9 = vmand %vm10960_vm4, %vm6130_vm3  ;;  %v6193_v13 = vsel %vm6139_vm5, %v5327_v3, %v5835_v11  ;;  %vm10966_vm4 = vcmp.ge.f32.partialorder %v6001_v30, %v5317_v63 }
 0x17a   : > { %vm6165_vm8 = vmand %vm10957_vm7, %vm6107_vm13  ;;  %vm1610_vm14 = vcmp.ne.s32.totalorder %v1602_v15, 0  ;;  %vm1611_vm2 = vcmp.ne.s32.totalorder %v1603_v20, 0  ;;  %vm1612_vm10 = vcmp.ne.s32.totalorder %v1604_v5, 0  ;;  %vm1595_vm13 = vcmp.ge.f32.partialorder %v6010_v18, %v5317_v63 }
 0x17b   : > { %vm1613_vm7 = vcmp.ne.s32.totalorder %v1605_v61, 0  ;;  %vm6185_vm12 = vmand %vm10963_vm1, %vm1610_vm14  ;;  %v6199_v5 = vsel %vm6148_vm0, %v5327_v3, %v5849_v8  ;;  %v6218_v11 = vsel %vm6165_vm8, %v5327_v3, %v5862_v52  ;;  %v1079_v8 = vmul.f32 %v6193_v13, %v5114_v32 }
 0x17c   : > { %vm6204_vm3 = vmand %vm10966_vm4, %vm1611_vm2  ;;  %v6212_v20 = vsel %vm6185_vm12, %v5327_v3, %v5998_v54  ;;  %v1080_v1 = vmul.f32 %v6199_v5, %v5114_v32  ;;  %vm10969_vm1 = vcmp.ge.f32.partialorder %v6006_v50, %v5317_v63  ;;  %v6243_v15 = vsel %vm6176_vm9, %v5327_v3, %v5873_v43 }
 0x17d   : > { %vm6227_vm2 = vmand %vm10969_vm1, %vm1612_vm10  ;;  %v6235_v54 = vsel %vm6204_vm3, %v5327_v3, %v6001_v30  ;;  %v1748_v52 = vmul.f32 %v6212_v20, %v5114_v32  ;;  %v1081_v44 = vmul.f32 %v6218_v11, %v5114_v32  ;;  %v6263_v43 = vsel %vm6014_vm11, 1.0, %v10871_v21 }
 0x17e   : > { %vm6250_vm10 = vmand %vm1595_vm13, %vm1613_vm7  ;;  %v6258_v30 = vsel %vm6227_vm2, %v5327_v3, %v6006_v50  ;;  %10974 = vst [vmem:[#allocation62_spill] sm:$0xff] %v6263_v43  ;;  %v1749_v28 = vmul.f32 %v6235_v54, %v5114_v32  ;;  %v1082_v47 = vmul.f32 %v6243_v15, %v5114_v32  ;;  %vm10975_vm14 = vmmov 1  }
 0x17f   : > { %v6273_v12 = vsel %vm6250_vm10, %v5327_v3, %v6010_v18  ;;  %vm6278_vm13 = vmxor %vm6185_vm12, %vm10975_vm14  ;;  %v1750_v35 = vmul.f32 %v6258_v30, %v5114_v32  ;;  %v1756_v53 = vadd.f32 %v1748_v52, %v1740_v45  ;;  %v1828_v25 = vmul.f32 %v6212_v20, %v5147_v58 }
 0x180   : > { %vm6289_vm7 = vmxor %vm6204_vm3, %vm10975_vm14  ;;  %v1751_v27 = vmul.f32 %v6273_v12, %v5114_v32  ;;  %v1757_v34 = vadd.f32 %v1749_v28, %v1741_v2  ;;  %v1829_v45 = vmul.f32 %v6235_v54, %v5147_v58  ;;  %v6312_v52 = vsel %vm6026_vm6, 1.0, %v10871_v21 }
 0x181   : > { %vm6305_vm12 = vmxor %vm6227_vm2, %vm10975_vm14  ;;  %10983 = vst [vmem:[#allocation64_spill] sm:$0xff] %v6312_v52  ;;  %v1758_v46 = vadd.f32 %v1750_v35, %v1742_v60  ;;  %v1772_v49 = vmul.f32 %v6263_v43, %v5144_v57  ;;  %v1087_v28 = vadd.f32 %v1079_v8, %v6032_v39  ;;  %vm10986_vm3 = vnez %v10933_v29 }
 0x182   : > { %vm6320_vm4 = vmxor %vm6250_vm10, %vm10975_vm14  ;;  %v6327_v0 = vsel %vm10986_vm3, 1.0, %v10871_v21  ;;  %v1759_v24 = vadd.f32 %v1751_v27, %v1743_v10  ;;  %v1764_v35 = vadd.f32 %v1756_v53, %v5141_v56  ;;  %v1830_v60 = vmul.f32 %v6258_v30, %v5147_v58 }
 0x183   : > { %10987 = vst [vmem:[#allocation65_spill] sm:$0xff] %v6327_v0  ;;  %vm1642_vm1 = vmpackc.low %vm6289_vm7, %vm6278_vm13  ;;  %v1765_v59 = vadd.f32 %v1757_v34, %v5141_v56  ;;  %v1773_v39 = vmul.f32 %v6296_v4, %v5144_v57  ;;  %v1831_v8 = vmul.f32 %v6273_v12, %v5147_v58  ;;  %v1836_v27 = vadd.f32 %v1828_v25, %v5150_v62  ;;  %v3903_v4 = vld [vmem:[%s5083_s27 + $0xc0] sm:$0xff] }
 0x184   : > { %vm1643_vm2 = vmpackc.low %vm6320_vm4, %vm6305_vm12  ;;  %v1766_v53 = vadd.f32 %v1758_v46, %v5141_v56  ;;  %v1774_v10 = vmul.f32 %v6312_v52, %v5144_v57  ;;  %v1837_v34 = vadd.f32 %v1829_v45, %v5150_v62  ;;  %v1838_v50 = vadd.f32 %v1830_v60, %v5150_v62 }
 0x185   : > { %v1767_v18 = vadd.f32 %v1759_v24, %v5141_v56  ;;  %v1775_v25 = vmul.f32 %v6327_v0, %v5144_v57  ;;  %v1839_v61 = vadd.f32 %v1831_v8, %v5150_v62  ;;  %v1844_v29 = vmin.f32 %v1836_v27, 80.0  ;;  %vm6355_vm10 = vmpackc.even %vm1643_vm2, %vm1642_vm1 }
 0x186   : > { %v6359_v46 = vadd.f32 %v1772_v49, %v1764_v35  ;;  %v1845_v52 = vmin.f32 %v1837_v34, 80.0  ;;  %v1846_v45 = vmin.f32 %v1838_v50, 80.0  ;;  %v1088_v60 = vadd.f32 %v1080_v1, %v6045_v26  ;;  %vm6368_vm13 = vmxor %vm6139_vm5, %vm10975_vm14  ;;  %v3904_v35 = vld [vmem:[%s5083_s27 + $0xc8] sm:$0xff] }
 0x187   : > { %v6363_v43 = vadd.f32 %v1773_v39, %v1765_v59  ;;  %v1847_v24 = vmin.f32 %v1839_v61, 80.0  ;;  %v1852_v0 = vmul.f32 1.442695, %v1844_v29  ;;  %v1089_v49 = vadd.f32 %v1081_v44, %v6049_v17  ;;  %vm6379_vm7 = vmxor %vm6148_vm0, %vm10975_vm14  ;;  %v3905_v44 = vld [vmem:[%s5083_s27 + $0xd0] sm:$0xff]  ;;  %v3906_v59 = vld [vmem:[%s5083_s27 + $0xd8] sm:$0xff] }
 0x188   : > { %v6374_v27 = vadd.f32 %v1774_v10, %v1766_v53  ;;  %v1854_v34 = vmul.f32 1.442695, %v1845_v52  ;;  %v1856_v26 = vmul.f32 1.442695, %v1846_v45  ;;  %v1090_v29 = vadd.f32 %v1082_v47, %v6084_v41  ;;  %vm6399_vm0 = vmxor %vm6165_vm8, %vm10975_vm14 }
 0x189   : > { %vm10994_vm5 = vnez %v10946_v51  ;;  %v6389_v17 = vadd.f32 %v1775_v25, %v1767_v18  ;;  %4210 = vpow2.f32 %v1852_v0  ;;  %v1858_v33 = vmul.f32 1.442695, %v1847_v24  ;;  %vm6410_vm4 = vmxor %vm6176_vm9, %vm10975_vm14 }
 0x18a   : > { %vm10596_vm12 = vmand %vm10994_vm5, %vm6355_vm10  ;;  %v1095_v52 = vadd.f32 %v1087_v28, %v5141_v56  ;;  %v1788_v16 = vmul.f32 %v6212_v20, %v5182_v22  ;;  %v1804_v39 = vsub.f32 %v3903_v4, %v6359_v46  ;;  %4212 = vpow2.f32 %v1854_v34 }
 0x18b   : > { %v1096_v41 = vadd.f32 %v1088_v60, %v5141_v56  ;;  %v1789_v0 = vmul.f32 %v6235_v54, %v5182_v22  ;;  %v1805_v28 = vsub.f32 %v3904_v35, %v6363_v43  ;;  %4214 = vpow2.f32 %v1856_v26  ;;  %vm1892_vm8 = vmxor %vm10596_vm12, %vm10975_vm14  ;;  %v3871_v35 = vld [vmem:[%s5083_s27 + $0x60] sm:$0xff] }
 0x18c   : > { %v1119_v23 = vmul.f32 %v6193_v13, %v5182_v22  ;;  %v1790_v4 = vmul.f32 %v6258_v30, %v5182_v22  ;;  %v1806_v53 = vsub.f32 %v3905_v44, %v6374_v27  ;;  %4216 = vpow2.f32 %v1858_v33  ;;  %vm970_vm9 = vmpackc.low %vm6379_vm7, %vm6368_vm13 }
 0x18d   : > { %v1097_v14 = vadd.f32 %v1089_v49, %v5141_v56  ;;  %v1791_v54 = vmul.f32 %v6273_v12, %v5182_v22  ;;  %v1807_v10 = vsub.f32 %v3906_v59, %v6389_v17  ;;  %v1098_v30 = vadd.f32 %v1090_v29, %v5141_v56  ;;  %vm971_vm1 = vmpackc.low %vm6410_vm4, %vm6399_vm0 }
 0x18e   : > { %v6432_v50 = vmul.f32 %v6199_v5, %v5182_v22  ;;  %v1796_v18 = vadd.f32 %v1788_v16, %v5199_v38  ;;  %v1812_v25 = vmul.f32 %v1804_v39, %v5206_v42  ;;  %v6441_v12 = vadd.f32 %v6096_v36, %v1095_v52  ;;  %vm6478_vm2 = vmpackc.even %vm971_vm1, %vm970_vm9 }
 0x18f   : > { %v6444_v61 = vadd.f32 %v6113_v6, %v1096_v41  ;;  %v1797_v45 = vadd.f32 %v1789_v0, %v5199_v38  ;;  %v1813_v60 = vmul.f32 %v1805_v28, %v5206_v42  ;;  %v1894_v24 = vsel %vm1892_vm8, 16843009, %v10853_v40 }
 0x190   : > { %v6455_v49 = vmul.f32 %v6218_v11, %v5182_v22  ;;  %v1798_v36 = vadd.f32 %v1790_v4, %v5199_v38  ;;  %v1814_v6 = vmul.f32 %v1806_v53, %v5206_v42  ;;  %v6462_v34 = vmul.f32 %v6243_v15, %v5182_v22 }
 0x191   : > { %v1159_v26 = vmul.f32 %v6193_v13, %v5147_v58  ;;  %v1799_v29 = vadd.f32 %v1791_v54, %v5199_v38  ;;  %v1815_v44 = vmul.f32 %v1807_v10, %v5206_v42  ;;  %v6469_v33 = vadd.f32 %v6117_v7, %v1097_v14 }
 0x192   : > { %v1160_v52 = vmul.f32 %v6199_v5, %v5147_v58  ;;  %v1820_v59 = vadd.f32 %v1812_v25, %v1796_v18  ;;  %v1896_v16 = vunpack.c.0.s8 %v1894_v24  ;;  %v1897_v39 = vunpack.c.1.s8 %v1894_v24 }
 0x193   : > { %v10999_v13 = vmov 0  ;;  %v6483_v47 = vadd.f32 %v6121_v48, %v1098_v30  ;;  %v4211_v7 = vpop.eup %4210  ;;  %v1821_v41 = vadd.f32 %v1813_v60, %v1797_v45  ;;  %v1127_v0 = vadd.f32 %v1119_v23, %v5199_v38 }
 0x194   : > { %v11000_v13 = vsel %vm6478_vm2, 4294967295, %v10999_v13  ;;  %v1135_v5 = vsub.f32 %v3871_v35, %v6441_v12  ;;  %v1161_v28 = vmul.f32 %v6218_v11, %v5147_v58  ;;  %v4213_v1 = vpop.eup %4212  ;;  %v1822_v20 = vadd.f32 %v1814_v6, %v1798_v36  ;;  %v3872_v36 = vld [vmem:[%s5083_s27 + $0x68] sm:$0xff]  ;;  %v3873_v6 = vld [vmem:[%s5083_s27 + $0x70] sm:$0xff]  ;;  %v3874_v35 = vld [vmem:[%s5083_s27 + $0x78] sm:$0xff] }
 0x195   : > { %v1868_v8 = vmul.f32 %v4211_v7, %v5227_v55  ;;  %v1898_v4 = vunpack.c.2.s8 %v1894_v24  ;;  %v1167_v53 = vadd.f32 %v1159_v26, %v5150_v62  ;;  %v4215_v48 = vpop.eup %4214  ;;  %v1823_v14 = vadd.f32 %v1815_v44, %v1799_v29 }
 0x196   : > { %v1869_v54 = vmul.f32 %v4213_v1, %v5227_v55  ;;  %v1899_v23 = vunpack.c.3.s8 %v1894_v24  ;;  %vm11001_vm13 = vnez %v10922_v19  ;;  %v1168_v11 = vadd.f32 %v1160_v52, %v5150_v62  ;;  %v4217_v10 = vpop.eup %4216 }
 0x197   : > { %vm10600_vm7 = vmand %vm11001_vm13, %vm6478_vm2  ;;  %v1870_v30 = vmul.f32 %v4215_v48, %v5227_v55  ;;  %v6498_v18 = vadd.f32 %v1868_v8, %v1820_v59  ;;  %vm6500_vm0 = vcmp.ne.s32.totalorder %v1896_v16, 0  ;;  %vm6504_vm4 = vcmp.ne.s32.totalorder %v1897_v39, 0 }
 0x198   : > { %v1871_v60 = vmul.f32 %v4217_v10, %v5227_v55  ;;  %v6509_v24 = vadd.f32 %v1869_v54, %v1821_v41  ;;  %v1162_v26 = vmul.f32 %v6243_v15, %v5147_v58  ;;  %v1169_v29 = vadd.f32 %v1161_v28, %v5150_v62  ;;  %vm6527_vm1 = vmxor %vm10600_vm7, %vm10975_vm14 }
 0x199   : > { %v6517_v44 = vadd.f32 %v1870_v30, %v1822_v20  ;;  %vm1884_vm8 = vcmp.ge.f32.partialorder %v6498_v18, %v5233_v9  ;;  %vm1906_vm9 = vcmp.ne.s32.totalorder %v1898_v4, 0  ;;  %v1175_v52 = vmin.f32 %v1167_v53, 80.0 }
 0x19a   : > { %v6531_v15 = vadd.f32 %v1871_v60, %v1823_v14  ;;  %vm1885_vm12 = vcmp.ge.f32.partialorder %v6509_v24, %v5233_v9  ;;  %vm1907_vm3 = vcmp.ne.s32.totalorder %v1899_v23, 0  ;;  %vm6537_vm6 = vmand %vm1884_vm8, %vm6500_vm0  ;;  %v11008_v16 = vmov 0 }
 0x19b   : > { %v11009_v16 = vsel %vm6537_vm6, 4294967295, %v11008_v16  ;;  %v1176_v39 = vmin.f32 %v1168_v11, 80.0  ;;  %vm1886_vm15 = vcmp.ge.f32.partialorder %v6517_v44, %v5233_v9  ;;  %vm6545_vm7 = vmand %vm1885_vm12, %vm6504_vm4  ;;  %v11011_v7 = vmov 0 }
 0x19c   : > { %11010 = vst [vmem:[#allocation66_spill] sm:$0xff] %v11009_v16  ;;  %v11012_v7 = vsel %vm6545_vm7, 4294967295, %v11011_v7  ;;  %v1136_v41 = vsub.f32 %v3872_v36, %v6444_v61  ;;  %v1137_v28 = vsub.f32 %v3873_v6, %v6469_v33  ;;  %v1138_v1 = vsub.f32 %v3874_v35, %v6483_v47  ;;  %vm6554_vm8 = vmand %vm1886_vm15, %vm1906_vm9 }
 0x19d   : > { %11013 = vst [vmem:[#allocation67_spill] sm:$0xff] %v11012_v7  ;;  %vm1887_vm0 = vcmp.ge.f32.partialorder %v6531_v15, %v5233_v9  ;;  %v11014_v20 = vmov 0  ;;  %v1143_v8 = vmul.f32 %v1135_v5, %v5206_v42  ;;  %v1170_v4 = vadd.f32 %v1162_v26, %v5150_v62  ;;  %vm1920_vm4 = vmpackc.low %vm6545_vm7, %vm6537_vm6 }
 0x19e   : > { %v11015_v20 = vsel %vm6554_vm8, 4294967295, %v11014_v20  ;;  %v1177_v53 = vmin.f32 %v1169_v29, 80.0  ;;  %vm6560_vm12 = vmand %vm1887_vm0, %vm1907_vm3  ;;  %v11017_v48 = vmov 0  ;;  %v1187_v14 = vmul.f32 1.442695, %v1175_v52 }
 0x19f   : > { %11016 = vst [vmem:[#allocation68_spill] sm:$0xff] %v11015_v20  ;;  %v11018_v48 = vsel %vm6560_vm12, 4294967295, %v11017_v48  ;;  %v1128_v54 = vadd.f32 %v6432_v50, %v5199_v38  ;;  %v1189_v23 = vmul.f32 1.442695, %v1176_v39  ;;  %vm1921_vm15 = vmpackc.low %vm6560_vm12, %vm6554_vm8  ;;  %v1129_v5 = vadd.f32 %v6455_v49, %v5199_v38 }
 0x1a0   : > { %11019 = vst [vmem:[#allocation69_spill] sm:$0xff] %v11018_v48  ;;  %v1130_v11 = vadd.f32 %v6462_v34, %v5199_v38  ;;  %v1144_v10 = vmul.f32 %v1136_v41, %v5206_v42  ;;  %v1145_v30 = vmul.f32 %v1137_v28, %v5206_v42  ;;  %vm1922_vm3 = vmpackc.even %vm1921_vm15, %vm1920_vm4  ;;  %v1146_v25 = vmul.f32 %v1138_v1, %v5206_v42 }
 0x1a1   : > { %v6581_v50 = vadd.f32 %v1143_v8, %v1127_v0  ;;  %v1178_v45 = vmin.f32 %v1170_v4, 80.0  ;;  %v1191_v60 = vmul.f32 1.442695, %v1177_v53  ;;  %vm11020_vm9 = vmand %vm10994_vm5, %vm6355_vm10  ;;  %v2076_v34 = vmul.f32 %v6359_v46, %v5112_v31 }
 0x1a2   : > { %vm6588_vm0 = vmor %vm11020_vm9, %vm1922_vm3  ;;  %v2077_v36 = vmul.f32 %v6363_v43, %v5112_v31  ;;  %v2078_v0 = vmul.f32 %v6374_v27, %v5112_v31  ;;  %4218 = vpow2.f32 %v1187_v14  ;;  %v2079_v2 = vmul.f32 %v6389_v17, %v5112_v31 }
 0x1a3   : > { %v1936_v51 = vsel %vm6588_vm0, 16843009, %v10853_v40  ;;  %4220 = vpow2.f32 %v1189_v23  ;;  %vm1929_vm10 = vcmp.ge.f32.partialorder %v6509_v24, %v5317_v63  ;;  %v1193_v43 = vmul.f32 1.442695, %v1178_v45 }
 0x1a4   : > { %v1938_v6 = vunpack.c.0.s8 %v1936_v51  ;;  %v1939_v46 = vunpack.c.1.s8 %v1936_v51  ;;  %v1940_v35 = vunpack.c.2.s8 %v1936_v51  ;;  %v1941_v26 = vunpack.c.3.s8 %v1936_v51 }
 0x1a5   : > { %4222 = vpow2.f32 %v1191_v60  ;;  %v6610_v27 = vsel %vm6527_vm1, 16843009, %v10853_v40  ;;  %vm1930_vm5 = vcmp.ge.f32.partialorder %v6517_v44, %v5317_v63  ;;  %vm1931_vm4 = vcmp.ge.f32.partialorder %v6531_v15, %v5317_v63 }
 0x1a6   : > { %vm1946_vm15 = vcmp.ne.s32.totalorder %v1938_v6, 0  ;;  %vm1947_vm3 = vcmp.ne.s32.totalorder %v1939_v46, 0  ;;  %vm1948_vm9 = vcmp.ne.s32.totalorder %v1940_v35, 0  ;;  %vm1949_vm11 = vcmp.ne.s32.totalorder %v1941_v26, 0 }
 0x1a7   : > { %vm11023_vm2 = vcmp.ge.f32.partialorder %v6498_v18, %v5317_v63  ;;  %v6623_v29 = vadd.f32 %v1144_v10, %v1128_v54  ;;  %v6625_v52 = vadd.f32 %v1145_v30, %v1129_v5  ;;  %vm6627_vm1 = vmand %vm1929_vm10, %vm1947_vm3  ;;  %v6637_v41 = vadd.f32 %v1146_v25, %v1130_v11 }
 0x1a8   : > { %vm6619_vm13 = vmand %vm11023_vm2, %vm1946_vm15  ;;  %v1227_v28 = vunpack.c.0.s8 %v6610_v27  ;;  %v1228_v1 = vunpack.c.1.s8 %v6610_v27  ;;  %v6649_v4 = vsel %vm6627_vm1, %v5327_v3, %v6509_v24  ;;  %4224 = vpow2.f32 %v1193_v43 }
 0x1a9   : > { %v6635_v39 = vsel %vm6619_vm13, %v5327_v3, %v6498_v18  ;;  %vm6641_vm2 = vmand %vm1930_vm5, %vm1948_vm9  ;;  %v6670_v24 = vsel %vm6537_vm6, 1.0, %v10871_v21  ;;  %v6675_v23 = vsel %vm6545_vm7, 1.0, %v10871_v21  ;;  %v2085_v5 = vmul.f32 %v6649_v4, %v5114_v32 }
 0x1aa   : > { %v2084_v18 = vmul.f32 %v6635_v39, %v5114_v32  ;;  %vm6657_vm10 = vmand %vm1931_vm4, %vm1949_vm11  ;;  %v6665_v54 = vsel %vm6641_vm2, %v5327_v3, %v6517_v44  ;;  %11032 = vst [vmem:[#allocation70_spill] sm:$0xff] %v6670_v24  ;;  %v2164_v25 = vmul.f32 %v6635_v39, %v5147_v58  ;;  %v6706_v60 = vsel %vm6554_vm8, 1.0, %v10871_v21 }
 0x1ab   : > { %11033 = vst [vmem:[#allocation71_spill] sm:$0xff] %v6675_v23  ;;  %v6683_v11 = vsel %vm6657_vm10, %v5327_v3, %v6531_v15  ;;  %vm6688_vm11 = vmxor %vm6619_vm13, %vm10975_vm14  ;;  %v2086_v10 = vmul.f32 %v6665_v54, %v5114_v32  ;;  %v2165_v6 = vmul.f32 %v6649_v4, %v5147_v58  ;;  %v6722_v26 = vsel %vm6560_vm12, 1.0, %v10871_v21 }
 0x1ac   : > { %v2092_v30 = vadd.f32 %v2084_v18, %v2076_v34  ;;  %v4219_v45 = vpop.eup %4218  ;;  %vm6699_vm4 = vmxor %vm6627_vm1, %vm10975_vm14  ;;  %11038 = vst [vmem:[#allocation72_spill] sm:$0xff] %v6706_v60  ;;  %v2087_v51 = vmul.f32 %v6683_v11, %v5114_v32  ;;  %v2093_v34 = vadd.f32 %v2085_v5, %v2077_v36  ;;  %v2108_v36 = vmul.f32 %v6670_v24, %v5144_v57 }
 0x1ad   : > { %v4221_v46 = vpop.eup %4220  ;;  %vm6715_vm13 = vmxor %vm6641_vm2, %vm10975_vm14  ;;  %11041 = vst [vmem:[#allocation73_spill] sm:$0xff] %v6722_v26  ;;  %v2094_v43 = vadd.f32 %v2086_v10, %v2078_v0  ;;  %v2109_v17 = vmul.f32 %v6675_v23, %v5144_v57  ;;  %v2166_v0 = vmul.f32 %v6665_v54, %v5147_v58  ;;  %v2110_v14 = vmul.f32 %v6706_v60, %v5144_v57 }
 0x1ae   : > { %vm6731_vm5 = vmxor %vm6657_vm10, %vm10975_vm14  ;;  %v2095_v8 = vadd.f32 %v2087_v51, %v2079_v2  ;;  %v2100_v18 = vadd.f32 %v2092_v30, %v5141_v56  ;;  %v2101_v5 = vadd.f32 %v2093_v34, %v5141_v56  ;;  %v2167_v53 = vmul.f32 %v6683_v11, %v5147_v58 }
 0x1af   : > { %v4223_v10 = vpop.eup %4222  ;;  %vm1978_vm15 = vmpackc.low %vm6699_vm4, %vm6688_vm11  ;;  %v2172_v2 = vadd.f32 %v2164_v25, %v5150_v62  ;;  %v1230_v30 = vunpack.c.3.s8 %v6610_v27  ;;  %v2102_v51 = vadd.f32 %v2094_v43, %v5141_v56  ;;  %v2173_v34 = vadd.f32 %v2165_v6, %v5150_v62 }
 0x1b0   : > { %vm1979_vm3 = vmpackc.low %vm6731_vm5, %vm6715_vm13  ;;  %v2174_v48 = vadd.f32 %v2166_v0, %v5150_v62  ;;  %v1199_v20 = vmul.f32 %v4219_v45, %v5227_v55  ;;  %vm6757_vm9 = vcmp.ne.s32.totalorder %v1227_v28, 0  ;;  %v2103_v25 = vadd.f32 %v2095_v8, %v5141_v56  ;;  %v3921_v0 = vld [vmem:[%s5083_s27 + $0x100] sm:$0xff] }
 0x1b1   : > { %v2111_v35 = vmul.f32 %v6722_v26, %v5144_v57  ;;  %v2175_v59 = vadd.f32 %v2167_v53, %v5150_v62  ;;  %v2180_v43 = vmin.f32 %v2172_v2, 80.0  ;;  %vm6765_vm1 = vcmp.ne.s32.totalorder %v1228_v1, 0  ;;  %vm6774_vm2 = vmpackc.even %vm1979_vm3, %vm1978_vm15  ;;  %v3922_v2 = vld [vmem:[%s5083_s27 + $0x108] sm:$0xff] }
 0x1b2   : > { %v6778_v45 = vadd.f32 %v2108_v36, %v2100_v18  ;;  %v6780_v6 = vadd.f32 %v2109_v17, %v2101_v5  ;;  %v2181_v53 = vmin.f32 %v2173_v34, 80.0  ;;  %v2182_v8 = vmin.f32 %v2174_v48, 80.0  ;;  %v4225_v1 = vpop.eup %4224  ;;  %vm10612_vm10 = vmand %vm6588_vm0, %vm6774_vm2  ;;  %v3923_v48 = vld [vmem:[%s5083_s27 + $0x110] sm:$0xff] }
 0x1b3   : > { %v2183_v26 = vmin.f32 %v2175_v59, 80.0  ;;  %v2188_v15 = vmul.f32 1.442695, %v2180_v43  ;;  %v1200_v44 = vmul.f32 %v4221_v46, %v5227_v55  ;;  %v1201_v60 = vmul.f32 %v4223_v10, %v5227_v55  ;;  %v3924_v10 = vld [vmem:[%s5083_s27 + $0x118] sm:$0xff]  ;;  %vm2228_vm11 = vmxor %vm10612_vm10, %vm10975_vm14 }
 0x1b4   : > { %v6786_v23 = vadd.f32 %v2110_v14, %v2102_v51  ;;  %v2190_v24 = vmul.f32 1.442695, %v2181_v53  ;;  %v2192_v36 = vmul.f32 1.442695, %v2182_v8  ;;  %v6789_v18 = vadd.f32 %v1199_v20, %v6581_v50 }
 0x1b5   : > { %v6796_v17 = vadd.f32 %v2111_v35, %v2103_v25  ;;  %v2124_v46 = vmul.f32 %v6635_v39, %v5182_v22  ;;  %4226 = vpow2.f32 %v2188_v15  ;;  %v2194_v5 = vmul.f32 1.442695, %v2183_v26 }
 0x1b6   : > { %v2125_v14 = vmul.f32 %v6649_v4, %v5182_v22  ;;  %v2140_v20 = vsub.f32 %v3921_v0, %v6778_v45  ;;  %v2141_v50 = vsub.f32 %v3922_v2, %v6780_v6  ;;  %4228 = vpow2.f32 %v2190_v24 }
 0x1b7   : > { %4230 = vpow2.f32 %v2192_v36  ;;  %v1202_v51 = vmul.f32 %v4225_v1, %v5227_v55  ;;  %v6807_v34 = vadd.f32 %v1200_v44, %v6623_v29  ;;  %v6810_v25 = vadd.f32 %v1201_v60, %v6625_v52 }
 0x1b8   : > { %v2126_v39 = vmul.f32 %v6665_v54, %v5182_v22  ;;  %v2142_v26 = vsub.f32 %v3923_v48, %v6786_v23  ;;  %4232 = vpow2.f32 %v2194_v5  ;;  %vm1215_vm4 = vcmp.ge.f32.partialorder %v6789_v18, %v5233_v9 }
 0x1b9   : > { %v2127_v29 = vmul.f32 %v6683_v11, %v5182_v22  ;;  %v2143_v52 = vsub.f32 %v3924_v10, %v6796_v17  ;;  %v11050_v4 = vunpack.c.2.s8 %v6610_v27  ;;  %vm6832_vm5 = vcmp.ne.s32.totalorder %v1230_v30, 0  ;;  %vm6850_vm10 = vmand %vm1215_vm4, %vm6757_vm9 }
 0x1ba   : > { %v2132_v60 = vadd.f32 %v2124_v46, %v5199_v38  ;;  %v2133_v35 = vadd.f32 %v2125_v14, %v5199_v38  ;;  %v2148_v59 = vmul.f32 %v2140_v20, %v5206_v42  ;;  %v2149_v11 = vmul.f32 %v2141_v50, %v5206_v42 }
 0x1bb   : > { %vm6828_vm13 = vcmp.ne.s32.totalorder %v11050_v4, 0  ;;  %v2230_v43 = vsel %vm2228_vm11, 16843009, %v10853_v40  ;;  %v6842_v27 = vadd.f32 %v1202_v51, %v6637_v41  ;;  %vm1216_vm15 = vcmp.ge.f32.partialorder %v6807_v34, %v5233_v9 }
 0x1bc   : > { %vm1217_vm3 = vcmp.ge.f32.partialorder %v6810_v25, %v5233_v9  ;;  %v11055_v30 = vmov 0  ;;  %v2134_v53 = vadd.f32 %v2126_v39, %v5199_v38  ;;  %v2150_v8 = vmul.f32 %v2142_v26, %v5206_v42  ;;  %vm6858_vm11 = vmand %vm1216_vm15, %vm6765_vm1 }
 0x1bd   : > { %v11056_v30 = vsel %vm6850_vm10, 4294967295, %v11055_v30  ;;  %v11058_v41 = vmov 0  ;;  %v2135_v1 = vadd.f32 %v2127_v29, %v5199_v38  ;;  %v2151_v0 = vmul.f32 %v2143_v52, %v5206_v42  ;;  %vm6868_vm4 = vmand %vm1217_vm3, %vm6828_vm13 }
 0x1be   : > { %11057 = vst [vmem:[#allocation74_spill] sm:$0xff] %v11056_v30  ;;  %v11059_v41 = vsel %vm6858_vm11, 4294967295, %v11058_v41  ;;  %vm1218_vm9 = vcmp.ge.f32.partialorder %v6842_v27, %v5233_v9  ;;  %v11061_v7 = vmov 0  ;;  %v2156_v2 = vadd.f32 %v2148_v59, %v2132_v60  ;;  %vm1250_vm15 = vmpackc.low %vm6858_vm11, %vm6850_vm10 }
 0x1bf   : > { %11060 = vst [vmem:[#allocation75_spill] sm:$0xff] %v11059_v41  ;;  %v11062_v7 = vsel %vm6868_vm4, 4294967295, %v11061_v7  ;;  %v2232_v15 = vunpack.c.0.s8 %v2230_v43  ;;  %vm6874_vm1 = vmand %vm1218_vm9, %vm6832_vm5  ;;  %v11064_v16 = vmov 0  ;;  %v4227_v44 = vpop.eup %4226  ;;  %v2157_v36 = vadd.f32 %v2149_v11, %v2133_v35 }
 0x1c0   : > { %11063 = vst [vmem:[#allocation76_spill] sm:$0xff] %v11062_v7  ;;  %v11065_v16 = vsel %vm6874_vm1, 4294967295, %v11064_v16  ;;  %v2233_v48 = vunpack.c.1.s8 %v2230_v43  ;;  %v4229_v46 = vpop.eup %4228  ;;  %v2158_v5 = vadd.f32 %v2150_v8, %v2134_v53  ;;  %v2204_v10 = vmul.f32 %v4227_v44, %v5227_v55  ;;  %vm1251_vm13 = vmpackc.low %vm6874_vm1, %vm6868_vm4 }
 0x1c1   : > { %11066 = vst [vmem:[#allocation77_spill] sm:$0xff] %v11065_v16  ;;  %v2234_v14 = vunpack.c.2.s8 %v2230_v43  ;;  %v4231_v20 = vpop.eup %4230  ;;  %v2159_v50 = vadd.f32 %v2151_v0, %v2135_v1  ;;  %v2205_v51 = vmul.f32 %v4229_v46, %v5227_v55  ;;  %v2235_v39 = vunpack.c.3.s8 %v2230_v43  ;;  %vm1252_vm5 = vmpackc.even %vm1251_vm13, %vm1250_vm15 }
 0x1c2   : > { %v4233_v26 = vpop.eup %4232  ;;  %v2206_v29 = vmul.f32 %v4231_v20, %v5227_v55  ;;  %v2212_v52 = vadd.f32 %v2204_v10, %v2156_v2  ;;  %vm2240_vm3 = vcmp.ne.s32.totalorder %v2232_v15, 0  ;;  %vm2241_vm9 = vcmp.ne.s32.totalorder %v2233_v48, 0 }
 0x1c3   : > { %v2207_v4 = vmul.f32 %v4233_v26, %v5227_v55  ;;  %v2213_v54 = vadd.f32 %v2205_v51, %v2157_v36  ;;  %vm2242_vm8 = vcmp.ne.s32.totalorder %v2234_v14, 0  ;;  %vm11067_vm7 = vnez %v10922_v19 }
 0x1c4   : > { %v2214_v24 = vadd.f32 %v2206_v29, %v2158_v5  ;;  %vm2220_vm12 = vcmp.ge.f32.partialorder %v2212_v52, %v5233_v9  ;;  %vm11068_vm6 = vnez %v11000_v13  ;;  %v11070_v60 = vmov 0 }
 0x1c5   : > { %vm11069_vm1 = vmand %vm11067_vm7, %vm11068_vm6  ;;  %v2215_v35 = vadd.f32 %v2207_v4, %v2159_v50  ;;  %vm2221_vm15 = vcmp.ge.f32.partialorder %v2213_v54, %v5233_v9  ;;  %vm2243_vm13 = vcmp.ne.s32.totalorder %v2235_v39, 0  ;;  %v11072_v59 = vmov 0 }
 0x1c6   : > { %vm6896_vm4 = vmor %vm11069_vm1, %vm1252_vm5  ;;  %vm2222_vm14 = vcmp.ge.f32.partialorder %v2214_v24, %v5233_v9  ;;  %v11075_v11 = vmov 0  ;;  %v11078_v19 = vmov 0  ;;  %v11081_v13 = vmov 0 }
 0x1c7   : > { %v11071_v60 = vsel %vm6896_vm4, 4294967295, %v11070_v60  ;;  %vm6901_vm11 = vmand %vm2220_vm12, %vm2240_vm3  ;;  %vm2223_vm6 = vcmp.ge.f32.partialorder %v2215_v35, %v5233_v9  ;;  %v6938_v53 = vmul.f32 %v6441_v12, %v5112_v31  ;;  %v6942_v8 = vmul.f32 %v6444_v61, %v5112_v31 }
 0x1c8   : > { %v11073_v59 = vsel %vm6901_vm11, 4294967295, %v11072_v59  ;;  %vm6906_vm10 = vmand %vm2221_vm15, %vm2241_vm9  ;;  %v6946_v1 = vmul.f32 %v6469_v33, %v5112_v31  ;;  %v6950_v49 = vmul.f32 %v6483_v47, %v5112_v31  ;;  %v2412_v12 = vmul.f32 %v6778_v45, %v5112_v31 }
 0x1c9   : > { %11074 = vst [vmem:[#allocation78_spill] sm:$0xff] %v11073_v59  ;;  %v11076_v11 = vsel %vm6906_vm10, 4294967295, %v11075_v11  ;;  %vm6911_vm7 = vmand %vm2222_vm14, %vm2242_vm8  ;;  %v2413_v61 = vmul.f32 %v6780_v6, %v5112_v31  ;;  %vm2266_vm9 = vcmp.ge.f32.partialorder %v2214_v24, %v5317_v63  ;;  %v2414_v47 = vmul.f32 %v6786_v23, %v5112_v31 }
 0x1ca   : > { %11077 = vst [vmem:[#allocation79_spill] sm:$0xff] %v11076_v11  ;;  %v11079_v19 = vsel %vm6911_vm7, 4294967295, %v11078_v19  ;;  %vm6915_vm1 = vmand %vm2223_vm6, %vm2243_vm13  ;;  %v6967_v44 = vsel %vm6896_vm4, 16843009, %v10853_v40  ;;  %v6972_v45 = vsel %vm6901_vm11, 1.0, %v10871_v21  ;;  %v6988_v36 = vsel %vm6906_vm10, 1.0, %v10871_v21 }
 0x1cb   : > { %11080 = vst [vmem:[#allocation80_spill] sm:$0xff] %v11079_v19  ;;  %v11082_v13 = vsel %vm6915_vm1, 4294967295, %v11081_v13  ;;  %vm2256_vm12 = vmpackc.low %vm6906_vm10, %vm6901_vm11  ;;  %v2415_v48 = vmul.f32 %v6796_v17, %v5112_v31  ;;  %v1269_v10 = vunpack.c.0.s8 %v6967_v44  ;;  %v1270_v14 = vunpack.c.1.s8 %v6967_v44 }
 0x1cc   : > { %11083 = vst [vmem:[#allocation81_spill] sm:$0xff] %v11082_v13  ;;  %vm2257_vm5 = vmpackc.low %vm6915_vm1, %vm6911_vm7  ;;  %v2444_v39 = vmul.f32 %v6972_v45, %v5144_v57  ;;  %v1271_v26 = vunpack.c.2.s8 %v6967_v44  ;;  %v7044_v4 = vsel %vm6911_vm7, 1.0, %v10871_v21  ;;  %v7078_v6 = vsel %vm6915_vm1, 1.0, %v10871_v21 }
 0x1cd   : > { %vm2258_vm3 = vmpackc.even %vm2257_vm5, %vm2256_vm12  ;;  %11087 = vst [vmem:[#allocation82_spill] sm:$0xff] %v6972_v45  ;;  %v2446_v13 = vmul.f32 %v7044_v4, %v5144_v57  ;;  %v1272_v11 = vunpack.c.3.s8 %v6967_v44  ;;  %vm11128_vm1 = vcmp.ge.f32.partialorder %v6807_v34, %v5317_v63 }
 0x1ce   : > { %vm11084_vm14 = vmand %vm6588_vm0, %vm6774_vm2  ;;  %vm2264_vm0 = vcmp.ge.f32.partialorder %v2212_v52, %v5317_v63  ;;  %vm2265_vm2 = vcmp.ge.f32.partialorder %v2213_v54, %v5317_v63  ;;  %11092 = vst [vmem:[#allocation83_spill] sm:$0xff] %v6988_v36 }
 0x1cf   : > { %vm6932_vm8 = vmor %vm11084_vm14, %vm2258_vm3  ;;  %11102 = vst [vmem:[#allocation85_spill] sm:$0xff] %v7044_v4 }
 0x1d0   : > { %v2272_v28 = vsel %vm6932_vm8, 16843009, %v10853_v40  ;;  %11108 = vst [vmem:[#allocation86_spill] sm:$0xff] %v7078_v6 }
 0x1d1   : > { %v2274_v0 = vunpack.c.0.s8 %v2272_v28  ;;  %v2275_v2 = vunpack.c.1.s8 %v2272_v28  ;;  %v2276_v33 = vunpack.c.2.s8 %v2272_v28  ;;  %v2277_v15 = vunpack.c.3.s8 %v2272_v28 }
 0x1d2   : > { %v2445_v28 = vmul.f32 %v6988_v36, %v5144_v57 }
 0x1d3   : > { %vm2282_vm15 = vcmp.ne.s32.totalorder %v2274_v0, 0  ;;  %vm2283_vm13 = vcmp.ne.s32.totalorder %v2275_v2, 0  ;;  %vm2284_vm6 = vcmp.ne.s32.totalorder %v2276_v33, 0  ;;  %vm6975_vm5 = vcmp.ne.s32.totalorder %v2277_v15, 0 }
 0x1d4   : > { %vm6981_vm3 = vmand %vm2264_vm0, %vm2282_vm15  ;;  %vm11095_vm15 = vnez %v11056_v30 }
 0x1d5   : > { %vm6994_vm12 = vmand %vm2265_vm2, %vm2283_vm13  ;;  %v7001_v5 = vsel %vm6981_vm3, %v5327_v3, %v2212_v52  ;;  %v7010_v17 = vsel %vm11095_vm15, 1.0, %v10871_v21 }
 0x1d6   : > { %11096 = vst [vmem:[#allocation84_spill] sm:$0xff] %v7010_v17  ;;  %vm7014_vm2 = vmand %vm2266_vm9, %vm2284_vm6  ;;  %v7021_v50 = vsel %vm6994_vm12, %v5327_v3, %v2213_v54  ;;  %v2420_v51 = vmul.f32 %v7001_v5, %v5114_v32  ;;  %vm11099_vm9 = vcmp.ge.f32.partialorder %v2215_v35, %v5317_v63  ;;  %v2500_v15 = vmul.f32 %v7001_v5, %v5147_v58 }
 0x1d7   : > { %vm7032_vm13 = vmand %vm11099_vm9, %vm6975_vm5  ;;  %v7039_v52 = vsel %vm7014_vm2, %v5327_v3, %v2214_v24  ;;  %v2421_v54 = vmul.f32 %v7021_v50, %v5114_v32  ;;  %vm11103_vm5 = vmmov 1  }
 0x1d8   : > { %v7055_v0 = vsel %vm7032_vm13, %v5327_v3, %v2215_v35  ;;  %vm7060_vm9 = vmxor %vm6981_vm3, %vm11103_vm5  ;;  %v2422_v2 = vmul.f32 %v7039_v52, %v5114_v32  ;;  %v2428_v33 = vadd.f32 %v2420_v51, %v2412_v12  ;;  %v2501_v12 = vmul.f32 %v7021_v50, %v5147_v58 }
 0x1d9   : > { %vm7071_vm6 = vmxor %vm6994_vm12, %vm11103_vm5  ;;  %v2423_v23 = vmul.f32 %v7055_v0, %v5114_v32  ;;  %v2429_v19 = vadd.f32 %v2421_v54, %v2413_v61  ;;  %vm7094_vm12 = vcmp.ne.s32.totalorder %v1269_v10, 0  ;;  %v2447_v10 = vmul.f32 %v7078_v6, %v5144_v57 }
 0x1da   : > { %vm7087_vm3 = vmxor %vm7014_vm2, %vm11103_vm5  ;;  %v2430_v51 = vadd.f32 %v2422_v2, %v2414_v47  ;;  %v2436_v54 = vadd.f32 %v2428_v33, %v5141_v56  ;;  %v2502_v47 = vmul.f32 %v7039_v52, %v5147_v58  ;;  %vm7108_vm2 = vcmp.ne.s32.totalorder %v1270_v14, 0  ;;  %v3941_v2 = vld [vmem:[%s5083_s27 + $0x150] sm:$0xff] }
 0x1db   : > { %vm7101_vm0 = vmxor %vm7032_vm13, %vm11103_vm5  ;;  %v2431_v20 = vadd.f32 %v2423_v23, %v2415_v48  ;;  %v2437_v44 = vadd.f32 %v2429_v19, %v5141_v56  ;;  %v2503_v48 = vmul.f32 %v7055_v0, %v5147_v58  ;;  %v2508_v29 = vadd.f32 %v2500_v15, %v5150_v62 }
 0x1dc   : > { %vm2314_vm14 = vmpackc.low %vm7071_vm6, %vm7060_vm9  ;;  %v2438_v14 = vadd.f32 %v2430_v51, %v5141_v56  ;;  %v2509_v19 = vadd.f32 %v2501_v12, %v5150_v62  ;;  %v2510_v33 = vadd.f32 %v2502_v47, %v5150_v62  ;;  %v7142_v51 = vadd.f32 %v2444_v39, %v2436_v54 }
 0x1dd   : > { %vm2315_vm13 = vmpackc.low %vm7101_vm0, %vm7087_vm3  ;;  %v2439_v24 = vadd.f32 %v2431_v20, %v5141_v56  ;;  %v2511_v15 = vadd.f32 %v2503_v48, %v5150_v62  ;;  %v2516_v23 = vmin.f32 %v2508_v29, 80.0  ;;  %vm11119_vm0 = vnez %v11059_v41  ;;  %v3939_v48 = vld [vmem:[%s5083_s27 + $0x140] sm:$0xff] }
 0x1de   : > { %vm7130_vm6 = vmpackc.even %vm2315_vm13, %vm2314_vm14  ;;  %v7140_v46 = vsel %vm11119_vm0, 1.0, %v10871_v21  ;;  %v2517_v12 = vmin.f32 %v2509_v19, 80.0  ;;  %v2518_v61 = vmin.f32 %v2510_v33, 80.0  ;;  %vm7144_vm14 = vcmp.ne.s32.totalorder %v1271_v26, 0  ;;  %v3940_v26 = vld [vmem:[%s5083_s27 + $0x148] sm:$0xff] }
 0x1df   : > { %11120 = vst [vmem:[#allocation87_spill] sm:$0xff] %v7140_v46  ;;  %vm11123_vm3 = vcmp.ge.f32.partialorder %v6789_v18, %v5317_v63  ;;  %v7158_v39 = vadd.f32 %v2445_v28, %v2437_v44  ;;  %v2519_v54 = vmin.f32 %v2511_v15, 80.0  ;;  %v2524_v29 = vmul.f32 1.442695, %v2516_v23  ;;  %vm7169_vm7 = vmand %vm11128_vm1, %vm7108_vm2  ;;  %v3942_v15 = vld [vmem:[%s5083_s27 + $0x158] sm:$0xff] }
 0x1e0   : > { %vm7153_vm13 = vmand %vm11123_vm3, %vm7094_vm12  ;;  %vm7160_vm9 = vcmp.ne.s32.totalorder %v1272_v11, 0  ;;  %v7178_v28 = vadd.f32 %v2446_v13, %v2438_v14  ;;  %v7180_v11 = vadd.f32 %v2447_v10, %v2439_v24  ;;  %v2526_v44 = vmul.f32 1.442695, %v2517_v12 }
 0x1e1   : > { %v2528_v33 = vmul.f32 1.442695, %v2518_v61  ;;  %4234 = vpow2.f32 %v2524_v29  ;;  %v2530_v23 = vmul.f32 1.442695, %v2519_v54  ;;  %vm11131_vm1 = vcmp.ge.f32.partialorder %v6810_v25, %v5317_v63 }
 0x1e2   : > { %vm7189_vm2 = vmand %vm11131_vm1, %vm7144_vm14  ;;  %vm11134_vm3 = vnez %v11062_v7  ;;  %v7200_v10 = vmul.f32 %v7010_v17, %v5144_v57  ;;  %v2460_v14 = vmul.f32 %v7001_v5, %v5182_v22  ;;  %v2476_v24 = vsub.f32 %v3939_v48, %v7142_v51 }
 0x1e3   : > { %v7196_v13 = vsel %vm11134_vm3, 1.0, %v10871_v21  ;;  %4236 = vpow2.f32 %v2526_v44  ;;  %vm11136_vm14 = vcmp.ge.f32.partialorder %v6842_v27, %v5317_v63  ;;  %vm11139_vm12 = vnez %v11065_v16 }
 0x1e4   : > { %11135 = vst [vmem:[#allocation88_spill] sm:$0xff] %v7196_v13  ;;  %vm7210_vm1 = vmand %vm11136_vm14, %vm7160_vm9  ;;  %v7217_v61 = vsel %vm11139_vm12, 1.0, %v10871_v21  ;;  %v2461_v5 = vmul.f32 %v7021_v50, %v5182_v22  ;;  %v2462_v20 = vmul.f32 %v7039_v52, %v5182_v22  ;;  %v2477_v48 = vsub.f32 %v3940_v26, %v7158_v39 }
 0x1e5   : > { %11140 = vst [vmem:[#allocation89_spill] sm:$0xff] %v7217_v61  ;;  %4238 = vpow2.f32 %v2528_v33  ;;  %vm11141_vm9 = vmand %vm6932_vm8, %vm7130_vm6  ;;  %v2463_v54 = vmul.f32 %v7055_v0, %v5182_v22  ;;  %v2478_v29 = vsub.f32 %v3941_v2, %v7178_v28  ;;  %v2479_v50 = vsub.f32 %v3942_v15, %v7180_v11 }
 0x1e6   : > { %vm2564_vm14 = vmxor %vm11141_vm9, %vm11103_vm5  ;;  %4240 = vpow2.f32 %v2530_v23  ;;  %v7238_v52 = vsel %vm7153_vm13, %v5327_v3, %v6789_v18  ;;  %v7244_v19 = vsel %vm7169_vm7, %v5327_v3, %v6807_v34  ;;  %v7250_v0 = vsel %vm7189_vm2, %v5327_v3, %v6810_v25 }
 0x1e7   : > { %v7256_v26 = vsel %vm7210_vm1, %v5327_v3, %v6842_v27  ;;  %v2468_v18 = vadd.f32 %v2460_v14, %v5199_v38  ;;  %v2484_v44 = vmul.f32 %v2476_v24, %v5206_v42  ;;  %v2566_v33 = vsel %vm2564_vm14, 16843009, %v10853_v40  ;;  %vm7280_vm9 = vmxor %vm7153_vm13, %vm11103_vm5 }
 0x1e8   : > { %v1416_v34 = vmul.f32 %v7238_v52, %v5114_v32  ;;  %v2469_v2 = vadd.f32 %v2461_v5, %v5199_v38  ;;  %v2485_v25 = vmul.f32 %v2477_v48, %v5206_v42  ;;  %v1417_v15 = vmul.f32 %v7244_v19, %v5114_v32  ;;  %vm7289_vm14 = vmxor %vm7169_vm7, %vm11103_vm5 }
 0x1e9   : > { %v1418_v27 = vmul.f32 %v7250_v0, %v5114_v32  ;;  %v2470_v23 = vadd.f32 %v2462_v20, %v5199_v38  ;;  %v2471_v14 = vadd.f32 %v2463_v54, %v5199_v38  ;;  %v2486_v24 = vmul.f32 %v2478_v29, %v5206_v42  ;;  %vm7301_vm13 = vmxor %vm7189_vm2, %vm11103_vm5 }
 0x1ea   : > { %v2487_v17 = vmul.f32 %v2479_v50, %v5206_v42  ;;  %v2568_v4 = vunpack.c.0.s8 %v2566_v33  ;;  %v2569_v36 = vunpack.c.1.s8 %v2566_v33  ;;  %v1419_v5 = vmul.f32 %v7256_v26, %v5114_v32  ;;  %vm7318_vm2 = vmxor %vm7210_vm1, %vm11103_vm5 }
 0x1eb   : > { %v1441_v48 = vmul.f32 %v7140_v46, %v5144_v57  ;;  %v2492_v45 = vadd.f32 %v2484_v44, %v2468_v18  ;;  %v2570_v16 = vunpack.c.2.s8 %v2566_v33  ;;  %v2571_v7 = vunpack.c.3.s8 %v2566_v33  ;;  %v4235_v29 = vpop.eup %4234 }
 0x1ec   : > { %v1442_v54 = vmul.f32 %v7196_v13, %v5144_v57  ;;  %v2493_v50 = vadd.f32 %v2485_v25, %v2469_v2  ;;  %v1424_v18 = vadd.f32 %v1416_v34, %v6938_v53  ;;  %v1425_v47 = vadd.f32 %v1417_v15, %v6942_v8 }
 0x1ed   : > { %v1443_v44 = vmul.f32 %v7217_v61, %v5144_v57  ;;  %v4237_v33 = vpop.eup %4236  ;;  %v2494_v41 = vadd.f32 %v2486_v24, %v2470_v23  ;;  %v2495_v30 = vadd.f32 %v2487_v17, %v2471_v14  ;;  %v2540_v13 = vmul.f32 %v4235_v29, %v5227_v55 }
 0x1ee   : > { %v1426_v2 = vadd.f32 %v1418_v27, %v6946_v1  ;;  %v2541_v8 = vmul.f32 %v4237_v33, %v5227_v55  ;;  %vm7307_vm7 = vcmp.ne.s32.totalorder %v2568_v4, 0  ;;  %vm7311_vm10 = vcmp.ne.s32.totalorder %v2569_v36, 0 }
 0x1ef   : > { %v4239_v53 = vpop.eup %4238  ;;  %v1427_v1 = vadd.f32 %v1419_v5, %v6950_v49  ;;  %v7324_v4 = vadd.f32 %v2540_v13, %v2492_v45  ;;  %vm7326_vm11 = vcmp.ne.s32.totalorder %v2570_v16, 0  ;;  %vm7330_vm12 = vcmp.ne.s32.totalorder %v2571_v7, 0 }
 0x1f0   : > { %v4241_v25 = vpop.eup %4240  ;;  %v2542_v15 = vmul.f32 %v4239_v53, %v5227_v55  ;;  %v7335_v23 = vadd.f32 %v2541_v8, %v2493_v50  ;;  %v1432_v49 = vadd.f32 %v1424_v18, %v5141_v56  ;;  %v1433_v16 = vadd.f32 %v1425_v47, %v5141_v56 }
 0x1f1   : > { %v2543_v12 = vmul.f32 %v4241_v25, %v5227_v55  ;;  %vm2556_vm3 = vcmp.ge.f32.partialorder %v7324_v4, %v5233_v9  ;;  %v1434_v7 = vadd.f32 %v1426_v2, %v5141_v56  ;;  %v1496_v13 = vmul.f32 %v7238_v52, %v5147_v58  ;;  %v3889_v2 = vld [vmem:[%s5083_s27 + $0xa0] sm:$0xff] }
 0x1f2   : > { %v7343_v45 = vadd.f32 %v2542_v15, %v2494_v41  ;;  %vm2557_vm1 = vcmp.ge.f32.partialorder %v7335_v23, %v5233_v9  ;;  %vm7360_vm15 = vmand %vm2556_vm3, %vm7307_vm7  ;;  %v11158_v41 = vmov 0  ;;  %v1435_v24 = vadd.f32 %v1427_v1, %v5141_v56 }
 0x1f3   : > { %v7354_v14 = vadd.f32 %v2543_v12, %v2495_v30  ;;  %v11159_v41 = vsel %vm7360_vm15, 4294967295, %v11158_v41  ;;  %v1497_v5 = vmul.f32 %v7244_v19, %v5147_v58  ;;  %vm7371_vm5 = vmand %vm2557_vm1, %vm7311_vm10  ;;  %v11161_v30 = vmov 0 }
 0x1f4   : > { %11160 = vst [vmem:[#allocation90_spill] sm:$0xff] %v11159_v41  ;;  %vm2558_vm0 = vcmp.ge.f32.partialorder %v7343_v45, %v5233_v9  ;;  %v11162_v30 = vsel %vm7371_vm5, 4294967295, %v11161_v30  ;;  %v1456_v29 = vmul.f32 %v7238_v52, %v5182_v22  ;;  %v1457_v50 = vmul.f32 %v7244_v19, %v5182_v22  ;;  %vm11170_vm1 = vmand %vm6932_vm8, %vm7130_vm6 }
 0x1f5   : > { %11163 = vst [vmem:[#allocation91_spill] sm:$0xff] %v11162_v30  ;;  %vm2559_vm3 = vcmp.ge.f32.partialorder %v7354_v14, %v5233_v9  ;;  %vm7383_vm7 = vmand %vm2558_vm0, %vm7326_vm11  ;;  %v11164_v18 = vmov 0  ;;  %v1458_v47 = vmul.f32 %v7250_v0, %v5182_v22  ;;  %v1459_v52 = vmul.f32 %v7256_v26, %v5182_v22  ;;  %v3958_v30 = vld [vmem:[%s5083_s27 + $0x188] sm:$0xff] }
 0x1f6   : > { %v11165_v18 = vsel %vm7383_vm7, 4294967295, %v11164_v18  ;;  %v1498_v33 = vmul.f32 %v7250_v0, %v5147_v58  ;;  %vm7395_vm10 = vmand %vm2559_vm3, %vm7330_vm12  ;;  %v11167_v19 = vmov 0  ;;  %v7401_v53 = vadd.f32 %v7200_v10, %v1432_v49  ;;  %v3890_v10 = vld [vmem:[%s5083_s27 + $0xa8] sm:$0xff] }
 0x1f7   : > { %11166 = vst [vmem:[#allocation92_spill] sm:$0xff] %v11165_v18  ;;  %v11168_v19 = vsel %vm7395_vm10, 4294967295, %v11167_v19  ;;  %v7403_v8 = vadd.f32 %v1441_v48, %v1433_v16  ;;  %v7405_v34 = vadd.f32 %v1442_v54, %v1434_v7  ;;  %v1504_v17 = vadd.f32 %v1496_v13, %v5150_v62  ;;  %vm2592_vm11 = vmpackc.low %vm7371_vm5, %vm7360_vm15  ;;  %v3891_v48 = vld [vmem:[%s5083_s27 + $0xb0] sm:$0xff] }
 0x1f8   : > { %11169 = vst [vmem:[#allocation93_spill] sm:$0xff] %v11168_v19  ;;  %v7414_v0 = vmul.f32 %v7142_v51, %v5112_v31  ;;  %v7418_v1 = vmul.f32 %v7158_v39, %v5112_v31  ;;  %v7422_v25 = vadd.f32 %v1443_v44, %v1435_v24  ;;  %v1505_v54 = vadd.f32 %v1497_v5, %v5150_v62  ;;  %vm2593_vm0 = vmpackc.low %vm7395_vm10, %vm7383_vm7  ;;  %v7438_v39 = vld [vmem:[%s5083_s27 + $0xb8] sm:$0xff] }
 0x1f9   : > { %v7431_v15 = vmul.f32 %v7178_v28, %v5112_v31  ;;  %v7435_v51 = vmul.f32 %v7180_v11, %v5112_v31  ;;  %v7441_v44 = vadd.f32 %v1456_v29, %v5199_v38  ;;  %v7444_v27 = vadd.f32 %v1457_v50, %v5199_v38  ;;  %vm2594_vm12 = vmpackc.even %vm2593_vm0, %vm2592_vm11 }
 0x1fa   : > { %v7447_v36 = vadd.f32 %v1458_v47, %v5199_v38  ;;  %v7450_v12 = vadd.f32 %v1459_v52, %v5199_v38  ;;  %v7454_v28 = vmul.f32 %v7256_v26, %v5147_v58  ;;  %v1506_v11 = vadd.f32 %v1498_v33, %v5150_v62  ;;  %vm7462_vm3 = vmor %vm11170_vm1, %vm2594_vm12 }
 0x1fb   : > { %v1472_v16 = vsub.f32 %v3889_v2, %v7401_v53  ;;  %v1473_v7 = vsub.f32 %v3890_v10, %v7403_v8  ;;  %v1474_v13 = vsub.f32 %v3891_v48, %v7405_v34  ;;  %v1512_v24 = vmin.f32 %v1504_v17, 80.0  ;;  %vm11173_vm8 = vmpackc.low %vm7289_vm14, %vm7280_vm9 }
 0x1fc   : > { %vm2600_vm11 = vcmp.ge.f32.partialorder %v7324_v4, %v5317_v63  ;;  %v2608_v43 = vsel %vm7462_vm3, 16843009, %v10853_v40  ;;  %vm11174_vm6 = vmpackc.low %vm7318_vm2, %vm7301_vm13  ;;  %v11175_v35 = vmov 0  ;;  %v1513_v5 = vmin.f32 %v1505_v54, 80.0 }
 0x1fd   : > { %vm7484_vm0 = vmpackc.even %vm11174_vm6, %vm11173_vm8  ;;  %v2610_v29 = vunpack.c.0.s8 %v2608_v43  ;;  %v2611_v50 = vunpack.c.1.s8 %v2608_v43  ;;  %v2612_v47 = vunpack.c.2.s8 %v2608_v43  ;;  %v2613_v46 = vunpack.c.3.s8 %v2608_v43 }
 0x1fe   : > { %v11176_v35 = vsel %vm7484_vm0, 4294967295, %v11175_v35  ;;  %vm2601_vm9 = vcmp.ge.f32.partialorder %v7335_v23, %v5317_v63  ;;  %v7497_v20 = vsel %vm7360_vm15, 1.0, %v10871_v21  ;;  %v1514_v59 = vmin.f32 %v1506_v11, 80.0 }
 0x1ff   : > { %11177 = vst [vmem:[#allocation94_spill] sm:$0xff] %v7497_v20  ;;  %vm2618_vm13 = vcmp.ne.s32.totalorder %v2610_v29, 0  ;;  %vm2619_vm2 = vcmp.ne.s32.totalorder %v2611_v50, 0  ;;  %vm2620_vm12 = vcmp.ne.s32.totalorder %v2612_v47, 0  ;;  %v1524_v6 = vmul.f32 1.442695, %v1512_v24 }
 0x200   : > { %vm2603_vm8 = vcmp.ge.f32.partialorder %v7354_v14, %v5317_v63  ;;  %vm7505_vm6 = vcmp.ne.s32.totalorder %v2613_v46, 0  ;;  %vm7512_vm14 = vmand %vm2600_vm11, %vm2618_vm13  ;;  %v1480_v2 = vmul.f32 %v1472_v16, %v5206_v42  ;;  %v1481_v17 = vmul.f32 %v1473_v7, %v5206_v42 }
 0x201   : > { %vm7518_vm1 = vmand %vm2601_vm9, %vm2619_vm2  ;;  %v7526_v48 = vsel %vm7512_vm14, %v5327_v3, %v7324_v4  ;;  %v7531_v54 = vsel %vm7371_vm5, 1.0, %v10871_v21  ;;  %v7534_v11 = vmul.f32 %v1474_v13, %v5206_v42  ;;  %v1526_v16 = vmul.f32 1.442695, %v1513_v5 }
 0x202   : > { %11184 = vst [vmem:[#allocation95_spill] sm:$0xff] %v7531_v54  ;;  %vm11185_vm11 = vcmp.ge.f32.partialorder %v7343_v45, %v5317_v63  ;;  %v7547_v4 = vsel %vm7518_vm1, %v5327_v3, %v7335_v23  ;;  %v2756_v24 = vmul.f32 %v7526_v48, %v5114_v32  ;;  %v2780_v13 = vmul.f32 %v7497_v20, %v5144_v57  ;;  %vm11189_vm2 = vmand %vm6896_vm4, %vm7484_vm0 }
 0x203   : > { %vm7539_vm9 = vmand %vm11185_vm11, %vm2620_vm12  ;;  %v1528_v43 = vmul.f32 1.442695, %v1514_v59  ;;  %vm11188_vm13 = vmmov 1   ;;  %v7581_v50 = vsel %vm7383_vm7, 1.0, %v10871_v21  ;;  %v2757_v47 = vmul.f32 %v7547_v4, %v5114_v32 }
 0x204   : > { %vm7559_vm12 = vmxor %vm11189_vm2, %vm11188_vm13  ;;  %v7576_v29 = vsel %vm7539_vm9, %v5327_v3, %v7343_v45  ;;  %11194 = vst [vmem:[#allocation96_spill] sm:$0xff] %v7581_v50  ;;  %4242 = vpow2.f32 %v1524_v6  ;;  %v2764_v52 = vadd.f32 %v2756_v24, %v7414_v0  ;;  %v2836_v6 = vmul.f32 %v7526_v48, %v5147_v58 }
 0x205   : > { %vm7568_vm11 = vmand %vm2603_vm8, %vm7505_vm6  ;;  %v2758_v59 = vmul.f32 %v7576_v29, %v5114_v32  ;;  %v2765_v26 = vadd.f32 %v2757_v47, %v7418_v1  ;;  %v2837_v18 = vmul.f32 %v7547_v4, %v5147_v58  ;;  %4244 = vpow2.f32 %v1526_v16 }
 0x206   : > { %v7589_v46 = vsel %vm7568_vm11, %v5327_v3, %v7354_v14  ;;  %vm7594_vm8 = vmxor %vm7512_vm14, %vm11188_vm13  ;;  %v7625_v10 = vsel %vm7395_vm10, 1.0, %v10871_v21  ;;  %v2781_v1 = vmul.f32 %v7531_v54, %v5144_v57  ;;  %4246 = vpow2.f32 %v1528_v43 }
 0x207   : > { %vm7606_vm6 = vmxor %vm7518_vm1, %vm11188_vm13  ;;  %v2759_v33 = vmul.f32 %v7589_v46, %v5114_v32  ;;  %11201 = vst [vmem:[#allocation97_spill] sm:$0xff] %v7625_v10  ;;  %v2766_v24 = vadd.f32 %v2758_v59, %v7431_v15  ;;  %v2772_v47 = vadd.f32 %v2764_v52, %v5141_v56  ;;  %v2773_v19 = vadd.f32 %v2765_v26, %v5141_v56 }
 0x208   : > { %vm7618_vm14 = vmxor %vm7539_vm9, %vm11188_vm13  ;;  %v2838_v15 = vmul.f32 %v7576_v29, %v5147_v58  ;;  %v2839_v43 = vmul.f32 %v7589_v46, %v5147_v58  ;;  %v2844_v23 = vadd.f32 %v2836_v6, %v5150_v62  ;;  %v7650_v59 = vadd.f32 %v1480_v2, %v7441_v44 }
 0x209   : > { %vm7633_vm1 = vmxor %vm7568_vm11, %vm11188_vm13  ;;  %v2767_v7 = vadd.f32 %v2759_v33, %v7435_v51  ;;  %v1507_v51 = vadd.f32 %v7454_v28, %v5150_v62  ;;  %v2774_v26 = vadd.f32 %v2766_v24, %v5141_v56  ;;  %v2782_v45 = vmul.f32 %v7581_v50, %v5144_v57 }
 0x20a   : > { %vm2650_vm9 = vmpackc.low %vm7606_vm6, %vm7594_vm8  ;;  %v2845_v52 = vadd.f32 %v2837_v18, %v5150_v62  ;;  %v2846_v44 = vadd.f32 %v2838_v15, %v5150_v62  ;;  %v2783_v6 = vmul.f32 %v7625_v10, %v5144_v57  ;;  %v2847_v14 = vadd.f32 %v2839_v43, %v5150_v62  ;;  %v3957_v15 = vld [vmem:[%s5083_s27 + $0x180] sm:$0xff]  ;;  %v3959_v43 = vld [vmem:[%s5083_s27 + $0x190] sm:$0xff] }
 0x20b   : > { %vm2651_vm2 = vmpackc.low %vm7633_vm1, %vm7618_vm14  ;;  %v2775_v28 = vadd.f32 %v2767_v7, %v5141_v56  ;;  %v2852_v33 = vmin.f32 %v2844_v23, 80.0  ;;  %v7671_v0 = vadd.f32 %v2780_v13, %v2772_v47  ;;  %v7673_v24 = vadd.f32 %v2781_v1, %v2773_v19 }
 0x20c   : > { %vm7663_vm11 = vmpackc.even %vm2651_vm2, %vm2650_vm9  ;;  %v2853_v18 = vmin.f32 %v2845_v52, 80.0  ;;  %v2854_v16 = vmin.f32 %v2846_v44, 80.0  ;;  %v2855_v41 = vmin.f32 %v2847_v14, 80.0  ;;  %v1489_v7 = vadd.f32 %v1481_v17, %v7444_v27  ;;  %v3960_v52 = vld [vmem:[%s5083_s27 + $0x198] sm:$0xff] }
 0x20d   : > { %v2860_v61 = vmul.f32 1.442695, %v2852_v33  ;;  %v1515_v50 = vmin.f32 %v1507_v51, 80.0  ;;  %vm10653_vm8 = vmand %vm7462_vm3, %vm7663_vm11  ;;  %v7682_v13 = vadd.f32 %v2782_v45, %v2774_v26  ;;  %v7687_v47 = vsel %vm7559_vm12, 16843009, %v10853_v40 }
 0x20e   : > { %v4243_v54 = vpop.eup %4242  ;;  %v2862_v19 = vmul.f32 1.442695, %v2853_v18  ;;  %v2864_v1 = vmul.f32 1.442695, %v2854_v16  ;;  %v7690_v23 = vadd.f32 %v2783_v6, %v2775_v28  ;;  %v2796_v27 = vmul.f32 %v7526_v48, %v5182_v22  ;;  %vm2900_vm12 = vmxor %vm10653_vm8, %vm11188_vm13 }
 0x20f   : > { %4248 = vpow2.f32 %v2860_v61  ;;  %v2866_v17 = vmul.f32 1.442695, %v2855_v41  ;;  %v4245_v51 = vpop.eup %4244  ;;  %v2797_v26 = vmul.f32 %v7547_v4, %v5182_v22  ;;  %v2812_v45 = vsub.f32 %v3957_v15, %v7671_v0 }
 0x210   : > { %v2813_v44 = vsub.f32 %v3958_v30, %v7673_v24  ;;  %4250 = vpow2.f32 %v2862_v19  ;;  %v4247_v5 = vpop.eup %4246  ;;  %v1490_v61 = vadd.f32 %v7534_v11, %v7447_v36  ;;  %v1530_v41 = vmul.f32 1.442695, %v1515_v50 }
 0x211   : > { %4252 = vpow2.f32 %v2864_v1  ;;  %v1564_v48 = vunpack.c.0.s8 %v7687_v47  ;;  %v2798_v4 = vmul.f32 %v7576_v29, %v5182_v22  ;;  %v2799_v30 = vmul.f32 %v7589_v46, %v5182_v22 }
 0x212   : > { %v2814_v28 = vsub.f32 %v3959_v43, %v7682_v13  ;;  %4254 = vpow2.f32 %v2866_v17  ;;  %v2804_v6 = vadd.f32 %v2796_v27, %v5199_v38  ;;  %v2815_v14 = vsub.f32 %v3960_v52, %v7690_v23 }
 0x213   : > { %v1565_v33 = vunpack.c.1.s8 %v7687_v47  ;;  %v1566_v36 = vunpack.c.2.s8 %v7687_v47  ;;  %v2805_v11 = vadd.f32 %v2797_v26, %v5199_v38  ;;  %v2820_v50 = vmul.f32 %v2812_v45, %v5206_v42 }
 0x214   : > { %v2821_v29 = vmul.f32 %v2813_v44, %v5206_v42  ;;  %v2902_v18 = vsel %vm2900_vm12, 16843009, %v10853_v40  ;;  %4256 = vpow2.f32 %v1530_v41  ;;  %v1536_v46 = vmul.f32 %v4243_v54, %v5227_v55 }
 0x215   : > { %v1537_v16 = vmul.f32 %v4245_v51, %v5227_v55  ;;  %v1538_v15 = vmul.f32 %v4247_v5, %v5227_v55  ;;  %v2806_v19 = vadd.f32 %v2798_v4, %v5199_v38  ;;  %v2807_v1 = vadd.f32 %v2799_v30, %v5199_v38 }
 0x216   : > { %v2822_v43 = vmul.f32 %v2814_v28, %v5206_v42  ;;  %vm7727_vm6 = vcmp.ne.s32.totalorder %v1564_v48, 0  ;;  %v2823_v17 = vmul.f32 %v2815_v14, %v5206_v42  ;;  %v7733_v52 = vadd.f32 %v1536_v46, %v7650_v59 }
 0x217   : > { %v7735_v54 = vadd.f32 %v1537_v16, %v1489_v7  ;;  %v7737_v51 = vadd.f32 %v1538_v15, %v1490_v61  ;;  %v2828_v26 = vadd.f32 %v2820_v50, %v2804_v6  ;;  %v2904_v45 = vunpack.c.0.s8 %v2902_v18 }
 0x218   : > { %vm7739_vm14 = vcmp.ne.s32.totalorder %v1565_v33, 0  ;;  %vm7743_vm1 = vcmp.ne.s32.totalorder %v1566_v36, 0  ;;  %v2829_v48 = vadd.f32 %v2821_v29, %v2805_v11  ;;  %v2905_v4 = vunpack.c.1.s8 %v2902_v18 }
 0x219   : > { %v4249_v41 = vpop.eup %4248  ;;  %vm1552_vm9 = vcmp.ge.f32.partialorder %v7733_v52, %v5233_v9  ;;  %vm1553_vm2 = vcmp.ge.f32.partialorder %v7735_v54, %v5233_v9  ;;  %v2830_v7 = vadd.f32 %v2822_v43, %v2806_v19  ;;  %v2906_v30 = vunpack.c.2.s8 %v2902_v18 }
 0x21a   : > { %v4251_v59 = vpop.eup %4250  ;;  %v2876_v61 = vmul.f32 %v4249_v41, %v5227_v55  ;;  %vm1554_vm12 = vcmp.ge.f32.partialorder %v7737_v51, %v5233_v9  ;;  %vm7756_vm8 = vmand %vm1552_vm9, %vm7727_vm6  ;;  %v11212_v28 = vmov 0  ;;  %v2831_v14 = vadd.f32 %v2823_v17, %v2807_v1 }
 0x21b   : > { %v11213_v28 = vsel %vm7756_vm8, 4294967295, %v11212_v28  ;;  %v4253_v6 = vpop.eup %4252  ;;  %v2877_v33 = vmul.f32 %v4251_v59, %v5227_v55  ;;  %v2907_v36 = vunpack.c.3.s8 %v2902_v18  ;;  %v11215_v11 = vsub.f32 %v7438_v39, %v7422_v25  ;;  %vm7767_vm10 = vmand %vm1553_vm2, %vm7739_vm14 }
 0x21c   : > { %11214 = vst [vmem:[#allocation98_spill] sm:$0xff] %v11213_v28  ;;  %v11216_v29 = vmov 0  ;;  %v4255_v46 = vpop.eup %4254  ;;  %v2878_v16 = vmul.f32 %v4253_v6, %v5227_v55  ;;  %v2884_v15 = vadd.f32 %v2876_v61, %v2828_v26  ;;  %vm2912_vm6 = vcmp.ne.s32.totalorder %v2904_v45, 0  ;;  %vm7780_vm7 = vmand %vm1554_vm12, %vm7743_vm1 }
 0x21d   : > { %v1483_v50 = vmul.f32 %v11215_v11, %v5206_v42  ;;  %v11217_v29 = vsel %vm7767_vm10, 4294967295, %v11216_v29  ;;  %v2879_v19 = vmul.f32 %v4255_v46, %v5227_v55  ;;  %v7773_v1 = vadd.f32 %v2877_v33, %v2829_v48 }
 0x21e   : > { %11218 = vst [vmem:[#allocation99_spill] sm:$0xff] %v11217_v29  ;;  %vm2913_vm9 = vcmp.ne.s32.totalorder %v2905_v4, 0  ;;  %v11219_v39 = vmov 0  ;;  %v7784_v18 = vadd.f32 %v2878_v16, %v2830_v7  ;;  %vm2892_vm14 = vcmp.ge.f32.partialorder %v2884_v15, %v5233_v9  ;;  %v4257_v43 = vpop.eup %4256 }
 0x21f   : > { %v11220_v39 = vsel %vm7780_vm7, 4294967295, %v11219_v39  ;;  %vm2914_vm2 = vcmp.ne.s32.totalorder %v2906_v30, 0  ;;  %v7791_v27 = vadd.f32 %v2879_v19, %v2831_v14  ;;  %vm2893_vm15 = vcmp.ge.f32.partialorder %v7773_v1, %v5233_v9  ;;  %vm7795_vm12 = vmand %vm2892_vm14, %vm2912_vm6 }
 0x220   : > { %11221 = vst [vmem:[#allocation100_spill] sm:$0xff] %v11220_v39  ;;  %vm2915_vm1 = vcmp.ne.s32.totalorder %v2907_v36, 0  ;;  %v11222_v17 = vmov 0  ;;  %v1491_v26 = vadd.f32 %v1483_v50, %v7450_v12  ;;  %vm2894_vm13 = vcmp.ge.f32.partialorder %v7784_v18, %v5233_v9  ;;  %vm7802_vm0 = vmand %vm2893_vm15, %vm2913_vm9 }
 0x221   : > { %v11223_v17 = vsel %vm7795_vm12, 4294967295, %v11222_v17  ;;  %v11225_v45 = vmov 0  ;;  %v1539_v44 = vmul.f32 %v4257_v43, %v5227_v55  ;;  %v1567_v5 = vunpack.c.3.s8 %v7687_v47  ;;  %vm7810_vm6 = vmand %vm2894_vm13, %vm2914_vm2 }
 0x222   : > { %11224 = vst [vmem:[#allocation101_spill] sm:$0xff] %v11223_v17  ;;  %v11226_v45 = vsel %vm7802_vm0, 4294967295, %v11225_v45  ;;  %vm2895_vm5 = vcmp.ge.f32.partialorder %v7791_v27, %v5233_v9  ;;  %v11228_v41 = vmov 0  ;;  %v11231_v12 = vmov 0  ;;  %vm2928_vm15 = vmpackc.low %vm7802_vm0, %vm7795_vm12 }
 0x223   : > { %11227 = vst [vmem:[#allocation102_spill] sm:$0xff] %v11226_v45  ;;  %v11229_v41 = vsel %vm7810_vm6, 4294967295, %v11228_v41  ;;  %vm7814_vm14 = vmand %vm2895_vm5, %vm2915_vm1  ;;  %v7822_v48 = vadd.f32 %v1539_v44, %v1491_v26  ;;  %vm1575_vm13 = vcmp.ne.s32.totalorder %v1567_v5, 0  ;;  %v3084_v47 = vmul.f32 %v7671_v0, %v5112_v31 }
 0x224   : > { %11230 = vst [vmem:[#allocation103_spill] sm:$0xff] %v11229_v41  ;;  %v11232_v12 = vsel %vm7814_vm14, 4294967295, %v11231_v12  ;;  %vm2929_vm9 = vmpackc.low %vm7814_vm14, %vm7810_vm6  ;;  %v11235_v4 = vmov 0  ;;  %v7845_v59 = vsel %vm7795_vm12, 1.0, %v10871_v21  ;;  %v3085_v0 = vmul.f32 %v7673_v24, %v5112_v31 }
 0x225   : > { %11233 = vst [vmem:[#allocation104_spill] sm:$0xff] %v11232_v12  ;;  %vm2930_vm2 = vmpackc.even %vm2929_vm9, %vm2928_vm15  ;;  %vm1555_vm5 = vcmp.ge.f32.partialorder %v7822_v48, %v5233_v9  ;;  %v3086_v49 = vmul.f32 %v7682_v13, %v5112_v31  ;;  %v7857_v7 = vsel %vm7802_vm0, 1.0, %v10871_v21  ;;  %v7862_v61 = vsel %vm7810_vm6, 1.0, %v10871_v21 }
 0x226   : > { %vm11234_vm1 = vmand %vm7462_vm3, %vm7663_vm11  ;;  %11238 = vst [vmem:[#allocation106_spill] sm:$0xff] %v7845_v59  ;;  %v7867_v24 = vsel %vm7814_vm14, 1.0, %v10871_v21  ;;  %v11242_v13 = vmov 0  ;;  %v3116_v36 = vmul.f32 %v7845_v59, %v5144_v57  ;;  %v7885_v11 = vmul.f32 %v7690_v23, %v5112_v31  ;;  %v3977_v59 = vld [vmem:[%s5083_s27 + $0x1d0] sm:$0xff] }
 0x227   : > { %vm7837_vm4 = vmor %vm11234_vm1, %vm2930_vm2  ;;  %11239 = vst [vmem:[#allocation107_spill] sm:$0xff] %v7857_v7  ;;  %v3117_v50 = vmul.f32 %v7857_v7, %v5144_v57  ;;  %vm11249_vm9 = vnez %v11071_v60  ;;  %vm11250_vm15 = vnez %v11176_v35  ;;  %v11255_v16 = vmov 0 }
 0x228   : > { %v11236_v4 = vsel %vm7837_vm4, 4294967295, %v11235_v4  ;;  %v2944_v2 = vsel %vm7837_vm4, 16843009, %v10853_v40  ;;  %11240 = vst [vmem:[#allocation108_spill] sm:$0xff] %v7862_v61  ;;  %11241 = vst [vmem:[#allocation109_spill] sm:$0xff] %v7867_v24  ;;  %v3118_v19 = vmul.f32 %v7862_v61, %v5144_v57  ;;  %vm2939_vm12 = vcmp.ge.f32.partialorder %v7791_v27, %v5317_v63 }
 0x229   : > { %11237 = vst [vmem:[#allocation105_spill] sm:$0xff] %v11236_v4  ;;  %vm7869_vm3 = vmand %vm1555_vm5, %vm1575_vm13  ;;  %v2946_v30 = vunpack.c.0.s8 %v2944_v2  ;;  %v2947_v6 = vunpack.c.1.s8 %v2944_v2  ;;  %v2948_v14 = vunpack.c.2.s8 %v2944_v2  ;;  %v2949_v33 = vunpack.c.3.s8 %v2944_v2 }
 0x22a   : > { %v11243_v13 = vsel %vm7869_vm3, 4294967295, %v11242_v13  ;;  %vm1588_vm11 = vmpackc.low %vm7869_vm3, %vm7780_vm7  ;;  %v7919_v60 = vmul.f32 %v7867_v24, %v5144_v57  ;;  %v11258_v26 = vmov 0  ;;  %v11265_v17 = vmov 0 }
 0x22b   : > { %11244 = vst [vmem:[#allocation110_spill] sm:$0xff] %v11243_v13  ;;  %vm11245_vm13 = vmmov %vm7756_vm8  ;;  %vm2954_vm1 = vcmp.ne.s32.totalorder %v2946_v30, 0  ;;  %vm2955_vm8 = vcmp.ne.s32.totalorder %v2947_v6, 0  ;;  %vm7894_vm14 = vcmp.ne.s32.totalorder %v2948_v14, 0  ;;  %v9138_v13 = vstv %s9053_s18 }
 0x22c   : > { %vm11246_vm2 = vmpackc.low %vm7767_vm10, %vm11245_vm13 }
 0x22d   : > { %vm1589_vm5 = vmpackc.even %vm1588_vm11, %vm11246_vm2  ;;  %vm11254_vm11 = vcmp.ge.f32.partialorder %v2884_v15, %v5317_v63 }
 0x22e   : > { %vm11251_vm6 = vmand %vm11249_vm9, %vm11250_vm15  ;;  %vm7936_vm9 = vcmp.ne.s32.totalorder %v2949_v33, 0  ;;  %v11263_v33 = vmov 0 }
 0x22f   : > { %vm7903_vm0 = vmor %vm11251_vm6, %vm1589_vm5  ;;  %vm11257_vm6 = vcmp.ge.f32.partialorder %v7773_v1, %v5317_v63 }
 0x230   : > { %vm7909_vm2 = vmand %vm11254_vm11, %vm2954_vm1  ;;  %v7924_v35 = vsel %vm7903_vm0, 16843009, %v10853_v40  ;;  %vm1596_vm1 = vcmp.ge.f32.partialorder %v7733_v52, %v5317_v63  ;;  %vm1599_vm11 = vcmp.ge.f32.partialorder %v7822_v48, %v5317_v63 }
 0x231   : > { %v11256_v16 = vsel %vm7909_vm2, 4294967295, %v11255_v16  ;;  %v2970_v43 = vsel %vm7909_vm2, %v5327_v3, %v2884_v15  ;;  %vm7932_vm15 = vmand %vm11257_vm6, %vm2955_vm8  ;;  %v1606_v5 = vunpack.c.0.s8 %v7924_v35  ;;  %vm11262_vm8 = vcmp.ge.f32.partialorder %v7784_v18, %v5317_v63 }
 0x232   : > { %v11259_v26 = vsel %vm7932_vm15, 4294967295, %v11258_v26  ;;  %v3092_v30 = vmul.f32 %v2970_v43, %v5114_v32  ;;  %v3132_v6 = vmul.f32 %v2970_v43, %v5182_v22  ;;  %v3172_v15 = vmul.f32 %v2970_v43, %v5147_v58  ;;  %vm7954_vm5 = vmand %vm11262_vm8, %vm7894_vm14 }
 0x233   : > { %v2971_v14 = vsel %vm7932_vm15, %v5327_v3, %v7773_v1  ;;  %v11264_v33 = vsel %vm7954_vm5, 4294967295, %v11263_v33  ;;  %v2972_v1 = vsel %vm7954_vm5, %v5327_v3, %v7784_v18  ;;  %vm7972_vm14 = vmand %vm2939_vm12, %vm7936_vm9  ;;  %vm1614_vm6 = vcmp.ne.s32.totalorder %v1606_v5, 0 }
 0x234   : > { %v3093_v2 = vmul.f32 %v2971_v14, %v5114_v32  ;;  %v3133_v12 = vmul.f32 %v2971_v14, %v5182_v22  ;;  %v3173_v43 = vmul.f32 %v2971_v14, %v5147_v58  ;;  %v3100_v46 = vadd.f32 %v3092_v30, %v3084_v47  ;;  %vm8019_vm4 = vmand %vm1596_vm1, %vm1614_vm6 }
 0x235   : > { %v3180_v41 = vadd.f32 %v3172_v15, %v5150_v62  ;;  %v3094_v45 = vmul.f32 %v2972_v1, %v5114_v32  ;;  %v11266_v17 = vsel %vm7972_vm14, 4294967295, %v11265_v17  ;;  %v1608_v14 = vunpack.c.2.s8 %v7924_v35 }
 0x236   : > { %11267 = vst [vmem:[#allocation111_spill] sm:$0xff] %v11266_v17  ;;  %v3140_v10 = vadd.f32 %v3132_v6, %v5199_v38  ;;  %v3101_v18 = vadd.f32 %v3093_v2, %v3085_v0  ;;  %v3181_v47 = vadd.f32 %v3173_v43, %v5150_v62  ;;  %v3134_v30 = vmul.f32 %v2972_v1, %v5182_v22  ;;  %v3975_v6 = vld [vmem:[%s5083_s27 + $0x1c0] sm:$0xff] }
 0x237   : > { %v3108_v44 = vadd.f32 %v3100_v46, %v5141_v56  ;;  %v3188_v15 = vmin.f32 %v3180_v41, 80.0  ;;  %v3102_v20 = vadd.f32 %v3094_v45, %v3086_v49  ;;  %v3174_v24 = vmul.f32 %v2972_v1, %v5147_v58  ;;  %v3976_v49 = vld [vmem:[%s5083_s27 + $0x1c8] sm:$0xff] }
 0x238   : > { %v3109_v0 = vadd.f32 %v3101_v18, %v5141_v56  ;;  %v3141_v2 = vadd.f32 %v3133_v12, %v5199_v38  ;;  %v3189_v43 = vmin.f32 %v3181_v47, 80.0  ;;  %v2973_v61 = vsel %vm7972_vm14, %v5327_v3, %v7791_v27 }
 0x239   : > { %v3124_v45 = vadd.f32 %v3116_v36, %v3108_v44  ;;  %v3196_v41 = vmul.f32 1.442695, %v3188_v15  ;;  %v3110_v1 = vadd.f32 %v3102_v20, %v5141_v56  ;;  %v3182_v46 = vadd.f32 %v3174_v24, %v5150_v62 }
 0x23a   : > { %v3125_v7 = vadd.f32 %v3117_v50, %v3109_v0  ;;  %v3198_v18 = vmul.f32 1.442695, %v3189_v43  ;;  %v3142_v12 = vadd.f32 %v3134_v30, %v5199_v38  ;;  %v3095_v47 = vmul.f32 %v2973_v61, %v5114_v32 }
 0x23b   : > { %v3148_v37 = vsub.f32 %v3975_v6, %v3124_v45  ;;  %4258 = vpow2.f32 %v3196_v41  ;;  %3419 = vst [vmem:[#allocation16] sm:$0xff] %v3124_v45  ;;  %v3126_v27 = vadd.f32 %v3118_v19, %v3110_v1  ;;  %v3190_v4 = vmin.f32 %v3182_v46, 80.0 }
 0x23c   : > { %v3149_v17 = vsub.f32 %v3976_v49, %v3125_v7  ;;  %4260 = vpow2.f32 %v3198_v18  ;;  %3420 = vst [vmem:[#allocation16 + $0x8] sm:$0xff] %v3125_v7  ;;  %v3103_v20 = vadd.f32 %v3095_v47, %v7885_v11  ;;  %v3135_v24 = vmul.f32 %v2973_v61, %v5182_v22  ;;  %v3978_v11 = vld [vmem:[%s5083_s27 + $0x1d8] sm:$0xff] }
 0x23d   : > { %v3156_v36 = vmul.f32 %v3148_v37, %v5206_v42  ;;  %v3150_v50 = vsub.f32 %v3977_v59, %v3126_v27  ;;  %v3200_v44 = vmul.f32 1.442695, %v3190_v4  ;;  %3421 = vst [vmem:[#allocation16 + $0x10] sm:$0xff] %v3126_v27  ;;  %v3175_v30 = vmul.f32 %v2973_v61, %v5147_v58 }
 0x23e   : > { %v3157_v15 = vmul.f32 %v3149_v17, %v5206_v42  ;;  %v3111_v19 = vadd.f32 %v3103_v20, %v5141_v56  ;;  %v1609_v6 = vunpack.c.3.s8 %v7924_v35  ;;  %v11268_v59 = vunpack.c.1.s8 %v7924_v35 }
 0x23f   : > { %v3164_v0 = vadd.f32 %v3156_v36, %v3140_v10  ;;  %v3158_v7 = vmul.f32 %v3150_v50, %v5206_v42  ;;  %4262 = vpow2.f32 %v3200_v44  ;;  %v3183_v43 = vadd.f32 %v3175_v30, %v5150_v62 }
 0x240   : > { %v3165_v37 = vadd.f32 %v3157_v15, %v3141_v2  ;;  %v3127_v4 = vadd.f32 %v7919_v60, %v3111_v19  ;;  %vm1615_vm9 = vcmp.ne.s32.totalorder %v11268_v59, 0  ;;  %vm1616_vm8 = vcmp.ne.s32.totalorder %v1608_v14, 0  ;;  %v3908_v19 = vld [vmem:[%s5083_s27 + $0xe8] sm:$0xff] }
 0x241   : > { %v3166_v17 = vadd.f32 %v3158_v7, %v3142_v12  ;;  %v3191_v61 = vmin.f32 %v3183_v43, 80.0  ;;  %vm1617_vm12 = vcmp.ne.s32.totalorder %v1609_v6, 0  ;;  %v3143_v5 = vadd.f32 %v3135_v24, %v5199_v38 }
 0x242   : > { %v3151_v60 = vsub.f32 %v3978_v11, %v3127_v4  ;;  %3422 = vst [vmem:[#allocation16 + $0x18] sm:$0xff] %v3127_v4  ;;  %vm11271_vm14 = vcmp.ge.f32.partialorder %v7735_v54, %v5317_v63  ;;  %vm11274_vm15 = vcmp.ge.f32.partialorder %v7737_v51, %v5317_v63  ;;  %vm8039_vm1 = vmand %vm1599_vm11, %vm1617_vm12  ;;  %v8047_v49 = vsel %vm8019_vm4, %v5327_v3, %v7733_v52 }
 0x243   : > { %vm8027_vm5 = vmand %vm11271_vm14, %vm1615_vm9  ;;  %v3202_v14 = vmul.f32 1.442695, %v3191_v61  ;;  %v1744_v1 = vmul.f32 %v7401_v53, %v5112_v31  ;;  %v1745_v12 = vmul.f32 %v7403_v8, %v5112_v31  ;;  %v1752_v47 = vmul.f32 %v8047_v49, %v5114_v32 }
 0x244   : > { %vm8034_vm2 = vmand %vm11274_vm15, %vm1616_vm8  ;;  %v3159_v45 = vmul.f32 %v3151_v60, %v5206_v42  ;;  %v8055_v18 = vsel %vm8027_vm5, %v5327_v3, %v7735_v54  ;;  %v8075_v8 = vsel %vm8039_vm1, %v5327_v3, %v7822_v48  ;;  %v1746_v36 = vmul.f32 %v7405_v34, %v5112_v31 }
 0x245   : > { %v4259_v46 = vpop.eup %4258  ;;  %4264 = vpow2.f32 %v3202_v14  ;;  %v8066_v53 = vsel %vm8034_vm2, %v5327_v3, %v7737_v51  ;;  %v1753_v54 = vmul.f32 %v8055_v18, %v5114_v32  ;;  %vm11279_vm15 = vmmov 1  }
 0x246   : > { %v4261_v27 = vpop.eup %4260  ;;  %v3212_v52 = vmul.f32 %v4259_v46, %v5227_v55  ;;  %v3167_v20 = vadd.f32 %v3159_v45, %v3143_v5  ;;  %v1754_v50 = vmul.f32 %v8066_v53, %v5114_v32  ;;  %vm8086_vm14 = vmxor %vm8019_vm4, %vm11279_vm15  ;;  %v1747_v30 = vmul.f32 %v7422_v25, %v5112_v31 }
 0x247   : > { %v3213_v24 = vmul.f32 %v4261_v27, %v5227_v55  ;;  %v1755_v48 = vmul.f32 %v8075_v8, %v5114_v32  ;;  %vm8099_vm12 = vmxor %vm8027_vm5, %vm11279_vm15  ;;  %v1760_v6 = vadd.f32 %v1752_v47, %v1744_v1  ;;  %v8114_v7 = vsel %vm11245_vm13, 1.0, %v10871_v21 }
 0x248   : > { %v8081_v44 = vadd.f32 %v3212_v52, %v3164_v0  ;;  %vm8107_vm4 = vmxor %vm8034_vm2, %vm11279_vm15  ;;  %11286 = vst [vmem:[#allocation112_spill] sm:$0xff] %v8114_v7  ;;  %v8119_v11 = vsel %vm7767_vm10, 1.0, %v10871_v21  ;;  %v1761_v43 = vadd.f32 %v1753_v54, %v1745_v12  ;;  %v8131_v4 = vsel %vm7780_vm7, 1.0, %v10871_v21 }
 0x249   : > { %v4263_v15 = vpop.eup %4262  ;;  %v8094_v34 = vadd.f32 %v3213_v24, %v3165_v37  ;;  %11287 = vst [vmem:[#allocation113_spill] sm:$0xff] %v8119_v11  ;;  %vm8124_vm5 = vmxor %vm8039_vm1, %vm11279_vm15  ;;  %v8136_v59 = vsel %vm7869_vm3, 1.0, %v10871_v21  ;;  %v1762_v61 = vadd.f32 %v1754_v50, %v1746_v36  ;;  %v1832_v10 = vmul.f32 %v8047_v49, %v5147_v58 }
 0x24a   : > { %v3214_v0 = vmul.f32 %v4263_v15, %v5227_v55  ;;  %11290 = vst [vmem:[#allocation114_spill] sm:$0xff] %v8131_v4  ;;  %11291 = vst [vmem:[#allocation115_spill] sm:$0xff] %v8136_v59  ;;  %v1763_v60 = vadd.f32 %v1755_v48, %v1747_v30  ;;  %v1833_v35 = vmul.f32 %v8055_v18, %v5147_v58 }
 0x24b   : > { %v1834_v14 = vmul.f32 %v8066_v53, %v5147_v58  ;;  %vm1645_vm2 = vmpackc.low %vm8099_vm12, %vm8086_vm14  ;;  %v1768_v2 = vadd.f32 %v1760_v6, %v5141_v56  ;;  %v1776_v45 = vmul.f32 %v8114_v7, %v5144_v57  ;;  %v1835_v41 = vmul.f32 %v8075_v8, %v5147_v58  ;;  %v11553_v7 = vld [vmem:[#allocation44_spill] sm:$0xff] }
 0x24c   : > { %v8140_v5 = vadd.f32 %v3214_v0, %v3166_v17  ;;  %v1777_v17 = vmul.f32 %v8119_v11, %v5144_v57  ;;  %vm1646_vm11 = vmpackc.low %vm8124_vm5, %vm8107_vm4  ;;  %v1769_v1 = vadd.f32 %v1761_v43, %v5141_v56  ;;  %v1840_v46 = vadd.f32 %v1832_v10, %v5150_v62 }
 0x24d   : > { %v1841_v12 = vadd.f32 %v1833_v35, %v5150_v62  ;;  %v1842_v47 = vadd.f32 %v1834_v14, %v5150_v62  ;;  %v1770_v52 = vadd.f32 %v1762_v61, %v5141_v56  ;;  %v1778_v54 = vmul.f32 %v8131_v4, %v5144_v57  ;;  %vm8178_vm6 = vmpackc.even %vm1646_vm11, %vm1645_vm2  ;;  %v3907_v61 = vld [vmem:[%s5083_s27 + $0xe0] sm:$0xff] }
 0x24e   : > { %v1779_v24 = vmul.f32 %v8136_v59, %v5144_v57  ;;  %v1843_v36 = vadd.f32 %v1835_v41, %v5150_v62  ;;  %v1771_v30 = vadd.f32 %v1763_v60, %v5141_v56  ;;  %v1848_v48 = vmin.f32 %v1840_v46, 80.0  ;;  %vm10689_vm9 = vmand %vm7903_vm0, %vm8178_vm6 }
 0x24f   : > { %v4265_v27 = vpop.eup %4264  ;;  %v1849_v15 = vmin.f32 %v1841_v12, 80.0  ;;  %v8182_v0 = vadd.f32 %v1776_v45, %v1768_v2  ;;  %v1850_v25 = vmin.f32 %v1842_v47, 80.0  ;;  %v8187_v10 = vadd.f32 %v1777_v17, %v1769_v1  ;;  %v3909_v2 = vld [vmem:[%s5083_s27 + $0xf0] sm:$0xff]  ;;  %vm1893_vm8 = vmxor %vm10689_vm9, %vm11279_vm15 }
 0x250   : > { %v3215_v50 = vmul.f32 %v4265_v27, %v5227_v55  ;;  %v1851_v43 = vmin.f32 %v1843_v36, 80.0  ;;  %v1860_v60 = vmul.f32 1.442695, %v1848_v48  ;;  %v8190_v14 = vadd.f32 %v1778_v54, %v1770_v52 }
 0x251   : > { %v1862_v35 = vmul.f32 1.442695, %v1849_v15  ;;  %v1864_v51 = vmul.f32 1.442695, %v1850_v25  ;;  %v8197_v45 = vadd.f32 %v1779_v24, %v1771_v30  ;;  %v1792_v17 = vmul.f32 %v8047_v49, %v5182_v22 }
 0x252   : > { %v8184_v37 = vadd.f32 %v3215_v50, %v3167_v20  ;;  %v1866_v41 = vmul.f32 1.442695, %v1851_v43  ;;  %4266 = vpow2.f32 %v1860_v60  ;;  %v3910_v20 = vld [vmem:[%s5083_s27 + $0xf8] sm:$0xff]  ;;  %v1808_v1 = vsub.f32 %v3907_v61, %v8182_v0 }
 0x253   : > { %4268 = vpow2.f32 %v1862_v35  ;;  %v1793_v46 = vmul.f32 %v8055_v18, %v5182_v22  ;;  %v1809_v12 = vsub.f32 %v3908_v19, %v8187_v10  ;;  %v1794_v47 = vmul.f32 %v8066_v53, %v5182_v22 }
 0x254   : > { %4270 = vpow2.f32 %v1864_v51  ;;  %v1810_v27 = vsub.f32 %v3909_v2, %v8190_v14  ;;  %v1795_v49 = vmul.f32 %v8075_v8, %v5182_v22  ;;  %v1811_v18 = vsub.f32 %v3910_v20, %v8197_v45 }
 0x255   : > { %4272 = vpow2.f32 %v1866_v41  ;;  %v1800_v52 = vadd.f32 %v1792_v17, %v5199_v38  ;;  %v1816_v54 = vmul.f32 %v1808_v1, %v5206_v42  ;;  %v1801_v53 = vadd.f32 %v1793_v46, %v5199_v38 }
 0x256   : > { %v1817_v24 = vmul.f32 %v1809_v12, %v5206_v42  ;;  %v1895_v36 = vsel %vm1893_vm8, 16843009, %v10853_v40  ;;  %v1802_v50 = vadd.f32 %v1794_v47, %v5199_v38  ;;  %v1818_v30 = vmul.f32 %v1810_v27, %v5206_v42 }
 0x257   : > { %v1803_v48 = vadd.f32 %v1795_v49, %v5199_v38  ;;  %v1819_v8 = vmul.f32 %v1811_v18, %v5206_v42  ;;  %v1824_v15 = vadd.f32 %v1816_v54, %v1800_v52  ;;  %v1900_v25 = vunpack.c.0.s8 %v1895_v36 }
 0x258   : > { %v1825_v61 = vadd.f32 %v1817_v24, %v1801_v53  ;;  %v1901_v60 = vunpack.c.1.s8 %v1895_v36  ;;  %v1826_v19 = vadd.f32 %v1818_v30, %v1802_v50  ;;  %v1902_v41 = vunpack.c.2.s8 %v1895_v36 }
 0x259   : > { %v1827_v20 = vadd.f32 %v1819_v8, %v1803_v48  ;;  %v1903_v1 = vunpack.c.3.s8 %v1895_v36  ;;  %vm1908_vm1 = vcmp.ne.s32.totalorder %v1900_v25, 0  ;;  %v11294_v54 = vmov 0 }
 0x25a   : > { %vm1909_vm14 = vcmp.ne.s32.totalorder %v1901_v60, 0  ;;  %vm1910_vm4 = vcmp.ne.s32.totalorder %v1902_v41, 0  ;;  %v11297_v53 = vmov 0  ;;  %v11300_v24 = vmov 0 }
 0x25b   : > { %vm1911_vm2 = vcmp.ne.s32.totalorder %v1903_v1, 0  ;;  %v11303_v36 = vmov 0  ;;  %v11307_v50 = vmov 0  ;;  %v2080_v6 = vmul.f32 %v8182_v0, %v5112_v31 }
 0x25c   : > { %v4267_v43 = vpop.eup %4266  ;;  %v2081_v60 = vmul.f32 %v8187_v10, %v5112_v31  ;;  %v2082_v0 = vmul.f32 %v8190_v14, %v5112_v31 }
 0x25d   : > { %v4269_v35 = vpop.eup %4268  ;;  %v1872_v51 = vmul.f32 %v4267_v43, %v5227_v55 }
 0x25e   : > { %v4271_v2 = vpop.eup %4270  ;;  %v1873_v17 = vmul.f32 %v4269_v35, %v5227_v55 }
 0x25f   : > { %v4273_v46 = vpop.eup %4272  ;;  %v1874_v12 = vmul.f32 %v4271_v2, %v5227_v55  ;;  %v1880_v47 = vadd.f32 %v1872_v51, %v1824_v15 }
 0x260   : > { %v1875_v27 = vmul.f32 %v4273_v46, %v5227_v55  ;;  %v1881_v49 = vadd.f32 %v1873_v17, %v1825_v61 }
 0x261   : > { %v1882_v18 = vadd.f32 %v1874_v12, %v1826_v19  ;;  %vm1888_vm12 = vcmp.ge.f32.partialorder %v1880_v47, %v5233_v9 }
 0x262   : > { %v1883_v52 = vadd.f32 %v1875_v27, %v1827_v20  ;;  %vm1889_vm5 = vcmp.ge.f32.partialorder %v1881_v49, %v5233_v9  ;;  %vm8233_vm11 = vmand %vm1888_vm12, %vm1908_vm1  ;;  %v2083_v20 = vmul.f32 %v8197_v45, %v5112_v31 }
 0x263   : > { %v11295_v54 = vsel %vm8233_vm11, 4294967295, %v11294_v54  ;;  %vm1890_vm8 = vcmp.ge.f32.partialorder %v1882_v18, %v5233_v9  ;;  %vm8238_vm9 = vmand %vm1889_vm5, %vm1909_vm14  ;;  %vm1932_vm5 = vcmp.ge.f32.partialorder %v1880_v47, %v5317_v63  ;;  %v8310_v2 = vsel %vm8233_vm11, 1.0, %v10871_v21 }
 0x264   : > { %11296 = vst [vmem:[#allocation116_spill] sm:$0xff] %v11295_v54  ;;  %v11298_v53 = vsel %vm8238_vm9, 4294967295, %v11297_v53  ;;  %vm1891_vm3 = vcmp.ge.f32.partialorder %v1883_v52, %v5233_v9  ;;  %vm8243_vm7 = vmand %vm1890_vm8, %vm1910_vm4  ;;  %vm1934_vm8 = vcmp.ge.f32.partialorder %v1882_v18, %v5317_v63  ;;  %v8337_v27 = vsel %vm8238_vm9, 1.0, %v10871_v21 }
 0x265   : > { %11299 = vst [vmem:[#allocation117_spill] sm:$0xff] %v11298_v53  ;;  %v11301_v24 = vsel %vm8243_vm7, 4294967295, %v11300_v24  ;;  %vm8247_vm10 = vmand %vm1891_vm3, %vm1911_vm2  ;;  %vm1933_vm2 = vcmp.ge.f32.partialorder %v1881_v49, %v5317_v63 }
 0x266   : > { %11302 = vst [vmem:[#allocation118_spill] sm:$0xff] %v11301_v24  ;;  %v11304_v36 = vsel %vm8247_vm10, 4294967295, %v11303_v36  ;;  %vm1923_vm1 = vmpackc.low %vm8238_vm9, %vm8233_vm11  ;;  %v8365_v23 = vsel %vm8247_vm10, 1.0, %v10871_v21 }
 0x267   : > { %11305 = vst [vmem:[#allocation119_spill] sm:$0xff] %v11304_v36  ;;  %vm1924_vm14 = vmpackc.low %vm8247_vm10, %vm8243_vm7 }
 0x268   : > { %vm1925_vm12 = vmpackc.even %vm1924_vm14, %vm1923_vm1  ;;  %vm1935_vm14 = vcmp.ge.f32.partialorder %v1883_v52, %v5317_v63  ;;  %11317 = vst [vmem:[#allocation120_spill] sm:$0xff] %v8310_v2 }
 0x269   : > { %vm11306_vm4 = vmand %vm7903_vm0, %vm8178_vm6  ;;  %11322 = vst [vmem:[#allocation121_spill] sm:$0xff] %v8337_v27 }
 0x26a   : > { %vm8264_vm3 = vmor %vm11306_vm4, %vm1925_vm12  ;;  %11328 = vst [vmem:[#allocation123_spill] sm:$0xff] %v8365_v23 }
 0x26b   : > { %v11308_v50 = vsel %vm8264_vm3, 4294967295, %v11307_v50  ;;  %v1937_v30 = vsel %vm8264_vm3, 16843009, %v10853_v40 }
 0x26c   : > { %v1942_v48 = vunpack.c.0.s8 %v1937_v30  ;;  %v1943_v8 = vunpack.c.1.s8 %v1937_v30  ;;  %v1944_v15 = vunpack.c.2.s8 %v1937_v30  ;;  %v1945_v25 = vunpack.c.3.s8 %v1937_v30 }
 0x26e   : > { %vm1950_vm1 = vcmp.ne.s32.totalorder %v1942_v48, 0  ;;  %vm1951_vm0 = vcmp.ne.s32.totalorder %v1943_v8, 0  ;;  %vm1952_vm6 = vcmp.ne.s32.totalorder %v1944_v15, 0  ;;  %vm1953_vm12 = vcmp.ne.s32.totalorder %v1945_v25, 0  ;;  %v3925_v25 = vld [vmem:[%s5083_s27 + $0x120] sm:$0xff] }
 0x26f   : > { %vm8275_vm4 = vmand %vm1932_vm5, %vm1950_vm1  ;;  %v8351_v48 = vsel %vm8243_vm7, 1.0, %v10871_v21  ;;  %v2112_v15 = vmul.f32 %v8310_v2, %v5144_v57 }
 0x270   : > { %vm8281_vm13 = vmand %vm1933_vm2, %vm1951_vm0  ;;  %v1966_v61 = vsel %vm8275_vm4, %v5327_v3, %v1880_v47  ;;  %11325 = vst [vmem:[#allocation122_spill] sm:$0xff] %v8351_v48 }
 0x271   : > { %vm8290_vm3 = vmand %vm1934_vm8, %vm1952_vm6  ;;  %v1967_v19 = vsel %vm8281_vm13, %v5327_v3, %v1881_v49  ;;  %v2088_v51 = vmul.f32 %v1966_v61, %v5114_v32  ;;  %v2168_v47 = vmul.f32 %v1966_v61, %v5147_v58 }
 0x272   : > { %vm8300_vm5 = vmand %vm1935_vm14, %vm1953_vm12  ;;  %v1968_v10 = vsel %vm8290_vm3, %v5327_v3, %v1882_v18  ;;  %v2089_v14 = vmul.f32 %v1967_v19, %v5114_v32  ;;  %vm11331_vm14 = vnez %v11308_v50 }
 0x273   : > { %v1969_v17 = vsel %vm8300_vm5, %v5327_v3, %v1883_v52  ;;  %vm8321_vm2 = vmxor %vm8275_vm4, %vm11279_vm15  ;;  %v2090_v46 = vmul.f32 %v1968_v10, %v5114_v32  ;;  %v2096_v12 = vadd.f32 %v2088_v51, %v2080_v6  ;;  %v2169_v52 = vmul.f32 %v1967_v19, %v5147_v58 }
 0x274   : > { %vm8330_vm8 = vmxor %vm8281_vm13, %vm11279_vm15  ;;  %v2091_v49 = vmul.f32 %v1969_v17, %v5114_v32  ;;  %v2097_v18 = vadd.f32 %v2089_v14, %v2081_v60  ;;  %v2170_v60 = vmul.f32 %v1968_v10, %v5147_v58  ;;  %v2171_v51 = vmul.f32 %v1969_v17, %v5147_v58 }
 0x275   : > { %vm8344_vm1 = vmxor %vm8290_vm3, %vm11279_vm15  ;;  %v2098_v8 = vadd.f32 %v2090_v46, %v2082_v0  ;;  %v2104_v43 = vadd.f32 %v2096_v12, %v5141_v56  ;;  %v2113_v0 = vmul.f32 %v8337_v27, %v5144_v57  ;;  %v2176_v41 = vadd.f32 %v2168_v47, %v5150_v62 }
 0x276   : > { %vm8358_vm13 = vmxor %vm8300_vm5, %vm11279_vm15  ;;  %v2099_v6 = vadd.f32 %v2091_v49, %v2083_v20  ;;  %v2105_v35 = vadd.f32 %v2097_v18, %v5141_v56  ;;  %v2114_v14 = vmul.f32 %v8351_v48, %v5144_v57  ;;  %v2177_v1 = vadd.f32 %v2169_v52, %v5150_v62  ;;  %v3926_v48 = vld [vmem:[%s5083_s27 + $0x128] sm:$0xff] }
 0x277   : > { %vm1981_vm3 = vmpackc.low %vm8330_vm8, %vm8321_vm2  ;;  %v2106_v20 = vadd.f32 %v2098_v8, %v5141_v56  ;;  %v2178_v46 = vadd.f32 %v2170_v60, %v5150_v62  ;;  %v2115_v47 = vmul.f32 %v8365_v23, %v5144_v57  ;;  %v2179_v45 = vadd.f32 %v2171_v51, %v5150_v62 }
 0x278   : > { %vm1982_vm0 = vmpackc.low %vm8358_vm13, %vm8344_vm1  ;;  %v2107_v12 = vadd.f32 %v2099_v6, %v5141_v56  ;;  %v2184_v49 = vmin.f32 %v2176_v41, 80.0  ;;  %v8395_v30 = vadd.f32 %v2112_v15, %v2104_v43  ;;  %v2185_v8 = vmin.f32 %v2177_v1, 80.0  ;;  %v3927_v15 = vld [vmem:[%s5083_s27 + $0x130] sm:$0xff]  ;;  %v3928_v1 = vld [vmem:[%s5083_s27 + $0x138] sm:$0xff] }
 0x279   : > { %vm8391_vm6 = vmpackc.even %vm1982_vm0, %vm1981_vm3  ;;  %v2186_v52 = vmin.f32 %v2178_v46, 80.0  ;;  %v8398_v60 = vadd.f32 %v2113_v0, %v2105_v35  ;;  %v2187_v6 = vmin.f32 %v2179_v45, 80.0  ;;  %v8401_v23 = vadd.f32 %v2114_v14, %v2106_v20 }
 0x27a   : > { %v2196_v59 = vmul.f32 1.442695, %v2184_v49  ;;  %v2198_v4 = vmul.f32 1.442695, %v2185_v8  ;;  %vm10701_vm12 = vmand %vm11331_vm14, %vm8391_vm6  ;;  %v8408_v43 = vadd.f32 %v2115_v47, %v2107_v12  ;;  %v2128_v35 = vmul.f32 %v1966_v61, %v5182_v22 }
 0x27b   : > { %v2200_v51 = vmul.f32 1.442695, %v2186_v52  ;;  %v2202_v41 = vmul.f32 1.442695, %v2187_v6  ;;  %v2144_v0 = vsub.f32 %v3925_v25, %v8395_v30  ;;  %v2129_v20 = vmul.f32 %v1967_v19, %v5182_v22  ;;  %vm2229_vm4 = vmxor %vm10701_vm12, %vm11279_vm15 }
 0x27c   : > { %4274 = vpow2.f32 %v2196_v59  ;;  %v2145_v14 = vsub.f32 %v3926_v48, %v8398_v60  ;;  %v2130_v46 = vmul.f32 %v1968_v10, %v5182_v22  ;;  %v2146_v45 = vsub.f32 %v3927_v15, %v8401_v23 }
 0x27d   : > { %4276 = vpow2.f32 %v2198_v4  ;;  %v2131_v59 = vmul.f32 %v1969_v17, %v5182_v22  ;;  %v2147_v4 = vsub.f32 %v3928_v1, %v8408_v43  ;;  %v2136_v61 = vadd.f32 %v2128_v35, %v5199_v38 }
 0x27e   : > { %4278 = vpow2.f32 %v2200_v51  ;;  %v2152_v19 = vmul.f32 %v2144_v0, %v5206_v42  ;;  %v2137_v10 = vadd.f32 %v2129_v20, %v5199_v38  ;;  %v2153_v48 = vmul.f32 %v2145_v14, %v5206_v42 }
 0x27f   : > { %4280 = vpow2.f32 %v2202_v41  ;;  %v2231_v12 = vsel %vm2229_vm4, 16843009, %v10853_v40  ;;  %v2138_v47 = vadd.f32 %v2130_v46, %v5199_v38  ;;  %v2154_v49 = vmul.f32 %v2146_v45, %v5206_v42 }
 0x280   : > { %v2139_v8 = vadd.f32 %v2131_v59, %v5199_v38  ;;  %v2155_v17 = vmul.f32 %v2147_v4, %v5206_v42  ;;  %v2160_v52 = vadd.f32 %v2152_v19, %v2136_v61  ;;  %v2236_v25 = vunpack.c.0.s8 %v2231_v12 }
 0x281   : > { %v2161_v51 = vadd.f32 %v2153_v48, %v2137_v10  ;;  %v2237_v15 = vunpack.c.1.s8 %v2231_v12  ;;  %v2162_v1 = vadd.f32 %v2154_v49, %v2138_v47  ;;  %v2238_v0 = vunpack.c.2.s8 %v2231_v12 }
 0x282   : > { %vm11332_vm5 = vnez %v11256_v16  ;;  %v2163_v46 = vadd.f32 %v2155_v17, %v2139_v8  ;;  %v2239_v59 = vunpack.c.3.s8 %v2231_v12  ;;  %vm11335_vm8 = vnez %v11259_v26  ;;  %v11341_v26 = vld [vmem:[#allocation111_spill] sm:$0xff] }
 0x283   : > { %vm8438_vm2 = vmxor %vm11332_vm5, %vm11279_vm15  ;;  %vm2244_vm13 = vcmp.ne.s32.totalorder %v2236_v25, 0  ;;  %vm11338_vm3 = vnez %v11264_v33  ;;  %v11339_v10 = vmov 0  ;;  %vm2245_vm4 = vcmp.ne.s32.totalorder %v2237_v15, 0 }
 0x284   : > { %vm8446_vm1 = vmxor %vm11335_vm8, %vm11279_vm15  ;;  %vm11342_vm5 = vnez %v11341_v26  ;;  %v11343_v47 = vmov 0  ;;  %vm2246_vm10 = vcmp.ne.s32.totalorder %v2238_v0, 0  ;;  %vm2247_vm9 = vcmp.ne.s32.totalorder %v2239_v59, 0 }
 0x285   : > { %vm8454_vm0 = vmxor %vm11338_vm3, %vm11279_vm15  ;;  %v11345_v8 = vmov 0  ;;  %v11348_v17 = vmov 0  ;;  %v11354_v25 = vmov 0  ;;  %v2416_v20 = vmul.f32 %v8395_v30, %v5112_v31 }
 0x286   : > { %v4275_v6 = vpop.eup %4274  ;;  %v11340_v10 = vsel %vm8454_vm0, 4294967295, %v11339_v10  ;;  %vm8462_vm8 = vmxor %vm11342_vm5, %vm11279_vm15  ;;  %v2418_v59 = vmul.f32 %v8401_v23, %v5112_v31 }
 0x287   : > { %v4277_v41 = vpop.eup %4276  ;;  %v2208_v35 = vmul.f32 %v4275_v6, %v5227_v55  ;;  %v11344_v47 = vsel %vm8462_vm8, 4294967295, %v11343_v47  ;;  %v11358_v6 = vmov 0 }
 0x288   : > { %v4279_v14 = vpop.eup %4278  ;;  %v2209_v45 = vmul.f32 %v4277_v41, %v5227_v55 }
 0x289   : > { %v4281_v61 = vpop.eup %4280  ;;  %v2210_v19 = vmul.f32 %v4279_v14, %v5227_v55  ;;  %v2216_v16 = vadd.f32 %v2208_v35, %v2160_v52  ;;  %v11351_v52 = vmov 0  ;;  %v11365_v35 = vld [vmem:[#allocation105_spill] sm:$0xff] }
 0x28a   : > { %v2211_v48 = vmul.f32 %v4281_v61, %v5227_v55  ;;  %v2217_v12 = vadd.f32 %v2209_v45, %v2161_v51  ;;  %v2417_v45 = vmul.f32 %v8398_v60, %v5112_v31  ;;  %v2419_v61 = vmul.f32 %v8408_v43, %v5112_v31 }
 0x28b   : > { %v2218_v49 = vadd.f32 %v2210_v19, %v2162_v1  ;;  %vm2224_vm12 = vcmp.ge.f32.partialorder %v2216_v16, %v5233_v9  ;;  %v11434_v1 = vmov 0 }
 0x28c   : > { %v2219_v33 = vadd.f32 %v2211_v48, %v2163_v46  ;;  %vm2225_vm7 = vcmp.ge.f32.partialorder %v2217_v12, %v5233_v9  ;;  %vm8472_vm11 = vmand %vm2224_vm12, %vm2244_vm13 }
 0x28d   : > { %v11346_v8 = vsel %vm8472_vm11, 4294967295, %v11345_v8  ;;  %vm2226_vm5 = vcmp.ge.f32.partialorder %v2218_v49, %v5233_v9  ;;  %vm8477_vm15 = vmand %vm2225_vm7, %vm2245_vm4  ;;  %v8570_v23 = vsel %vm8472_vm11, 1.0, %v10871_v21 }
 0x28e   : > { %11347 = vst [vmem:[#allocation111_spill] sm:$0xff] %v11346_v8  ;;  %v11349_v17 = vsel %vm8477_vm15, 4294967295, %v11348_v17  ;;  %vm2227_vm8 = vcmp.ge.f32.partialorder %v2219_v33, %v5233_v9  ;;  %vm8482_vm0 = vmand %vm2226_vm5, %vm2246_vm10  ;;  %vm11361_vm5 = vnez %v11344_v47  ;;  %v8585_v48 = vsel %vm8477_vm15, 1.0, %v10871_v21 }
 0x28f   : > { %11350 = vst [vmem:[#allocation124_spill] sm:$0xff] %v11349_v17  ;;  %v11352_v52 = vsel %vm8482_vm0, 4294967295, %v11351_v52  ;;  %vm8486_vm3 = vmand %vm2227_vm8, %vm2247_vm9  ;;  %vm11360_vm8 = vnez %v11340_v10 }
 0x290   : > { %11353 = vst [vmem:[#allocation125_spill] sm:$0xff] %v11352_v52  ;;  %v11355_v25 = vsel %vm8486_vm3, 4294967295, %v11354_v25  ;;  %vm2259_vm12 = vmpackc.low %vm8477_vm15, %vm8472_vm11 }
 0x291   : > { %11356 = vst [vmem:[#allocation126_spill] sm:$0xff] %v11355_v25  ;;  %vm2260_vm7 = vmpackc.low %vm8486_vm3, %vm8482_vm0  ;;  %vm2271_vm3 = vcmp.ge.f32.partialorder %v2219_v33, %v5317_v63 }
 0x292   : > { %vm2261_vm13 = vmpackc.even %vm2260_vm7, %vm2259_vm12  ;;  %vm2269_vm7 = vcmp.ge.f32.partialorder %v2217_v12, %v5317_v63  ;;  %11377 = vst [vmem:[#allocation105_spill] sm:$0xff] %v8570_v23 }
 0x293   : > { %vm11357_vm10 = vmand %vm11331_vm14, %vm8391_vm6  ;;  %11380 = vst [vmem:[#allocation127_spill] sm:$0xff] %v8585_v48 }
 0x294   : > { %vm8503_vm9 = vmor %vm11357_vm10, %vm2261_vm13  ;;  %vm11366_vm13 = vnez %v11365_v35  ;;  %v11437_v35 = vmov 0 }
 0x295   : > { %v11359_v6 = vsel %vm8503_vm9, 4294967295, %v11358_v6  ;;  %v2273_v51 = vsel %vm8503_vm9, 16843009, %v10853_v40  ;;  %vm2987_vm12 = vmpackc.low %vm11361_vm5, %vm11360_vm8  ;;  %vm2270_vm8 = vcmp.ge.f32.partialorder %v2218_v49, %v5317_v63 }
 0x296   : > { %v2278_v15 = vunpack.c.0.s8 %v2273_v51  ;;  %v2279_v50 = vunpack.c.1.s8 %v2273_v51  ;;  %v2280_v41 = vunpack.c.2.s8 %v2273_v51  ;;  %v2281_v18 = vunpack.c.3.s8 %v2273_v51  ;;  %vm11362_vm6 = vmpackc.low %vm8446_vm1, %vm8438_vm2 }
 0x297   : > { %vm8520_vm14 = vmpackc.even %vm2987_vm12, %vm11362_vm6  ;;  %vm11367_vm2 = vcmp.ge.f32.partialorder %v2216_v16, %v5317_v63  ;;  %vm11372_vm6 = vmmov 1  }
 0x298   : > { %vm10718_vm10 = vmand %vm11366_vm13, %vm8520_vm14  ;;  %vm2286_vm5 = vcmp.ne.s32.totalorder %v2278_v15, 0  ;;  %vm2287_vm4 = vcmp.ne.s32.totalorder %v2279_v50, 0  ;;  %vm2288_vm9 = vcmp.ne.s32.totalorder %v2280_v41, 0  ;;  %vm2289_vm0 = vcmp.ne.s32.totalorder %v2281_v18, 0 }
 0x299   : > { %vm8533_vm1 = vmand %vm11367_vm2, %vm2286_vm5  ;;  %v2448_v18 = vmul.f32 %v8570_v23, %v5144_v57  ;;  %vm11389_vm2 = vnez %v11355_v25 }
 0x29a   : > { %vm8539_vm12 = vmand %vm2269_vm7, %vm2287_vm4  ;;  %v2302_v46 = vsel %vm8533_vm1, %v5327_v3, %v2216_v16  ;;  %v8626_v14 = vsel %vm11389_vm2, 1.0, %v10871_v21 }
 0x29b   : > { %vm8556_vm4 = vmxor %vm10718_vm10, %vm11372_vm6  ;;  %v2303_v60 = vsel %vm8539_vm12, %v5327_v3, %v2217_v12  ;;  %v2424_v19 = vmul.f32 %v2302_v46, %v5114_v32  ;;  %v2504_v15 = vmul.f32 %v2302_v46, %v5147_v58  ;;  %11390 = vst [vmem:[#allocation129_spill] sm:$0xff] %v8626_v14  ;;  %v2451_v47 = vmul.f32 %v8626_v14, %v5144_v57 }
 0x29c   : > { %vm8560_vm7 = vmand %vm2270_vm8, %vm2288_vm9  ;;  %vm11381_vm9 = vnez %v11352_v52  ;;  %v2425_v43 = vmul.f32 %v2303_v60, %v5114_v32  ;;  %v2505_v0 = vmul.f32 %v2303_v60, %v5147_v58 }
 0x29d   : > { %vm8575_vm5 = vmand %vm2271_vm3, %vm2289_vm0  ;;  %v2304_v10 = vsel %vm8560_vm7, %v5327_v3, %v2218_v49  ;;  %v8590_v12 = vsel %vm11381_vm9, 1.0, %v10871_v21  ;;  %v2432_v51 = vadd.f32 %v2424_v19, %v2416_v20 }
 0x29e   : > { %11382 = vst [vmem:[#allocation128_spill] sm:$0xff] %v8590_v12  ;;  %v2305_v26 = vsel %vm8575_vm5, %v5327_v3, %v2219_v33  ;;  %vm8599_vm0 = vmxor %vm8533_vm1, %vm11372_vm6  ;;  %v2426_v49 = vmul.f32 %v2304_v10, %v5114_v32  ;;  %v2433_v41 = vadd.f32 %v2425_v43, %v2417_v45  ;;  %v2449_v43 = vmul.f32 %v8585_v48, %v5144_v57 }
 0x29f   : > { %vm8608_vm3 = vmxor %vm8539_vm12, %vm11372_vm6  ;;  %v2427_v33 = vmul.f32 %v2305_v26, %v5114_v32  ;;  %v2440_v45 = vadd.f32 %v2432_v51, %v5141_v56  ;;  %v2450_v25 = vmul.f32 %v8590_v12, %v5144_v57  ;;  %v2513_v50 = vadd.f32 %v2505_v0, %v5150_v62  ;;  %v3944_v0 = vld [vmem:[%s5083_s27 + $0x168] sm:$0xff] }
 0x2a0   : > { %vm8619_vm8 = vmxor %vm8560_vm7, %vm11372_vm6  ;;  %v2434_v19 = vadd.f32 %v2426_v49, %v2418_v59  ;;  %v2441_v17 = vadd.f32 %v2433_v41, %v5141_v56  ;;  %v2506_v59 = vmul.f32 %v2304_v10, %v5147_v58  ;;  %v2507_v49 = vmul.f32 %v2305_v26, %v5147_v58 }
 0x2a1   : > { %vm8634_vm1 = vmxor %vm8575_vm5, %vm11372_vm6  ;;  %v2435_v52 = vadd.f32 %v2427_v33, %v2419_v61  ;;  %v2512_v61 = vadd.f32 %v2504_v15, %v5150_v62  ;;  %v8662_v15 = vadd.f32 %v2448_v18, %v2440_v45  ;;  %v2521_v18 = vmin.f32 %v2513_v50, 80.0 }
 0x2a2   : > { %vm2317_vm12 = vmpackc.low %vm8608_vm3, %vm8599_vm0  ;;  %v2442_v16 = vadd.f32 %v2434_v19, %v5141_v56  ;;  %v2514_v33 = vadd.f32 %v2506_v59, %v5150_v62  ;;  %v2515_v20 = vadd.f32 %v2507_v49, %v5150_v62  ;;  %vm11395_vm3 = vnez %v11359_v6  ;;  %v3945_v49 = vld [vmem:[%s5083_s27 + $0x170] sm:$0xff] }
 0x2a3   : > { %vm2318_vm7 = vmpackc.low %vm8634_vm1, %vm8619_vm8  ;;  %v2443_v51 = vadd.f32 %v2435_v52, %v5141_v56  ;;  %v2520_v19 = vmin.f32 %v2512_v61, 80.0  ;;  %v3943_v52 = vld [vmem:[%s5083_s27 + $0x160] sm:$0xff]  ;;  %v8673_v4 = vadd.f32 %v2449_v43, %v2441_v17  ;;  %v2464_v61 = vmul.f32 %v2302_v46, %v5182_v22 }
 0x2a4   : > { %vm8658_vm5 = vmpackc.even %vm2318_vm7, %vm2317_vm12  ;;  %v8675_v59 = vadd.f32 %v2450_v25, %v2442_v16  ;;  %v2522_v45 = vmin.f32 %v2514_v33, 80.0  ;;  %v2523_v14 = vmin.f32 %v2515_v20, 80.0  ;;  %v3238_v25 = vsel %vm8556_vm4, 16843009, %v10853_v40  ;;  %v11398_v33 = vld [vmem:[#allocation33_spill] sm:$0xff]  ;;  %v3946_v20 = vld [vmem:[%s5083_s27 + $0x178] sm:$0xff] }
 0x2a5   : > { %vm10721_vm8 = vmand %vm11395_vm3, %vm8658_vm5  ;;  %v2532_v8 = vmul.f32 1.442695, %v2520_v19  ;;  %v8694_v43 = vadd.f32 %v2451_v47, %v2443_v51  ;;  %v2465_v46 = vmul.f32 %v2303_v60, %v5182_v22  ;;  %v2534_v16 = vmul.f32 1.442695, %v2521_v18  ;;  %v11402_v18 = vld [vmem:[#allocation34_spill] sm:$0xff] }
 0x2a6   : > { %vm8687_vm12 = vmxor %vm10721_vm8, %vm11372_vm6  ;;  %v2536_v50 = vmul.f32 1.442695, %v2522_v45  ;;  %vm11399_vm7 = vnez %v11398_v33  ;;  %v2466_v19 = vmul.f32 %v2304_v10, %v5182_v22  ;;  %v2467_v12 = vmul.f32 %v2305_v26, %v5182_v22 }
 0x2a7   : > { %vm1018_vm10 = vmpackc.low %vm11399_vm7, %vm11399_vm7  ;;  %4282 = vpow2.f32 %v2532_v8  ;;  %v2538_v36 = vmul.f32 1.442695, %v2523_v14  ;;  %v2480_v51 = vsub.f32 %v3943_v52, %v8662_v15  ;;  %v2481_v60 = vsub.f32 %v3944_v0, %v8673_v4  ;;  %v11406_v52 = vld [vmem:[#allocation35_spill] sm:$0xff] }
 0x2a8   : > { %vm8703_vm8 = vmpackc.even %vm1018_vm10, %vm1018_vm10  ;;  %v2482_v47 = vsub.f32 %v3945_v49, %v8675_v59  ;;  %4284 = vpow2.f32 %v2534_v16  ;;  %vm11403_vm4 = vnez %v11402_v18  ;;  %v3240_v10 = vunpack.c.0.s8 %v3238_v25 }
 0x2a9   : > { %vm1020_vm7 = vmpackc.low %vm11403_vm4, %vm11403_vm4  ;;  %4286 = vpow2.f32 %v2536_v50  ;;  %v3241_v26 = vunpack.c.1.s8 %v3238_v25  ;;  %v3242_v8 = vunpack.c.2.s8 %v3238_v25  ;;  %v2483_v45 = vsub.f32 %v3946_v20, %v8694_v43 }
 0x2aa   : > { %vm8713_vm1 = vmpackc.even %vm1020_vm7, %vm1020_vm7  ;;  %4288 = vpow2.f32 %v2538_v36  ;;  %vm11407_vm2 = vnez %v11406_v52  ;;  %v2472_v0 = vadd.f32 %v2464_v61, %v5199_v38  ;;  %v2473_v49 = vadd.f32 %v2465_v46, %v5199_v38  ;;  %v11408_v52 = vld [vmem:[#allocation36_spill] sm:$0xff] }
 0x2ab   : > { %vm1022_vm4 = vmpackc.low %vm11407_vm2, %vm11407_vm2  ;;  %v2474_v16 = vadd.f32 %v2466_v19, %v5199_v38  ;;  %v2475_v50 = vadd.f32 %v2467_v12, %v5199_v38  ;;  %v2488_v36 = vmul.f32 %v2480_v51, %v5206_v42  ;;  %v2489_v33 = vmul.f32 %v2481_v60, %v5206_v42 }
 0x2ac   : > { %vm1023_vm7 = vmpackc.even %vm1022_vm4, %vm1022_vm4  ;;  %v2490_v20 = vmul.f32 %v2482_v47, %v5206_v42  ;;  %v2567_v18 = vsel %vm8687_vm12, 16843009, %v10853_v40  ;;  %vm11409_vm2 = vnez %v11408_v52  ;;  %v3243_v61 = vunpack.c.3.s8 %v3238_v25 }
 0x2ad   : > { %vm1024_vm0 = vmpackc.low %vm11409_vm2, %vm11409_vm2  ;;  %vm3248_vm10 = vcmp.ne.s32.totalorder %v3240_v10, 0  ;;  %vm3249_vm9 = vcmp.ne.s32.totalorder %v3241_v26, 0  ;;  %vm3250_vm15 = vcmp.ne.s32.totalorder %v3242_v8, 0  ;;  %v2491_v12 = vmul.f32 %v2483_v45, %v5206_v42 }
 0x2ae   : > { %vm1025_vm11 = vmpackc.even %vm1024_vm0, %vm1024_vm0  ;;  %vm11410_vm4 = vcmp.ge.f32.partialorder %v8081_v44, %v5233_v9  ;;  %v11411_v46 = vmov 0  ;;  %v1034_v17 = vsel %vm8703_vm8, 16843009, %v10853_v40  ;;  %v1035_v25 = vsel %vm8713_vm1, 16843009, %v10853_v40 }
 0x2af   : > { %vm8742_vm6 = vmand %vm11410_vm4, %vm3248_vm10  ;;  %v1036_v19 = vsel %vm1023_vm7, 16843009, %v10853_v40  ;;  %vm3251_vm0 = vcmp.ne.s32.totalorder %v3243_v61, 0  ;;  %vm11413_vm12 = vcmp.ge.f32.partialorder %v8094_v34, %v5233_v9  ;;  %v11414_v51 = vmov 0 }
 0x2b0   : > { %v11412_v46 = vsel %vm8742_vm6, 4294967295, %v11411_v46  ;;  %vm8756_vm2 = vmand %vm11413_vm12, %vm3249_vm9  ;;  %v1037_v60 = vsel %vm1025_vm11, 16843009, %v10853_v40  ;;  %v1042_v47 = vunpack.c.0.s8 %v1034_v17  ;;  %v1043_v10 = vunpack.c.0.s8 %v1035_v25 }
 0x2b1   : > { %v11415_v51 = vsel %vm8756_vm2, 4294967295, %v11414_v51  ;;  %v2496_v30 = vadd.f32 %v2488_v36, %v2472_v0  ;;  %v2572_v26 = vunpack.c.0.s8 %v2567_v18  ;;  %vm11417_vm8 = vcmp.ge.f32.partialorder %v8140_v5, %v5233_v9  ;;  %v4283_v52 = vpop.eup %4282 }
 0x2b2   : > { %11416 = vst [vmem:[#allocation33_spill] sm:$0xff] %v11415_v51  ;;  %vm8764_vm1 = vmand %vm11417_vm8, %vm3250_vm15  ;;  %v11418_v8 = vmov 0  ;;  %v1044_v14 = vunpack.c.0.s8 %v1036_v19  ;;  %v1045_v45 = vunpack.c.0.s8 %v1037_v60  ;;  %v2497_v61 = vadd.f32 %v2489_v33, %v2473_v49  ;;  %v4285_v36 = vpop.eup %4284 }
 0x2b3   : > { %v11419_v8 = vsel %vm8764_vm1, 4294967295, %v11418_v8  ;;  %v2573_v24 = vunpack.c.1.s8 %v2567_v18  ;;  %vm11421_vm9 = vcmp.ge.f32.partialorder %v8184_v37, %v5233_v9  ;;  %v11422_v17 = vmov 0  ;;  %vm3264_vm15 = vmpackc.low %vm8756_vm2, %vm8742_vm6  ;;  %v4287_v33 = vpop.eup %4286 }
 0x2b4   : > { %11420 = vst [vmem:[#allocation34_spill] sm:$0xff] %v11419_v8  ;;  %vm8771_vm11 = vmand %vm11421_vm9, %vm3251_vm0  ;;  %v1050_v0 = vpack.c.b16 %v1043_v10, %v1042_v47  ;;  %v2498_v25 = vadd.f32 %v2490_v20, %v2474_v16  ;;  %v2544_v53 = vmul.f32 %v4283_v52, %v5227_v55  ;;  %v2574_v54 = vunpack.c.2.s8 %v2567_v18  ;;  %v4289_v16 = vpop.eup %4288 }
 0x2b5   : > { %v11423_v17 = vsel %vm8771_vm11, 4294967295, %v11422_v17  ;;  %v1051_v49 = vpack.c.b16 %v1045_v45, %v1044_v14  ;;  %v2499_v19 = vadd.f32 %v2491_v12, %v2475_v50  ;;  %v2545_v60 = vmul.f32 %v4285_v36, %v5227_v55  ;;  %vm3265_vm10 = vmpackc.low %vm8771_vm11, %vm8764_vm1 }
 0x2b6   : > { %11424 = vst [vmem:[#allocation35_spill] sm:$0xff] %v11423_v17  ;;  %v2575_v48 = vunpack.c.3.s8 %v2567_v18  ;;  %v2546_v20 = vmul.f32 %v4287_v33, %v5227_v55  ;;  %v2552_v47 = vadd.f32 %v2544_v53, %v2496_v30  ;;  %vm2580_vm7 = vcmp.ne.s32.totalorder %v2572_v26, 0  ;;  %vm3266_vm4 = vmpackc.even %vm3265_vm10, %vm3264_vm15 }
 0x2b7   : > { %v1052_v10 = vpack.c.b8 %v1051_v49, %v1050_v0  ;;  %v2547_v14 = vmul.f32 %v4289_v16, %v5227_v55  ;;  %v2553_v45 = vadd.f32 %v2545_v60, %v2497_v61  ;;  %vm2581_vm0 = vcmp.ne.s32.totalorder %v2573_v24, 0  ;;  %vm11425_vm9 = vmand %vm11366_vm13, %vm8520_vm14 }
 0x2b8   : > { %v2554_v50 = vadd.f32 %v2546_v20, %v2498_v25  ;;  %vm2560_vm12 = vcmp.ge.f32.partialorder %v2552_v47, %v5233_v9  ;;  %vm2582_vm8 = vcmp.ne.s32.totalorder %v2574_v54, 0  ;;  %vm8793_vm11 = vmor %vm11425_vm9, %vm3266_vm4  ;;  %v11426_v18 = vmov 0 }
 0x2b9   : > { %v11427_v18 = vsel %vm8793_vm11, 4294967295, %v11426_v18  ;;  %1056 = vst [vmem:[%s5103_s4] sm:$0xff] %v1052_v10  ;;  %v2555_v53 = vadd.f32 %v2547_v14, %v2499_v19  ;;  %vm2561_vm15 = vcmp.ge.f32.partialorder %v2553_v45, %v5233_v9  ;;  %vm2583_vm10 = vcmp.ne.s32.totalorder %v2575_v48, 0  ;;  %vm8799_vm1 = vmand %vm2560_vm12, %vm2580_vm7 }
 0x2ba   : > { %v11428_v24 = vmov 0  ;;  %vm2562_vm2 = vcmp.ge.f32.partialorder %v2554_v50, %v5233_v9  ;;  %vm8804_vm6 = vmand %vm2561_vm15, %vm2581_vm0  ;;  %v11431_v54 = vmov 0  ;;  %v3280_v48 = vsel %vm8793_vm11, 16843009, %v10853_v40 }
 0x2bb   : > { %v11429_v24 = vsel %vm8799_vm1, 4294967295, %v11428_v24  ;;  %v11432_v54 = vsel %vm8804_vm6, 4294967295, %v11431_v54  ;;  %vm2563_vm14 = vcmp.ge.f32.partialorder %v2555_v53, %v5233_v9  ;;  %vm8809_vm13 = vmand %vm2562_vm2, %vm2582_vm8  ;;  %v3282_v30 = vunpack.c.0.s8 %v3280_v48 }
 0x2bc   : > { %11430 = vst [vmem:[#allocation36_spill] sm:$0xff] %v11429_v24  ;;  %11433 = vst [vmem:[#allocation130_spill] sm:$0xff] %v11432_v54  ;;  %v11435_v1 = vsel %vm8809_vm13, 4294967295, %v11434_v1  ;;  %v3283_v41 = vunpack.c.1.s8 %v3280_v48  ;;  %v3284_v26 = vunpack.c.2.s8 %v3280_v48  ;;  %v2752_v25 = vmul.f32 %v8662_v15, %v5112_v31  ;;  %v11489_v24 = vld [vmem:[#allocation50_spill] sm:$0xff] }
 0x2bd   : > { %11436 = vst [vmem:[#allocation131_spill] sm:$0xff] %v11435_v1  ;;  %vm8813_vm4 = vmand %vm2563_vm14, %vm2583_vm10  ;;  %v3285_v49 = vunpack.c.3.s8 %v3280_v48  ;;  %vm8853_vm14 = vcmp.ne.s32.totalorder %v3282_v30, 0  ;;  %vm2607_vm10 = vcmp.ge.f32.partialorder %v2555_v53, %v5317_v63  ;;  %v2753_v15 = vmul.f32 %v8673_v4, %v5112_v31 }
 0x2be   : > { %v11438_v35 = vsel %vm8813_vm4, 4294967295, %v11437_v35  ;;  %vm2595_vm7 = vmpackc.low %vm8804_vm6, %vm8799_vm1  ;;  %v2754_v14 = vmul.f32 %v8675_v59, %v5112_v31  ;;  %v2755_v48 = vmul.f32 %v8694_v43, %v5112_v31  ;;  %v8905_v59 = vsel %vm8799_vm1, 1.0, %v10871_v21 }
 0x2bf   : > { %11439 = vst [vmem:[#allocation132_spill] sm:$0xff] %v11438_v35  ;;  %vm2596_vm2 = vmpackc.low %vm8813_vm4, %vm8809_vm13  ;;  %v11481_v20 = vmov 0 }
 0x2c0   : > { %vm2597_vm0 = vmpackc.even %vm2596_vm2, %vm2595_vm7  ;;  %vm2604_vm7 = vcmp.ge.f32.partialorder %v2552_v47, %v5317_v63  ;;  %11458 = vst [vmem:[#allocation133_spill] sm:$0xff] %v8905_v59 }
 0x2c1   : > { %vm11440_vm8 = vmand %vm11395_vm3, %vm8658_vm5  ;;  %vm2605_vm5 = vcmp.ge.f32.partialorder %v2553_v45, %v5317_v63  ;;  %vm8870_vm3 = vcmp.ne.s32.totalorder %v3283_v41, 0 }
 0x2c2   : > { %vm8835_vm9 = vmor %vm11440_vm8, %vm2597_vm0 }
 0x2c3   : > { %v2609_v6 = vsel %vm8835_vm9, 16843009, %v10853_v40 }
 0x2c4   : > { %v2614_v52 = vunpack.c.0.s8 %v2609_v6  ;;  %v2615_v61 = vunpack.c.1.s8 %v2609_v6  ;;  %v2616_v0 = vunpack.c.2.s8 %v2609_v6  ;;  %v2617_v36 = vunpack.c.3.s8 %v2609_v6 }
 0x2c5   : > { %v2784_v6 = vmul.f32 %v8905_v59, %v5144_v57 }
 0x2c6   : > { %vm2622_vm2 = vcmp.ne.s32.totalorder %v2614_v52, 0  ;;  %vm2623_vm0 = vcmp.ne.s32.totalorder %v2615_v61, 0  ;;  %vm2624_vm8 = vcmp.ne.s32.totalorder %v2616_v0, 0  ;;  %vm8858_vm15 = vcmp.ne.s32.totalorder %v2617_v36, 0 }
 0x2c7   : > { %vm8864_vm12 = vmand %vm2604_vm7, %vm2622_vm2  ;;  %vm8887_vm7 = vcmp.ne.s32.totalorder %v3284_v26, 0  ;;  %v8936_v52 = vsel %vm8804_vm6, 1.0, %v10871_v21  ;;  %v8941_v61 = vsel %vm8809_vm13, 1.0, %v10871_v21 }
 0x2c8   : > { %vm8874_vm11 = vmand %vm2605_vm5, %vm2623_vm0  ;;  %v8881_v10 = vsel %vm8864_vm12, %v5327_v3, %v2552_v47  ;;  %vm11455_vm5 = vcmp.ge.f32.partialorder %v2554_v50, %v5317_v63  ;;  %vm8909_vm0 = vcmp.ne.s32.totalorder %v3285_v49, 0  ;;  %11466 = vst [vmem:[#allocation134_spill] sm:$0xff] %v8936_v52  ;;  %v2785_v54 = vmul.f32 %v8936_v52, %v5144_v57 }
 0x2c9   : > { %vm8893_vm2 = vmand %vm11455_vm5, %vm2624_vm8  ;;  %v8900_v47 = vsel %vm8874_vm11, %v5327_v3, %v2553_v45  ;;  %v2760_v43 = vmul.f32 %v8881_v10, %v5114_v32  ;;  %vm11461_vm8 = vcmp.ge.f32.partialorder %v8081_v44, %v5317_v63  ;;  %11467 = vst [vmem:[#allocation135_spill] sm:$0xff] %v8941_v61  ;;  %v2840_v16 = vmul.f32 %v8881_v10, %v5147_v58 }
 0x2ca   : > { %vm8918_vm5 = vmand %vm11461_vm8, %vm8853_vm14  ;;  %v2640_v26 = vsel %vm8893_vm2, %v5327_v3, %v2554_v50  ;;  %v2761_v0 = vmul.f32 %v8900_v47, %v5114_v32  ;;  %vm11471_vm14 = vmmov 1   ;;  %v2841_v1 = vmul.f32 %v8900_v47, %v5147_v58 }
 0x2cb   : > { %vm8926_vm1 = vmand %vm2607_vm10, %vm8858_vm15  ;;  %vm11468_vm15 = vcmp.ge.f32.partialorder %v8094_v34, %v5317_v63  ;;  %v2762_v33 = vmul.f32 %v2640_v26, %v5114_v32  ;;  %v2768_v19 = vadd.f32 %v2760_v43, %v2752_v25  ;;  %v8988_v25 = vsel %vm8813_vm4, 1.0, %v10871_v21 }
 0x2cc   : > { %vm8950_vm10 = vmand %vm11468_vm15, %vm8870_vm3  ;;  %v8957_v36 = vsel %vm8926_vm1, %v5327_v3, %v2555_v53  ;;  %vm11474_vm3 = vcmp.ge.f32.partialorder %v8140_v5, %v5317_v63  ;;  %11479 = vst [vmem:[#allocation136_spill] sm:$0xff] %v8988_v25  ;;  %v2769_v43 = vadd.f32 %v2761_v0, %v2753_v15  ;;  %v2849_v60 = vadd.f32 %v2841_v1, %v5150_v62  ;;  %v3961_v1 = vld [vmem:[%s5083_s27 + $0x1a0] sm:$0xff] }
 0x2cd   : > { %vm8962_vm8 = vmxor %vm8864_vm12, %vm11471_vm14  ;;  %v2763_v4 = vmul.f32 %v8957_v36, %v5114_v32  ;;  %v2770_v15 = vadd.f32 %v2762_v33, %v2754_v14  ;;  %v2776_v0 = vadd.f32 %v2768_v19, %v5141_v56  ;;  %v2786_v14 = vmul.f32 %v8941_v61, %v5144_v57 }
 0x2ce   : > { %vm8974_vm15 = vmand %vm11474_vm3, %vm8887_vm7  ;;  %v2777_v27 = vadd.f32 %v2769_v43, %v5141_v56  ;;  %v2842_v33 = vmul.f32 %v2640_v26, %v5147_v58  ;;  %v2787_v19 = vmul.f32 %v8988_v25, %v5144_v57 }
 0x2cf   : > { %vm8981_vm12 = vmxor %vm8874_vm11, %vm11471_vm14  ;;  %vm11480_vm11 = vcmp.ge.f32.partialorder %v8184_v37, %v5317_v63  ;;  %v2771_v30 = vadd.f32 %v2763_v4, %v2755_v48  ;;  %v2778_v41 = vadd.f32 %v2770_v15, %v5141_v56  ;;  %v2843_v48 = vmul.f32 %v8957_v36, %v5147_v58  ;;  %v11550_v15 = vld [vmem:[#allocation43_spill] sm:$0xff] }
 0x2d0   : > { %vm8999_vm7 = vmand %vm11480_vm11, %vm8909_vm0  ;;  %v2848_v4 = vadd.f32 %v2840_v16, %v5150_v62  ;;  %v2850_v43 = vadd.f32 %v2842_v33, %v5150_v62  ;;  %v9047_v25 = vadd.f32 %v2784_v6, %v2776_v0  ;;  %v2857_v6 = vmin.f32 %v2849_v60, 80.0 }
 0x2d1   : > { %v11482_v20 = vsel %vm8999_vm7, 4294967295, %v11481_v20  ;;  %vm9006_vm3 = vmxor %vm8893_vm2, %vm11471_vm14  ;;  %v2779_v49 = vadd.f32 %v2771_v30, %v5141_v56  ;;  %v2851_v16 = vadd.f32 %v2843_v48, %v5150_v62  ;;  %v9060_v30 = vadd.f32 %v2785_v54, %v2777_v27  ;;  %v3962_v48 = vld [vmem:[%s5083_s27 + $0x1a8] sm:$0xff]  ;;  %v3964_v27 = vld [vmem:[%s5083_s27 + $0x1b8] sm:$0xff] }
 0x2d2   : > { %vm9018_vm0 = vmxor %vm8926_vm1, %vm11471_vm14  ;;  %v2856_v35 = vmin.f32 %v2848_v4, 80.0  ;;  %v9062_v0 = vadd.f32 %v2786_v14, %v2778_v41  ;;  %v2858_v33 = vmin.f32 %v2850_v43, 80.0  ;;  %v3963_v4 = vld [vmem:[%s5083_s27 + $0x1b0] sm:$0xff]  ;;  %v2800_v54 = vmul.f32 %v8881_v10, %v5182_v22 }
 0x2d3   : > { %vm2653_vm2 = vmpackc.low %vm8981_vm12, %vm8962_vm8  ;;  %vm11490_vm12 = vnez %v11489_v24  ;;  %v9066_v61 = vadd.f32 %v2787_v19, %v2779_v49  ;;  %v2859_v52 = vmin.f32 %v2851_v16, 80.0  ;;  %v2870_v14 = vmul.f32 1.442695, %v2857_v6  ;;  %v11509_v24 = vld [vmem:[#allocation51_spill] sm:$0xff] }
 0x2d4   : > { %vm2654_vm1 = vmpackc.low %vm9018_vm0, %vm9006_vm3  ;;  %v2868_v11 = vmul.f32 1.442695, %v2856_v35  ;;  %v2872_v41 = vmul.f32 1.442695, %v2858_v33  ;;  %v2801_v49 = vmul.f32 %v8900_v47, %v5182_v22  ;;  %v2802_v60 = vmul.f32 %v2640_v26, %v5182_v22 }
 0x2d5   : > { %vm9043_vm8 = vmpackc.even %vm2654_vm1, %vm2653_vm2  ;;  %v2874_v43 = vmul.f32 1.442695, %v2859_v52  ;;  %v2816_v16 = vsub.f32 %v3961_v1, %v9047_v25  ;;  %v2817_v35 = vsub.f32 %v3962_v48, %v9060_v30  ;;  %v2818_v6 = vsub.f32 %v3963_v4, %v9062_v0 }
 0x2d6   : > { %vm10749_vm3 = vmand %vm8835_vm9, %vm9043_vm8  ;;  %4290 = vpow2.f32 %v2868_v11  ;;  %v2803_v47 = vmul.f32 %v8957_v36, %v5182_v22  ;;  %v2819_v26 = vsub.f32 %v3964_v27, %v9066_v61  ;;  %v2808_v52 = vadd.f32 %v2800_v54, %v5199_v38 }
 0x2d7   : > { %vm9074_vm0 = vmxor %vm10749_vm3, %vm11471_vm14  ;;  %4292 = vpow2.f32 %v2870_v14  ;;  %v2809_v1 = vadd.f32 %v2801_v49, %v5199_v38  ;;  %v2810_v33 = vadd.f32 %v2802_v60, %v5199_v38  ;;  %v2824_v48 = vmul.f32 %v2816_v16, %v5206_v42  ;;  %v11505_v16 = vld [vmem:[#allocation108_spill] sm:$0xff] }
 0x2d8   : > { %vm9084_vm2 = vmxor %vm8918_vm5, %vm11471_vm14  ;;  %4294 = vpow2.f32 %v2872_v41  ;;  %v2903_v36 = vsel %vm9074_vm0, 16843009, %v10853_v40  ;;  %v2825_v4 = vmul.f32 %v2817_v35, %v5206_v42  ;;  %v2826_v27 = vmul.f32 %v2818_v6, %v5206_v42  ;;  %v11507_v6 = vld [vmem:[#allocation109_spill] sm:$0xff] }
 0x2d9   : > { %vm9094_vm1 = vmxor %vm8950_vm10, %vm11471_vm14  ;;  %4296 = vpow2.f32 %v2874_v43  ;;  %v2811_v54 = vadd.f32 %v2803_v47, %v5199_v38  ;;  %v2827_v14 = vmul.f32 %v2819_v26, %v5206_v42  ;;  %v2908_v41 = vunpack.c.0.s8 %v2903_v36  ;;  %v11503_v43 = vld [vmem:[#allocation107_spill] sm:$0xff] }
 0x2da   : > { %vm9104_vm3 = vmxor %vm8974_vm15, %vm11471_vm14  ;;  %v2909_v19 = vunpack.c.1.s8 %v2903_v36  ;;  %v9153_v10 = vmul.f32 %v11503_v43, %v9138_v13  ;;  %v9157_v35 = vmul.f32 %v11505_v16, %v9138_v13  ;;  %v9161_v11 = vmul.f32 %v11507_v6, %v9138_v13 }
 0x2db   : > { %vm3317_vm11 = vmxor %vm8999_vm7, %vm11471_vm14  ;;  %v2832_v47 = vadd.f32 %v2824_v48, %v2808_v52  ;;  %v2833_v26 = vadd.f32 %v2825_v4, %v2809_v1  ;;  %v2835_v23 = vadd.f32 %v2827_v14, %v2811_v54  ;;  %v2910_v2 = vunpack.c.2.s8 %v2903_v36  ;;  %v11517_v4 = vld [vmem:[#allocation53_spill] sm:$0xff] }
 0x2dc   : > { %vm3322_vm4 = vmpackc.low %vm9094_vm1, %vm9084_vm2  ;;  %vm11499_vm1 = vnez %v11427_v18  ;;  %v11501_v18 = vld [vmem:[#allocation106_spill] sm:$0xff]  ;;  %11506 = vst [vmem:[#allocation107_spill] sm:$0xff] %v9157_v35  ;;  %v2911_v16 = vunpack.c.3.s8 %v2903_v36  ;;  %v11511_v35 = vld [vmem:[#allocation52_spill] sm:$0xff]  ;;  %v9182_v36 = vmul.f32 %v9047_v25, %v5112_v31  ;;  %v11533_v1 = vmov 0 }
 0x2dd   : > { %vm3323_vm13 = vmpackc.low %vm3317_vm11, %vm9104_vm3  ;;  %v9149_v60 = vmul.f32 %v11501_v18, %v9138_v13  ;;  %11504 = vst [vmem:[#allocation106_spill] sm:$0xff] %v9153_v10  ;;  %v2834_v18 = vadd.f32 %v2826_v27, %v2810_v33  ;;  %vm11512_vm3 = vnez %v11511_v35 }
 0x2de   : > { %vm3324_vm2 = vmpackc.even %vm3323_vm13, %vm3322_vm4  ;;  %11508 = vst [vmem:[#allocation108_spill] sm:$0xff] %v9161_v11 }
 0x2df   : > { %vm3328_vm6 = vmand %vm11499_vm1, %vm3324_vm2  ;;  %11502 = vst [vmem:[#allocation50_spill] sm:$0xff] %v9149_v60  ;;  %vm9172_vm2 = vcmp.ne.s32.totalorder %v2908_v41, 0  ;;  %vm9176_vm1 = vcmp.ne.s32.totalorder %v2909_v19, 0  ;;  %v9194_v19 = vmul.f32 %v9060_v30, %v5112_v31 }
 0x2e0   : > { %v3507_v49 = vsel %vm3328_vm6, 16843009, %v10853_v40  ;;  %vm11500_vm13 = vmpackc.low %vm11490_vm12, %vm11490_vm12  ;;  %vm11510_vm6 = vnez %v11509_v24  ;;  %v4291_v59 = vpop.eup %4290 }
 0x2e1   : > { %vm1027_vm4 = vmpackc.even %vm11500_vm13, %vm11500_vm13  ;;  %3509 = vst [vmem:[#allocation19] sm:$0xff] %v3507_v49  ;;  %v4293_v6 = vpop.eup %4292  ;;  %v2880_v24 = vmul.f32 %v4291_v59, %v5227_v55 }
 0x2e2   : > { %vm1028_vm12 = vmpackc.low %vm11510_vm6, %vm11510_vm6  ;;  %v1038_v43 = vsel %vm1027_vm4, 16843009, %v10853_v40  ;;  %v4295_v33 = vpop.eup %4294  ;;  %v2881_v48 = vmul.f32 %v4293_v6, %v5227_v55  ;;  %vm11518_vm4 = vnez %v11517_v4 }
 0x2e3   : > { %vm1029_vm11 = vmpackc.even %vm1028_vm12, %vm1028_vm12  ;;  %v1046_v27 = vunpack.c.0.s8 %v1038_v43  ;;  %v4297_v14 = vpop.eup %4296  ;;  %v2882_v41 = vmul.f32 %v4295_v33, %v5227_v55  ;;  %v9190_v25 = vadd.f32 %v2880_v24, %v2832_v47 }
 0x2e4   : > { %vm1030_vm0 = vmpackc.low %vm11512_vm3, %vm11512_vm3  ;;  %v1039_v49 = vsel %vm1029_vm11, 16843009, %v10853_v40  ;;  %v2883_v6 = vmul.f32 %v4297_v14, %v5227_v55  ;;  %v9197_v4 = vadd.f32 %v2881_v48, %v2833_v26  ;;  %vm9199_vm11 = vcmp.ne.s32.totalorder %v2910_v2, 0 }
 0x2e5   : > { %vm1031_vm13 = vmpackc.even %vm1030_vm0, %vm1030_vm0  ;;  %v1047_v54 = vunpack.c.0.s8 %v1039_v49  ;;  %v11521_v49 = vld [vmem:[#allocation42_spill] sm:$0xff]  ;;  %v9211_v30 = vadd.f32 %v2882_v41, %v2834_v18  ;;  %v11527_v18 = vmov 0  ;;  %v9250_v48 = vmul.f32 %v9066_v61, %v5112_v31 }
 0x2e6   : > { %vm1032_vm6 = vmpackc.low %vm11518_vm4, %vm11518_vm4  ;;  %v1040_v59 = vsel %vm1031_vm13, 16843009, %v10853_v40  ;;  %vm11522_vm3 = vnez %v11521_v49  ;;  %vm2896_vm13 = vcmp.ge.f32.partialorder %v9190_v25, %v5233_v9  ;;  %vm9215_vm4 = vcmp.ne.s32.totalorder %v2911_v16, 0 }
 0x2e7   : > { %vm1033_vm12 = vmpackc.even %vm1032_vm6, %vm1032_vm6  ;;  %v1048_v35 = vunpack.c.0.s8 %v1040_v59  ;;  %v9223_v24 = vadd.f32 %v2883_v6, %v2835_v23  ;;  %v9235_v16 = vmul.f32 %v9062_v0, %v5112_v31  ;;  %v1053_v33 = vpack.c.b16 %v1047_v54, %v1046_v27  ;;  %v678_v27 = vld [vmem:[#allocation21] sm:$0xff] }
 0x2e8   : > { %v1041_v43 = vsel %vm1033_vm12, 16843009, %v10853_v40  ;;  %vm1354_vm0 = vmpackc.low %vm11522_vm3, %vm11522_vm3  ;;  %vm2897_vm12 = vcmp.ge.f32.partialorder %v9197_v4, %v5233_v9  ;;  %v11530_v23 = vmov 0  ;;  %v9265_v31 = vstv %s11807_s2 }
 0x2e9   : > { %v1049_v2 = vunpack.c.0.s8 %v1041_v43  ;;  %vm9219_vm6 = vmpackc.even %vm1354_vm0, %vm1354_vm0  ;;  %vm2898_vm0 = vcmp.ge.f32.partialorder %v9211_v30, %v5233_v9  ;;  %11536 = vst [vmem:[#allocation53_spill] sm:$0xff] %v9265_v31  ;;  %v11537_v61 = vmov 0  ;;  %v993_v47 = vmul.f32 %v9265_v31, %v678_v27 }
 0x2ea   : > { %vm9229_vm3 = vmand %vm2896_vm13, %vm9172_vm2  ;;  %vm2899_vm2 = vcmp.ge.f32.partialorder %v9223_v24, %v5233_v9  ;;  %v9283_v54 = vsel %vm9219_vm6, 16843009, %v10853_v40 }
 0x2eb   : > { %v11528_v18 = vsel %vm9229_vm3, 4294967295, %v11527_v18  ;;  %vm9241_vm7 = vmand %vm2897_vm12, %vm9176_vm1  ;;  %v3969_v52 = vsel %vm9229_vm3, 1.0, %v10871_v21  ;;  %v1054_v0 = vpack.c.b16 %v1049_v2, %v1048_v35  ;;  %vm2940_vm1 = vcmp.ge.f32.partialorder %v9190_v25, %v5317_v63  ;;  %v679_v2 = vld [vmem:[#allocation21 + $0x8] sm:$0xff] }
 0x2ec   : > { %11529 = vst [vmem:[#allocation109_spill] sm:$0xff] %v11528_v18  ;;  %v11531_v23 = vsel %vm9241_vm7, 4294967295, %v11530_v23  ;;  %vm9256_vm13 = vmand %vm2898_vm0, %vm9199_vm11  ;;  %v3970_v59 = vsel %vm9241_vm7, 1.0, %v10871_v21  ;;  %v9290_v14 = vmul.f32 %v3969_v52, %v9138_v13  ;;  %v9293_v41 = vmul.f32 %v3969_v52, %v5144_v57  ;;  %v11552_v18 = vld [vmem:[#allocation39_spill] sm:$0xff] }
 0x2ed   : > { %11532 = vst [vmem:[#allocation51_spill] sm:$0xff] %v11531_v23  ;;  %v11534_v1 = vsel %vm9256_vm13, 4294967295, %v11533_v1  ;;  %vm9269_vm12 = vmand %vm2899_vm2, %vm9215_vm4  ;;  %v3971_v11 = vsel %vm9256_vm13, 1.0, %v10871_v21  ;;  %v1055_v6 = vpack.c.b8 %v1054_v0, %v1053_v33  ;;  %v9305_v43 = vmul.f32 %v3970_v59, %v9138_v13  ;;  %v11544_v0 = vld [vmem:[#allocation38_spill] sm:$0xff] }
 0x2ee   : > { %11535 = vst [vmem:[#allocation52_spill] sm:$0xff] %v11534_v1  ;;  %v11538_v61 = vsel %vm9269_vm12, 4294967295, %v11537_v61  ;;  %vm2931_vm4 = vmpackc.low %vm9241_vm7, %vm9229_vm3  ;;  %v9298_v35 = vsel %vm9269_vm12, 1.0, %v10871_v21  ;;  %v9308_v49 = vmul.f32 %v3970_v59, %v5144_v57  ;;  %v9314_v26 = vmul.f32 %v3971_v11, %v9138_v13 }
 0x2ef   : > { %11539 = vst [vmem:[#allocation42_spill] sm:$0xff] %v11538_v61  ;;  %11540 = vst [vmem:[#allocation137_spill] sm:$0xff] %v9290_v14  ;;  %v9317_v33 = vmul.f32 %v3971_v11, %v5144_v57  ;;  %v9321_v52 = vmul.f32 %v9298_v35, %v5144_v57  ;;  %v1002_v59 = vmul.f32 %v11544_v0, %v9138_v13  ;;  %v9337_v61 = vstv %s9135_s16  ;;  %v11548_v57 = vld [vmem:[#allocation46_spill] sm:$0xff] }
 0x2f0   : > { %11541 = vst [vmem:[#allocation138_spill] sm:$0xff] %v9298_v35  ;;  %vm2932_vm6 = vmpackc.low %vm9269_vm12, %vm9256_vm13  ;;  %v1338_v1 = vmul.f32 %v11548_v57, %v9138_v13  ;;  %v994_v11 = vmul.f32 %v9265_v31, %v679_v2  ;;  %v1003_v35 = vmul.f32 %v11552_v18, %v9138_v13  ;;  %v11555_v2 = vld [vmem:[#allocation47_spill] sm:$0xff] }
 0x2f1   : > { %11542 = vst [vmem:[#allocation139_spill] sm:$0xff] %v9305_v43  ;;  %vm2933_vm0 = vmpackc.even %vm2932_vm6, %vm2931_vm4  ;;  %v1010_v0 = vadd.f32 %v1002_v59, %v993_v47  ;;  %vm11554_vm6 = vnez %v11553_v7  ;;  %v9363_v59 = vmul.f32 %v11555_v2, %v9138_v13  ;;  %v11556_v18 = vld [vmem:[#allocation63_spill] sm:$0xff] }
 0x2f2   : > { %11543 = vst [vmem:[#allocation140_spill] sm:$0xff] %v9314_v26  ;;  %1057 = vst [vmem:[%s5103_s4 + $0x8] sm:$0xff] %v1055_v6  ;;  %v11549_v6 = vld [vmem:[#allocation62_spill] sm:$0xff]  ;;  %v680_v26 = vld [vmem:[#allocation21 + $0x10] sm:$0xff]  ;;  %v9367_v17 = vmul.f32 %v11556_v18, %v9138_v13 }
 0x2f3   : > { %vm11545_vm2 = vmand %vm8835_vm9, %vm9043_vm8  ;;  %v9343_v23 = vmul.f32 %v11549_v6, %v9138_v13  ;;  %vm11551_vm9 = vnez %v11550_v15  ;;  %v1330_v47 = vmul.f32 %v9337_v61, %v1010_v0  ;;  %v9374_v7 = vmul.f32 %v9265_v31, %v680_v26  ;;  %v11565_v18 = vld [vmem:[#allocation40_spill] sm:$0xff] }
 0x2f4   : > { %vm9331_vm4 = vmor %vm11545_vm2, %vm2933_vm0  ;;  %11557 = vst [vmem:[#allocation38_spill] sm:$0xff] %v9367_v17  ;;  %v9393_v26 = vmul.f32 %v11565_v18, %v9138_v13 }
 0x2f5   : > { %v2945_v12 = vsel %vm9331_vm4, 16843009, %v10853_v40  ;;  %vm1356_vm8 = vmpackc.low %vm11551_vm9, %vm11551_vm9 }
 0x2f6   : > { %v2950_v57 = vunpack.c.0.s8 %v2945_v12  ;;  %v2951_v43 = vunpack.c.1.s8 %v2945_v12  ;;  %v2952_v14 = vunpack.c.2.s8 %v2945_v12  ;;  %v2953_v6 = vunpack.c.3.s8 %v2945_v12  ;;  %vm1357_vm0 = vmpackc.even %vm1356_vm8, %vm1356_vm8 }
 0x2f7   : > { %vm1358_vm2 = vmpackc.low %vm11554_vm6, %vm11554_vm6  ;;  %v9358_v15 = vsel %vm1357_vm0, 16843009, %v10853_v40 }
 0x2f8   : > { %vm2958_vm9 = vcmp.ne.s32.totalorder %v2950_v57, 0  ;;  %vm2959_vm11 = vcmp.ne.s32.totalorder %v2951_v43, 0  ;;  %vm9369_vm8 = vcmp.ne.s32.totalorder %v2952_v14, 0  ;;  %vm1359_vm6 = vmpackc.even %vm1358_vm2, %vm1358_vm2  ;;  %vm9383_vm12 = vcmp.ne.s32.totalorder %v2953_v6, 0  ;;  %v11564_v14 = vld [vmem:[#allocation70_spill] sm:$0xff]  ;;  %v3979_v6 = vld [vmem:[%s5083_s27 + $0x1e0] sm:$0xff] }
 0x2f9   : > { %vm9379_vm0 = vmand %vm2940_vm1, %vm2958_vm9  ;;  %v9389_v43 = vmul.f32 %v11564_v14, %v9138_v13  ;;  %v1011_v57 = vadd.f32 %v1003_v35, %v994_v11  ;;  %vm11566_vm1 = vcmp.ge.f32.partialorder %v9197_v4, %v5317_v63  ;;  %v9407_v14 = vsel %vm1359_vm6, 16843009, %v10853_v40 }
 0x2fa   : > { %v2974_v10 = vsel %vm9379_vm0, %v5327_v3, %v9190_v25  ;;  %vm9402_vm2 = vmand %vm11566_vm1, %vm2959_vm11  ;;  %v9410_v11 = vadd.f32 %v1338_v1, %v1330_v47  ;;  %vm11569_vm11 = vcmp.ge.f32.partialorder %v9211_v30, %v5317_v63  ;;  %vm11572_vm6 = vcmp.ge.f32.partialorder %v9223_v24, %v5317_v63 }
 0x2fb   : > { %v3096_v18 = vmul.f32 %v2974_v10, %v5114_v32  ;;  %v3136_v39 = vmul.f32 %v2974_v10, %v5182_v22  ;;  %v3176_v25 = vmul.f32 %v2974_v10, %v5147_v58  ;;  %v2975_v60 = vsel %vm9402_vm2, %v5327_v3, %v9197_v4  ;;  %vm9424_vm9 = vmand %vm11569_vm11, %vm9369_vm8 }
 0x2fc   : > { %v3097_v1 = vmul.f32 %v2975_v60, %v5114_v32  ;;  %v3137_v47 = vmul.f32 %v2975_v60, %v5182_v22  ;;  %v3177_v10 = vmul.f32 %v2975_v60, %v5147_v58  ;;  %v2976_v4 = vsel %vm9424_vm9, %v5327_v3, %v9211_v30  ;;  %vm9440_vm8 = vmand %vm11572_vm6, %vm9383_vm12 }
 0x2fd   : > { %v3104_v31 = vadd.f32 %v3096_v18, %v9182_v36  ;;  %v3184_v29 = vadd.f32 %v3176_v25, %v5150_v62  ;;  %v3098_v60 = vmul.f32 %v2976_v4, %v5114_v32  ;;  %vm9450_vm1 = vmxor %vm9379_vm0, %vm11471_vm14  ;;  %v9455_v2 = vmul.f32 %v9337_v61, %v1011_v57 }
 0x2fe   : > { %v3144_v8 = vadd.f32 %v3136_v39, %v5199_v38  ;;  %v3105_v28 = vadd.f32 %v3097_v1, %v9194_v19  ;;  %v3185_v36 = vadd.f32 %v3177_v10, %v5150_v62  ;;  %vm9463_vm12 = vmxor %vm9402_vm2, %vm11471_vm14  ;;  %v3178_v39 = vmul.f32 %v2976_v4, %v5147_v58  ;;  %v11585_v19 = vld [vmem:[#allocation45_spill] sm:$0xff] }
 0x2ff   : > { %v3112_v25 = vadd.f32 %v3104_v31, %v5141_v56  ;;  %v3192_v57 = vmin.f32 %v3184_v29, 80.0  ;;  %v3106_v63 = vadd.f32 %v3098_v60, %v9235_v16  ;;  %vm9474_vm0 = vmxor %vm9424_vm9, %vm11471_vm14  ;;  %v3145_v10 = vadd.f32 %v3137_v47, %v5199_v38  ;;  %v3980_v60 = vld [vmem:[%s5083_s27 + $0x1e8] sm:$0xff] }
 0x300   : > { %v3113_v1 = vadd.f32 %v3105_v28, %v5141_v56  ;;  %v3193_v0 = vmin.f32 %v3185_v36, 80.0  ;;  %v2977_v29 = vsel %vm9440_vm8, %v5327_v3, %v9223_v24  ;;  %vm9488_vm2 = vmxor %vm9440_vm8, %vm11471_vm14  ;;  %v3186_v47 = vadd.f32 %v3178_v39, %v5150_v62  ;;  %v3981_v36 = vld [vmem:[%s5083_s27 + $0x1f0] sm:$0xff] }
 0x301   : > { %v3128_v31 = vadd.f32 %v9293_v41, %v3112_v25  ;;  %v3204_v35 = vmul.f32 1.442695, %v3192_v57  ;;  %v3114_v28 = vadd.f32 %v3106_v63, %v5141_v56  ;;  %vm2989_vm11 = vmpackc.low %vm9463_vm12, %vm9450_vm1  ;;  %v3138_v17 = vmul.f32 %v2976_v4, %v5182_v22 }
 0x302   : > { %v3129_v24 = vadd.f32 %v9308_v49, %v3113_v1  ;;  %v3206_v12 = vmul.f32 1.442695, %v3193_v0  ;;  %v3099_v51 = vmul.f32 %v2977_v29, %v5114_v32  ;;  %vm2990_vm9 = vmpackc.low %vm9488_vm2, %vm9474_vm0  ;;  %v3194_v30 = vmin.f32 %v3186_v47, 80.0 }
 0x303   : > { %v3152_v63 = vsub.f32 %v3979_v6, %v3128_v31  ;;  %4298 = vpow2.f32 %v3204_v35  ;;  %3423 = vst [vmem:[#allocation16 + $0x20] sm:$0xff] %v3128_v31  ;;  %v3130_v41 = vadd.f32 %v9317_v33, %v3114_v28  ;;  %vm9509_vm6 = vmpackc.even %vm2990_vm9, %vm2989_vm11  ;;  %v3139_v4 = vmul.f32 %v2977_v29, %v5182_v22 }
 0x304   : > { %v3153_v49 = vsub.f32 %v3980_v60, %v3129_v24  ;;  %4300 = vpow2.f32 %v3206_v12  ;;  %3424 = vst [vmem:[#allocation16 + $0x28] sm:$0xff] %v3129_v24  ;;  %v3107_v32 = vadd.f32 %v3099_v51, %v9250_v48  ;;  %vm10780_vm8 = vmand %vm9331_vm4, %vm9509_vm6  ;;  %v3208_v25 = vmul.f32 1.442695, %v3194_v30  ;;  %v11590_v60 = vld [vmem:[#allocation74_spill] sm:$0xff] }
 0x305   : > { %v3160_v0 = vmul.f32 %v3152_v63, %v5206_v42  ;;  %v3154_v33 = vsub.f32 %v3981_v36, %v3130_v41  ;;  %3425 = vst [vmem:[#allocation16 + $0x30] sm:$0xff] %v3130_v41  ;;  %v3179_v57 = vmul.f32 %v2977_v29, %v5147_v58  ;;  %vm3237_vm1 = vmxor %vm10780_vm8, %vm11471_vm14  ;;  %v3146_v51 = vadd.f32 %v3138_v17, %v5199_v38  ;;  %v11589_v17 = vld [vmem:[#allocation71_spill] sm:$0xff] }
 0x306   : > { %v3161_v22 = vmul.f32 %v3153_v49, %v5206_v42  ;;  %v3115_v48 = vadd.f32 %v3107_v32, %v5141_v56  ;;  %v9531_v39 = vsel %vm3237_vm1, 16843009, %v10853_v40  ;;  %vm11586_vm12 = vnez %v11585_v19  ;;  %v3982_v56 = vld [vmem:[%s5083_s27 + $0x1f8] sm:$0xff]  ;;  %s4745_s27 = smov [#allocation16]  }
 0x307   : > { %vm1360_vm0 = vmpackc.low %vm11586_vm12, %vm11586_vm12  ;;  %v3162_v58 = vmul.f32 %v3154_v33, %v5206_v42  ;;  %4302 = vpow2.f32 %v3208_v25  ;;  %v3187_v6 = vadd.f32 %v3179_v57, %v5150_v62  ;;  %v9544_v29 = vmul.f32 %v11589_v17, %v9138_v13  ;;  %s3540_s29 = sshll.u32 %s4745_s27, 4  ;;  %s3541_s29 = int_to_ptr.vmem [resolvable:$true] %s3540_s29 }
 0x308   : > { %vm9538_vm2 = vmpackc.even %vm1360_vm0, %vm1360_vm0  ;;  %v3131_v16 = vadd.f32 %v9321_v52, %v3115_v48  ;;  %v9549_v31 = vadd.f32 %v3139_v4, %v5199_v38  ;;  %v3244_v35 = vunpack.c.0.s8 %v9531_v39  ;;  %vm11591_vm11 = vnez %v11590_v60  ;;  %s4491_s14 = scalar_lea.vmem %s3541_s29, 1024  ;;  %p4498_p10 = scmp.lt.s32.totalorder %s3541_s29, %s3541_s29 }
 0x309   : > { %vm1362_vm9 = vmpackc.low %vm11591_vm11, %vm11591_vm11  ;;  %v9557_v62 = vadd.f32 %v9393_v26, %v9374_v7  ;;  %v3168_v28 = vadd.f32 %v3160_v0, %v3144_v8  ;;  %v9559_v47 = vadd.f32 %v3161_v22, %v3145_v10  ;;  %v3195_v24 = vmin.f32 %v3187_v6, 80.0  ;;  %p4492_p4 = scmp.ne.s32.totalorder %s3541_s29, %s4491_s14  ;;  %p4499_p8 = scmp.lt.s32.totalorder %s4491_s14, %s4491_s14 }
 0x30a   : > { %v11592_v12 = vunpack.c.0.s8 %v9283_v54  ;;  %v11593_v52 = vunpack.c.0.s8 %v9358_v15  ;;  %vm9567_vm1 = vmpackc.even %vm1362_vm9, %vm1362_vm9  ;;  %v9571_v63 = vadd.f32 %v3162_v58, %v3146_v51  ;;  %3426 = vst [vmem:[#allocation16 + $0x38] sm:$0xff] %v3131_v16  ;;  %v3245_v8 = vunpack.c.1.s8 %v9531_v39  ;;  %v11596_v15 = vld [vmem:[#allocation75_spill] sm:$0xff] }
 0x30b   : > { %v3246_v7 = vunpack.c.2.s8 %v9531_v39  ;;  %v1373_v54 = vsel %vm9538_vm2, 16843009, %v10853_v40  ;;  %vm11597_vm12 = vnez %v11596_v15  ;;  %v3155_v26 = vsub.f32 %v3982_v56, %v3131_v16  ;;  %p4493_p2 = pnand %p4492_p4, %p11600_p11  ;;  %p4500_p13 = por %p4499_p8, %p4498_p10 }
 0x30c   : > { %v9565_v38 = vpack.c.b16 %v11593_v52, %v11592_v12  ;;  %vm1364_vm0 = vmpackc.low %vm11597_vm12, %vm11597_vm12  ;;  %v3210_v10 = vmul.f32 1.442695, %v3195_v24  ;;  %v3247_v41 = vunpack.c.3.s8 %v9531_v39  ;;  %v1381_v30 = vunpack.c.0.s8 %v1373_v54 }
 0x30d   : > { %vm9582_vm11 = vmpackc.even %vm1364_vm0, %vm1364_vm0  ;;  %p4494_p1 = pneg %p4493_p2 }
 0x30f   : > { %p4501_p0 = pnand %p4500_p13, %p4494_p1 }
 0x311   : > { %4504 = shalt.err (!%p4501_p0)
}
 0x312   : > { %s4505_s17 = scalar_lea.hbm %s10518_s8, 1024 }
 0x313   : > { %p4506_p5 = scmp.ne.s32.totalorder %s10518_s8, %s4505_s17  ;;  %p4511_p12 = scmp.lt.u32.totalorder %s4505_s17, %s10518_s8 }
 0x315   : > { %p4507_p7 = pnand %p4506_p5, %p11600_p11 }
 0x317   : > { %p4508_p3 = pneg %p4507_p7 }
 0x319   : > { %p4513_p6 = pnand %p4511_p12, %p4508_p3 }
 0x31b   : > { %4516 = shalt.err (!%p4513_p6)
}
 0x31c   : > { %4042 = dma.vmem_to_hbm [thread:$0]  (%p11600_p11), %s3541_s29, 1024, %s10518_s8, [#allocation17]   ;;  %vm9604_vm2 = vcmp.ne.s32.totalorder %v3244_v35, 0  ;;  %v11603_v4 = vld [vmem:[#allocation76_spill] sm:$0xff]  ;;  %v1374_v0 = vsel %vm9567_vm1, 16843009, %v10853_v40  ;;  %v3306_v25 = vsel %vm8918_vm5, %v5327_v3, %v8081_v44  ;;  %v4299_v57 = vpop.eup %4298  ;;  %4304 = vpow2.f32 %v3210_v10 }
 0x31d   : > { %vm11604_vm9 = vnez %v11603_v4  ;;  %v1375_v33 = vsel %vm9582_vm11, 16843009, %v10853_v40  ;;  %v11605_v22 = vunpack.c.0.s8 %v9407_v14  ;;  %v1382_v48 = vunpack.c.0.s8 %v1374_v0  ;;  %3411 = vst [vmem:[#allocation15] sm:$0xff] %v3306_v25  ;;  %v4301_v58 = vpop.eup %4300  ;;  %v11608_v17 = vld [vmem:[#allocation77_spill] sm:$0xff]  ;;  %v11610_v12 = vld [vmem:[#allocation54_spill] sm:$0xff]  ;;  %v11615_v53 = vld [vmem:[#allocation55_spill] sm:$0xff] }
 0x31e   : > { %vm1366_vm12 = vmpackc.low %vm11604_vm9, %vm11604_vm9  ;;  %v1383_v19 = vunpack.c.0.s8 %v1375_v33  ;;  %v3216_v6 = vmul.f32 %v4299_v57, %v5227_v55  ;;  %vm9624_vm1 = vcmp.ne.s32.totalorder %v3245_v8, 0  ;;  %vm11609_vm11 = vnez %v11608_v17  ;;  %v4303_v50 = vpop.eup %4302  ;;  %v11623_v15 = vld [vmem:[#allocation82_spill] sm:$0xff]  ;;  %v11631_v1 = vld [vmem:[#allocation33_spill] sm:$0xff]  ;;  %s4746_s27 = smov [#allocation15]  }
 0x31f   : > { %v1387_v51 = vpack.c.b16 %v1381_v30, %v11605_v22  ;;  %vm1367_vm0 = vmpackc.even %vm1366_vm12, %vm1366_vm12  ;;  %v3307_v45 = vsel %vm8950_vm10, %v5327_v3, %v8094_v34  ;;  %v3217_v14 = vmul.f32 %v4301_v58, %v5227_v55  ;;  %v3163_v56 = vmul.f32 %v3155_v26, %v5206_v42  ;;  %v11625_v32 = vld [vmem:[#allocation94_spill] sm:$0xff]  ;;  %v11628_v22 = vld [vmem:[#allocation83_spill] sm:$0xff]  ;;  %s3526_s29 = sshll.u32 %s4746_s27, 4  ;;  %s9910_s29 = int_to_ptr.vmem [resolvable:$true] %s3526_s29 }
 0x320   : > { %vm1368_vm5 = vmpackc.low %vm11609_vm11, %vm11609_vm11  ;;  %v1376_v44 = vsel %vm1367_vm0, 16843009, %v10853_v40  ;;  %3412 = vst [vmem:[#allocation15 + $0x8] sm:$0xff] %v3307_v45  ;;  %v9639_v60 = vadd.f32 %v3216_v6, %v3168_v28  ;;  %vm11611_vm12 = vnez %v11610_v12  ;;  %v3308_v34 = vsel %vm8974_vm15, %v5327_v3, %v8140_v5  ;;  %s4517_s14 = scalar_lea.vmem %s9910_s29, 1024  ;;  %p4524_p1 = scmp.lt.s32.totalorder %s9910_s29, %s9910_s29 }
 0x321   : > { %v1388_v16 = vpack.c.b8 %v1387_v51, %v9565_v38  ;;  %vm1369_vm9 = vmpackc.even %vm1368_vm5, %vm1368_vm5  ;;  %v1384_v35 = vunpack.c.0.s8 %v1376_v44  ;;  %vm11612_vm10 = vnez %v11482_v20  ;;  %v9654_v28 = vadd.f32 %v3217_v14, %v9559_v47  ;;  %3413 = vst [vmem:[#allocation15 + $0x10] sm:$0xff] %v3308_v34  ;;  %v11633_v44 = vld [vmem:[#allocation38_spill] sm:$0xff]  ;;  %v11634_v14 = vld [vmem:[#allocation95_spill] sm:$0xff]  ;;  %p4518_p9 = scmp.ne.s32.totalorder %s9910_s29, %s4517_s14  ;;  %p4525_p10 = scmp.lt.s32.totalorder %s4517_s14, %s4517_s14 }
 0x322   : > { %v1377_v24 = vsel %vm1369_vm9, 16843009, %v10853_v40  ;;  %vm1690_vm0 = vmpackc.low %vm11611_vm12, %vm11611_vm12  ;;  %v3309_v42 = vsel %vm11612_vm10, %v5327_v3, %v8184_v37  ;;  %v1389_v38 = vpack.c.b16 %v1383_v19, %v1382_v48  ;;  %v1666_v36 = vmul.f32 %v9410_v11, %v9337_v61  ;;  %v11629_v19 = vld [vmem:[#allocation56_spill] sm:$0xff]  ;;  %v11639_v37 = vld [vmem:[#allocation98_spill] sm:$0xff] }
 0x323   : > { %3883 = vst [vmem:[%s5103_s4 + $0x10] sm:$0xff] %v1388_v16  ;;  %v1385_v52 = vunpack.c.0.s8 %v1377_v24  ;;  %vm1691_vm11 = vmpackc.even %vm1690_vm0, %vm1690_vm0  ;;  %v3218_v5 = vmul.f32 %v4303_v50, %v5227_v55  ;;  %vm3232_vm15 = vcmp.ge.f32.partialorder %v9639_v60, %v5233_v9  ;;  %vm9664_vm5 = vcmp.ne.s32.totalorder %v3246_v7, 0  ;;  %v11635_v24 = vld [vmem:[#allocation37_spill] sm:$0xff]  ;;  %p4519_p4 = pnand %p4518_p9, %p11600_p11  ;;  %p4526_p8 = por %p4525_p10, %p4524_p1 }
 0x324   : > { %3414 = vst [vmem:[#allocation15 + $0x18] sm:$0xff] %v3309_v42  ;;  %vm11616_vm9 = vnez %v11615_v53  ;;  %v1706_v20 = vsel %vm1691_vm11, 16843009, %v10853_v40  ;;  %v3171_v47 = vadd.f32 %v3163_v56, %v9549_v31  ;;  %vm3233_vm0 = vcmp.ge.f32.partialorder %v9654_v28, %v5233_v9  ;;  %vm9683_vm8 = vmand %vm3232_vm15, %vm9604_vm2 }
 0x325   : > { %vm1692_vm12 = vmpackc.low %vm11616_vm9, %vm11616_vm9  ;;  %vm9677_vm10 = vcmp.ne.s32.totalorder %v3247_v41, 0  ;;  %v1390_v7 = vpack.c.b16 %v1385_v52, %v1384_v35  ;;  %v9688_v54 = vadd.f32 %v3218_v5, %v9571_v63  ;;  %v1682_v39 = vadd.f32 %v9343_v23, %v1666_v36  ;;  %p4520_p2 = pneg %p4519_p4 }
 0x326   : > { %vm9692_vm11 = vmand %vm3233_vm0, %vm9624_vm1  ;;  %v2346_v26 = vmul.f32 %v11623_v15, %v9138_v13  ;;  %vm11624_vm2 = vnez %v11412_v46  ;;  %v1714_v41 = vunpack.c.0.s8 %v1706_v20  ;;  %v1347_v49 = vadd.f32 %v9363_v59, %v9455_v2  ;;  %v4305_v33 = vpop.eup %4304  ;;  %v11643_v15 = vld [vmem:[#allocation64_spill] sm:$0xff] }
 0x327   : > { %v3983_v10 = vsel %vm11624_vm2, 1.0, %v10871_v21  ;;  %v1391_v63 = vpack.c.b8 %v1390_v7, %v1389_v38  ;;  %vm3234_vm1 = vcmp.ge.f32.partialorder %v9688_v54, %v5233_v9  ;;  %vm1693_vm0 = vmpackc.even %vm1692_vm12, %vm1692_vm12  ;;  %v2002_v23 = vmul.f32 %v1682_v39, %v9337_v61  ;;  %v11638_v38 = vld [vmem:[#allocation48_spill] sm:$0xff]  ;;  %p4527_p13 = pnand %p4526_p8, %p4520_p2 }
 0x328   : > { %v3435_v30 = vtrunc.f32 %v3983_v10  ;;  %v2682_v4 = vmul.f32 %v11625_v32, %v9138_v13  ;;  %v9720_v0 = vmul.f32 %v3983_v10, %v9138_v13  ;;  %vm9724_vm15 = vmand %vm3234_vm1, %vm9664_vm5  ;;  %v1707_v2 = vsel %vm1693_vm0, 16843009, %v10853_v40  ;;  %v11647_v32 = vld [vmem:[#allocation34_spill] sm:$0xff] }
 0x329   : > { %3884 = vst [vmem:[%s5103_s4 + $0x18] sm:$0xff] %v1391_v63  ;;  %v1667_v57 = vmul.f32 %v1347_v49, %v9337_v61  ;;  %v2347_v51 = vmul.f32 %v11628_v22, %v9138_v13  ;;  %v3219_v48 = vmul.f32 %v4305_v33, %v5227_v55  ;;  %vm11630_vm9 = vnez %v11629_v19  ;;  %v11652_v22 = vld [vmem:[#allocation96_spill] sm:$0xff] }
 0x32a   : > { %v9730_v25 = vpack.c.f32.eXmY %v3435_v30, %v3435_v30, 312  ;;  %vm1694_vm12 = vmpackc.low %vm11630_vm9, %vm11630_vm9  ;;  %v1715_v58 = vunpack.c.0.s8 %v1707_v2  ;;  %v2018_v6 = vadd.f32 %v9389_v43, %v2002_v23  ;;  %vm11632_vm5 = vnez %v11631_v1  ;;  %v11636_v43 = vld [vmem:[#allocation57_spill] sm:$0xff] }
 0x32b   : > { %v3984_v17 = vsel %vm11632_vm5, 1.0, %v10871_v21  ;;  %vm1695_vm1 = vmpackc.even %vm1694_vm12, %vm1694_vm12  ;;  %v1683_v45 = vadd.f32 %v11633_v44, %v1667_v57  ;;  %v9746_v56 = vmul.f32 %v11634_v14, %v9138_v13  ;;  %v1332_v55 = vmul.f32 %v9337_v61, %v9557_v62 }
 0x32c   : > { %v3436_v16 = vtrunc.f32 %v3984_v17  ;;  %v9750_v35 = vadd.f32 %v3219_v48, %v3171_v47  ;;  %vm11637_vm9 = vnez %v11636_v43  ;;  %v1708_v12 = vsel %vm1695_vm1, 16843009, %v10853_v40  ;;  %vm11649_vm12 = vmand %vm9331_vm4, %vm9509_vm6 }
 0x32d   : > { %vm1696_vm5 = vmpackc.low %vm11637_vm9, %vm11637_vm9  ;;  %v2338_v34 = vmul.f32 %v2018_v6, %v9337_v61  ;;  %v9760_v42 = vmul.f32 %v3984_v17, %v9138_v13  ;;  %v1716_v62 = vunpack.c.0.s8 %v1708_v12  ;;  %v1722_v50 = vpack.c.b16 %v1715_v58, %v1714_v41  ;;  %v11645_v41 = vld [vmem:[#allocation85_spill] sm:$0xff]  ;;  %v681_v17 = vld [vmem:[#allocation21 + $0x18] sm:$0xff] }
 0x32e   : > { %vm1697_vm2 = vmpackc.even %vm1696_vm5, %vm1696_vm5  ;;  %v2003_v52 = vmul.f32 %v1683_v45, %v9337_v61  ;;  %v1340_v36 = vmul.f32 %v11638_v38, %v9138_v13  ;;  %vm3235_vm9 = vcmp.ge.f32.partialorder %v9750_v35, %v5233_v9  ;;  %vm11640_vm0 = vnez %v11639_v37  ;;  %v11664_v37 = vld [vmem:[#allocation50_spill] sm:$0xff] }
 0x32f   : > { %v1709_v5 = vsel %vm1697_vm2, 16843009, %v10853_v40  ;;  %v2354_v53 = vadd.f32 %v2346_v26, %v2338_v34  ;;  %v9775_v20 = vpack.c.f32.eXmY %v3436_v16, %v3436_v16, 312  ;;  %vm9779_vm5 = vmand %vm3235_vm9, %vm9677_vm10  ;;  %v1676_v10 = vmul.f32 %v11643_v15, %v9138_v13  ;;  %v11644_v26 = vld [vmem:[#allocation72_spill] sm:$0xff] }
 0x330   : > { %v1717_v7 = vunpack.c.0.s8 %v1709_v5  ;;  %v2019_v9 = vadd.f32 %v9544_v29, %v2003_v52  ;;  %v1348_v39 = vadd.f32 %v1340_v36, %v1332_v55  ;;  %vm3268_vm2 = vmpackc.low %vm9779_vm5, %vm9724_vm15  ;;  %v2012_v63 = vmul.f32 %v11644_v26, %v9138_v13  ;;  %v11654_v55 = vld [vmem:[#allocation99_spill] sm:$0xff] }
 0x331   : > { %v2674_v11 = vmul.f32 %v2354_v53, %v9337_v61  ;;  %v9797_v29 = vmul.f32 %v11645_v41, %v9138_v13  ;;  %vm11646_vm10 = vmpackc.low %vm9692_vm11, %vm9683_vm8  ;;  %vm11648_vm1 = vnez %v11647_v32  ;;  %v9820_v48 = vmul.f32 %v11652_v22, %v9138_v13  ;;  %v11677_v22 = vld [vmem:[#allocation49_spill] sm:$0xff] }
 0x332   : > { %vm3269_vm9 = vmpackc.even %vm3268_vm2, %vm11646_vm10  ;;  %v1723_v30 = vpack.c.b16 %v1717_v7, %v1716_v62  ;;  %v2339_v49 = vmul.f32 %v2019_v9, %v9337_v61  ;;  %v1668_v23 = vmul.f32 %v1348_v39, %v9337_v61  ;;  %v3985_v33 = vsel %vm11648_vm1, 1.0, %v10871_v21  ;;  %v11668_v39 = vld [vmem:[#allocation100_spill] sm:$0xff] }
 0x333   : > { %vm9814_vm13 = vmor %vm11649_vm12, %vm3269_vm9  ;;  %v2690_v57 = vadd.f32 %v2682_v4, %v2674_v11  ;;  %v9823_v19 = vmul.f32 %v3985_v33, %v9138_v13  ;;  %v3437_v58 = vtrunc.f32 %v3985_v33  ;;  %vm11655_vm12 = vnez %v11654_v55 }
 0x334   : > { %v3281_v27 = vsel %vm9814_vm13, 16843009, %v10853_v40  ;;  %v1724_v18 = vpack.c.b8 %v1723_v30, %v1722_v50  ;;  %vm11653_vm4 = vmpackc.low %vm11640_vm0, %vm11640_vm0  ;;  %v2355_v4 = vadd.f32 %v2347_v51, %v2339_v49  ;;  %v1684_v6 = vadd.f32 %v1676_v10, %v1668_v23  ;;  %v11658_v50 = vld [vmem:[#allocation53_spill] sm:$0xff] }
 0x335   : > { %vm1699_vm6 = vmpackc.even %vm11653_vm4, %vm11653_vm4  ;;  %v3286_v44 = vunpack.c.0.s8 %v3281_v27  ;;  %v3287_v45 = vunpack.c.1.s8 %v3281_v27  ;;  %v3288_v14 = vunpack.c.2.s8 %v3281_v27  ;;  %v3289_v16 = vunpack.c.3.s8 %v3281_v27 }
 0x336   : > { %vm1700_vm2 = vmpackc.low %vm11655_vm12, %vm11655_vm12  ;;  %3901 = vst [vmem:[%s5103_s4 + $0x20] sm:$0xff] %v1724_v18  ;;  %v1710_v43 = vsel %vm1699_vm6, 16843009, %v10853_v40  ;;  %v3010_v12 = vmul.f32 %v2690_v57, %v9337_v61  ;;  %v2675_v34 = vmul.f32 %v2355_v4, %v9337_v61  ;;  %v2004_v51 = vmul.f32 %v1684_v6, %v9337_v61  ;;  %v11680_v18 = vld [vmem:[#allocation106_spill] sm:$0xff] }
 0x337   : > { %vm1701_vm10 = vmpackc.even %vm1700_vm2, %vm1700_vm2  ;;  %vm3294_vm0 = vcmp.ne.s32.totalorder %v3286_v44, 0  ;;  %vm3295_vm9 = vcmp.ne.s32.totalorder %v3287_v45, 0  ;;  %vm9842_vm4 = vcmp.ne.s32.totalorder %v3288_v14, 0  ;;  %v996_v52 = vmul.f32 %v11658_v50, %v681_v17  ;;  %v682_v17 = vld [vmem:[#allocation21 + $0x20] sm:$0xff] }
 0x338   : > { %vm9847_vm1 = vcmp.ne.s32.totalorder %v3289_v16, 0  ;;  %vm11661_vm6 = vcmp.ge.f32.partialorder %v9639_v60, %v11635_v24  ;;  %v1711_v5 = vsel %vm1701_vm10, 16843009, %v10853_v40  ;;  %v3026_v53 = vadd.f32 %v11664_v37, %v3010_v12  ;;  %v11684_v14 = vld [vmem:[#allocation73_spill] sm:$0xff] }
 0x339   : > { %vm9854_vm12 = vmand %vm11661_vm6, %vm3294_vm0  ;;  %v2691_v7 = vadd.f32 %v9746_v56, %v2675_v34  ;;  %vm11665_vm2 = vcmp.ge.f32.partialorder %v9654_v28, %v11635_v24  ;;  %vm11669_vm0 = vnez %v11668_v39  ;;  %v1718_v15 = vunpack.c.0.s8 %v1710_v43 }
 0x33a   : > { %vm9864_vm7 = vmand %vm11665_vm2, %vm3295_vm9  ;;  %v1719_v10 = vunpack.c.0.s8 %v1711_v5  ;;  %v3310_v56 = vsel %vm9854_vm12, %v5327_v3, %v9639_v60  ;;  %v2020_v11 = vadd.f32 %v2012_v63, %v2004_v51  ;;  %vm11670_vm10 = vcmp.ge.f32.partialorder %v9688_v54, %v11635_v24  ;;  %v11673_v63 = vld [vmem:[#allocation41_spill] sm:$0xff]  ;;  %v11688_v51 = vld [vmem:[#allocation35_spill] sm:$0xff] }
 0x33b   : > { %vm1702_vm6 = vmpackc.low %vm11669_vm0, %vm11669_vm0  ;;  %3415 = vst [vmem:[#allocation15 + $0x20] sm:$0xff] %v3310_v56  ;;  %v3311_v41 = vsel %vm9864_vm7, %v5327_v3, %v9654_v28  ;;  %v3346_v30 = vmul.f32 %v3026_v53, %v9337_v61  ;;  %v3011_v60 = vmul.f32 %v2691_v7, %v9337_v61  ;;  %v1005_v49 = vmul.f32 %v11673_v63, %v9138_v13 }
 0x33c   : > { %vm9880_vm9 = vmand %vm11670_vm10, %vm9842_vm4  ;;  %vm11674_vm4 = vcmp.ge.f32.partialorder %v9750_v35, %v11635_v24  ;;  %3416 = vst [vmem:[#allocation15 + $0x28] sm:$0xff] %v3311_v41  ;;  %v2340_v33 = vmul.f32 %v2020_v11, %v9337_v61  ;;  %v9906_v57 = vpack.c.f32.eXmY %v3437_v58, %v3437_v58, 312  ;;  %v1341_v27 = vmul.f32 %v11677_v22, %v9138_v13 }
 0x33d   : > { %vm9897_vm2 = vmand %vm11674_vm4, %vm9847_vm1  ;;  %v3312_v28 = vsel %vm9880_vm9, %v5327_v3, %v9688_v54  ;;  %v3362_v58 = vadd.f32 %v9720_v0, %v3346_v30  ;;  %v3027_v4 = vadd.f32 %v11680_v18, %v3011_v60  ;;  %v1013_v6 = vadd.f32 %v1005_v49, %v996_v52  ;;  %v11683_v0 = vld [vmem:[#allocation65_spill] sm:$0xff] }
 0x33e   : > { %vm9915_vm1 = vmxor %vm9854_vm12, %vm11471_vm14  ;;  %3417 = vst [vmem:[#allocation15 + $0x30] sm:$0xff] %v3312_v28  ;;  %v3313_v54 = vsel %vm9897_vm2, %v5327_v3, %v9750_v35  ;;  %v9932_v45 = vpack.c.b16 %v1719_v10, %v1718_v15  ;;  %v2356_v3 = vadd.f32 %v9797_v29, %v2340_v33  ;;  %v1677_v35 = vmul.f32 %v11683_v0, %v9138_v13  ;;  %v11687_v29 = vld [vmem:[#allocation86_spill] sm:$0xff] }
 0x33f   : > { %vm9928_vm12 = vmxor %vm9864_vm7, %vm11471_vm14  ;;  %3418 = vst [vmem:[#allocation15 + $0x38] sm:$0xff] %v3313_v54  ;;  %v9939_v16 = vmul.f32 %v11684_v14, %v9138_v13  ;;  %v3347_v43 = vmul.f32 %v3027_v4, %v9337_v61  ;;  %v1333_v12 = vmul.f32 %v9337_v61, %v1013_v6  ;;  %v9952_v34 = vmul.f32 %v11687_v29, %v9138_v13 }
 0x340   : > { %vm9944_vm7 = vmxor %vm9880_vm9, %vm11471_vm14  ;;  %3427 = vst [vmem:[#allocation21] sm:$0xff] %v3362_v58  ;;  %vm11689_vm10 = vnez %v11688_v51 }
 0x341   : > { %v3986_v62 = vsel %vm11689_vm10, 1.0, %v10871_v21 }
 0x342   : > { %4530 = shalt.err (!%p4527_p13)
}
 0x343   : > { %s4531_s17 = scalar_lea.hbm %s10517_s7, 1024 }
 0x344   : > { %p4532_p0 = scmp.ne.s32.totalorder %s10517_s7, %s4531_s17  ;;  %p4537_p3 = scmp.lt.u32.totalorder %s4531_s17, %s10517_s7 }
 0x346   : > { %p4533_p5 = pnand %p4532_p0, %p11600_p11 }
 0x348   : > { %p4534_p7 = pneg %p4533_p5 }
 0x34a   : > { %p4539_p12 = pnand %p4537_p3, %p4534_p7 }
 0x34c   : > { %4542 = shalt.err (!%p4539_p12)
}
 0x34d   : > { %4040 = dma.vmem_to_hbm [thread:$0]  (%p11600_p11), %s9910_s29, 1024, %s10517_s7, [#allocation4]   ;;  %vm9983_vm9 = vmxor %vm9897_vm2, %vm11471_vm14  ;;  %v2676_v38 = vmul.f32 %v2356_v3, %v9337_v61  ;;  %v11692_v36 = vld [vmem:[#allocation97_spill] sm:$0xff]  ;;  %v3438_v37 = vtrunc.f32 %v3986_v62  ;;  %v997_v53 = vmul.f32 %v11658_v50, %v682_v17  ;;  %v3363_v7 = vadd.f32 %v9760_v42, %v3347_v43  ;;  %v11693_v10 = vld [vmem:[#allocation58_spill] sm:$0xff] }
 0x34e   : > { %v9990_v5 = vmul.f32 %v11692_v36, %v9138_v13  ;;  %vm3325_vm4 = vmpackc.low %vm9928_vm12, %vm9915_vm1  ;;  %v1349_v9 = vadd.f32 %v1341_v27, %v1333_v12  ;;  %v9999_v15 = vmul.f32 %v3986_v62, %v9138_v13  ;;  %v1006_v56 = vmul.f32 %v11693_v10, %v9138_v13  ;;  %v683_v11 = vld [vmem:[#allocation21 + $0x28] sm:$0xff]  ;;  %s4747_s27 = smov [#allocation19]   ;;  %v11694_v42 = vld [vmem:[#allocation84_spill] sm:$0xff] }
 0x34f   : > { %s3568_s29 = sshll.u32 %s4747_s27, 4  ;;  %vm3326_vm14 = vmpackc.low %vm9983_vm9, %vm9944_vm7  ;;  %v2692_v26 = vadd.f32 %v9820_v48, %v2676_v38  ;;  %v10008_v41 = vpack.c.f32.eXmY %v3438_v37, %v3438_v37, 312  ;;  %v1342_v30 = vmul.f32 %v11694_v42, %v9138_v13  ;;  %v11695_v60 = vld [vmem:[#allocation112_spill] sm:$0xff]  ;;  %3428 = vst [vmem:[#allocation21 + $0x8] sm:$0xff] %v3363_v7  ;;  %v11697_v48 = vld [vmem:[#allocation105_spill] sm:$0xff]  ;;  %v3987_v24 = vsel %vm9683_vm8, 1.0, %v10871_v21  ;;  %s10034_s29 = int_to_ptr.vmem [resolvable:$true] %s3568_s29 }
 0x350   : > { %v10014_v63 = vmul.f32 %v11695_v60, %v9138_v13  ;;  %vm3327_vm2 = vmpackc.even %vm3326_vm14, %vm3325_vm4  ;;  %v1669_v49 = vmul.f32 %v1349_v9, %v9337_v61  ;;  %v1014_v23 = vadd.f32 %v1006_v56, %v997_v53  ;;  %v11696_v28 = vld [vmem:[#allocation120_spill] sm:$0xff]  ;;  %v10023_v22 = vmul.f32 %v11697_v48, %v9138_v13  ;;  %v11698_v58 = vld [vmem:[#allocation59_spill] sm:$0xff]  ;;  %s4543_s14 = scalar_lea.vmem %s10034_s29, 256  ;;  %p4550_p2 = scmp.lt.s32.totalorder %s10034_s29, %s10034_s29 }
 0x351   : > { %v10019_v33 = vmul.f32 %v11696_v28, %v9138_v13  ;;  %vm3329_vm1 = vmand %vm9814_vm13, %vm3327_vm2  ;;  %v3012_v27 = vmul.f32 %v2692_v26, %v9337_v61  ;;  %v998_v54 = vmul.f32 %v11658_v50, %v683_v11  ;;  %v1007_v18 = vmul.f32 %v11698_v58, %v9138_v13  ;;  %v11699_v17 = vld [vmem:[#allocation133_spill] sm:$0xff]  ;;  %v11700_v3 = vld [vmem:[#allocation110_spill] sm:$0xff]  ;;  %p4544_p6 = scmp.ne.s32.totalorder %s10034_s29, %s4543_s14  ;;  %p4551_p1 = scmp.lt.s32.totalorder %s4543_s14, %s4543_s14 }
 0x352   : > { %v3508_v4 = vsel %vm3329_vm1, 16843009, %v10853_v40  ;;  %vm1703_vm13 = vmpackc.even %vm1702_vm6, %vm1702_vm6  ;;  %v1685_v2 = vadd.f32 %v1677_v35, %v1669_v49  ;;  %v1334_v6 = vmul.f32 %v9337_v61, %v1014_v23  ;;  %v10046_v44 = vmul.f32 %v11699_v17, %v9138_v13  ;;  %v11702_v0 = vld [vmem:[#allocation107_spill] sm:$0xff] }
 0x353   : > { %3510 = vst [vmem:[#allocation19 + $0x8] sm:$0xff] %v3508_v4  ;;  %vm11701_vm12 = vnez %v11700_v3  ;;  %v1712_v39 = vsel %vm1703_vm13, 16843009, %v10853_v40  ;;  %v3028_v14 = vadd.f32 %v11702_v0, %v3012_v27  ;;  %v3439_v55 = vtrunc.f32 %v3987_v24  ;;  %v11705_v52 = vld [vmem:[#allocation87_spill] sm:$0xff]  ;;  %p4545_p9 = pnand %p4544_p6, %p11600_p11  ;;  %p4552_p10 = por %p4551_p1, %p4550_p2 }
 0x354   : > { %vm1704_vm7 = vmpackc.low %vm11701_vm12, %vm11701_vm12  ;;  %v1015_v43 = vadd.f32 %v1007_v18, %v998_v54  ;;  %v1720_v12 = vunpack.c.0.s8 %v1712_v39  ;;  %v2005_v29 = vmul.f32 %v1685_v2, %v9337_v61  ;;  %v1350_v62 = vadd.f32 %v1342_v30, %v1334_v6 }
 0x355   : > { %vm10053_vm0 = vmpackc.even %vm1704_vm7, %vm1704_vm7  ;;  %v1343_v38 = vmul.f32 %v11705_v52, %v9138_v13  ;;  %p4546_p4 = pneg %p4545_p9 }
 0x357   : > { %p4553_p8 = pnand %p4552_p10, %p4546_p4 }
 0x359   : > { %4556 = shalt.err (!%p4553_p8)
}
 0x35a   : > { %s4557_s17 = scalar_lea.hbm %s10520_s10, 256 }
 0x35b   : > { %p4558_p13 = scmp.ne.s32.totalorder %s10520_s10, %s4557_s17  ;;  %p4563_p7 = scmp.lt.u32.totalorder %s4557_s17, %s10520_s10 }
 0x35d   : > { %p4559_p0 = pnand %p4558_p13, %p11600_p11 }
 0x35f   : > { %p4560_p5 = pneg %p4559_p0 }
 0x361   : > { %p4565_p3 = pnand %p4563_p7, %p4560_p5 }
 0x363   : > { %4568 = shalt.err (!%p4565_p3)
}
 0x364   : > { %4046 = dma.vmem_to_hbm [thread:$0]  (%p11600_p11), %s10034_s29, 256, %s10520_s10, [#allocation20]   ;;  %v1713_v36 = vsel %vm10053_vm0, 16843009, %v10853_v40  ;;  %v11706_v37 = vld [vmem:[#allocation66_spill] sm:$0xff]  ;;  %v3348_v53 = vmul.f32 %v3028_v14, %v9337_v61  ;;  %v10091_v7 = vmul.f32 %v3987_v24, %v9138_v13  ;;  %v1335_v9 = vmul.f32 %v9337_v61, %v1015_v43  ;;  %v11708_v42 = vld [vmem:[#allocation67_spill] sm:$0xff] }
 0x365   : > { %vm11707_vm6 = vnez %v11706_v37  ;;  %v1721_v10 = vunpack.c.0.s8 %v1713_v36  ;;  %v2021_v56 = vadd.f32 %v9939_v16, %v2005_v29  ;;  %v1670_v11 = vmul.f32 %v1350_v62, %v9337_v61  ;;  %v11710_v23 = vld [vmem:[#allocation113_spill] sm:$0xff]  ;;  %v11712_v58 = vld [vmem:[#allocation68_spill] sm:$0xff]  ;;  %v11714_v2 = vld [vmem:[#allocation127_spill] sm:$0xff]  ;;  %s4748_s27 = smov [#allocation18]  }
 0x366   : > { %vm2026_vm9 = vmpackc.low %vm11707_vm6, %vm11707_vm6  ;;  %v10096_v26 = vpack.c.f32.eXmY %v3439_v55, %v3439_v55, 312  ;;  %vm11709_vm14 = vnez %v11708_v42  ;;  %v3364_v60 = vadd.f32 %v9823_v19, %v3348_v53  ;;  %v1351_v49 = vadd.f32 %v1343_v38, %v1335_v9  ;;  %v11711_v24 = vld [vmem:[#allocation121_spill] sm:$0xff]  ;;  %v684_v17 = vld [vmem:[#allocation21 + $0x30] sm:$0xff]  ;;  %s3554_s29 = sshll.u32 %s4748_s27, 4  ;;  %s3555_s29 = int_to_ptr.vmem [resolvable:$true] %s3554_s29 }
 0x367   : > { %vm2027_vm4 = vmpackc.even %vm2026_vm9, %vm2026_vm9  ;;  %v1679_v28 = vmul.f32 %v11710_v23, %v9138_v13  ;;  %v1726_v48 = vpack.c.b16 %v1721_v10, %v1720_v12  ;;  %v2341_v16 = vmul.f32 %v2021_v56, %v9337_v61  ;;  %v1686_v27 = vadd.f32 %v10014_v63, %v1670_v11  ;;  %v11715_v14 = vld [vmem:[#allocation69_spill] sm:$0xff]  ;;  %v11717_v35 = vld [vmem:[#allocation134_spill] sm:$0xff]  ;;  %s4569_s14 = scalar_lea.vmem %s3555_s29, 256  ;;  %p4576_p4 = scmp.lt.s32.totalorder %s3555_s29, %s3555_s29 }
 0x368   : > { %vm2028_vm2 = vmpackc.low %vm11709_vm14, %vm11709_vm14  ;;  %v2042_v30 = vsel %vm2027_vm4, 16843009, %v10853_v40  ;;  %v2015_v54 = vmul.f32 %v11711_v24, %v9138_v13  ;;  %vm11713_vm13 = vnez %v11712_v58  ;;  %3429 = vst [vmem:[#allocation21 + $0x10] sm:$0xff] %v3364_v60  ;;  %v1671_v4 = vmul.f32 %v1351_v49, %v9337_v61  ;;  %v11718_v37 = vld [vmem:[#allocation116_spill] sm:$0xff]  ;;  %v11724_v58 = vld [vmem:[#allocation118_spill] sm:$0xff]  ;;  %p4570_p12 = scmp.ne.s32.totalorder %s3555_s29, %s4569_s14  ;;  %p4577_p2 = scmp.lt.s32.totalorder %s4569_s14, %s4569_s14 }
 0x369   : > { %vm2029_vm1 = vmpackc.even %vm2028_vm2, %vm2028_vm2  ;;  %v2050_v19 = vunpack.c.0.s8 %v2042_v30  ;;  %v2351_v6 = vmul.f32 %v11714_v2, %v9138_v13  ;;  %v1727_v63 = vpack.c.b8 %v1726_v48, %v9932_v45  ;;  %v2357_v39 = vadd.f32 %v9952_v34, %v2341_v16  ;;  %v11721_v30 = vld [vmem:[#allocation117_spill] sm:$0xff] }
 0x36a   : > { %vm2030_vm12 = vmpackc.low %vm11713_vm13, %vm11713_vm13  ;;  %v2043_v18 = vsel %vm2029_vm1, 16843009, %v10853_v40  ;;  %v2006_v0 = vmul.f32 %v1686_v27, %v9337_v61  ;;  %vm11716_vm0 = vnez %v11715_v14  ;;  %v1687_v43 = vadd.f32 %v1679_v28, %v1671_v4  ;;  %v11723_v27 = vld [vmem:[#allocation88_spill] sm:$0xff]  ;;  %p4571_p6 = pnand %p4570_p12, %p11600_p11  ;;  %p4578_p1 = por %p4577_p2, %p4576_p4 }
 0x36b   : > { %vm2031_vm7 = vmpackc.even %vm2030_vm12, %vm2030_vm12  ;;  %v2051_v3 = vunpack.c.0.s8 %v2043_v18  ;;  %v2687_v12 = vmul.f32 %v11717_v35, %v9138_v13  ;;  %v3988_v45 = vsel %vm9692_vm11, 1.0, %v10871_v21  ;;  %3902 = vst [vmem:[%s5103_s4 + $0x28] sm:$0xff] %v1727_v63  ;;  %v2677_v34 = vmul.f32 %v2357_v39, %v9337_v61  ;;  %v11726_v63 = vld [vmem:[#allocation108_spill] sm:$0xff]  ;;  %v11727_v39 = vld [vmem:[#allocation119_spill] sm:$0xff] }
 0x36c   : > { %vm2032_vm6 = vmpackc.low %vm11716_vm0, %vm11716_vm0  ;;  %v2044_v55 = vsel %vm2031_vm7, 16843009, %v10853_v40  ;;  %v2022_v62 = vadd.f32 %v10019_v33, %v2006_v0  ;;  %v999_v52 = vmul.f32 %v11658_v50, %v684_v17  ;;  %vm11719_vm4 = vnez %v11718_v37  ;;  %v11720_v33 = vld [vmem:[#allocation60_spill] sm:$0xff]  ;;  %v11731_v37 = vld [vmem:[#allocation78_spill] sm:$0xff]  ;;  %p4572_p9 = pneg %p4571_p6 }
 0x36d   : > { %vm2033_vm9 = vmpackc.even %vm2032_vm6, %vm2032_vm6  ;;  %v2052_v29 = vunpack.c.0.s8 %v2044_v55  ;;  %v2058_v36 = vpack.c.b16 %v2051_v3, %v2050_v19  ;;  %v2007_v53 = vmul.f32 %v1687_v43, %v9337_v61  ;;  %v3440_v9 = vtrunc.f32 %v3988_v45  ;;  %v11729_v43 = vld [vmem:[#allocation114_spill] sm:$0xff] }
 0x36e   : > { %v2045_v38 = vsel %vm2033_vm9, 16843009, %v10853_v40  ;;  %vm2034_vm14 = vmpackc.low %vm11719_vm4, %vm11719_vm4  ;;  %v2693_v56 = vadd.f32 %v9990_v5, %v2677_v34  ;;  %v2342_v11 = vmul.f32 %v2022_v62, %v9337_v61  ;;  %v1008_v42 = vmul.f32 %v11720_v33, %v9138_v13  ;;  %v11730_v62 = vld [vmem:[#allocation122_spill] sm:$0xff]  ;;  %v11734_v33 = vld [vmem:[#allocation79_spill] sm:$0xff]  ;;  %p4579_p10 = pnand %p4578_p1, %p4572_p9 }
 0x36f   : > { %v2053_v10 = vunpack.c.0.s8 %v2045_v38  ;;  %vm2035_vm2 = vmpackc.even %vm2034_vm14, %vm2034_vm14  ;;  %vm11722_vm1 = vnez %v11721_v30  ;;  %v2023_v49 = vadd.f32 %v2015_v54, %v2007_v53  ;;  %v10146_v23 = vmul.f32 %v3988_v45, %v9138_v13 }
 0x370   : > { %vm2036_vm13 = vmpackc.low %vm11722_vm1, %vm11722_vm1  ;;  %v2046_v60 = vsel %vm2035_vm2, 16843009, %v10853_v40  ;;  %v10148_v28 = vpack.c.f32.eXmY %v3440_v9, %v3440_v9, 312  ;;  %v3013_v5 = vmul.f32 %v2693_v56, %v9337_v61  ;;  %v2358_v16 = vadd.f32 %v10023_v22, %v2342_v11 }
 0x371   : > { %v2059_v48 = vpack.c.b16 %v2053_v10, %v2052_v29  ;;  %vm2037_vm12 = vmpackc.even %vm2036_vm13, %vm2036_vm13  ;;  %v1344_v24 = vmul.f32 %v11723_v27, %v9138_v13  ;;  %vm11725_vm7 = vnez %v11724_v58  ;;  %v2054_v18 = vunpack.c.0.s8 %v2046_v60 }
 0x372   : > { %vm2038_vm0 = vmpackc.low %vm11725_vm7, %vm11725_vm7  ;;  %v2047_v54 = vsel %vm2037_vm12, 16843009, %v10853_v40  ;;  %v2343_v19 = vmul.f32 %v2023_v49, %v9337_v61  ;;  %v1016_v4 = vadd.f32 %v1008_v42, %v999_v52  ;;  %v3029_v3 = vadd.f32 %v11726_v63, %v3013_v5 }
 0x373   : > { %v2060_v2 = vpack.c.b8 %v2059_v48, %v2058_v36  ;;  %vm2039_vm6 = vmpackc.even %vm2038_vm0, %vm2038_vm0  ;;  %v2055_v17 = vunpack.c.0.s8 %v2047_v54  ;;  %v2678_v22 = vmul.f32 %v2358_v16, %v9337_v61  ;;  %vm11728_vm9 = vnez %v11727_v39  ;;  %v685_v48 = vld [vmem:[#allocation21 + $0x38] sm:$0xff]  ;;  %v11736_v16 = vld [vmem:[#allocation137_spill] sm:$0xff] }
 0x374   : > { %vm2040_vm4 = vmpackc.low %vm11728_vm9, %vm11728_vm9  ;;  %v2048_v0 = vsel %vm2039_vm6, 16843009, %v10853_v40  ;;  %v2359_v14 = vadd.f32 %v2351_v6, %v2343_v19  ;;  %v1336_v55 = vmul.f32 %v9337_v61, %v1016_v4  ;;  %v1680_v35 = vmul.f32 %v11729_v43, %v9138_v13  ;;  %v11738_v54 = vld [vmem:[#allocation80_spill] sm:$0xff] }
 0x375   : > { %3919 = vst [vmem:[%s5103_s4 + $0x30] sm:$0xff] %v2060_v2  ;;  %vm2041_vm14 = vmpackc.even %vm2040_vm4, %vm2040_vm4  ;;  %v2056_v45 = vunpack.c.0.s8 %v2048_v0  ;;  %v3349_v29 = vmul.f32 %v3029_v3, %v9337_v61  ;;  %v2694_v34 = vadd.f32 %v10046_v44, %v2678_v22  ;;  %v2016_v52 = vmul.f32 %v11730_v62, %v9138_v13  ;;  %v11733_v44 = vld [vmem:[#allocation128_spill] sm:$0xff]  ;;  %v11740_v22 = vld [vmem:[#allocation81_spill] sm:$0xff] }
 0x376   : > { %v2049_v38 = vsel %vm2041_vm14, 16843009, %v10853_v40  ;;  %v2061_v36 = vpack.c.b16 %v2055_v17, %v2054_v18  ;;  %vm11732_vm2 = vnez %v11731_v37  ;;  %v2679_v6 = vmul.f32 %v2359_v14, %v9337_v61  ;;  %v11742_v0 = vld [vmem:[#allocation139_spill] sm:$0xff] }
 0x377   : > { %vm2362_vm1 = vmpackc.low %vm11732_vm2, %vm11732_vm2  ;;  %v1352_v53 = vadd.f32 %v1344_v24, %v1336_v55  ;;  %v2057_v9 = vunpack.c.0.s8 %v2049_v38  ;;  %v3365_v10 = vadd.f32 %v9999_v15, %v3349_v29  ;;  %v3014_v56 = vmul.f32 %v2694_v34, %v9337_v61  ;;  %v11737_v24 = vld [vmem:[#allocation135_spill] sm:$0xff] }
 0x378   : > { %vm2363_vm13 = vmpackc.even %vm2362_vm1, %vm2362_vm1  ;;  %v2352_v11 = vmul.f32 %v11733_v44, %v9138_v13  ;;  %vm11735_vm12 = vnez %v11734_v33  ;;  %v2695_v30 = vadd.f32 %v2687_v12, %v2679_v6  ;;  %v3989_v49 = vsel %vm9724_vm15, 1.0, %v10871_v21  ;;  %v11748_v33 = vld [vmem:[#allocation124_spill] sm:$0xff] }
 0x379   : > { %vm2364_vm7 = vmpackc.low %vm11735_vm12, %vm11735_vm12  ;;  %v2378_v42 = vsel %vm2363_vm13, 16843009, %v10853_v40  ;;  %v1672_v60 = vmul.f32 %v1352_v53, %v9337_v61  ;;  %v2062_v15 = vpack.c.b16 %v2057_v9, %v2056_v45  ;;  %3430 = vst [vmem:[#allocation21 + $0x18] sm:$0xff] %v3365_v10  ;;  %v3030_v27 = vadd.f32 %v11736_v16, %v3014_v56  ;;  %v11747_v56 = vld [vmem:[#allocation115_spill] sm:$0xff]  ;;  %v11751_v16 = vld [vmem:[#allocation129_spill] sm:$0xff] }
 0x37a   : > { %vm2365_vm0 = vmpackc.even %vm2364_vm7, %vm2364_vm7  ;;  %v2386_v5 = vunpack.c.0.s8 %v2378_v42  ;;  %v10193_v58 = vmul.f32 %v11737_v24, %v9138_v13  ;;  %vm11739_vm6 = vnez %v11738_v54  ;;  %v3015_v18 = vmul.f32 %v2695_v30, %v9337_v61  ;;  %v11752_v24 = vld [vmem:[#allocation125_spill] sm:$0xff] }
 0x37b   : > { %vm2366_vm9 = vmpackc.low %vm11739_vm6, %vm11739_vm6  ;;  %v2379_v12 = vsel %vm2365_vm0, 16843009, %v10853_v40  ;;  %v1688_v19 = vadd.f32 %v1680_v35, %v1672_v60  ;;  %v3441_v4 = vtrunc.f32 %v3989_v49  ;;  %v2063_v2 = vpack.c.b8 %v2062_v15, %v2061_v36  ;;  %v11744_v36 = vld [vmem:[#allocation111_spill] sm:$0xff] }
 0x37c   : > { %vm2367_vm4 = vmpackc.even %vm2366_vm9, %vm2366_vm9  ;;  %v2387_v17 = vunpack.c.0.s8 %v2379_v12  ;;  %v3350_v63 = vmul.f32 %v3030_v27, %v9337_v61  ;;  %v1000_v3 = vmul.f32 %v11658_v50, %v685_v48  ;;  %vm11741_vm14 = vnez %v11740_v22  ;;  %v11743_v50 = vld [vmem:[#allocation61_spill] sm:$0xff]  ;;  %v11750_v60 = vld [vmem:[#allocation123_spill] sm:$0xff] }
 0x37d   : > { %vm2368_vm2 = vmpackc.low %vm11741_vm14, %vm11741_vm14  ;;  %v2380_v39 = vsel %vm2367_vm4, 16843009, %v10853_v40  ;;  %v3031_v14 = vadd.f32 %v11742_v0, %v3015_v18  ;;  %v2008_v55 = vmul.f32 %v1688_v19, %v9337_v61  ;;  %v10209_v43 = vmul.f32 %v3989_v49, %v9138_v13  ;;  %3920 = vst [vmem:[%s5103_s4 + $0x38] sm:$0xff] %v2063_v2  ;;  %v11754_v12 = vld [vmem:[#allocation136_spill] sm:$0xff] }
 0x37e   : > { %vm2369_vm1 = vmpackc.even %vm2368_vm2, %vm2368_vm2  ;;  %v2388_v35 = vunpack.c.0.s8 %v2380_v39  ;;  %v3366_v45 = vadd.f32 %v10091_v7, %v3350_v63  ;;  %v10213_v29 = vpack.c.f32.eXmY %v3441_v4, %v3441_v4, 312  ;;  %v1009_v34 = vmul.f32 %v11743_v50, %v9138_v13  ;;  %v11746_v7 = vld [vmem:[#allocation89_spill] sm:$0xff] }
 0x37f   : > { %v2381_v62 = vsel %vm2369_vm1, 16843009, %v10853_v40  ;;  %v2394_v38 = vpack.c.b16 %v2387_v17, %v2386_v5  ;;  %vm11745_vm13 = vnez %v11744_v36  ;;  %v3351_v37 = vmul.f32 %v3031_v14, %v9337_v61 }
 0x380   : > { %vm2370_vm12 = vmpackc.low %vm11745_vm13, %vm11745_vm13  ;;  %v2024_v6 = vadd.f32 %v2016_v52, %v2008_v55  ;;  %v2389_v53 = vunpack.c.0.s8 %v2381_v62  ;;  %3431 = vst [vmem:[#allocation21 + $0x20] sm:$0xff] %v3366_v45  ;;  %v1017_v9 = vadd.f32 %v1009_v34, %v1000_v3  ;;  %v1345_v10 = vmul.f32 %v11746_v7, %v9138_v13  ;;  %v11755_v3 = vld [vmem:[#allocation126_spill] sm:$0xff] }
 0x381   : > { %vm2371_vm7 = vmpackc.even %vm2370_vm12, %vm2370_vm12  ;;  %v1681_v44 = vmul.f32 %v11747_v56, %v9138_v13  ;;  %vm11749_vm0 = vnez %v11748_v33  ;;  %v3367_v30 = vadd.f32 %v10146_v23, %v3351_v37  ;;  %v2017_v49 = vmul.f32 %v11750_v60, %v9138_v13  ;;  %v11757_v45 = vld [vmem:[#allocation90_spill] sm:$0xff]  ;;  %v11761_v33 = vld [vmem:[#allocation92_spill] sm:$0xff] }
 0x382   : > { %vm2372_vm6 = vmpackc.low %vm11749_vm0, %vm11749_vm0  ;;  %v2382_v42 = vsel %vm2371_vm7, 16843009, %v10853_v40  ;;  %v2344_v52 = vmul.f32 %v2024_v6, %v9337_v61  ;;  %v2395_v48 = vpack.c.b16 %v2389_v53, %v2388_v35  ;;  %v1337_v5 = vmul.f32 %v9337_v61, %v1017_v9  ;;  %v11759_v6 = vld [vmem:[#allocation91_spill] sm:$0xff] }
 0x383   : > { %vm2373_vm9 = vmpackc.even %vm2372_vm6, %vm2372_vm6  ;;  %v2390_v15 = vunpack.c.0.s8 %v2382_v42  ;;  %v10237_v27 = vmul.f32 %v11751_v16, %v9138_v13  ;;  %vm11753_vm4 = vnez %v11752_v24  ;;  %3432 = vst [vmem:[#allocation21 + $0x28] sm:$0xff] %v3367_v30  ;;  %v10245_v18 = vmul.f32 %v11754_v12, %v9138_v13  ;;  %v11763_v42 = vld [vmem:[#allocation140_spill] sm:$0xff]  ;;  %v11764_v24 = vld [vmem:[#allocation93_spill] sm:$0xff] }
 0x384   : > { %vm2374_vm14 = vmpackc.low %vm11753_vm4, %vm11753_vm4  ;;  %v2383_v23 = vsel %vm2373_vm9, 16843009, %v10853_v40  ;;  %v2360_v54 = vadd.f32 %v2352_v11, %v2344_v52  ;;  %v10250_v19 = vsel %vm9779_vm5, 1.0, %v10871_v21  ;;  %v2396_v4 = vpack.c.b8 %v2395_v48, %v2394_v38 }
 0x385   : > { %vm2375_vm2 = vmpackc.even %vm2374_vm14, %vm2374_vm14  ;;  %v2391_v2 = vunpack.c.0.s8 %v2383_v23  ;;  %v1353_v17 = vadd.f32 %v1345_v10, %v1337_v5  ;;  %v3447_v63 = vpack.c.b8 %v9730_v25, %v9730_v25  ;;  %vm11756_vm1 = vnez %v11755_v3 }
 0x386   : > { %vm2376_vm13 = vmpackc.low %vm11756_vm1, %vm11756_vm1  ;;  %v2384_v11 = vsel %vm2375_vm2, 16843009, %v10853_v40  ;;  %v2680_v22 = vmul.f32 %v2360_v54, %v9337_v61  ;;  %v3442_v39 = vtrunc.f32 %v10250_v19  ;;  %v3453_v21 = vpack.c.b8 %v9775_v20, %v9775_v20  ;;  %3937 = vst [vmem:[%s5103_s4 + $0x40] sm:$0xff] %v2396_v4 }
 0x387   : > { %vm2377_vm12 = vmpackc.even %vm2376_vm13, %vm2376_vm13  ;;  %v2392_v0 = vunpack.c.0.s8 %v2384_v11  ;;  %v2397_v14 = vpack.c.b16 %v2391_v2, %v2390_v15  ;;  %v1673_v55 = vmul.f32 %v1353_v17, %v9337_v61  ;;  %v3459_v25 = vpack.c.b8 %v9906_v57, %v9906_v57 }
 0x388   : > { %v2385_v35 = vsel %vm2377_vm12, 16843009, %v10853_v40  ;;  %vm11758_vm7 = vnez %v11757_v45  ;;  %v2696_v50 = vadd.f32 %v10193_v58, %v2680_v22  ;;  %v3485_v34 = vpack.c.f32.eXmY %v3442_v39, %v3442_v39, 312 }
 0x389   : > { %vm2698_vm0 = vmpackc.low %vm11758_vm7, %vm11758_vm7  ;;  %v3465_v20 = vpack.c.b8 %v10008_v41, %v10008_v41  ;;  %v2393_v62 = vunpack.c.0.s8 %v2385_v35  ;;  %v1689_v38 = vadd.f32 %v1681_v44, %v1673_v55  ;;  %v3491_v36 = vunpack.c.0.s8 %v3447_v63  ;;  %v11766_v63 = vld [vmem:[#allocation36_spill] sm:$0xff] }
 0x38a   : > { %vm2699_vm6 = vmpackc.even %vm2698_vm0, %vm2698_vm0  ;;  %v3492_v37 = vunpack.c.0.s8 %v3453_v21  ;;  %vm11760_vm9 = vnez %v11759_v6  ;;  %v3016_v53 = vmul.f32 %v2696_v50, %v9337_v61  ;;  %v3493_v9 = vunpack.c.0.s8 %v3459_v25 }
 0x38b   : > { %vm2700_vm4 = vmpackc.low %vm11760_vm9, %vm11760_vm9  ;;  %v2714_v57 = vsel %vm2699_vm6, 16843009, %v10853_v40  ;;  %v3494_v7 = vunpack.c.0.s8 %v3465_v20  ;;  %v2398_v58 = vpack.c.b16 %v2393_v62, %v2392_v0  ;;  %v2009_v41 = vmul.f32 %v1689_v38, %v9337_v61 }
 0x38c   : > { %vm2701_vm14 = vmpackc.even %vm2700_vm4, %vm2700_vm4  ;;  %v2722_v10 = vunpack.c.0.s8 %v2714_v57  ;;  %v3499_v56 = vpack.c.b16 %v3492_v37, %v3491_v36  ;;  %vm11762_vm2 = vnez %v11761_v33  ;;  %v3032_v30 = vadd.f32 %v11763_v42, %v3016_v53  ;;  %v11773_v57 = vld [vmem:[#allocation132_spill] sm:$0xff] }
 0x38d   : > { %vm2702_vm1 = vmpackc.low %vm11762_vm2, %vm11762_vm2  ;;  %v2715_v44 = vsel %vm2701_vm14, 16843009, %v10853_v40  ;;  %v3500_v52 = vpack.c.b16 %v3494_v7, %v3493_v9  ;;  %v3471_v60 = vpack.c.b8 %v10096_v26, %v10096_v26  ;;  %v2399_v48 = vpack.c.b8 %v2398_v58, %v2397_v14  ;;  %v11768_v14 = vld [vmem:[#allocation130_spill] sm:$0xff] }
 0x38e   : > { %vm2703_vm13 = vmpackc.even %vm2702_vm1, %vm2702_vm1  ;;  %v2723_v15 = vunpack.c.0.s8 %v2715_v44  ;;  %v2025_v5 = vadd.f32 %v2017_v49, %v2009_v41  ;;  %v3477_v16 = vpack.c.b8 %v10148_v28, %v10148_v28  ;;  %vm11765_vm12 = vnez %v11764_v24 }
 0x38f   : > { %vm2704_vm7 = vmpackc.low %vm11765_vm12, %vm11765_vm12  ;;  %v2716_v23 = vsel %vm2703_vm13, 16843009, %v10853_v40  ;;  %v3352_v54 = vmul.f32 %v3032_v30, %v9337_v61  ;;  %v3501_v12 = vpack.c.b8 %v3500_v52, %v3499_v56  ;;  %v3483_v4 = vpack.c.b8 %v10213_v29, %v10213_v29  ;;  %3938 = vst [vmem:[%s5103_s4 + $0x48] sm:$0xff] %v2399_v48 }
 0x390   : > { %vm2705_vm0 = vmpackc.even %vm2704_vm7, %vm2704_vm7  ;;  %v2724_v26 = vunpack.c.0.s8 %v2716_v23  ;;  %v2730_v2 = vpack.c.b16 %v2723_v15, %v2722_v10  ;;  %v2345_v49 = vmul.f32 %v2025_v5, %v9337_v61  ;;  %v3489_v17 = vpack.c.b8 %v3485_v34, %v3485_v34  ;;  %v11771_v34 = vld [vmem:[#allocation131_spill] sm:$0xff]  ;;  %v11775_v10 = vld [vmem:[#allocation101_spill] sm:$0xff] }
 0x391   : > { %v2717_v28 = vsel %vm2705_vm0, 16843009, %v10853_v40  ;;  %vm11767_vm6 = vnez %v11766_v63  ;;  %v3368_v3 = vadd.f32 %v10209_v43, %v3352_v54  ;;  %3505 = vst [vmem:[#allocation18] sm:$0xff] %v3501_v12  ;;  %v3495_v11 = vunpack.c.0.s8 %v3471_v60 }
 0x392   : > { %vm2706_vm9 = vmpackc.low %vm11767_vm6, %vm11767_vm6  ;;  %v3496_v22 = vunpack.c.0.s8 %v3477_v16  ;;  %v2725_v39 = vunpack.c.0.s8 %v2717_v28  ;;  %v2361_v29 = vadd.f32 %v10237_v27, %v2345_v49  ;;  %v3497_v21 = vunpack.c.0.s8 %v3483_v4  ;;  %v11770_v27 = vld [vmem:[#allocation138_spill] sm:$0xff] }
 0x393   : > { %vm2707_vm4 = vmpackc.even %vm2706_vm9, %vm2706_vm9  ;;  %v3498_v0 = vunpack.c.0.s8 %v3489_v17  ;;  %vm11769_vm14 = vnez %v11768_v14  ;;  %3433 = vst [vmem:[#allocation21 + $0x30] sm:$0xff] %v3368_v3  ;;  %v3025_v50 = vmul.f32 %v11770_v27, %v9138_v13  ;;  %vm11772_vm13 = vnez %v11771_v34 }
 0x394   : > { %vm2708_vm2 = vmpackc.low %vm11769_vm14, %vm11769_vm14  ;;  %v2718_v55 = vsel %vm2707_vm4, 16843009, %v10853_v40  ;;  %v3502_v25 = vpack.c.b16 %v3496_v22, %v3495_v11  ;;  %v2731_v43 = vpack.c.b16 %v2725_v39, %v2724_v26  ;;  %v2681_v35 = vmul.f32 %v2361_v29, %v9337_v61 }
 0x395   : > { %vm2709_vm1 = vmpackc.even %vm2708_vm2, %vm2708_vm2  ;;  %v3503_v45 = vpack.c.b16 %v3498_v0, %v3497_v21  ;;  %v2726_v62 = vunpack.c.0.s8 %v2718_v55  ;;  %vm11774_vm0 = vnez %v11773_v57  ;;  %vm11776_vm4 = vnez %v11775_v10 }
 0x396   : > { %vm2710_vm12 = vmpackc.low %vm11772_vm13, %vm11772_vm13  ;;  %v2719_v20 = vsel %vm2709_vm1, 16843009, %v10853_v40  ;;  %v2732_v38 = vpack.c.b8 %v2731_v43, %v2730_v2  ;;  %v2697_v37 = vadd.f32 %v10245_v18, %v2681_v35 }
 0x397   : > { %vm2711_vm7 = vmpackc.even %vm2710_vm12, %vm2710_vm12  ;;  %v2727_v36 = vunpack.c.0.s8 %v2719_v20  ;;  %v3504_v6 = vpack.c.b8 %v3503_v45, %v3502_v25 }
 0x398   : > { %vm2712_vm6 = vmpackc.low %vm11774_vm0, %vm11774_vm0  ;;  %v2720_v53 = vsel %vm2711_vm7, 16843009, %v10853_v40  ;;  %3955 = vst [vmem:[%s5103_s4 + $0x50] sm:$0xff] %v2732_v38  ;;  %v3017_v7 = vmul.f32 %v2697_v37, %v9337_v61 }
 0x399   : > { %vm2713_vm9 = vmpackc.even %vm2712_vm6, %vm2712_vm6  ;;  %v2728_v9 = vunpack.c.0.s8 %v2720_v53  ;;  %3506 = vst [vmem:[#allocation18 + $0x8] sm:$0xff] %v3504_v6 }
 0x39a   : > { %v2721_v58 = vsel %vm2713_vm9, 16843009, %v10853_v40  ;;  %vm3034_vm14 = vmpackc.low %vm11776_vm4, %vm11776_vm4 }
 0x39b   : > { %4582 = shalt.err (!%p4579_p10)
}
 0x39c   : > { %s11777_s17 = sld [smem:[#allocation145_spill]] }
 0x3a2   : > { %s4583_s3 = scalar_lea.hbm %s11777_s17, 256 }
 0x3a3   : > { %p4584_p8 = scmp.ne.s32.totalorder %s11777_s17, %s4583_s3  ;;  %p4589_p5 = scmp.lt.u32.totalorder %s4583_s3, %s11777_s17 }
 0x3a5   : > { %p4585_p13 = pnand %p4584_p8, %p11600_p11 }
 0x3a7   : > { %p4586_p0 = pneg %p4585_p13 }
 0x3a9   : > { %p4591_p7 = pnand %p4589_p5, %p4586_p0 }
 0x3ab   : > { %4594 = shalt.err (!%p4591_p7)
}
 0x3ac   : > { %4044 = dma.vmem_to_hbm [thread:$0]  (%p11600_p11), %s3555_s29, 256, %s11777_s17, [#allocation17]   ;;  %v2729_v18 = vunpack.c.0.s8 %v2721_v58  ;;  %v2733_v41 = vpack.c.b16 %v2727_v36, %v2726_v62  ;;  %vm3035_vm2 = vmpackc.even %vm3034_vm14, %vm3034_vm14  ;;  %v3033_v56 = vadd.f32 %v3025_v50, %v3017_v7  ;;  %v3361_v33 = vmul.f32 %v10250_v19, %v9138_v13  ;;  %v11778_v44 = vld [vmem:[#allocation102_spill] sm:$0xff]  ;;  %v11780_v60 = vld [vmem:[#allocation103_spill] sm:$0xff] }
 0x3ad   : > { %vm11779_vm1 = vnez %v11778_v44  ;;  %v3050_v42 = vsel %vm3035_vm2, 16843009, %v10853_v40  ;;  %s4749_s29 = smov [#allocation21]   ;;  %vm11781_vm7 = vnez %v11780_v60  ;;  %v11782_v16 = vld [vmem:[#allocation104_spill] sm:$0xff]  ;;  %vm3042_vm2 = vmpackc.low %vm9229_vm3, %vm9229_vm3 }
 0x3ae   : > { %vm3036_vm13 = vmpackc.low %vm11779_vm1, %vm11779_vm1  ;;  %s3582_s14 = sshll.u32 %s4749_s29, 4  ;;  %v2734_v30 = vpack.c.b16 %v2729_v18, %v2728_v9  ;;  %v3353_v52 = vmul.f32 %v3033_v56, %v9337_v61  ;;  %v3058_v19 = vunpack.c.0.s8 %v3050_v42  ;;  %vm11783_vm9 = vnez %v11782_v16  ;;  %s3583_s14 = int_to_ptr.vmem [resolvable:$true] %s3582_s14 }
 0x3af   : > { %vm3037_vm12 = vmpackc.even %vm3036_vm13, %vm3036_vm13  ;;  %s4595_s12 = scalar_lea.vmem %s3583_s14, 1024  ;;  %p4602_p9 = scmp.lt.s32.totalorder %s3583_s14, %s3583_s14 }
 0x3b0   : > { %vm3038_vm0 = vmpackc.low %vm11781_vm7, %vm11781_vm7  ;;  %v3051_v48 = vsel %vm3037_vm12, 16843009, %v10853_v40  ;;  %v2735_v13 = vpack.c.b8 %v2734_v30, %v2733_v41  ;;  %v3369_v5 = vadd.f32 %v3361_v33, %v3353_v52  ;;  %p4596_p3 = scmp.ne.s32.totalorder %s3583_s14, %s4595_s12  ;;  %p4603_p4 = scmp.lt.s32.totalorder %s4595_s12, %s4595_s12 }
 0x3b1   : > { %vm3039_vm6 = vmpackc.even %vm3038_vm0, %vm3038_vm0  ;;  %v3059_v15 = vunpack.c.0.s8 %v3051_v48 }
 0x3b2   : > { %vm3040_vm4 = vmpackc.low %vm11783_vm9, %vm11783_vm9  ;;  %v3052_v24 = vsel %vm3039_vm6, 16843009, %v10853_v40  ;;  %3956 = vst [vmem:[%s5103_s4 + $0x58] sm:$0xff] %v2735_v13  ;;  %p4597_p12 = pnand %p4596_p3, %p11600_p11  ;;  %p4604_p2 = por %p4603_p4, %p4602_p9 }
 0x3b3   : > { %vm3041_vm14 = vmpackc.even %vm3040_vm4, %vm3040_vm4  ;;  %v3060_v61 = vunpack.c.0.s8 %v3052_v24  ;;  %3434 = vst [vmem:[#allocation21 + $0x38] sm:$0xff] %v3369_v5 }
 0x3b4   : > { %v3053_v23 = vsel %vm3041_vm14, 16843009, %v10853_v40  ;;  %p4598_p6 = pneg %p4597_p12 }
 0x3b6   : > { %p4605_p1 = pnand %p4604_p2, %p4598_p6 }
 0x3b8   : > { %4608 = shalt.err (!%p4605_p1)
}
 0x3b9   : > { %s11785_s30 = sld [smem:[#allocation146_spill]] }
 0x3bf   : > { %s4609_s13 = scalar_lea.hbm %s11785_s30, 1024 }
 0x3c0   : > { %p4610_p10 = scmp.ne.s32.totalorder %s11785_s30, %s4609_s13  ;;  %p4615_p0 = scmp.lt.u32.totalorder %s4609_s13, %s11785_s30 }
 0x3c2   : > { %p4611_p8 = pnand %p4610_p10, %p11600_p11 }
 0x3c4   : > { %p4612_p13 = pneg %p4611_p8 }
 0x3c6   : > { %p4617_p5 = pnand %p4615_p0, %p4612_p13 }
 0x3c8   : > { %4620 = shalt.err (!%p4617_p5)
}
 0x3c9   : > { %4048 = dma.vmem_to_hbm [thread:$0]  (%p11600_p11), %s3583_s14, 1024, %s11785_s30, [#allocation20]   ;;  %v3061_v12 = vunpack.c.0.s8 %v3053_v23  ;;  %v3066_v4 = vpack.c.b16 %v3059_v15, %v3058_v19  ;;  %vm3043_vm1 = vmpackc.even %vm3042_vm2, %vm3042_vm2  ;;  %v11786_v26 = vld [vmem:[#allocation51_spill] sm:$0xff]  ;;  %v11788_v17 = vld [vmem:[#allocation52_spill] sm:$0xff]  ;;  %vm11792_vm2 = vnez %v11412_v46 }
 0x3ca   : > { %vm11787_vm13 = vnez %v11786_v26  ;;  %v3054_v2 = vsel %vm3043_vm1, 16843009, %v10853_v40  ;;  %vm11789_vm0 = vnez %v11788_v17  ;;  %v11790_v22 = vld [vmem:[#allocation42_spill] sm:$0xff]  ;;  %vm3370_vm1 = vmpackc.low %vm11792_vm2, %vm11792_vm2  ;;  %s4012_s14 = sshll.u32 %s4723_s24, 11  ;;  %s3598_s9 = sshll.u32 %s5103_s4, 4  ;;  %s10448_s9 = int_to_ptr.vmem [resolvable:$true] %s3598_s9 }
 0x3cb   : > { %vm3044_vm12 = vmpackc.low %vm11787_vm13, %vm11787_vm13  ;;  %v3067_v49 = vpack.c.b16 %v3061_v12, %v3060_v61  ;;  %v3062_v3 = vunpack.c.0.s8 %v3054_v2  ;;  %vm11791_vm3 = vnez %v11790_v22  ;;  %s11795_s18 = sld [smem:[#allocation147_spill]]  ;;  %s3512_s16 = scalar_lea.sflag [#allocation23], %s5079_s11 }
 0x3cc   : > { %vm3045_vm7 = vmpackc.even %vm3044_vm12, %vm3044_vm12  ;;  %vm11793_vm12 = vnez %v11631_v1  ;;  %s4621_s27 = scalar_lea.vmem %s10448_s9, 2048  ;;  %p11796_p3 = scmp.ne.s32.totalorder %s10803_s20, 0 }
 0x3cd   : > { %vm3046_vm6 = vmpackc.low %vm11789_vm0, %vm11789_vm0  ;;  %v3055_v28 = vsel %vm3045_vm7, 16843009, %v10853_v40  ;;  %v3068_v63 = vpack.c.b8 %v3067_v49, %v3066_v4  ;;  %p4622_p7 = scmp.ne.s32.totalorder %s10448_s9, %s4621_s27  ;;  %s4750_s24 = smov [#allocation22]  }
 0x3ce   : > { %vm3047_vm9 = vmpackc.even %vm3046_vm6, %vm3046_vm6  ;;  %v3063_v11 = vunpack.c.0.s8 %v3055_v28  ;;  %vm11794_vm6 = vnez %v11647_v32  ;;  %s4625_s29 = sshll.u32 %s4750_s24, 4  ;;  %s4626_s29 = int_to_ptr.vmem [resolvable:$false] %s4625_s29 }
 0x3cf   : > { %vm3048_vm4 = vmpackc.low %vm11791_vm3, %vm11791_vm3  ;;  %v3056_v39 = vsel %vm3047_vm9, 16843009, %v10853_v40  ;;  %3973 = vst [vmem:[%s5103_s4 + $0x60] sm:$0xff] %v3068_v63  ;;  %p4623_p12 = pnand %p4622_p7, %p11796_p3  ;;  %s4627_s12 = scalar_lea.vmem %s4626_s29, 4096 }
 0x3d0   : > { %vm3049_vm14 = vmpackc.even %vm3048_vm4, %vm3048_vm4  ;;  %v3064_v29 = vunpack.c.0.s8 %v3056_v39  ;;  %v3069_v14 = vpack.c.b16 %v3063_v11, %v3062_v3  ;;  %p4628_p9 = scmp.lt.s32.totalorder %s10448_s9, %s4626_s29  ;;  %p4629_p4 = scmp.lt.s32.totalorder %s4627_s12, %s4621_s27 }
 0x3d1   : > { %v3057_v21 = vsel %vm3049_vm14, 16843009, %v10853_v40  ;;  %vm3371_vm13 = vmpackc.even %vm3370_vm1, %vm3370_vm1  ;;  %s10446_s2 = scalar_lea.hbm %s11795_s18, %s4012_s14  ;;  %p4624_p6 = pneg %p4623_p12 }
 0x3d2   : > { %v3065_v0 = vunpack.c.0.s8 %v3057_v21  ;;  %vm3372_vm7 = vmpackc.low %vm11793_vm12, %vm11793_vm12  ;;  %v3386_v55 = vsel %vm3371_vm13, 16843009, %v10853_v40  ;;  %p4630_p2 = por %p4629_p4, %p4628_p9 }
 0x3d3   : > { %vm3373_vm0 = vmpackc.even %vm3372_vm7, %vm3372_vm7  ;;  %v3394_v35 = vunpack.c.0.s8 %v3386_v55 }
 0x3d4   : > { %v3070_v25 = vpack.c.b16 %v3065_v0, %v3064_v29  ;;  %vm3374_vm9 = vmpackc.low %vm11794_vm6, %vm11794_vm6  ;;  %v3387_v46 = vsel %vm3373_vm0, 16843009, %v10853_v40  ;;  %p4631_p1 = pnand %p4630_p2, %p4624_p6 }
 0x3d5   : > { %vm3375_vm3 = vmpackc.even %vm3374_vm9, %vm3374_vm9  ;;  %v3395_v45 = vunpack.c.0.s8 %v3387_v46 }
 0x3d6   : > { %v3071_v43 = vpack.c.b8 %v3070_v25, %v3069_v14  ;;  %vm3376_vm4 = vmpackc.low %vm11689_vm10, %vm11689_vm10  ;;  %v3388_v1 = vsel %vm3375_vm3, 16843009, %v10853_v40 }
 0x3d7   : > { %vm3377_vm14 = vmpackc.even %vm3376_vm4, %vm3376_vm4  ;;  %v3396_v27 = vunpack.c.0.s8 %v3388_v1  ;;  %v3402_v34 = vpack.c.b16 %v3395_v45, %v3394_v35 }
 0x3d8   : > { %3974 = vst [vmem:[%s5103_s4 + $0x68] sm:$0xff] %v3071_v43  ;;  %v3389_v50 = vsel %vm3377_vm14, 16843009, %v10853_v40  ;;  %vm3378_vm2 = vmpackc.low %vm9683_vm8, %vm9683_vm8 }
 0x3d9   : > { %v3397_v32 = vunpack.c.0.s8 %v3389_v50  ;;  %vm3379_vm1 = vmpackc.even %vm3378_vm2, %vm3378_vm2 }
 0x3da   : > { %vm3380_vm13 = vmpackc.low %vm9692_vm11, %vm9692_vm11  ;;  %v3390_v51 = vsel %vm3379_vm1, 16843009, %v10853_v40 }
 0x3db   : > { %v3403_v20 = vpack.c.b16 %v3397_v32, %v3396_v27  ;;  %vm3381_vm10 = vmpackc.even %vm3380_vm13, %vm3380_vm13  ;;  %v3398_v38 = vunpack.c.0.s8 %v3390_v51 }
 0x3dc   : > { %vm3382_vm12 = vmpackc.low %vm9724_vm15, %vm9724_vm15  ;;  %v3391_v8 = vsel %vm3381_vm10, 16843009, %v10853_v40 }
 0x3dd   : > { %v3404_v62 = vpack.c.b8 %v3403_v20, %v3402_v34  ;;  %vm3383_vm8 = vmpackc.even %vm3382_vm12, %vm3382_vm12  ;;  %v3399_v36 = vunpack.c.0.s8 %v3391_v8 }
 0x3de   : > { %vm3384_vm11 = vmpackc.low %vm9779_vm5, %vm9779_vm5  ;;  %v3392_v31 = vsel %vm3383_vm8, 16843009, %v10853_v40 }
 0x3df   : > { %3991 = vst [vmem:[%s5103_s4 + $0x70] sm:$0xff] %v3404_v62  ;;  %vm3385_vm7 = vmpackc.even %vm3384_vm11, %vm3384_vm11  ;;  %v3400_v59 = vunpack.c.0.s8 %v3392_v31  ;;  %v3405_v57 = vpack.c.b16 %v3399_v36, %v3398_v38 }
 0x3e0   : > { %v3393_v37 = vsel %vm3385_vm7, 16843009, %v10853_v40 }
 0x3e1   : > { %v3401_v6 = vunpack.c.0.s8 %v3393_v37 }
 0x3e3   : > { %v3406_v53 = vpack.c.b16 %v3401_v6, %v3400_v59 }
 0x3e5   : > { %v3407_v47 = vpack.c.b8 %v3406_v53, %v3405_v57 }
 0x3e7   : > { %3992 = vst [vmem:[%s5103_s4 + $0x78] sm:$0xff] %v3407_v47 }
 0x3e8   : > { %4634 = shalt.err (!%p4631_p1)
}
 0x3e9   : > { %s4635_s4 = scalar_lea.hbm %s10446_s2, 2048  ;;  %s4639_s13 = scalar_lea.hbm %s11795_s18, 4096 }
 0x3ea   : > { %p4636_p10 = scmp.ne.s32.totalorder %s10446_s2, %s4635_s4  ;;  %p4640_p0 = scmp.lt.u32.totalorder %s10446_s2, %s11795_s18 }
 0x3eb   : > { %p4641_p5 = scmp.lt.u32.totalorder %s4639_s13, %s4635_s4  ;;  %p4643_p12 = scmp.lt.u32.totalorder %s4635_s4, %s10446_s2 }
 0x3ec   : > { %p4637_p8 = pnand %p4636_p10, %p11796_p3 }
 0x3ed   : > { %p4642_p7 = por %p4641_p5, %p4640_p0 }
 0x3ee   : > { %p4638_p13 = pneg %p4637_p8 }
 0x3ef   : > { %p4644_p6 = por %p4643_p12, %p4642_p7 }
 0x3f1   : > { %p4645_p9 = pnand %p4644_p6, %p4638_p13 }
 0x3f3   : > { %4648 = shalt.err (!%p4645_p9)
}
 0x3f4   : > { %s4751_s27 = smov 256   ;;  %s4752_s12 = smov 16  }
 0x3f5   : > { %4049 = dma.vmem_to_hbm [thread:$0]  (%p11796_p3), %s10448_s9, 2048, %s10446_s2, %s3512_s16, %s4751_s27, %s4751_s27, %s4752_s12  }
 0x3f6   : > { %4694 = dma.done.wait (%p11600_p11), [#allocation4], 1024  }
 0x3f7   : > { %4696 = vsyncadd (%p11600_p11), [#allocation4], 4294966272 }
 0x3f8   : > { %4698 = dma.done.wait (%p11600_p11), [#allocation17], 1280  }
 0x3f9   : > { %4700 = vsyncadd (%p11600_p11), [#allocation17], 4294966016 }
 0x3fa   : > { %4702 = dma.done.wait (%p11600_p11), [#allocation20], 1280  }
 0x3fb   : > { %4704 = vsyncadd (%p11600_p11), [#allocation20], 4294966016 }
 0x3fc PF: > { %s3633_s20 = sand.u32 1, %s4711_s21   ;;  %p11797_p3 = scmp.ne.s32.totalorder %s10804_s0, 0 }
 0x3fd   : > { %p11798_p4 = scmp.ge.s32.totalorder %s4731_s26, 2  ;;  %s3634_s11 = scalar_lea.sflag [#allocation23], %s3633_s20 }
 0x3ff   : > { %p4085_p2 = pnand %p11798_p4, %p11797_p3 }
 0x401   : > { %4706 = dma.done.wait (!%p4085_p2), %s3634_s11, 2048  }
 0x402   : > { %4708 = vsyncadd (!%p4085_p2), %s3634_s11, 4294965248  ;;  %s36_s26 = sadd.s32 1, %s4731_s26   ;;  %s11799_s21 = smov %s4715_s22 }
 0x403   : > { %p33_p1 = scmp.ge.s32.totalorder %s36_s26, 4   ;;  %s11800_s22 = smov %s4719_s23 }
 0x404   : > { %s11801_s23 = smov %s5022_s28  ;;  %s11802_s24 = smov %s4727_s25 }
 0x405   : > { %s11803_s25 = smov %s11805_s19  ;;  %35 = sbr.rel (!%p33_p1) target bundleno = 21 (0x15), region = 187 }
 0x40c   :  { %3639 = vsyncpa [#allocation3], 1 }
 0x40d   :  { %3641 = vsyncpa [#allocation3 + $0x1], 1 }
 0x40e   :  { %3642 = vsyncpa [#allocation8], 1 }
 0x40f   :  { %3643 = vsyncpa [#allocation11], 1 }
 0x410   :  { %3644 = vsyncpa [#allocation14], 1 }
 0x411   :  { %3645 = vsyncpa [#allocation4], 1 }
 0x412   :  { %3647 = vsyncpa [#allocation4 + $0x1], 1 }
 0x413   :  { %3648 = vsyncpa [#allocation17], 1 }
 0x414   :  { %3649 = vsyncpa [#allocation20], 1 }
 0x415   :  { %3650 = vsyncpa [#allocation23], 1 }
 0x416   :  { %3652 = vsyncpa [#allocation23 + $0x1], 1 }
 0x417   :  { %3653 = vsyncpa [#allocation5], 1 }
 0x418   :  { %3655 = vsyncpa [#allocation5 + $0x1], 1 }

</bundles_post_ra>
